<compile_context>
chip_gen: v6e
topology: v6e:2x2x1
jax: 0.10.0
libtpu: 0.0.40
codegen_flags: <defaults>
</compile_context>

<pallas_src>
import functools

import jax
import jax.numpy as jnp
from jax.experimental import pallas as pl
from jax.experimental.pallas import tpu as pltpu


# ----------------------------------------------------------------------------
# Fused kernel: conv(k3)+relu -> conv(k3)+relu -> conv(k3) -> gram -> fc
# One grid step == one batch element.  Layout inside the kernel is (L, C) so the
# channel axis maps onto the 128-lane dimension.
# ----------------------------------------------------------------------------
def _fused_cnn_kernel(x_ref, w1_ref, b1_ref, w2_ref, b2_ref, w3_ref, b3_ref,
                      fc_w_ref, fc_b_ref, o_ref, *, L, matrix_size):
    x = x_ref[0]  # (L, 512) f32, current batch element

    def conv_k3(h, w_ref, b_ref, cin, relu):
        # h: (L, cin).  Zero-pad along L in VMEM, build the im2col matrix
        # (L, 3*cin) = [x[l-1] | x[l] | x[l+1]], single MXU matmul with the
        # pre-flattened (3*cin, cout) weight.
        z = jnp.zeros((1, cin), jnp.float32)
        hp = jnp.concatenate([z, h, z], axis=0)                  # (L+2, cin)
        h3 = jnp.concatenate([hp[0:L], hp[1:L + 1], hp[2:L + 2]], axis=1)  # (L, 3*cin)
        out = jnp.dot(h3, w_ref[...], preferred_element_type=jnp.float32)
        out = out + b_ref[...]                                   # (1, cout) broadcast
        if relu:
            out = jnp.maximum(out, 0.0)
        return out

    h1 = conv_k3(x, w1_ref, b1_ref, 512, relu=True)    # (L, 256)
    h2 = conv_k3(h1, w2_ref, b2_ref, 256, relu=True)   # (L, 128)
    h3 = conv_k3(h2, w3_ref, b3_ref, 128, relu=False)  # (L, ms)

    # Gram matrix: torch bmm(out, out^T)/L in NCL layout == (h3^T @ h3)/L here.
    gram = jnp.dot(h3.T, h3, preferred_element_type=jnp.float32) * (1.0 / L)  # (ms, ms)

    # fc on the row-major-flattened gram WITHOUT an in-kernel (ms,ms)->(1,ms*ms)
    # reshape:  y = fc_b + sum_i gram[i, :] @ fc_w[i*ms:(i+1)*ms, :]
    ms = matrix_size
    acc = fc_b_ref[...]                                          # (1, ms*ms)
    for i in range(ms):
        acc = acc + jnp.dot(gram[i:i + 1, :],
                            fc_w_ref[i * ms:(i + 1) * ms, :],
                            preferred_element_type=jnp.float32)
    o_ref[0] = acc                                               # lane-dense (1, ms*ms)


def cnn_forward(x_ncl, params, matrix_size=32):
    """x_ncl: (B, 512, L) float32  ->  (B, matrix_size, matrix_size)"""
    B, C, L = x_ncl.shape
    assert C == 512
    ms = matrix_size
    x_blc = jnp.swapaxes(x_ncl, 1, 2).astype(jnp.float32)        # (B, L, 512)

    kernel = functools.partial(_fused_cnn_kernel, L=L, matrix_size=ms)

    out_flat = pl.pallas_call(
        kernel,
        out_shape=jax.ShapeDtypeStruct((B, 1, ms * ms), jnp.float32),
        grid=(B,),
        in_specs=[
            pl.BlockSpec((1, L, 512), lambda i: (i, 0, 0)),      # activations
            pl.BlockSpec((3 * 512, 256), lambda i: (0, 0)),      # conv1 weight (im2col)
            pl.BlockSpec((1, 256), lambda i: (0, 0)),            # conv1 bias
            pl.BlockSpec((3 * 256, 128), lambda i: (0, 0)),      # conv2 weight
            pl.BlockSpec((1, 128), lambda i: (0, 0)),            # conv2 bias
            pl.BlockSpec((3 * 128, ms), lambda i: (0, 0)),       # conv3 weight
            pl.BlockSpec((1, ms), lambda i: (0, 0)),             # conv3 bias
            pl.BlockSpec((ms * ms, ms * ms), lambda i: (0, 0)),  # fc weight (in, out)
            pl.BlockSpec((1, ms * ms), lambda i: (0, 0)),        # fc bias
        ],
        out_specs=pl.BlockSpec((1, 1, ms * ms), lambda i: (i, 0, 0)),
        compiler_params=pltpu.CompilerParams(
            dimension_semantics=("parallel",),                   # v7x: one TC per batch elem
            vmem_limit_bytes=32 * 1024 * 1024,
        ),
    )(x_blc,
      params["w1"], params["b1"].reshape(1, 256),
      params["w2"], params["b2"].reshape(1, 128),
      params["w3"], params["b3"].reshape(1, ms),
      params["fc_w"], params["fc_b"].reshape(1, ms * ms))

    return out_flat.reshape(B, ms, ms)


# ----------------------------------------------------------------------------
# Pure-JAX (XLA) reference for correctness checking
# ----------------------------------------------------------------------------
def cnn_reference(x_ncl, params, matrix_size=32):
    ms = matrix_size

    def conv(x, w_flat, b, cin, cout):
        w = w_flat.reshape(3, cin, cout)                 # (K, Cin, Cout)
        w_oik = jnp.transpose(w, (2, 1, 0))              # (Cout, Cin, K) - torch layout
        y = jax.lax.conv_general_dilated(
            x, w_oik, window_strides=(1,), padding=((1, 1),),
            dimension_numbers=("NCH", "OIH", "NCH"))
        return y + b[None, :, None]

    h = jax.nn.relu(conv(x_ncl, params["w1"], params["b1"], 512, 256))
    h = jax.nn.relu(conv(h, params["w2"], params["b2"], 256, 128))
    h = conv(h, params["w3"], params["b3"], 128, ms)     # (B, ms, L)
    B, _, L = h.shape
    gram = jnp.einsum("bcl,bdl->bcd", h, h) / L          # (B, ms, ms)
    y = gram.reshape(B, ms * ms) @ params["fc_w"] + params["fc_b"]
    return y.reshape(B, ms, ms)


# ----------------------------------------------------------------------------
# Deterministic synthetic parameters (shapes match the torch module; conv
# weights stored pre-flattened as (3*Cin, Cout) for the im2col matmul).
# ----------------------------------------------------------------------------
def init_params(key, matrix_size=32):
    ms = matrix_size
    ks = jax.random.split(key, 8)

    def w(k, shape, fan_in):
        return (jax.random.normal(k, shape, jnp.float32) / jnp.sqrt(fan_in)).astype(jnp.float32)

    return {
        "w1": w(ks[0], (3, 512, 256), 3 * 512).reshape(3 * 512, 256),
        "b1": 0.01 * jax.random.normal(ks[4], (256,), jnp.float32),
        "w2": w(ks[1], (3, 256, 128), 3 * 256).reshape(3 * 256, 128),
        "b2": 0.01 * jax.random.normal(ks[5], (128,), jnp.float32),
        "w3": w(ks[2], (3, 128, ms), 3 * 128).reshape(3 * 128, ms),
        "b3": 0.01 * jax.random.normal(ks[6], (ms,), jnp.float32),
        "fc_w": w(ks[3], (ms * ms, ms * ms), ms * ms),
        "fc_b": 0.01 * jax.random.normal(ks[7], (ms * ms,), jnp.float32),
    }


if __name__ == "__main__":
    B, C, L = 2, 512, 16
    matrix_size = 32

    key = jax.random.PRNGKey(0)
    kx, kp = jax.random.split(key)
    x = jax.random.normal(kx, (B, C, L), jnp.float32)
    params = init_params(kp, matrix_size=matrix_size)

    out = cnn_forward(x, params, matrix_size=matrix_size)
    jax.block_until_ready(out)

    assert out.shape == (B, matrix_size, matrix_size)
    assert bool(jnp.all(jnp.isfinite(out)))

    ref = cnn_reference(x, params, matrix_size=matrix_size)
    jax.block_until_ready(ref)
    assert bool(jnp.allclose(out, ref, rtol=1e-3, atol=1e-3)), \
        f"max abs err = {float(jnp.max(jnp.abs(out - ref)))}"

    print("KERNEL_OK")
</pallas_src>

<mosaic_0001>
module attributes {stable_mosaic.version = 11 : i64} {
  func.func @_fused_cnn_kernel(%arg0: i32, %arg1: memref<1x16x512xf32, #tpu.memory_space<vmem>>, %arg2: memref<1536x256xf32, #tpu.memory_space<vmem>>, %arg3: memref<1x256xf32, #tpu.memory_space<vmem>>, %arg4: memref<768x128xf32, #tpu.memory_space<vmem>>, %arg5: memref<1x128xf32, #tpu.memory_space<vmem>>, %arg6: memref<384x32xf32, #tpu.memory_space<vmem>>, %arg7: memref<1x32xf32, #tpu.memory_space<vmem>>, %arg8: memref<1024x1024xf32, #tpu.memory_space<vmem>>, %arg9: memref<1x1024xf32, #tpu.memory_space<vmem>>, %arg10: memref<1x1x1024xf32, #tpu.memory_space<vmem>>) attributes {dimension_semantics = [#tpu.dimension_semantics<parallel>], iteration_bounds = array<i64: 2>, scalar_prefetch = 0 : i64, scratch_operands = 0 : i64, tpu.core_type = #tpu.core_type<tc>, window_params = [{transform_indices = @transform_0, window_bounds = array<i64: 1, 16, 512>}, {pipeline_mode = #tpu.pipeline_mode<synchronous>, transform_indices = @transform_1, window_bounds = array<i64: 1536, 256>}, {pipeline_mode = #tpu.pipeline_mode<synchronous>, transform_indices = @transform_2, window_bounds = array<i64: 1, 256>}, {pipeline_mode = #tpu.pipeline_mode<synchronous>, transform_indices = @transform_3, window_bounds = array<i64: 768, 128>}, {pipeline_mode = #tpu.pipeline_mode<synchronous>, transform_indices = @transform_4, window_bounds = array<i64: 1, 128>}, {pipeline_mode = #tpu.pipeline_mode<synchronous>, transform_indices = @transform_5, window_bounds = array<i64: 384, 32>}, {pipeline_mode = #tpu.pipeline_mode<synchronous>, transform_indices = @transform_6, window_bounds = array<i64: 1, 32>}, {pipeline_mode = #tpu.pipeline_mode<synchronous>, transform_indices = @transform_7, window_bounds = array<i64: 1024, 1024>}, {pipeline_mode = #tpu.pipeline_mode<synchronous>, transform_indices = @transform_8, window_bounds = array<i64: 1, 1024>}, {transform_indices = @transform_9, window_bounds = array<i64: 1, 1, 1024>}]} {
    %c0 = arith.constant 0 : index
    %c0_0 = arith.constant 0 : index
    %c0_1 = arith.constant 0 : index
    %0 = vector.load %arg1[%c0, %c0_0, %c0_1] : memref<1x16x512xf32, #tpu.memory_space<vmem>>, vector<1x16x512xf32>
    %1 = vector.shape_cast %0 : vector<1x16x512xf32> to vector<16x512xf32>
    %cst = arith.constant 0.000000e+00 : f32
    %2 = vector.broadcast %cst : f32 to vector<1x512xf32>
    %3 = tpu.concatenate %2, %1, %2 in 0 : vector<1x512xf32>, vector<16x512xf32>, vector<1x512xf32> -> vector<18x512xf32>
    %4 = vector.extract_strided_slice %3 {offsets = [0, 0], sizes = [16, 512], strides = [1, 1]} : vector<18x512xf32> to vector<16x512xf32>
    %5 = vector.extract_strided_slice %3 {offsets = [1, 0], sizes = [16, 512], strides = [1, 1]} : vector<18x512xf32> to vector<16x512xf32>
    %6 = vector.extract_strided_slice %3 {offsets = [2, 0], sizes = [16, 512], strides = [1, 1]} : vector<18x512xf32> to vector<16x512xf32>
    %7 = tpu.concatenate %4, %5, %6 in 1 : vector<16x512xf32>, vector<16x512xf32>, vector<16x512xf32> -> vector<16x1536xf32>
    %c0_2 = arith.constant 0 : index
    %c0_3 = arith.constant 0 : index
    %8 = vector.load %arg2[%c0_2, %c0_3] : memref<1536x256xf32, #tpu.memory_space<vmem>>, vector<1536x256xf32>
    %cst_4 = arith.constant dense<0.000000e+00> : vector<16x256xf32>
    %9 = tpu.matmul %7, %8, %cst_4 {dimension_numbers = #tpu.dot_dimension_numbers<[1], [0], [0], [1], [0, 0, 1, 1], [], []>} : vector<16x1536xf32>, vector<1536x256xf32>, vector<16x256xf32> -> vector<16x256xf32>
    %c0_5 = arith.constant 0 : index
    %c0_6 = arith.constant 0 : index
    %10 = vector.load %arg3[%c0_5, %c0_6] : memref<1x256xf32, #tpu.memory_space<vmem>>, vector<1x256xf32>
    %11 = vector.broadcast %10 : vector<1x256xf32> to vector<16x256xf32>
    %12 = arith.addf %9, %11 : vector<16x256xf32>
    %cst_7 = arith.constant 0.000000e+00 : f32
    %13 = vector.broadcast %cst_7 : f32 to vector<16x256xf32>
    %14 = arith.maximumf %12, %13 : vector<16x256xf32>
    %cst_8 = arith.constant 0.000000e+00 : f32
    %15 = vector.broadcast %cst_8 : f32 to vector<1x256xf32>
    %16 = tpu.concatenate %15, %14, %15 in 0 : vector<1x256xf32>, vector<16x256xf32>, vector<1x256xf32> -> vector<18x256xf32>
    %17 = vector.extract_strided_slice %16 {offsets = [0, 0], sizes = [16, 256], strides = [1, 1]} : vector<18x256xf32> to vector<16x256xf32>
    %18 = vector.extract_strided_slice %16 {offsets = [1, 0], sizes = [16, 256], strides = [1, 1]} : vector<18x256xf32> to vector<16x256xf32>
    %19 = vector.extract_strided_slice %16 {offsets = [2, 0], sizes = [16, 256], strides = [1, 1]} : vector<18x256xf32> to vector<16x256xf32>
    %20 = tpu.concatenate %17, %18, %19 in 1 : vector<16x256xf32>, vector<16x256xf32>, vector<16x256xf32> -> vector<16x768xf32>
    %c0_9 = arith.constant 0 : index
    %c0_10 = arith.constant 0 : index
    %21 = vector.load %arg4[%c0_9, %c0_10] : memref<768x128xf32, #tpu.memory_space<vmem>>, vector<768x128xf32>
    %cst_11 = arith.constant dense<0.000000e+00> : vector<16x128xf32>
    %22 = tpu.matmul %20, %21, %cst_11 {dimension_numbers = #tpu.dot_dimension_numbers<[1], [0], [0], [1], [0, 0, 1, 1], [], []>} : vector<16x768xf32>, vector<768x128xf32>, vector<16x128xf32> -> vector<16x128xf32>
    %c0_12 = arith.constant 0 : index
    %c0_13 = arith.constant 0 : index
    %23 = vector.load %arg5[%c0_12, %c0_13] : memref<1x128xf32, #tpu.memory_space<vmem>>, vector<1x128xf32>
    %24 = vector.broadcast %23 : vector<1x128xf32> to vector<16x128xf32>
    %25 = arith.addf %22, %24 : vector<16x128xf32>
    %cst_14 = arith.constant 0.000000e+00 : f32
    %26 = vector.broadcast %cst_14 : f32 to vector<16x128xf32>
    %27 = arith.maximumf %25, %26 : vector<16x128xf32>
    %cst_15 = arith.constant 0.000000e+00 : f32
    %28 = vector.broadcast %cst_15 : f32 to vector<1x128xf32>
    %29 = tpu.concatenate %28, %27, %28 in 0 : vector<1x128xf32>, vector<16x128xf32>, vector<1x128xf32> -> vector<18x128xf32>
    %30 = vector.extract_strided_slice %29 {offsets = [0, 0], sizes = [16, 128], strides = [1, 1]} : vector<18x128xf32> to vector<16x128xf32>
    %31 = vector.extract_strided_slice %29 {offsets = [1, 0], sizes = [16, 128], strides = [1, 1]} : vector<18x128xf32> to vector<16x128xf32>
    %32 = vector.extract_strided_slice %29 {offsets = [2, 0], sizes = [16, 128], strides = [1, 1]} : vector<18x128xf32> to vector<16x128xf32>
    %33 = tpu.concatenate %30, %31, %32 in 1 : vector<16x128xf32>, vector<16x128xf32>, vector<16x128xf32> -> vector<16x384xf32>
    %c0_16 = arith.constant 0 : index
    %c0_17 = arith.constant 0 : index
    %34 = vector.load %arg6[%c0_16, %c0_17] : memref<384x32xf32, #tpu.memory_space<vmem>>, vector<384x32xf32>
    %cst_18 = arith.constant dense<0.000000e+00> : vector<16x32xf32>
    %35 = tpu.matmul %33, %34, %cst_18 {dimension_numbers = #tpu.dot_dimension_numbers<[1], [0], [0], [1], [0, 0, 1, 1], [], []>} : vector<16x384xf32>, vector<384x32xf32>, vector<16x32xf32> -> vector<16x32xf32>
    %c0_19 = arith.constant 0 : index
    %c0_20 = arith.constant 0 : index
    %36 = vector.load %arg7[%c0_19, %c0_20] : memref<1x32xf32, #tpu.memory_space<vmem>>, vector<1x32xf32>
    %37 = vector.broadcast %36 : vector<1x32xf32> to vector<16x32xf32>
    %38 = arith.addf %35, %37 : vector<16x32xf32>
    %39 = tpu.transpose %38, [1, 0] : vector<16x32xf32> -> vector<32x16xf32>
    %cst_21 = arith.constant dense<0.000000e+00> : vector<32x32xf32>
    %40 = tpu.matmul %39, %38, %cst_21 {dimension_numbers = #tpu.dot_dimension_numbers<[1], [0], [0], [1], [0, 0, 1, 1], [], []>} : vector<32x16xf32>, vector<16x32xf32>, vector<32x32xf32> -> vector<32x32xf32>
    %cst_22 = arith.constant 6.250000e-02 : f32
    %41 = vector.broadcast %cst_22 : f32 to vector<32x32xf32>
    %42 = arith.mulf %40, %41 : vector<32x32xf32>
    %c0_23 = arith.constant 0 : index
    %c0_24 = arith.constant 0 : index
    %43 = vector.load %arg9[%c0_23, %c0_24] : memref<1x1024xf32, #tpu.memory_space<vmem>>, vector<1x1024xf32>
    %44 = vector.extract_strided_slice %42 {offsets = [0, 0], sizes = [1, 32], strides = [1, 1]} : vector<32x32xf32> to vector<1x32xf32>
    %c0_25 = arith.constant 0 : index
    %c0_26 = arith.constant 0 : index
    %45 = vector.load %arg8[%c0_25, %c0_26] : memref<1024x1024xf32, #tpu.memory_space<vmem>>, vector<32x1024xf32>
    %cst_27 = arith.constant dense<0.000000e+00> : vector<1x1024xf32>
    %46 = tpu.matmul %44, %45, %cst_27 {dimension_numbers = #tpu.dot_dimension_numbers<[1], [0], [0], [1], [0, 0, 1, 1], [], []>} : vector<1x32xf32>, vector<32x1024xf32>, vector<1x1024xf32> -> vector<1x1024xf32>
    %47 = arith.addf %43, %46 : vector<1x1024xf32>
    %48 = vector.extract_strided_slice %42 {offsets = [1, 0], sizes = [1, 32], strides = [1, 1]} : vector<32x32xf32> to vector<1x32xf32>
    %c32 = arith.constant 32 : index
    %c0_28 = arith.constant 0 : index
    %49 = vector.load %arg8[%c32, %c0_28] : memref<1024x1024xf32, #tpu.memory_space<vmem>>, vector<32x1024xf32>
    %cst_29 = arith.constant dense<0.000000e+00> : vector<1x1024xf32>
    %50 = tpu.matmul %48, %49, %cst_29 {dimension_numbers = #tpu.dot_dimension_numbers<[1], [0], [0], [1], [0, 0, 1, 1], [], []>} : vector<1x32xf32>, vector<32x1024xf32>, vector<1x1024xf32> -> vector<1x1024xf32>
    %51 = arith.addf %47, %50 : vector<1x1024xf32>
    %52 = vector.extract_strided_slice %42 {offsets = [2, 0], sizes = [1, 32], strides = [1, 1]} : vector<32x32xf32> to vector<1x32xf32>
    %c64 = arith.constant 64 : index
    %c0_30 = arith.constant 0 : index
    %53 = vector.load %arg8[%c64, %c0_30] : memref<1024x1024xf32, #tpu.memory_space<vmem>>, vector<32x1024xf32>
    %cst_31 = arith.constant dense<0.000000e+00> : vector<1x1024xf32>
    %54 = tpu.matmul %52, %53, %cst_31 {dimension_numbers = #tpu.dot_dimension_numbers<[1], [0], [0], [1], [0, 0, 1, 1], [], []>} : vector<1x32xf32>, vector<32x1024xf32>, vector<1x1024xf32> -> vector<1x1024xf32>
    %55 = arith.addf %51, %54 : vector<1x1024xf32>
    %56 = vector.extract_strided_slice %42 {offsets = [3, 0], sizes = [1, 32], strides = [1, 1]} : vector<32x32xf32> to vector<1x32xf32>
    %c96 = arith.constant 96 : index
    %c0_32 = arith.constant 0 : index
    %57 = vector.load %arg8[%c96, %c0_32] : memref<1024x1024xf32, #tpu.memory_space<vmem>>, vector<32x1024xf32>
    %cst_33 = arith.constant dense<0.000000e+00> : vector<1x1024xf32>
    %58 = tpu.matmul %56, %57, %cst_33 {dimension_numbers = #tpu.dot_dimension_numbers<[1], [0], [0], [1], [0, 0, 1, 1], [], []>} : vector<1x32xf32>, vector<32x1024xf32>, vector<1x1024xf32> -> vector<1x1024xf32>
    %59 = arith.addf %55, %58 : vector<1x1024xf32>
    %60 = vector.extract_strided_slice %42 {offsets = [4, 0], sizes = [1, 32], strides = [1, 1]} : vector<32x32xf32> to vector<1x32xf32>
    %c128 = arith.constant 128 : index
    %c0_34 = arith.constant 0 : index
    %61 = vector.load %arg8[%c128, %c0_34] : memref<1024x1024xf32, #tpu.memory_space<vmem>>, vector<32x1024xf32>
    %cst_35 = arith.constant dense<0.000000e+00> : vector<1x1024xf32>
    %62 = tpu.matmul %60, %61, %cst_35 {dimension_numbers = #tpu.dot_dimension_numbers<[1], [0], [0], [1], [0, 0, 1, 1], [], []>} : vector<1x32xf32>, vector<32x1024xf32>, vector<1x1024xf32> -> vector<1x1024xf32>
    %63 = arith.addf %59, %62 : vector<1x1024xf32>
    %64 = vector.extract_strided_slice %42 {offsets = [5, 0], sizes = [1, 32], strides = [1, 1]} : vector<32x32xf32> to vector<1x32xf32>
    %c160 = arith.constant 160 : index
    %c0_36 = arith.constant 0 : index
    %65 = vector.load %arg8[%c160, %c0_36] : memref<1024x1024xf32, #tpu.memory_space<vmem>>, vector<32x1024xf32>
    %cst_37 = arith.constant dense<0.000000e+00> : vector<1x1024xf32>
    %66 = tpu.matmul %64, %65, %cst_37 {dimension_numbers = #tpu.dot_dimension_numbers<[1], [0], [0], [1], [0, 0, 1, 1], [], []>} : vector<1x32xf32>, vector<32x1024xf32>, vector<1x1024xf32> -> vector<1x1024xf32>
    %67 = arith.addf %63, %66 : vector<1x1024xf32>
    %68 = vector.extract_strided_slice %42 {offsets = [6, 0], sizes = [1, 32], strides = [1, 1]} : vector<32x32xf32> to vector<1x32xf32>
    %c192 = arith.constant 192 : index
    %c0_38 = arith.constant 0 : index
    %69 = vector.load %arg8[%c192, %c0_38] : memref<1024x1024xf32, #tpu.memory_space<vmem>>, vector<32x1024xf32>
    %cst_39 = arith.constant dense<0.000000e+00> : vector<1x1024xf32>
    %70 = tpu.matmul %68, %69, %cst_39 {dimension_numbers = #tpu.dot_dimension_numbers<[1], [0], [0], [1], [0, 0, 1, 1], [], []>} : vector<1x32xf32>, vector<32x1024xf32>, vector<1x1024xf32> -> vector<1x1024xf32>
    %71 = arith.addf %67, %70 : vector<1x1024xf32>
    %72 = vector.extract_strided_slice %42 {offsets = [7, 0], sizes = [1, 32], strides = [1, 1]} : vector<32x32xf32> to vector<1x32xf32>
    %c224 = arith.constant 224 : index
    %c0_40 = arith.constant 0 : index
    %73 = vector.load %arg8[%c224, %c0_40] : memref<1024x1024xf32, #tpu.memory_space<vmem>>, vector<32x1024xf32>
    %cst_41 = arith.constant dense<0.000000e+00> : vector<1x1024xf32>
    %74 = tpu.matmul %72, %73, %cst_41 {dimension_numbers = #tpu.dot_dimension_numbers<[1], [0], [0], [1], [0, 0, 1, 1], [], []>} : vector<1x32xf32>, vector<32x1024xf32>, vector<1x1024xf32> -> vector<1x1024xf32>
    %75 = arith.addf %71, %74 : vector<1x1024xf32>
    %76 = vector.extract_strided_slice %42 {offsets = [8, 0], sizes = [1, 32], strides = [1, 1]} : vector<32x32xf32> to vector<1x32xf32>
    %c256 = arith.constant 256 : index
    %c0_42 = arith.constant 0 : index
    %77 = vector.load %arg8[%c256, %c0_42] : memref<1024x1024xf32, #tpu.memory_space<vmem>>, vector<32x1024xf32>
    %cst_43 = arith.constant dense<0.000000e+00> : vector<1x1024xf32>
    %78 = tpu.matmul %76, %77, %cst_43 {dimension_numbers = #tpu.dot_dimension_numbers<[1], [0], [0], [1], [0, 0, 1, 1], [], []>} : vector<1x32xf32>, vector<32x1024xf32>, vector<1x1024xf32> -> vector<1x1024xf32>
    %79 = arith.addf %75, %78 : vector<1x1024xf32>
    %80 = vector.extract_strided_slice %42 {offsets = [9, 0], sizes = [1, 32], strides = [1, 1]} : vector<32x32xf32> to vector<1x32xf32>
    %c288 = arith.constant 288 : index
    %c0_44 = arith.constant 0 : index
    %81 = vector.load %arg8[%c288, %c0_44] : memref<1024x1024xf32, #tpu.memory_space<vmem>>, vector<32x1024xf32>
    %cst_45 = arith.constant dense<0.000000e+00> : vector<1x1024xf32>
    %82 = tpu.matmul %80, %81, %cst_45 {dimension_numbers = #tpu.dot_dimension_numbers<[1], [0], [0], [1], [0, 0, 1, 1], [], []>} : vector<1x32xf32>, vector<32x1024xf32>, vector<1x1024xf32> -> vector<1x1024xf32>
    %83 = arith.addf %79, %82 : vector<1x1024xf32>
    %84 = vector.extract_strided_slice %42 {offsets = [10, 0], sizes = [1, 32], strides = [1, 1]} : vector<32x32xf32> to vector<1x32xf32>
    %c320 = arith.constant 320 : index
    %c0_46 = arith.constant 0 : index
    %85 = vector.load %arg8[%c320, %c0_46] : memref<1024x1024xf32, #tpu.memory_space<vmem>>, vector<32x1024xf32>
    %cst_47 = arith.constant dense<0.000000e+00> : vector<1x1024xf32>
    %86 = tpu.matmul %84, %85, %cst_47 {dimension_numbers = #tpu.dot_dimension_numbers<[1], [0], [0], [1], [0, 0, 1, 1], [], []>} : vector<1x32xf32>, vector<32x1024xf32>, vector<1x1024xf32> -> vector<1x1024xf32>
    %87 = arith.addf %83, %86 : vector<1x1024xf32>
    %88 = vector.extract_strided_slice %42 {offsets = [11, 0], sizes = [1, 32], strides = [1, 1]} : vector<32x32xf32> to vector<1x32xf32>
    %c352 = arith.constant 352 : index
    %c0_48 = arith.constant 0 : index
    %89 = vector.load %arg8[%c352, %c0_48] : memref<1024x1024xf32, #tpu.memory_space<vmem>>, vector<32x1024xf32>
    %cst_49 = arith.constant dense<0.000000e+00> : vector<1x1024xf32>
    %90 = tpu.matmul %88, %89, %cst_49 {dimension_numbers = #tpu.dot_dimension_numbers<[1], [0], [0], [1], [0, 0, 1, 1], [], []>} : vector<1x32xf32>, vector<32x1024xf32>, vector<1x1024xf32> -> vector<1x1024xf32>
    %91 = arith.addf %87, %90 : vector<1x1024xf32>
    %92 = vector.extract_strided_slice %42 {offsets = [12, 0], sizes = [1, 32], strides = [1, 1]} : vector<32x32xf32> to vector<1x32xf32>
    %c384 = arith.constant 384 : index
    %c0_50 = arith.constant 0 : index
    %93 = vector.load %arg8[%c384, %c0_50] : memref<1024x1024xf32, #tpu.memory_space<vmem>>, vector<32x1024xf32>
    %cst_51 = arith.constant dense<0.000000e+00> : vector<1x1024xf32>
    %94 = tpu.matmul %92, %93, %cst_51 {dimension_numbers = #tpu.dot_dimension_numbers<[1], [0], [0], [1], [0, 0, 1, 1], [], []>} : vector<1x32xf32>, vector<32x1024xf32>, vector<1x1024xf32> -> vector<1x1024xf32>
    %95 = arith.addf %91, %94 : vector<1x1024xf32>
    %96 = vector.extract_strided_slice %42 {offsets = [13, 0], sizes = [1, 32], strides = [1, 1]} : vector<32x32xf32> to vector<1x32xf32>
    %c416 = arith.constant 416 : index
    %c0_52 = arith.constant 0 : index
    %97 = vector.load %arg8[%c416, %c0_52] : memref<1024x1024xf32, #tpu.memory_space<vmem>>, vector<32x1024xf32>
    %cst_53 = arith.constant dense<0.000000e+00> : vector<1x1024xf32>
    %98 = tpu.matmul %96, %97, %cst_53 {dimension_numbers = #tpu.dot_dimension_numbers<[1], [0], [0], [1], [0, 0, 1, 1], [], []>} : vector<1x32xf32>, vector<32x1024xf32>, vector<1x1024xf32> -> vector<1x1024xf32>
    %99 = arith.addf %95, %98 : vector<1x1024xf32>
    %100 = vector.extract_strided_slice %42 {offsets = [14, 0], sizes = [1, 32], strides = [1, 1]} : vector<32x32xf32> to vector<1x32xf32>
    %c448 = arith.constant 448 : index
    %c0_54 = arith.constant 0 : index
    %101 = vector.load %arg8[%c448, %c0_54] : memref<1024x1024xf32, #tpu.memory_space<vmem>>, vector<32x1024xf32>
    %cst_55 = arith.constant dense<0.000000e+00> : vector<1x1024xf32>
    %102 = tpu.matmul %100, %101, %cst_55 {dimension_numbers = #tpu.dot_dimension_numbers<[1], [0], [0], [1], [0, 0, 1, 1], [], []>} : vector<1x32xf32>, vector<32x1024xf32>, vector<1x1024xf32> -> vector<1x1024xf32>
    %103 = arith.addf %99, %102 : vector<1x1024xf32>
    %104 = vector.extract_strided_slice %42 {offsets = [15, 0], sizes = [1, 32], strides = [1, 1]} : vector<32x32xf32> to vector<1x32xf32>
    %c480 = arith.constant 480 : index
    %c0_56 = arith.constant 0 : index
    %105 = vector.load %arg8[%c480, %c0_56] : memref<1024x1024xf32, #tpu.memory_space<vmem>>, vector<32x1024xf32>
    %cst_57 = arith.constant dense<0.000000e+00> : vector<1x1024xf32>
    %106 = tpu.matmul %104, %105, %cst_57 {dimension_numbers = #tpu.dot_dimension_numbers<[1], [0], [0], [1], [0, 0, 1, 1], [], []>} : vector<1x32xf32>, vector<32x1024xf32>, vector<1x1024xf32> -> vector<1x1024xf32>
    %107 = arith.addf %103, %106 : vector<1x1024xf32>
    %108 = vector.extract_strided_slice %42 {offsets = [16, 0], sizes = [1, 32], strides = [1, 1]} : vector<32x32xf32> to vector<1x32xf32>
    %c512 = arith.constant 512 : index
    %c0_58 = arith.constant 0 : index
    %109 = vector.load %arg8[%c512, %c0_58] : memref<1024x1024xf32, #tpu.memory_space<vmem>>, vector<32x1024xf32>
    %cst_59 = arith.constant dense<0.000000e+00> : vector<1x1024xf32>
    %110 = tpu.matmul %108, %109, %cst_59 {dimension_numbers = #tpu.dot_dimension_numbers<[1], [0], [0], [1], [0, 0, 1, 1], [], []>} : vector<1x32xf32>, vector<32x1024xf32>, vector<1x1024xf32> -> vector<1x1024xf32>
    %111 = arith.addf %107, %110 : vector<1x1024xf32>
    %112 = vector.extract_strided_slice %42 {offsets = [17, 0], sizes = [1, 32], strides = [1, 1]} : vector<32x32xf32> to vector<1x32xf32>
    %c544 = arith.constant 544 : index
    %c0_60 = arith.constant 0 : index
    %113 = vector.load %arg8[%c544, %c0_60] : memref<1024x1024xf32, #tpu.memory_space<vmem>>, vector<32x1024xf32>
    %cst_61 = arith.constant dense<0.000000e+00> : vector<1x1024xf32>
    %114 = tpu.matmul %112, %113, %cst_61 {dimension_numbers = #tpu.dot_dimension_numbers<[1], [0], [0], [1], [0, 0, 1, 1], [], []>} : vector<1x32xf32>, vector<32x1024xf32>, vector<1x1024xf32> -> vector<1x1024xf32>
    %115 = arith.addf %111, %114 : vector<1x1024xf32>
    %116 = vector.extract_strided_slice %42 {offsets = [18, 0], sizes = [1, 32], strides = [1, 1]} : vector<32x32xf32> to vector<1x32xf32>
    %c576 = arith.constant 576 : index
    %c0_62 = arith.constant 0 : index
    %117 = vector.load %arg8[%c576, %c0_62] : memref<1024x1024xf32, #tpu.memory_space<vmem>>, vector<32x1024xf32>
    %cst_63 = arith.constant dense<0.000000e+00> : vector<1x1024xf32>
    %118 = tpu.matmul %116, %117, %cst_63 {dimension_numbers = #tpu.dot_dimension_numbers<[1], [0], [0], [1], [0, 0, 1, 1], [], []>} : vector<1x32xf32>, vector<32x1024xf32>, vector<1x1024xf32> -> vector<1x1024xf32>
    %119 = arith.addf %115, %118 : vector<1x1024xf32>
    %120 = vector.extract_strided_slice %42 {offsets = [19, 0], sizes = [1, 32], strides = [1, 1]} : vector<32x32xf32> to vector<1x32xf32>
    %c608 = arith.constant 608 : index
    %c0_64 = arith.constant 0 : index
    %121 = vector.load %arg8[%c608, %c0_64] : memref<1024x1024xf32, #tpu.memory_space<vmem>>, vector<32x1024xf32>
    %cst_65 = arith.constant dense<0.000000e+00> : vector<1x1024xf32>
    %122 = tpu.matmul %120, %121, %cst_65 {dimension_numbers = #tpu.dot_dimension_numbers<[1], [0], [0], [1], [0, 0, 1, 1], [], []>} : vector<1x32xf32>, vector<32x1024xf32>, vector<1x1024xf32> -> vector<1x1024xf32>
    %123 = arith.addf %119, %122 : vector<1x1024xf32>
    %124 = vector.extract_strided_slice %42 {offsets = [20, 0], sizes = [1, 32], strides = [1, 1]} : vector<32x32xf32> to vector<1x32xf32>
    %c640 = arith.constant 640 : index
    %c0_66 = arith.constant 0 : index
    %125 = vector.load %arg8[%c640, %c0_66] : memref<1024x1024xf32, #tpu.memory_space<vmem>>, vector<32x1024xf32>
    %cst_67 = arith.constant dense<0.000000e+00> : vector<1x1024xf32>
    %126 = tpu.matmul %124, %125, %cst_67 {dimension_numbers = #tpu.dot_dimension_numbers<[1], [0], [0], [1], [0, 0, 1, 1], [], []>} : vector<1x32xf32>, vector<32x1024xf32>, vector<1x1024xf32> -> vector<1x1024xf32>
    %127 = arith.addf %123, %126 : vector<1x1024xf32>
    %128 = vector.extract_strided_slice %42 {offsets = [21, 0], sizes = [1, 32], strides = [1, 1]} : vector<32x32xf32> to vector<1x32xf32>
    %c672 = arith.constant 672 : index
    %c0_68 = arith.constant 0 : index
    %129 = vector.load %arg8[%c672, %c0_68] : memref<1024x1024xf32, #tpu.memory_space<vmem>>, vector<32x1024xf32>
    %cst_69 = arith.constant dense<0.000000e+00> : vector<1x1024xf32>
    %130 = tpu.matmul %128, %129, %cst_69 {dimension_numbers = #tpu.dot_dimension_numbers<[1], [0], [0], [1], [0, 0, 1, 1], [], []>} : vector<1x32xf32>, vector<32x1024xf32>, vector<1x1024xf32> -> vector<1x1024xf32>
    %131 = arith.addf %127, %130 : vector<1x1024xf32>
    %132 = vector.extract_strided_slice %42 {offsets = [22, 0], sizes = [1, 32], strides = [1, 1]} : vector<32x32xf32> to vector<1x32xf32>
    %c704 = arith.constant 704 : index
    %c0_70 = arith.constant 0 : index
    %133 = vector.load %arg8[%c704, %c0_70] : memref<1024x1024xf32, #tpu.memory_space<vmem>>, vector<32x1024xf32>
    %cst_71 = arith.constant dense<0.000000e+00> : vector<1x1024xf32>
    %134 = tpu.matmul %132, %133, %cst_71 {dimension_numbers = #tpu.dot_dimension_numbers<[1], [0], [0], [1], [0, 0, 1, 1], [], []>} : vector<1x32xf32>, vector<32x1024xf32>, vector<1x1024xf32> -> vector<1x1024xf32>
    %135 = arith.addf %131, %134 : vector<1x1024xf32>
    %136 = vector.extract_strided_slice %42 {offsets = [23, 0], sizes = [1, 32], strides = [1, 1]} : vector<32x32xf32> to vector<1x32xf32>
    %c736 = arith.constant 736 : index
    %c0_72 = arith.constant 0 : index
    %137 = vector.load %arg8[%c736, %c0_72] : memref<1024x1024xf32, #tpu.memory_space<vmem>>, vector<32x1024xf32>
    %cst_73 = arith.constant dense<0.000000e+00> : vector<1x1024xf32>
    %138 = tpu.matmul %136, %137, %cst_73 {dimension_numbers = #tpu.dot_dimension_numbers<[1], [0], [0], [1], [0, 0, 1, 1], [], []>} : vector<1x32xf32>, vector<32x1024xf32>, vector<1x1024xf32> -> vector<1x1024xf32>
    %139 = arith.addf %135, %138 : vector<1x1024xf32>
    %140 = vector.extract_strided_slice %42 {offsets = [24, 0], sizes = [1, 32], strides = [1, 1]} : vector<32x32xf32> to vector<1x32xf32>
    %c768 = arith.constant 768 : index
    %c0_74 = arith.constant 0 : index
    %141 = vector.load %arg8[%c768, %c0_74] : memref<1024x1024xf32, #tpu.memory_space<vmem>>, vector<32x1024xf32>
    %cst_75 = arith.constant dense<0.000000e+00> : vector<1x1024xf32>
    %142 = tpu.matmul %140, %141, %cst_75 {dimension_numbers = #tpu.dot_dimension_numbers<[1], [0], [0], [1], [0, 0, 1, 1], [], []>} : vector<1x32xf32>, vector<32x1024xf32>, vector<1x1024xf32> -> vector<1x1024xf32>
    %143 = arith.addf %139, %142 : vector<1x1024xf32>
    %144 = vector.extract_strided_slice %42 {offsets = [25, 0], sizes = [1, 32], strides = [1, 1]} : vector<32x32xf32> to vector<1x32xf32>
    %c800 = arith.constant 800 : index
    %c0_76 = arith.constant 0 : index
    %145 = vector.load %arg8[%c800, %c0_76] : memref<1024x1024xf32, #tpu.memory_space<vmem>>, vector<32x1024xf32>
    %cst_77 = arith.constant dense<0.000000e+00> : vector<1x1024xf32>
    %146 = tpu.matmul %144, %145, %cst_77 {dimension_numbers = #tpu.dot_dimension_numbers<[1], [0], [0], [1], [0, 0, 1, 1], [], []>} : vector<1x32xf32>, vector<32x1024xf32>, vector<1x1024xf32> -> vector<1x1024xf32>
    %147 = arith.addf %143, %146 : vector<1x1024xf32>
    %148 = vector.extract_strided_slice %42 {offsets = [26, 0], sizes = [1, 32], strides = [1, 1]} : vector<32x32xf32> to vector<1x32xf32>
    %c832 = arith.constant 832 : index
    %c0_78 = arith.constant 0 : index
    %149 = vector.load %arg8[%c832, %c0_78] : memref<1024x1024xf32, #tpu.memory_space<vmem>>, vector<32x1024xf32>
    %cst_79 = arith.constant dense<0.000000e+00> : vector<1x1024xf32>
    %150 = tpu.matmul %148, %149, %cst_79 {dimension_numbers = #tpu.dot_dimension_numbers<[1], [0], [0], [1], [0, 0, 1, 1], [], []>} : vector<1x32xf32>, vector<32x1024xf32>, vector<1x1024xf32> -> vector<1x1024xf32>
    %151 = arith.addf %147, %150 : vector<1x1024xf32>
    %152 = vector.extract_strided_slice %42 {offsets = [27, 0], sizes = [1, 32], strides = [1, 1]} : vector<32x32xf32> to vector<1x32xf32>
    %c864 = arith.constant 864 : index
    %c0_80 = arith.constant 0 : index
    %153 = vector.load %arg8[%c864, %c0_80] : memref<1024x1024xf32, #tpu.memory_space<vmem>>, vector<32x1024xf32>
    %cst_81 = arith.constant dense<0.000000e+00> : vector<1x1024xf32>
    %154 = tpu.matmul %152, %153, %cst_81 {dimension_numbers = #tpu.dot_dimension_numbers<[1], [0], [0], [1], [0, 0, 1, 1], [], []>} : vector<1x32xf32>, vector<32x1024xf32>, vector<1x1024xf32> -> vector<1x1024xf32>
    %155 = arith.addf %151, %154 : vector<1x1024xf32>
    %156 = vector.extract_strided_slice %42 {offsets = [28, 0], sizes = [1, 32], strides = [1, 1]} : vector<32x32xf32> to vector<1x32xf32>
    %c896 = arith.constant 896 : index
    %c0_82 = arith.constant 0 : index
    %157 = vector.load %arg8[%c896, %c0_82] : memref<1024x1024xf32, #tpu.memory_space<vmem>>, vector<32x1024xf32>
    %cst_83 = arith.constant dense<0.000000e+00> : vector<1x1024xf32>
    %158 = tpu.matmul %156, %157, %cst_83 {dimension_numbers = #tpu.dot_dimension_numbers<[1], [0], [0], [1], [0, 0, 1, 1], [], []>} : vector<1x32xf32>, vector<32x1024xf32>, vector<1x1024xf32> -> vector<1x1024xf32>
    %159 = arith.addf %155, %158 : vector<1x1024xf32>
    %160 = vector.extract_strided_slice %42 {offsets = [29, 0], sizes = [1, 32], strides = [1, 1]} : vector<32x32xf32> to vector<1x32xf32>
    %c928 = arith.constant 928 : index
    %c0_84 = arith.constant 0 : index
    %161 = vector.load %arg8[%c928, %c0_84] : memref<1024x1024xf32, #tpu.memory_space<vmem>>, vector<32x1024xf32>
    %cst_85 = arith.constant dense<0.000000e+00> : vector<1x1024xf32>
    %162 = tpu.matmul %160, %161, %cst_85 {dimension_numbers = #tpu.dot_dimension_numbers<[1], [0], [0], [1], [0, 0, 1, 1], [], []>} : vector<1x32xf32>, vector<32x1024xf32>, vector<1x1024xf32> -> vector<1x1024xf32>
    %163 = arith.addf %159, %162 : vector<1x1024xf32>
    %164 = vector.extract_strided_slice %42 {offsets = [30, 0], sizes = [1, 32], strides = [1, 1]} : vector<32x32xf32> to vector<1x32xf32>
    %c960 = arith.constant 960 : index
    %c0_86 = arith.constant 0 : index
    %165 = vector.load %arg8[%c960, %c0_86] : memref<1024x1024xf32, #tpu.memory_space<vmem>>, vector<32x1024xf32>
    %cst_87 = arith.constant dense<0.000000e+00> : vector<1x1024xf32>
    %166 = tpu.matmul %164, %165, %cst_87 {dimension_numbers = #tpu.dot_dimension_numbers<[1], [0], [0], [1], [0, 0, 1, 1], [], []>} : vector<1x32xf32>, vector<32x1024xf32>, vector<1x1024xf32> -> vector<1x1024xf32>
    %167 = arith.addf %163, %166 : vector<1x1024xf32>
    %168 = vector.extract_strided_slice %42 {offsets = [31, 0], sizes = [1, 32], strides = [1, 1]} : vector<32x32xf32> to vector<1x32xf32>
    %c992 = arith.constant 992 : index
    %c0_88 = arith.constant 0 : index
    %169 = vector.load %arg8[%c992, %c0_88] : memref<1024x1024xf32, #tpu.memory_space<vmem>>, vector<32x1024xf32>
    %cst_89 = arith.constant dense<0.000000e+00> : vector<1x1024xf32>
    %170 = tpu.matmul %168, %169, %cst_89 {dimension_numbers = #tpu.dot_dimension_numbers<[1], [0], [0], [1], [0, 0, 1, 1], [], []>} : vector<1x32xf32>, vector<32x1024xf32>, vector<1x1024xf32> -> vector<1x1024xf32>
    %171 = arith.addf %167, %170 : vector<1x1024xf32>
    %c0_90 = arith.constant 0 : index
    %c0_91 = arith.constant 0 : index
    %c0_92 = arith.constant 0 : index
    %172 = vector.load %arg10[%c0_90, %c0_91, %c0_92] : memref<1x1x1024xf32, #tpu.memory_space<vmem>>, vector<1x1x1024xf32>
    %173 = vector.shape_cast %172 : vector<1x1x1024xf32> to vector<1x1024xf32>
    %174 = vector.shape_cast %171 : vector<1x1024xf32> to vector<1x1x1024xf32>
    tpu.vector_store %arg10[%c0_90, %c0_91, %c0_92], %174 {strides = array<i32>} : memref<1x1x1024xf32, #tpu.memory_space<vmem>>, vector<1x1x1024xf32>,
    return
  }
  func.func @transform_0(%arg0: i32) -> (i32, i32, i32) {
    %c0_i32 = arith.constant 0 : i32
    %c0_i32_0 = arith.constant 0 : i32
    %c0_i32_1 = arith.constant 0 : i32
    return %arg0, %c0_i32, %c0_i32_0 : i32, i32, i32
  }
  func.func @transform_1(%arg0: i32) -> (i32, i32) {
    %c0_i32 = arith.constant 0 : i32
    %c0_i32_0 = arith.constant 0 : i32
    %c0_i32_1 = arith.constant 0 : i32
    return %c0_i32, %c0_i32_0 : i32, i32
  }
  func.func @transform_2(%arg0: i32) -> (i32, i32) {
    %c0_i32 = arith.constant 0 : i32
    %c0_i32_0 = arith.constant 0 : i32
    %c0_i32_1 = arith.constant 0 : i32
    return %c0_i32, %c0_i32_0 : i32, i32
  }
  func.func @transform_3(%arg0: i32) -> (i32, i32) {
    %c0_i32 = arith.constant 0 : i32
    %c0_i32_0 = arith.constant 0 : i32
    %c0_i32_1 = arith.constant 0 : i32
    return %c0_i32, %c0_i32_0 : i32, i32
  }
  func.func @transform_4(%arg0: i32) -> (i32, i32) {
    %c0_i32 = arith.constant 0 : i32
    %c0_i32_0 = arith.constant 0 : i32
    %c0_i32_1 = arith.constant 0 : i32
    return %c0_i32, %c0_i32_0 : i32, i32
  }
  func.func @transform_5(%arg0: i32) -> (i32, i32) {
    %c0_i32 = arith.constant 0 : i32
    %c0_i32_0 = arith.constant 0 : i32
    %c0_i32_1 = arith.constant 0 : i32
    return %c0_i32, %c0_i32_0 : i32, i32
  }
  func.func @transform_6(%arg0: i32) -> (i32, i32) {
    %c0_i32 = arith.constant 0 : i32
    %c0_i32_0 = arith.constant 0 : i32
    %c0_i32_1 = arith.constant 0 : i32
    return %c0_i32, %c0_i32_0 : i32, i32
  }
  func.func @transform_7(%arg0: i32) -> (i32, i32) {
    %c0_i32 = arith.constant 0 : i32
    %c0_i32_0 = arith.constant 0 : i32
    %c0_i32_1 = arith.constant 0 : i32
    return %c0_i32, %c0_i32_0 : i32, i32
  }
  func.func @transform_8(%arg0: i32) -> (i32, i32) {
    %c0_i32 = arith.constant 0 : i32
    %c0_i32_0 = arith.constant 0 : i32
    %c0_i32_1 = arith.constant 0 : i32
    return %c0_i32, %c0_i32_0 : i32, i32
  }
  func.func @transform_9(%arg0: i32) -> (i32, i32, i32) {
    %c0_i32 = arith.constant 0 : i32
    %c0_i32_0 = arith.constant 0 : i32
    %c0_i32_1 = arith.constant 0 : i32
    return %arg0, %c0_i32, %c0_i32_0 : i32, i32, i32
  }
}

</mosaic_0001>

<bundles_post_ra>
// kernel: tpu_custom_call.1
= control target key start
LH: loop header
LB: loop body
LE: loop exit
PB: predicated region body
PF: predicated region fallthrough
CT: control target
= control target key end

     0   :  { %s17297_s0 = inlined_call_operand.hbm [shape: f32[2,16,512], index: 0, kind: input, shape index: {}]   ;;  %s17298_s1 = inlined_call_operand.hbm [shape: f32[1536,256], index: 1, kind: input, shape index: {}]   ;;  %s17299_s2 = inlined_call_operand.hbm [shape: f32[1,256], index: 2, kind: input, shape index: {}]   ;;  %s17300_s3 = inlined_call_operand.hbm [shape: f32[768,128], index: 3, kind: input, shape index: {}]   ;;  %s17301_s4 = inlined_call_operand.hbm [shape: f32[1,128], index: 4, kind: input, shape index: {}]   ;;  %s17302_s5 = inlined_call_operand.vmem [shape: f32[384,32], index: 5, kind: input, shape index: {}]   ;;  %s17303_s6 = inlined_call_operand.hbm [shape: f32[1,32], index: 6, kind: input, shape index: {}]   ;;  %s17304_s7 = inlined_call_operand.hbm [shape: f32[1024,1024], index: 7, kind: input, shape index: {}]   ;;  %s17305_s8 = inlined_call_operand.hbm [shape: f32[1,1024], index: 8, kind: input, shape index: {}]   ;;  %s17306_s9 = inlined_call_operand.hbm [shape: f32[2,1,1024], index: 9, kind: output, shape index: {}]  }
   0x1   :  { %17311 = sst [smem:[#allocation26_spill]] %s17298_s1 }
   0x2   :  { %17312 = sst [smem:[#allocation27_spill]] %s17299_s2 }
   0x3   :  { %17313 = sst [smem:[#allocation28_spill]] %s17300_s3 }
   0x4   :  { %14 = vsyncpa [#allocation3], 0 }
   0x5   :  { %16 = vsyncpa [#allocation3 + $0x1], 0 }
   0x6   :  { %17 = vsyncpa [#allocation6], 0 }
   0x7   :  { %18 = vsyncpa [#allocation9], 0 }
   0x8   :  { %19 = vsyncpa [#allocation12], 0 }
   0x9   :  { %20 = vsyncpa [#allocation15], 0 }
   0xa   :  { %21 = vsyncpa [#allocation4], 0 }
   0xb   :  { %23 = vsyncpa [#allocation4 + $0x1], 0  ;;  %s15307_s30 = smov 0   ;;  %s15309_s10 = smov 0  }
   0xc   :  { %s15311_s11 = smov 0   ;;  %s15313_s12 = smov 0  }
   0xd LB: > { %s15238_s13 = smov [#allocation5]   ;;  %s15328_s15 = sadd.s32 4294967295, %s15236_s12   ;;  %s15236_s12 = sphi %s15313_s12, %s17349_s12   ;;  %s15232_s11 = sphi %s15311_s11, %s17348_s11   ;;  %s15228_s10 = sphi %s15309_s10, %s17347_s10   ;;  %s15224_s30 = sphi %s15307_s30, %s17346_s30  }
   0xe   : > { %s266_s14 = sshll.u32 %s15238_s13, 4  ;;  %p14421_p0 = scmp.ge.s32.totalorder %s15236_s12, 1  ;;  %s267_s14 = int_to_ptr.vmem [resolvable:$true] %s266_s14 }
   0xf   : > { %p17307_p1 = scmp.eq.s32.totalorder %s15328_s15, 0  ;;  %p254_p2 = scmp.lt.s32.totalorder %s15236_s12, 3 }
  0x10   : > { %s15239_s17 = smov [#allocation8]   ;;  %s15240_s20 = smov [#allocation11]  }
  0x11   : > { %p15333_p3 = pnand %p14421_p0, %p254_p2  ;;  %s290_s18 = sshll.u32 %s15239_s17, 4  ;;  %s15346_s18 = int_to_ptr.vmem [resolvable:$true] %s290_s18 }
  0x12   : > { %s15348_s21 = sshll.u32 %s15240_s20, 4  ;;  %s14957_s23 = scalar_lea.vmem %s267_s14, 49152  ;;  %s319_s21 = int_to_ptr.vmem [resolvable:$true] %s15348_s21 }
  0x13   : > { %s17314_s16 = scalar_select %p15333_p3, 1, 0 }
  0x14   : > { %p14851_p5 = pneg %p15333_p3  ;;  %p14958_p8 = scmp.ne.s32.totalorder %s267_s14, %s14957_s23 }
  0x15   : > { %p14965_p11 = scmp.lt.s32.totalorder %s267_s14, %s267_s14  ;;  %p14966_p12 = scmp.lt.s32.totalorder %s14957_s23, %s14957_s23 }
  0x16   : > { %p15342_p6 = pnand %p14851_p5, %p17307_p1 }
  0x17   : > { %p14967_p13 = por %p14966_p12, %p14965_p11 }
  0x18   : > { %p15352_p7 = pneg %p15342_p6 }
  0x1a   : > { %p14960_p9 = pnand %p14958_p8, %p15352_p7 }
  0x1c   : > { %p14961_p10 = pneg %p14960_p9 }
  0x1e   : > { %p14968_p0 = pnand %p14967_p13, %p14961_p10 }
  0x20   : > { %14971 = shalt.err (!%p14968_p0)
}
  0x21   : > { %s15241_s24 = smov 256   ;;  %s15242_s25 = smov 16  }
  0x22   : > { %s17317_s1 = sld [smem:[#allocation26_spill]]  ;;  %s14983_s28 = scalar_lea.vmem %s15346_s18, 12288 }
  0x23   : > { %p14984_p2 = scmp.ne.s32.totalorder %s15346_s18, %s14983_s28  ;;  %p14991_p9 = scmp.lt.s32.totalorder %s15346_s18, %s15346_s18 }
  0x24   : > { %p14992_p10 = scmp.lt.s32.totalorder %s14983_s28, %s14983_s28 }
  0x25   : > { %p14986_p5 = pnand %p14984_p2, %p15352_p7 }
  0x26   : > { %p14993_p11 = por %p14992_p10, %p14991_p9 }
  0x27   : > { %p14987_p8 = pneg %p14986_p5 }
  0x28   : > { %14854 = dma.hbm_to_vmem [thread:$0]  (!%p15342_p6), %s17317_s1, 49152, %s267_s14, [#allocation6], %s15241_s24, %s15241_s24, %s15242_s25  }
  0x29   : > { %p14994_p12 = pnand %p14993_p11, %p14987_p8 }
  0x2b   : > { %14997 = shalt.err (!%p14994_p12)
}
  0x2c   : > { %s15243_s29 = smov 128   ;;  %s15244_s13 = smov 8  }
  0x2d   : > { %s17318_s3 = sld [smem:[#allocation28_spill]]  ;;  %s15009_s20 = scalar_lea.vmem %s319_s21, 16 }
  0x2e   : > { %p15010_p13 = scmp.ne.s32.totalorder %s319_s21, %s15009_s20  ;;  %s15016_s23 = scalar_lea.vmem %s319_s21, 32 }
  0x2f   : > { %p15017_p5 = scmp.lt.s32.totalorder %s319_s21, %s319_s21  ;;  %p15018_p8 = scmp.lt.s32.totalorder %s15016_s23, %s15009_s20 }
  0x30   : > { %p15012_p0 = pnand %p15010_p13, %p15352_p7 }
  0x31   : > { %p15019_p9 = por %p15018_p8, %p15017_p5 }
  0x32   : > { %p15013_p2 = pneg %p15012_p0 }
  0x33   : > { %14860 = dma.hbm_to_vmem [thread:$0]  (!%p15342_p6), %s17318_s3, 12288, %s15346_s18, [#allocation9], %s15243_s29, %s15243_s29, %s15244_s13  }
  0x34   : > { %p15020_p10 = pnand %p15019_p9, %p15013_p2 }
  0x36   : > { %15023 = shalt.err (!%p15020_p10)
}
  0x37   : > { %14866 = dma.hbm_to_vmem [thread:$0]  (!%p15342_p6), %s17303_s6, 16, %s319_s21, [#allocation12]  }
  0x38   : > { %s15245_s18 = smov [#allocation7]   ;;  %s15246_s27 = smov [#allocation10]  }
  0x39   : > { %s280_s26 = sshll.u32 %s15245_s18, 4  ;;  %s304_s28 = sshll.u32 %s15246_s27, 4  ;;  %s281_s26 = int_to_ptr.vmem [resolvable:$true] %s280_s26  ;;  %s305_s28 = int_to_ptr.vmem [resolvable:$true] %s304_s28 }
  0x3a   : > { %s15035_s29 = scalar_lea.vmem %s281_s26, 32  ;;  %p15043_p0 = scmp.lt.s32.totalorder %s281_s26, %s281_s26 }
  0x3b   : > { %p15036_p11 = scmp.ne.s32.totalorder %s281_s26, %s15035_s29  ;;  %p15044_p2 = scmp.lt.s32.totalorder %s15035_s29, %s15035_s29 }
  0x3d   : > { %p15038_p12 = pnand %p15036_p11, %p15352_p7  ;;  %p15045_p5 = por %p15044_p2, %p15043_p0 }
  0x3f   : > { %p15039_p13 = pneg %p15038_p12 }
  0x41   : > { %p15046_p8 = pnand %p15045_p5, %p15039_p13 }
  0x43   : > { %15049 = shalt.err (!%p15046_p8)
}
  0x44   : > { %s17319_s2 = sld [smem:[#allocation27_spill]]  ;;  %s15061_s21 = scalar_lea.vmem %s305_s28, 16 }
  0x45   : > { %p15062_p9 = scmp.ne.s32.totalorder %s305_s28, %s15061_s21  ;;  %s15068_s14 = scalar_lea.vmem %s305_s28, 32 }
  0x46   : > { %p15069_p11 = scmp.lt.s32.totalorder %s305_s28, %s305_s28  ;;  %p15070_p12 = scmp.lt.s32.totalorder %s15068_s14, %s15061_s21 }
  0x47   : > { %p15064_p10 = pnand %p15062_p9, %p15352_p7 }
  0x48   : > { %p15071_p1 = por %p15070_p12, %p15069_p11 }
  0x49   : > { %p15065_p4 = pneg %p15064_p10 }
  0x4a   : > { %14857 = dma.hbm_to_vmem [thread:$0]  (!%p15342_p6), %s17319_s2, 32, %s281_s26, [#allocation6]  }
  0x4b   : > { %p15072_p0 = pnand %p15071_p1, %p15065_p4 }
  0x4d   : > { %15075 = shalt.err (!%p15072_p0)
}
  0x4e   : > { %14863 = dma.hbm_to_vmem [thread:$0]  (!%p15342_p6), %s17301_s4, 16, %s305_s28, [#allocation9]  }
  0x4f   : > { %s15247_s24 = smov [#allocation13]  }
  0x50   : > { %s328_s25 = sshll.u32 %s15247_s24, 4  ;;  %s329_s25 = int_to_ptr.vmem [resolvable:$true] %s328_s25 }
  0x51   : > { %s15087_s18 = scalar_lea.vmem %s329_s25, 131072  ;;  %p15095_p8 = scmp.lt.s32.totalorder %s329_s25, %s329_s25 }
  0x52   : > { %p15088_p13 = scmp.ne.s32.totalorder %s329_s25, %s15087_s18  ;;  %p15096_p9 = scmp.lt.s32.totalorder %s15087_s18, %s15087_s18 }
  0x54   : > { %p15090_p2 = pnand %p15088_p13, %p15352_p7  ;;  %p15097_p10 = por %p15096_p9, %p15095_p8 }
  0x56   : > { %p15091_p5 = pneg %p15090_p2 }
  0x58   : > { %p15098_p1 = pnand %p15097_p10, %p15091_p5 }
  0x5a   : > { %15101 = shalt.err (!%p15098_p1)
}
  0x5b   : > { %s15248_s26 = smov 1024   ;;  %s15249_s27 = smov 64  }
  0x5c   : > { %14869 = dma.hbm_to_vmem [thread:$0]  (!%p15342_p6), %s17304_s7, 131072, %s329_s25, [#allocation12], %s15248_s26, %s15248_s26, %s15249_s27  }
  0x5d   : > { %s15250_s13 = smov [#allocation14]  }
  0x5e   : > { %s342_s17 = sshll.u32 %s15250_s13, 4  ;;  %s343_s17 = int_to_ptr.vmem [resolvable:$true] %s342_s17 }
  0x5f   : > { %s15113_s21 = scalar_lea.vmem %s343_s17, 128  ;;  %p15121_p0 = scmp.lt.s32.totalorder %s343_s17, %s343_s17 }
  0x60   : > { %p15114_p4 = scmp.ne.s32.totalorder %s343_s17, %s15113_s21  ;;  %p15122_p13 = scmp.lt.s32.totalorder %s15113_s21, %s15113_s21 }
  0x62   : > { %p15116_p11 = pnand %p15114_p4, %p15352_p7  ;;  %p15123_p2 = por %p15122_p13, %p15121_p0 }
  0x64   : > { %p15117_p12 = pneg %p15116_p11 }
  0x66   : > { %p15124_p5 = pnand %p15123_p2, %p15117_p12 }
  0x68   : > { %15127 = shalt.err (!%p15124_p5)
}
  0x69   : > { %14872 = dma.hbm_to_vmem [thread:$0]  (!%p15342_p6), %s17305_s8, 128, %s343_s17, [#allocation15]  }
  0x6a   : > { %s14420_s22 = sadd.s32 4294967294, %s15236_s12   ;;  %s15413_s19 = sadd.s32 1, %s15236_s12  }
  0x6b   : > { %s36_s23 = sadd.s32 1, %s15232_s11  ;;  %s33_s24 = ssub.s32 %s15236_s12, %s15413_s19 }
  0x6c   : > { %p43_p7 = scmp.ne.s32.totalorder %s15232_s11, %s15228_s10  ;;  %p34_p8 = scmp.eq.s32.totalorder %s33_s24, 0 }
  0x6d   : > { %p44_p9 = scmp.eq.s32.totalorder %s15236_s12, 0  ;;  %p49_p10 = scmp.ne.s32.totalorder %s15228_s10, %s15224_s30 }
  0x6e   : > { %p241_p1 = scmp.eq.s32.totalorder %s15328_s15, 1  ;;  %p17320_p11 = scmp.eq.s32.totalorder %s15328_s15, 0 }
  0x6f   : > { %s15425_s25 = scalar_select %p34_p8, %s15232_s11, %s36_s23  }
  0x70   : > { %p45_p4 = por %p44_p9, %p43_p7  ;;  %p15429_p12 = por %p17320_p11, %p49_p10 }
  0x71   : > { %p15433_p6 = por %p241_p1, %p43_p7  ;;  %p247_p0 = scmp.eq.s32.totalorder %s14420_s22, 1 }
  0x72   : > { %s17321_s18 = scalar_select %p15429_p12, 1, 0 }
  0x73   : > { %s17322_s26 = scalar_select %p15433_p6, 1, 0 }
  0x74   : > { %p14888_p13 = scmp.lt.s32.totalorder %s15236_s12, 2  ;;  %s353_s27 = sand.u32 1, %s15232_s11  }
  0x75   : > { %p15439_p2 = por %p247_p0, %p49_p10  ;;  %s14430_s28 = sshll.u32 %s353_s27, 6 }
  0x76   : > { %s14596_s13 = sshll.u32 %s15236_s12, 10  ;;  %s357_s20 = scalar_lea.vmem [#allocation2], %s14430_s28 }
  0x77   : > { %s17323_s29 = scalar_select %p15439_p2, 1, 0 }
  0x78   : > { %s15447_s14 = scalar_lea.hbm %s17297_s0, %s14596_s13  ;;  %s364_s23 = sshll.u32 %s357_s20, 4  ;;  %s15453_s23 = int_to_ptr.vmem [resolvable:$true] %s364_s23 }
  0x79   : > { %p15449_p5 = pnand %p14888_p13, %p45_p4  ;;  %s15455_s24 = scalar_lea.sflag [#allocation3], %s353_s27 }
  0x7a   : > { %s15128_s1 = scalar_lea.hbm %s15447_s14, 1024  ;;  %s15133_s28 = scalar_lea.hbm %s17297_s0, 2048 }
  0x7b   : > { %p15129_p7 = scmp.ne.s32.totalorder %s15447_s14, %s15128_s1  ;;  %p15130_p8 = pneg %p15449_p5 }
  0x7c   : > { %p15134_p1 = scmp.lt.s32.totalorder %s15447_s14, %s17297_s0  ;;  %p15135_p4 = scmp.lt.s32.totalorder %s15133_s28, %s15128_s1 }
  0x7d   : > { %p15131_p9 = pnand %p15130_p8, %p15129_p7 }
  0x7e   : > { %p15136_p11 = por %p15135_p4, %p15134_p1 }
  0x7f   : > { %p15132_p10 = pneg %p15131_p9 }
  0x81   : > { %p15137_p0 = pnand %p15136_p11, %p15132_p10 }
  0x83   : > { %15140 = shalt.err (!%p15137_p0)
}
  0x84   : > { %s15141_s27 = scalar_lea.vmem %s15453_s23, 1024  ;;  %s15251_s2 = smov [#allocation2]  }
  0x85   : > { %p15142_p13 = scmp.ne.s32.totalorder %s15453_s23, %s15141_s27  ;;  %s15146_s3 = sshll.u32 %s15251_s2, 4  ;;  %s15147_s3 = int_to_ptr.vmem [resolvable:$false] %s15146_s3 }
  0x86   : > { %s15148_s13 = scalar_lea.vmem %s15147_s3, 2048  ;;  %p15149_p9 = scmp.lt.s32.totalorder %s15453_s23, %s15147_s3 }
  0x87   : > { %p15144_p2 = pnand %p15142_p13, %p15130_p8  ;;  %p15150_p6 = scmp.lt.s32.totalorder %s15148_s13, %s15141_s27 }
  0x89   : > { %p15145_p7 = pneg %p15144_p2  ;;  %p15151_p12 = por %p15150_p6, %p15149_p9 }
  0x8b   : > { %p15152_p3 = pnand %p15151_p12, %p15145_p7 }
  0x8d   : > { %15155 = shalt.err (!%p15152_p3)
}
  0x8e   : > { %s15252_s1 = smov 512   ;;  %s15253_s17 = smov 32  }
  0x8f   : > { %14876 = dma.hbm_to_vmem [thread:$0]  (!%p15449_p5), %s15447_s14, 1024, %s15453_s23, %s15455_s24, %s15252_s1, %s15252_s1, %s15253_s17  }
  0x90   : > { %p17325_p8 = scmp.ne.s32.totalorder %s17314_s16, 0 }
  0x92   : > { %376 = sbr.rel (%p17325_p8) target bundleno = 2201 (0x899), region = 56 }
  0x97   : > { %s15479_s2 = sand.u32 1, %s15228_s10   ;;  %p17326_p3 = scmp.ne.s32.totalorder %s17321_s18, 0 }
  0x98   : > { %s14434_s3 = sshll.u32 %s15479_s2, 6  ;;  %s379_s28 = scalar_lea.sflag [#allocation3], %s15479_s2 }
  0x99   : > { %s15483_s21 = scalar_lea.vmem [#allocation2], %s14434_s3 }
  0x9a   : > { %15199 = dma.done.wait (%p17326_p3), %s379_s28, 1024  }
  0x9b   : > { %15201 = vsyncadd (%p17326_p3), %s379_s28, 4294966272  ;;  %p17327_p12 = scmp.eq.s32.totalorder %s15328_s15, 0 }
  0x9d   : > { %15203 = dma.done.wait (%p17327_p12), [#allocation6], 49184   ;;  %p17328_p6 = pmov %p17327_p12 }
  0x9f   : > { %15205 = vsyncadd (%p17328_p6), [#allocation6], 4294918112  ;;  %p17329_p2 = pmov %p17328_p6 }
  0xa1   : > { %15207 = dma.done.wait (%p17329_p2), [#allocation9], 12304   ;;  %p17330_p5 = pmov %p17329_p2 }
  0xa2   : > { %p17331_p10 = pmov %p17329_p2 }
  0xa3   : > { %15209 = vsyncadd (%p17330_p5), [#allocation9], 4294954992 }
  0xa4   : > { %15211 = dma.done.wait (%p17331_p10), [#allocation12], 131088   ;;  %p17332_p1 = pmov %p17329_p2 }
  0xa6   : > { %15213 = vsyncadd (%p17332_p1), [#allocation12], 4294836208  ;;  %p17333_p4 = pmov %p17332_p1 }
  0xa7   : > { %p17334_p11 = pmov %p17332_p1 }
  0xa8   : > { %15215 = dma.done.wait (%p17333_p4), [#allocation15], 128  }
  0xa9   : > { %15217 = vsyncadd (%p17334_p11), [#allocation15], 4294967168  ;;  %v591_v0 = vld [vmem:[#allocation5 + $0xf8] sm:$0xff]  ;;  %v590_v2 = vld [vmem:[#allocation5 + $0xf0] sm:$0xff]  ;;  %vm461_vm0 = vcmask 1040384   ;;  %vm531_vm2 = vcmask 1045504  }
  0xaa   : > { %v655_v1 = vld [vmem:[#allocation5 + $0x2f8] sm:$0xff]  ;;  %956 = vmatprep.subr.mxu0 %v591_v0  ;;  %v654_v3 = vld [vmem:[#allocation5 + $0x2f0] sm:$0xff]  ;;  %v589_v4 = vld [vmem:[#allocation5 + $0xe8] sm:$0xff]  ;;  %vm502_vm3 = vcmask 1046528   ;;  %vm2067_vm4 = vcmask 130048   ;;  %vm2202_vm5 = vcmask 261120  }
  0xab   : > { %1033 = vmatprep.subr.mxu1 %v655_v1  ;;  %v653_v5 = vld [vmem:[#allocation5 + $0x2e8] sm:$0xff]  ;;  %957 = vmatpush1.msra.mxu0 %v590_v2  ;;  %v588_v6 = vld [vmem:[#allocation5 + $0xe0] sm:$0xff]  ;;  %v587_v8 = vld [vmem:[#allocation5 + $0xd8] sm:$0xff]  ;;  %s14442_s28 = sshll.u32 %s15479_s2, 3  ;;  %s14269_s24 = scalar_lea.sflag [#allocation4], %s15479_s2 }
  0xac   : > { %1034 = vmatpush1.msra.mxu1 %v654_v3  ;;  %v652_v7 = vld [vmem:[#allocation5 + $0x2e0] sm:$0xff]  ;;  %958 = vmatprep.subr.mxu0 %v589_v4  ;;  %v651_v9 = vld [vmem:[#allocation5 + $0x2d8] sm:$0xff]  ;;  %v586_v10 = vld [vmem:[#allocation5 + $0xd0] sm:$0xff]  ;;  %s444_s16 = scalar_lea.vmem [#allocation16], %s14442_s28  ;;  %p17343_p13 = scmp.ne.s32.totalorder %s17322_s26, 0 }
  0xad   : > { %1035 = vmatprep.subr.mxu1 %v653_v5  ;;  %v650_v11 = vld [vmem:[#allocation5 + $0x2d0] sm:$0xff]  ;;  %959 = vmatpush1.msra.mxu0 %v588_v6  ;;  %v585_v12 = vld [vmem:[#allocation5 + $0xc8] sm:$0xff]  ;;  %v584_v14 = vld [vmem:[#allocation5 + $0xc0] sm:$0xff]  ;;  %s14283_s18 = sshll.u32 %s444_s16, 4  ;;  %s15256_s27 = smov [#allocation16]   ;;  %s14284_s18 = int_to_ptr.vmem [resolvable:$true] %s14283_s18 }
  0xae   : > { %1036 = vmatpush1.msra.mxu1 %v652_v7  ;;  %v649_v13 = vld [vmem:[#allocation5 + $0x2c8] sm:$0xff]  ;;  %960 = vmatprep.subr.mxu0 %v587_v8  ;;  %v648_v15 = vld [vmem:[#allocation5 + $0x2c0] sm:$0xff]  ;;  %v583_v16 = vld [vmem:[#allocation5 + $0xb8] sm:$0xff]  ;;  %s15156_s20 = scalar_lea.vmem %s14284_s18, 128  ;;  %s15160_s13 = sshll.u32 %s15256_s27, 4  ;;  %s15161_s13 = int_to_ptr.vmem [resolvable:$false] %s15160_s13 }
  0xaf   : > { %1037 = vmatprep.subr.mxu1 %v651_v9  ;;  %961 = vmatpush1.msra.mxu0 %v586_v10  ;;  %v647_v17 = vld [vmem:[#allocation5 + $0x2b8] sm:$0xff]  ;;  %v582_v18 = vld [vmem:[#allocation5 + $0xb0] sm:$0xff]  ;;  %v581_v20 = vld [vmem:[#allocation5 + $0xa8] sm:$0xff]  ;;  %p15157_p0 = scmp.ne.s32.totalorder %s14284_s18, %s15156_s20  ;;  %p15163_p8 = scmp.lt.s32.totalorder %s14284_s18, %s15161_s13 }
  0xb0   : > { %1038 = vmatpush1.msra.mxu1 %v650_v11  ;;  %962 = vmatprep.subr.mxu0 %v585_v12  ;;  %v646_v19 = vld [vmem:[#allocation5 + $0x2b0] sm:$0xff]  ;;  %v645_v21 = vld [vmem:[#allocation5 + $0x2a8] sm:$0xff]  ;;  %v580_v22 = vld [vmem:[#allocation5 + $0xa0] sm:$0xff] }
  0xb1   : > { %1039 = vmatprep.subr.mxu1 %v649_v13  ;;  %963 = vmatpush1.msra.mxu0 %v584_v14  ;;  %v644_v23 = vld [vmem:[#allocation5 + $0x2a0] sm:$0xff]  ;;  %v579_v24 = vld [vmem:[#allocation5 + $0x98] sm:$0xff]  ;;  %v578_v26 = vld [vmem:[#allocation5 + $0x90] sm:$0xff]  ;;  %p15158_p7 = pnand %p15157_p0, %p17343_p13 }
  0xb2   : > { %1040 = vmatpush1.msra.mxu1 %v648_v15  ;;  %964 = vmatprep.subr.mxu0 %v583_v16  ;;  %v643_v25 = vld [vmem:[#allocation5 + $0x298] sm:$0xff]  ;;  %v642_v27 = vld [vmem:[#allocation5 + $0x290] sm:$0xff]  ;;  %v577_v28 = vld [vmem:[#allocation5 + $0x88] sm:$0xff] }
  0xb3   : > { %1041 = vmatprep.subr.mxu1 %v647_v17  ;;  %965 = vmatpush1.msra.mxu0 %v582_v18  ;;  %v641_v29 = vld [vmem:[#allocation5 + $0x288] sm:$0xff]  ;;  %v576_v30 = vld [vmem:[#allocation5 + $0x80] sm:$0xff]  ;;  %v575_v32 = vld [vmem:[#allocation5 + $0x78] sm:$0xff]  ;;  %p15159_p9 = pneg %p15158_p7 }
  0xb4   : > { %1042 = vmatpush1.msra.mxu1 %v646_v19  ;;  %966 = vmatprep.subr.mxu0 %v581_v20  ;;  %v640_v31 = vld [vmem:[#allocation5 + $0x280] sm:$0xff]  ;;  %v639_v33 = vld [vmem:[#allocation5 + $0x278] sm:$0xff]  ;;  %v574_v34 = vld [vmem:[#allocation5 + $0x70] sm:$0xff] }
  0xb5   : > { %1043 = vmatprep.subr.mxu1 %v645_v21  ;;  %967 = vmatpush1.msra.mxu0 %v580_v22  ;;  %v638_v35 = vld [vmem:[#allocation5 + $0x270] sm:$0xff]  ;;  %v573_v36 = vld [vmem:[#allocation5 + $0x68] sm:$0xff]  ;;  %v572_v38 = vld [vmem:[#allocation5 + $0x60] sm:$0xff] }
  0xb6   : > { %1044 = vmatpush1.msra.mxu1 %v644_v23  ;;  %968 = vmatprep.subr.mxu0 %v579_v24  ;;  %v637_v37 = vld [vmem:[#allocation5 + $0x268] sm:$0xff]  ;;  %v636_v39 = vld [vmem:[#allocation5 + $0x260] sm:$0xff]  ;;  %v571_v40 = vld [vmem:[#allocation5 + $0x58] sm:$0xff] }
  0xb7   : > { %1045 = vmatprep.subr.mxu1 %v643_v25  ;;  %969 = vmatpush1.msra.mxu0 %v578_v26  ;;  %v635_v41 = vld [vmem:[#allocation5 + $0x258] sm:$0xff]  ;;  %v570_v42 = vld [vmem:[#allocation5 + $0x50] sm:$0xff]  ;;  %v569_v44 = vld [vmem:[#allocation5 + $0x48] sm:$0xff] }
  0xb8   : > { %1046 = vmatpush1.msra.mxu1 %v642_v27  ;;  %970 = vmatprep.subr.mxu0 %v577_v28  ;;  %v634_v43 = vld [vmem:[#allocation5 + $0x250] sm:$0xff]  ;;  %v633_v45 = vld [vmem:[#allocation5 + $0x248] sm:$0xff]  ;;  %v568_v46 = vld [vmem:[#allocation5 + $0x40] sm:$0xff] }
  0xb9   : > { %1047 = vmatprep.subr.mxu1 %v641_v29  ;;  %971 = vmatpush1.msra.mxu0 %v576_v30  ;;  %v632_v47 = vld [vmem:[#allocation5 + $0x240] sm:$0xff]  ;;  %v567_v48 = vld [vmem:[#allocation5 + $0x38] sm:$0xff]  ;;  %v566_v50 = vld [vmem:[#allocation5 + $0x30] sm:$0xff] }
  0xba   : > { %1048 = vmatpush1.msra.mxu1 %v640_v31  ;;  %972 = vmatprep.subr.mxu0 %v575_v32  ;;  %v631_v49 = vld [vmem:[#allocation5 + $0x238] sm:$0xff]  ;;  %v630_v51 = vld [vmem:[#allocation5 + $0x230] sm:$0xff]  ;;  %v565_v52 = vld [vmem:[#allocation5 + $0x28] sm:$0xff] }
  0xbb   : > { %1049 = vmatprep.subr.mxu1 %v639_v33  ;;  %973 = vmatpush1.msra.mxu0 %v574_v34  ;;  %v629_v53 = vld [vmem:[#allocation5 + $0x228] sm:$0xff]  ;;  %v564_v54 = vld [vmem:[#allocation5 + $0x20] sm:$0xff]  ;;  %v563_v56 = vld [vmem:[#allocation5 + $0x18] sm:$0xff] }
  0xbc   : > { %1050 = vmatpush1.msra.mxu1 %v638_v35  ;;  %974 = vmatprep.subr.mxu0 %v573_v36  ;;  %v628_v55 = vld [vmem:[#allocation5 + $0x220] sm:$0xff]  ;;  %v627_v57 = vld [vmem:[#allocation5 + $0x218] sm:$0xff]  ;;  %v562_v58 = vld [vmem:[#allocation5 + $0x10] sm:$0xff] }
  0xbd   : > { %1051 = vmatprep.subr.mxu1 %v637_v37  ;;  %975 = vmatpush1.msra.mxu0 %v572_v38  ;;  %v626_v59 = vld [vmem:[#allocation5 + $0x210] sm:$0xff]  ;;  %v561_v60 = vld [vmem:[#allocation5 + $0x8] sm:$0xff]  ;;  %v560_v62 = vld [vmem:[#allocation5] sm:$0xff] }
  0xbe   : > { %1052 = vmatpush1.msra.mxu1 %v636_v39  ;;  %976 = vmatprep.subr.mxu0 %v571_v40  ;;  %v625_v61 = vld [vmem:[#allocation5 + $0x208] sm:$0xff]  ;;  %v624_v63 = vld [vmem:[#allocation5 + $0x200] sm:$0xff]  ;;  %v623_v0 = vld [vmem:[#allocation5 + $0x1f8] sm:$0xff] }
  0xbf   : > { %1053 = vmatprep.subr.mxu1 %v635_v41  ;;  %977 = vmatpush1.msra.mxu0 %v570_v42  ;;  %v687_v1 = vld [vmem:[#allocation5 + $0x3f8] sm:$0xff]  ;;  %v622_v2 = vld [vmem:[#allocation5 + $0x1f0] sm:$0xff]  ;;  %v621_v4 = vld [vmem:[#allocation5 + $0x1e8] sm:$0xff] }
  0xc0   : > { %1054 = vmatpush1.msra.mxu1 %v634_v43  ;;  %978 = vmatprep.subr.mxu0 %v569_v44  ;;  %v686_v3 = vld [vmem:[#allocation5 + $0x3f0] sm:$0xff]  ;;  %v685_v5 = vld [vmem:[#allocation5 + $0x3e8] sm:$0xff]  ;;  %v620_v6 = vld [vmem:[#allocation5 + $0x1e0] sm:$0xff] }
  0xc1   : > { %1055 = vmatprep.subr.mxu1 %v633_v45  ;;  %979 = vmatpush1.msra.mxu0 %v568_v46  ;;  %v684_v7 = vld [vmem:[#allocation5 + $0x3e0] sm:$0xff]  ;;  %v619_v8 = vld [vmem:[#allocation5 + $0x1d8] sm:$0xff]  ;;  %v618_v10 = vld [vmem:[#allocation5 + $0x1d0] sm:$0xff] }
  0xc2   : > { %1056 = vmatpush1.msra.mxu1 %v632_v47  ;;  %980 = vmatprep.subr.mxu0 %v567_v48  ;;  %v683_v9 = vld [vmem:[#allocation5 + $0x3d8] sm:$0xff]  ;;  %v682_v11 = vld [vmem:[#allocation5 + $0x3d0] sm:$0xff]  ;;  %v617_v12 = vld [vmem:[#allocation5 + $0x1c8] sm:$0xff] }
  0xc3   : > { %1057 = vmatprep.subr.mxu1 %v631_v49  ;;  %981 = vmatpush1.msra.mxu0 %v566_v50  ;;  %v681_v13 = vld [vmem:[#allocation5 + $0x3c8] sm:$0xff]  ;;  %v616_v14 = vld [vmem:[#allocation5 + $0x1c0] sm:$0xff]  ;;  %v615_v16 = vld [vmem:[#allocation5 + $0x1b8] sm:$0xff] }
  0xc4   : > { %1058 = vmatpush1.msra.mxu1 %v630_v51  ;;  %982 = vmatprep.subr.mxu0 %v565_v52  ;;  %v680_v15 = vld [vmem:[#allocation5 + $0x3c0] sm:$0xff]  ;;  %v679_v17 = vld [vmem:[#allocation5 + $0x3b8] sm:$0xff]  ;;  %v614_v18 = vld [vmem:[#allocation5 + $0x1b0] sm:$0xff] }
  0xc5   : > { %1059 = vmatprep.subr.mxu1 %v629_v53  ;;  %983 = vmatpush1.msra.mxu0 %v564_v54  ;;  %v678_v19 = vld [vmem:[#allocation5 + $0x3b0] sm:$0xff]  ;;  %v613_v20 = vld [vmem:[#allocation5 + $0x1a8] sm:$0xff]  ;;  %v612_v22 = vld [vmem:[#allocation5 + $0x1a0] sm:$0xff] }
  0xc6   : > { %1060 = vmatpush1.msra.mxu1 %v628_v55  ;;  %984 = vmatprep.subr.mxu0 %v563_v56  ;;  %v677_v21 = vld [vmem:[#allocation5 + $0x3a8] sm:$0xff]  ;;  %v676_v23 = vld [vmem:[#allocation5 + $0x3a0] sm:$0xff]  ;;  %v611_v24 = vld [vmem:[#allocation5 + $0x198] sm:$0xff] }
  0xc7   : > { %1061 = vmatprep.subr.mxu1 %v627_v57  ;;  %985 = vmatpush1.msra.mxu0 %v562_v58  ;;  %v675_v25 = vld [vmem:[#allocation5 + $0x398] sm:$0xff]  ;;  %v610_v26 = vld [vmem:[#allocation5 + $0x190] sm:$0xff]  ;;  %v609_v28 = vld [vmem:[#allocation5 + $0x188] sm:$0xff] }
  0xc8   : > { %1062 = vmatpush1.msra.mxu1 %v626_v59  ;;  %986 = vmatprep.subr.mxu0 %v561_v60  ;;  %v674_v27 = vld [vmem:[#allocation5 + $0x390] sm:$0xff]  ;;  %v673_v29 = vld [vmem:[#allocation5 + $0x388] sm:$0xff]  ;;  %v608_v30 = vld [vmem:[#allocation5 + $0x180] sm:$0xff] }
  0xc9   : > { %1063 = vmatprep.subr.mxu1 %v625_v61  ;;  %987 = vmatpush1.msra.mxu0 %v560_v62  ;;  %v672_v31 = vld [vmem:[#allocation5 + $0x380] sm:$0xff]  ;;  %v607_v32 = vld [vmem:[#allocation5 + $0x178] sm:$0xff]  ;;  %v606_v34 = vld [vmem:[#allocation5 + $0x170] sm:$0xff] }
  0xca   : > { %1064 = vmatpush1.msra.mxu1 %v624_v63  ;;  %988 = vmatprep.subr.mxu0 %v623_v0  ;;  %v671_v33 = vld [vmem:[#allocation5 + $0x378] sm:$0xff]  ;;  %v670_v35 = vld [vmem:[#allocation5 + $0x370] sm:$0xff]  ;;  %v605_v36 = vld [vmem:[#allocation5 + $0x168] sm:$0xff] }
  0xcb   : > { %1065 = vmatprep.subr.mxu1 %v687_v1  ;;  %989 = vmatpush2.msra.mxu0 %v622_v2  ;;  %v669_v37 = vld [vmem:[#allocation5 + $0x368] sm:$0xff]  ;;  %v604_v38 = vld [vmem:[#allocation5 + $0x160] sm:$0xff]  ;;  %v603_v40 = vld [vmem:[#allocation5 + $0x158] sm:$0xff] }
  0xcc   : > { %1066 = vmatpush2.msra.mxu1 %v686_v3  ;;  %990 = vmatprep.subr.mxu0 %v621_v4  ;;  %v668_v39 = vld [vmem:[#allocation5 + $0x360] sm:$0xff]  ;;  %v667_v41 = vld [vmem:[#allocation5 + $0x358] sm:$0xff]  ;;  %v602_v42 = vld [vmem:[#allocation5 + $0x150] sm:$0xff] }
  0xcd   : > { %1067 = vmatprep.subr.mxu1 %v685_v5  ;;  %991 = vmatpush2.msra.mxu0 %v620_v6  ;;  %v666_v43 = vld [vmem:[#allocation5 + $0x350] sm:$0xff]  ;;  %v601_v44 = vld [vmem:[#allocation5 + $0x148] sm:$0xff]  ;;  %v600_v46 = vld [vmem:[#allocation5 + $0x140] sm:$0xff] }
  0xce   : > { %1068 = vmatpush2.msra.mxu1 %v684_v7  ;;  %992 = vmatprep.subr.mxu0 %v619_v8  ;;  %v665_v45 = vld [vmem:[#allocation5 + $0x348] sm:$0xff]  ;;  %v664_v47 = vld [vmem:[#allocation5 + $0x340] sm:$0xff]  ;;  %v599_v48 = vld [vmem:[#allocation5 + $0x138] sm:$0xff] }
  0xcf   : > { %1069 = vmatprep.subr.mxu1 %v683_v9  ;;  %993 = vmatpush2.msra.mxu0 %v618_v10  ;;  %v663_v49 = vld [vmem:[#allocation5 + $0x338] sm:$0xff]  ;;  %v598_v50 = vld [vmem:[#allocation5 + $0x130] sm:$0xff]  ;;  %v597_v52 = vld [vmem:[#allocation5 + $0x128] sm:$0xff] }
  0xd0   : > { %1070 = vmatpush2.msra.mxu1 %v682_v11  ;;  %994 = vmatprep.subr.mxu0 %v617_v12  ;;  %v662_v51 = vld [vmem:[#allocation5 + $0x330] sm:$0xff]  ;;  %v661_v53 = vld [vmem:[#allocation5 + $0x328] sm:$0xff]  ;;  %v596_v54 = vld [vmem:[#allocation5 + $0x120] sm:$0xff] }
  0xd1   : > { %1071 = vmatprep.subr.mxu1 %v681_v13  ;;  %995 = vmatpush2.msra.mxu0 %v616_v14  ;;  %v660_v55 = vld [vmem:[#allocation5 + $0x320] sm:$0xff]  ;;  %v446_v56 = vld [vmem:[%s15483_s21 + $0x8] sm:$0xff]  ;;  %v595_v57 = vld [vmem:[#allocation5 + $0x118] sm:$0xff] }
  0xd2   : > { %1072 = vmatpush2.msra.mxu1 %v680_v15  ;;  %996 = vmatprep.subr.mxu0 %v615_v16  ;;  %v659_v58 = vld [vmem:[#allocation5 + $0x318] sm:$0xff]  ;;  %v445_v59 = vld [vmem:[%s15483_s21] sm:$0xff]  ;;  %v594_v60 = vld [vmem:[#allocation5 + $0x110] sm:$0xff]  ;;  %v15508_v1 = vrot.slane %v446_v56, 7 }
  0xd3   : > { %1073 = vmatprep.subr.mxu1 %v679_v17  ;;  %997 = vmatpush2.msra.mxu0 %v614_v18  ;;  %v658_v61 = vld [vmem:[#allocation5 + $0x310] sm:$0xff]  ;;  %v448_v62 = vld [vmem:[%s15483_s21 + $0x18] sm:$0xff]  ;;  %v593_v63 = vld [vmem:[#allocation5 + $0x108] sm:$0xff]  ;;  %v15516_v5 = vrot.slane %v445_v59, 7 }
  0xd4   : > { %1074 = vmatpush2.msra.mxu1 %v678_v19  ;;  %998 = vmatprep.subr.mxu0 %v613_v20  ;;  %v657_v0 = vld [vmem:[#allocation5 + $0x308] sm:$0xff]  ;;  %v447_v2 = vld [vmem:[%s15483_s21 + $0x10] sm:$0xff]  ;;  %v592_v3 = vld [vmem:[#allocation5 + $0x100] sm:$0xff]  ;;  %v15518_v7 = vrot.slane %v448_v62, 7 }
  0xd5   : > { %1075 = vmatprep.subr.mxu1 %v677_v21  ;;  %999 = vmatpush2.msra.mxu0 %v612_v22  ;;  %vm15512_vm1 = vmneg %vm461_vm0  ;;  %v656_v6 = vld [vmem:[#allocation5 + $0x300] sm:$0xff]  ;;  %v719_v8 = vld [vmem:[#allocation5 + $0x4f8] sm:$0xff]  ;;  %v15520_v9 = vrot.slane %v447_v2, 7 }
  0xd6   : > { %1076 = vmatpush2.msra.mxu1 %v676_v23  ;;  %1000 = vmatprep.subr.mxu0 %v611_v24  ;;  %v783_v10 = vld [vmem:[#allocation5 + $0x6f8] sm:$0xff]  ;;  %v718_v11 = vld [vmem:[#allocation5 + $0x4f0] sm:$0xff]  ;;  %v717_v13 = vld [vmem:[#allocation5 + $0x4e8] sm:$0xff]  ;;  %v15554_v2 = vsel %vm461_vm0, 0.0, %v15518_v7 }
  0xd7   : > { %1077 = vmatprep.subr.mxu1 %v675_v25  ;;  %1001 = vmatpush2.msra.mxu0 %v610_v26  ;;  %v782_v12 = vld [vmem:[#allocation5 + $0x6f0] sm:$0xff]  ;;  %v781_v14 = vld [vmem:[#allocation5 + $0x6e8] sm:$0xff]  ;;  %v716_v15 = vld [vmem:[#allocation5 + $0x4e0] sm:$0xff] }
  0xd8   : > { %1078 = vmatpush2.msra.mxu1 %v674_v27  ;;  %1002 = vmatprep.subr.mxu0 %v609_v28  ;;  %v780_v16 = vld [vmem:[#allocation5 + $0x6e0] sm:$0xff]  ;;  %v715_v17 = vld [vmem:[#allocation5 + $0x4d8] sm:$0xff]  ;;  %v714_v19 = vld [vmem:[#allocation5 + $0x4d0] sm:$0xff] }
  0xd9   : > { %1079 = vmatprep.subr.mxu1 %v673_v29  ;;  %1003 = vmatpush2.msra.mxu0 %v608_v30  ;;  %v779_v18 = vld [vmem:[#allocation5 + $0x6d8] sm:$0xff]  ;;  %v778_v20 = vld [vmem:[#allocation5 + $0x6d0] sm:$0xff]  ;;  %v713_v21 = vld [vmem:[#allocation5 + $0x4c8] sm:$0xff] }
  0xda   : > { %1080 = vmatpush2.msra.mxu1 %v672_v31  ;;  %1004 = vmatprep.subr.mxu0 %v607_v32  ;;  %v777_v22 = vld [vmem:[#allocation5 + $0x6c8] sm:$0xff]  ;;  %v712_v23 = vld [vmem:[#allocation5 + $0x4c0] sm:$0xff]  ;;  %v711_v25 = vld [vmem:[#allocation5 + $0x4b8] sm:$0xff] }
  0xdb   : > { %1081 = vmatprep.subr.mxu1 %v671_v33  ;;  %1005 = vmatpush2.msra.mxu0 %v606_v34  ;;  %v776_v24 = vld [vmem:[#allocation5 + $0x6c0] sm:$0xff]  ;;  %v775_v26 = vld [vmem:[#allocation5 + $0x6b8] sm:$0xff]  ;;  %v710_v27 = vld [vmem:[#allocation5 + $0x4b0] sm:$0xff] }
  0xdc   : > { %1082 = vmatpush2.msra.mxu1 %v670_v35  ;;  %1006 = vmatprep.subr.mxu0 %v605_v36  ;;  %v774_v28 = vld [vmem:[#allocation5 + $0x6b0] sm:$0xff]  ;;  %v709_v29 = vld [vmem:[#allocation5 + $0x4a8] sm:$0xff]  ;;  %v708_v31 = vld [vmem:[#allocation5 + $0x4a0] sm:$0xff] }
  0xdd   : > { %1083 = vmatprep.subr.mxu1 %v669_v37  ;;  %1007 = vmatpush2.msra.mxu0 %v604_v38  ;;  %v773_v30 = vld [vmem:[#allocation5 + $0x6a8] sm:$0xff]  ;;  %v772_v32 = vld [vmem:[#allocation5 + $0x6a0] sm:$0xff]  ;;  %v707_v33 = vld [vmem:[#allocation5 + $0x498] sm:$0xff] }
  0xde   : > { %1084 = vmatpush2.msra.mxu1 %v668_v39  ;;  %1008 = vmatprep.subr.mxu0 %v603_v40  ;;  %v771_v34 = vld [vmem:[#allocation5 + $0x698] sm:$0xff]  ;;  %v706_v35 = vld [vmem:[#allocation5 + $0x490] sm:$0xff]  ;;  %v705_v37 = vld [vmem:[#allocation5 + $0x488] sm:$0xff] }
  0xdf   : > { %1085 = vmatprep.subr.mxu1 %v667_v41  ;;  %1009 = vmatpush2.msra.mxu0 %v602_v42  ;;  %v770_v36 = vld [vmem:[#allocation5 + $0x690] sm:$0xff]  ;;  %v769_v38 = vld [vmem:[#allocation5 + $0x688] sm:$0xff]  ;;  %v704_v39 = vld [vmem:[#allocation5 + $0x480] sm:$0xff] }
  0xe0   : > { %1086 = vmatpush2.msra.mxu1 %v666_v43  ;;  %1010 = vmatprep.subr.mxu0 %v601_v44  ;;  %v768_v40 = vld [vmem:[#allocation5 + $0x680] sm:$0xff]  ;;  %v703_v41 = vld [vmem:[#allocation5 + $0x478] sm:$0xff]  ;;  %v702_v43 = vld [vmem:[#allocation5 + $0x470] sm:$0xff] }
  0xe1   : > { %1087 = vmatprep.subr.mxu1 %v665_v45  ;;  %1011 = vmatpush2.msra.mxu0 %v600_v46  ;;  %v767_v42 = vld [vmem:[#allocation5 + $0x678] sm:$0xff]  ;;  %v766_v44 = vld [vmem:[#allocation5 + $0x670] sm:$0xff]  ;;  %v701_v45 = vld [vmem:[#allocation5 + $0x468] sm:$0xff] }
  0xe2   : > { %1088 = vmatpush2.msra.mxu1 %v664_v47  ;;  %1012 = vmatprep.subr.mxu0 %v599_v48  ;;  %v765_v46 = vld [vmem:[#allocation5 + $0x668] sm:$0xff]  ;;  %v700_v48 = vld [vmem:[#allocation5 + $0x460] sm:$0xff]  ;;  %v698_v56 = vld [vmem:[#allocation5 + $0x450] sm:$0xff] }
  0xe3   : > { %1089 = vmatprep.subr.mxu1 %v663_v49  ;;  %1013 = vmatpush2.msra.mxu0 %v598_v50  ;;  %v450_v47 = vld [vmem:[%s15483_s21 + $0x28] sm:$0xff]  ;;  %v764_v49 = vld [vmem:[#allocation5 + $0x660] sm:$0xff]  ;;  %v15541_v59 = vld [vmem:[%s15483_s21 + $0x30] sm:$0xff] }
  0xe4   : > { %1090 = vmatpush2.msra.mxu1 %v662_v51  ;;  %1014 = vmatprep.subr.mxu0 %v597_v52  ;;  %v468_v50 = vrot.slane %v450_v47, 7  ;;  %v449_v51 = vld [vmem:[%s15483_s21 + $0x20] sm:$0xff]  ;;  %v699_v52 = vld [vmem:[#allocation5 + $0x458] sm:$0xff]  ;;  %v761_v62 = vld [vmem:[#allocation5 + $0x648] sm:$0xff] }
  0xe5   : > { %1091 = vmatprep.subr.mxu1 %v661_v53  ;;  %1015 = vmatpush2.msra.mxu0 %v596_v54  ;;  %v763_v53 = vld [vmem:[#allocation5 + $0x658] sm:$0xff]  ;;  %v466_v54 = vrot.slane %v449_v51, 7  ;;  %v814_v47 = vld [vmem:[#allocation5 + $0x7f0] sm:$0xff]  ;;  %v812_v51 = vld [vmem:[#allocation5 + $0x7e0] sm:$0xff] }
  0xe6   : > { %1092 = vmatpush2.msra.mxu1 %v660_v55  ;;  %1016 = vmatprep.subr.mxu0 %v595_v57  ;;  %v15537_v55 = vld [vmem:[%s15483_s21 + $0x38] sm:$0xff]  ;;  %v762_v57 = vld [vmem:[#allocation5 + $0x650] sm:$0xff]  ;;  %s14597_s21 = sshll.u32 %s15328_s15, 7  ;;  %s15162_s15 = scalar_lea.vmem %s15161_s13, 256 }
  0xe7   : > { %1093 = vmatprep.subr.mxu1 %v659_v58  ;;  %1017 = vmatpush2.msra.mxu0 %v594_v60  ;;  %v472_v58 = vrot.slane %v15537_v55, 7  ;;  %v15545_v60 = vsel %vm461_vm0, 0.0, %v15508_v1  ;;  %v845_v55 = vld [vmem:[#allocation5 + $0x8e8] sm:$0xff]  ;;  %s14281_s22 = scalar_lea.hbm %s17306_s9, %s14597_s21  ;;  %p15164_p3 = scmp.lt.s32.totalorder %s15162_s15, %s15156_s20 }
  0xe8   : > { %1094 = vmatpush2.msra.mxu1 %v658_v61  ;;  %1018 = vmatprep.subr.mxu0 %v593_v63  ;;  %v697_v61 = vld [vmem:[#allocation5 + $0x448] sm:$0xff]  ;;  %v470_v63 = vrot.slane %v15541_v59, 7 }
  0xe9   : > { %1095 = vmatprep.subr.mxu1 %v657_v0  ;;  %1019 = vmatpush2.msra.mxu0 %v592_v3  ;;  %v15550_v0 = vsel %vm461_vm0, 0.0, %v15516_v5  ;;  %v535_v3 = vrot.slane %v15545_v60, 2  ;;  %p15165_p12 = por %p15164_p3, %p15163_p8 }
  0xea   : > { %14444 = vmatprep.mubr.msk.f32.mxu0 %vm15512_vm1, %v15508_v1  ;;  %1096 = vmatpush2.msra.mxu1 %v656_v6  ;;  %v696_v6 = vld [vmem:[#allocation5 + $0x440] sm:$0xff] }
  0xeb   : > { %14446 = vmatmul.mubr.msk.f32.vlgmr.msra.gmra.mxu0 %vm15512_vm1, %v15516_v5  ;;  %14448 = vmatprep.mubr.msk.f32.mxu1 %vm15512_vm1, %v15518_v7  ;;  %p15166_p6 = pnand %p15165_p12, %p15159_p9 }
  0xec   : > { %1110 = vmatprep.subr.mxu0 %v719_v8  ;;  %1187 = vmatprep.subr.mxu1 %v783_v10  ;;  %v760_v8 = vld [vmem:[#allocation5 + $0x640] sm:$0xff]  ;;  %v15559_v10 = vsel %vm461_vm0, %v15508_v1, %v468_v50 }
  0xed   : > { %14450 = vmatmul.mubr.msk.f32.vlgmr.msra.gmra.mxu1 %vm15512_vm1, %v15520_v9  ;;  %1111 = vmatpush1.msra.mxu0 %v718_v11  ;;  %v15563_v11 = vsel %vm461_vm0, %v15516_v5, %v466_v54  ;;  %v532_v5 = vrot.slane %v15550_v0, 2 }
  0xee   : > { %1188 = vmatpush1.msra.mxu1 %v782_v12  ;;  %1112 = vmatprep.subr.mxu0 %v717_v13  ;;  %v15569_v12 = vsel %vm461_vm0, %v15518_v7, %v472_v58  ;;  %v541_v13 = vrot.slane %v15554_v2, 2  ;;  %v533_v1 = vrot.slane %v15563_v11, 2  ;;  %v15580_v7 = vsel %vm461_vm0, %v15520_v9, %v470_v63 }
  0xef   : > { %1189 = vmatprep.subr.mxu1 %v781_v14  ;;  %1113 = vmatpush1.msra.mxu0 %v716_v15  ;;  %v695_v14 = vld [vmem:[#allocation5 + $0x438] sm:$0xff] }
  0xf0   : > { %1190 = vmatpush1.msra.mxu1 %v780_v16  ;;  %1114 = vmatprep.subr.mxu0 %v715_v17  ;;  %v759_v15 = vld [vmem:[#allocation5 + $0x638] sm:$0xff]  ;;  %v536_v16 = vrot.slane %v15559_v10, 2  ;;  %v542_v17 = vrot.slane %v15569_v12, 2 }
  0xf1   : > { %1191 = vmatprep.subr.mxu1 %v779_v18  ;;  %1115 = vmatpush1.msra.mxu0 %v714_v19  ;;  %v694_v18 = vld [vmem:[#allocation5 + $0x430] sm:$0xff] }
  0xf2   : > { %1192 = vmatpush1.msra.mxu1 %v778_v20  ;;  %1116 = vmatprep.subr.mxu0 %v713_v21  ;;  %v758_v19 = vld [vmem:[#allocation5 + $0x630] sm:$0xff]  ;;  %v15584_v20 = vsel %vm461_vm0, 0.0, %v15520_v9  ;;  %v693_v21 = vld [vmem:[#allocation5 + $0x428] sm:$0xff]  ;;  %v691_v9 = vld [vmem:[#allocation5 + $0x418] sm:$0xff] }
  0xf3   : > { %1193 = vmatprep.subr.mxu1 %v777_v22  ;;  %1117 = vmatpush1.msra.mxu0 %v712_v23  ;;  %v757_v22 = vld [vmem:[#allocation5 + $0x628] sm:$0xff]  ;;  %v539_v23 = vrot.slane %v15580_v7, 2 }
  0xf4   : > { %1194 = vmatpush1.msra.mxu1 %v776_v24  ;;  %1118 = vmatprep.subr.mxu0 %v711_v25  ;;  %v538_v24 = vrot.slane %v15584_v20, 2  ;;  %v692_v25 = vld [vmem:[#allocation5 + $0x420] sm:$0xff] }
  0xf5   : > { %1195 = vmatprep.subr.mxu1 %v775_v26  ;;  %1119 = vmatpush1.msra.mxu0 %v710_v27  ;;  %v756_v26 = vld [vmem:[#allocation5 + $0x620] sm:$0xff]  ;;  %v15589_v27 = vsel %vm461_vm0, %v468_v50, 0.0 }
  0xf6   : > { %1196 = vmatpush1.msra.mxu1 %v774_v28  ;;  %1120 = vmatprep.subr.mxu0 %v709_v29  ;;  %v15592_v28 = vsel %vm461_vm0, %v466_v54, 0.0  ;;  %v755_v29 = vld [vmem:[#allocation5 + $0x618] sm:$0xff]  ;;  %v748_v50 = vld [vmem:[#allocation5 + $0x5e0] sm:$0xff]  ;;  %v746_v54 = vld [vmem:[#allocation5 + $0x5d0] sm:$0xff] }
  0xf7   : > { %1197 = vmatprep.subr.mxu1 %v773_v30  ;;  %1121 = vmatpush1.msra.mxu0 %v708_v31  ;;  %v15595_v30 = vsel %vm531_vm2, %v535_v3, %v536_v16  ;;  %v15600_v31 = vsel %vm531_vm2, %v541_v13, %v542_v17  ;;  %v808_v3 = vld [vmem:[#allocation5 + $0x7c0] sm:$0xff]  ;;  %v742_v13 = vld [vmem:[#allocation5 + $0x5b0] sm:$0xff] }
  0xf8   : > { %1198 = vmatpush1.msra.mxu1 %v772_v32  ;;  %1122 = vmatprep.subr.mxu0 %v707_v33  ;;  %v15603_v32 = vsel %vm531_vm2, %v532_v5, %v533_v1  ;;  %v546_v33 = vrot.slane %v15589_v27, 2  ;;  %v804_v5 = vld [vmem:[#allocation5 + $0x7a0] sm:$0xff] }
  0xf9   : > { %1199 = vmatprep.subr.mxu1 %v771_v34  ;;  %1123 = vmatpush1.msra.mxu0 %v706_v35  ;;  %v690_v34 = vld [vmem:[#allocation5 + $0x410] sm:$0xff] }
  0xfa   : > { %1200 = vmatpush1.msra.mxu1 %v770_v36  ;;  %1124 = vmatprep.subr.mxu0 %v705_v37  ;;  %v754_v35 = vld [vmem:[#allocation5 + $0x610] sm:$0xff]  ;;  %v544_v36 = vrot.slane %v15592_v28, 2  ;;  %v689_v37 = vld [vmem:[#allocation5 + $0x408] sm:$0xff] }
  0xfb   : > { %1201 = vmatprep.subr.mxu1 %v769_v38  ;;  %1125 = vmatpush1.msra.mxu0 %v704_v39  ;;  %v753_v38 = vld [vmem:[#allocation5 + $0x608] sm:$0xff]  ;;  %v15610_v39 = vsel %vm531_vm2, %v538_v24, %v539_v23 }
  0xfc   : > { %1202 = vmatpush1.msra.mxu1 %v768_v40  ;;  %1126 = vmatprep.subr.mxu0 %v703_v41  ;;  %v15613_v40 = vsel %vm531_vm2, %v536_v16, %v546_v33  ;;  %v688_v41 = vld [vmem:[#allocation5 + $0x400] sm:$0xff]  ;;  %v805_v16 = vld [vmem:[#allocation5 + $0x7a8] sm:$0xff]  ;;  %v799_v33 = vld [vmem:[#allocation5 + $0x778] sm:$0xff] }
  0xfd   : > { %1203 = vmatprep.subr.mxu1 %v767_v42  ;;  %1127 = vmatpush1.msra.mxu0 %v702_v43  ;;  %v752_v42 = vld [vmem:[#allocation5 + $0x600] sm:$0xff]  ;;  %v15616_v43 = vsel %vm531_vm2, %v533_v1, %v544_v36  ;;  %v737_v24 = vld [vmem:[#allocation5 + $0x588] sm:$0xff] }
  0xfe   : > { %1204 = vmatpush1.msra.mxu1 %v766_v44  ;;  %1128 = vmatprep.subr.mxu0 %v701_v45  ;;  %v751_v44 = vld [vmem:[#allocation5 + $0x5f8] sm:$0xff]  ;;  %v740_v1 = vld [vmem:[#allocation5 + $0x5a0] sm:$0xff]  ;;  %v733_v36 = vld [vmem:[#allocation5 + $0x568] sm:$0xff] }
  0xff   : > { %1205 = vmatprep.subr.mxu1 %v765_v46  ;;  %1129 = vmatpush1.msra.mxu0 %v700_v48  ;;  %v815_v45 = vld [vmem:[#allocation5 + $0x7f8] sm:$0xff]  ;;  %v750_v46 = vld [vmem:[#allocation5 + $0x5f0] sm:$0xff]  ;;  %v749_v48 = vld [vmem:[#allocation5 + $0x5e8] sm:$0xff] }
 0x100   : > { %1206 = vmatpush1.msra.mxu1 %v764_v49  ;;  %1130 = vmatprep.subr.mxu0 %v699_v52  ;;  %v813_v49 = vld [vmem:[#allocation5 + $0x7e8] sm:$0xff]  ;;  %v747_v52 = vld [vmem:[#allocation5 + $0x5d8] sm:$0xff] }
 0x101   : > { %1207 = vmatprep.subr.mxu1 %v763_v53  ;;  %1131 = vmatpush1.msra.mxu0 %v698_v56  ;;  %v811_v53 = vld [vmem:[#allocation5 + $0x7d8] sm:$0xff]  ;;  %v810_v56 = vld [vmem:[#allocation5 + $0x7d0] sm:$0xff] }
 0x102   : > { %1208 = vmatpush1.msra.mxu1 %v762_v57  ;;  %1132 = vmatprep.subr.mxu0 %v697_v61  ;;  %v745_v57 = vld [vmem:[#allocation5 + $0x5c8] sm:$0xff] }
 0x103   : > { %1209 = vmatprep.subr.mxu1 %v761_v62  ;;  %1133 = vmatpush1.msra.mxu0 %v696_v6  ;;  %v809_v61 = vld [vmem:[#allocation5 + $0x7c8] sm:$0xff]  ;;  %v744_v62 = vld [vmem:[#allocation5 + $0x5c0] sm:$0xff]  ;;  %v743_v6 = vld [vmem:[#allocation5 + $0x5b8] sm:$0xff] }
 0x104   : > { %1210 = vmatpush1.msra.mxu1 %v760_v8  ;;  %1134 = vmatprep.subr.mxu0 %v695_v14  ;;  %v807_v8 = vld [vmem:[#allocation5 + $0x7b8] sm:$0xff]  ;;  %v806_v14 = vld [vmem:[#allocation5 + $0x7b0] sm:$0xff] }
 0x105   : > { %1211 = vmatprep.subr.mxu1 %v759_v15  ;;  %1135 = vmatpush1.msra.mxu0 %v694_v18  ;;  %v741_v15 = vld [vmem:[#allocation5 + $0x5a8] sm:$0xff]  ;;  %v739_v18 = vld [vmem:[#allocation5 + $0x598] sm:$0xff] }
 0x106   : > { %1212 = vmatpush1.msra.mxu1 %v758_v19  ;;  %1136 = vmatprep.subr.mxu0 %v693_v21  ;;  %v803_v19 = vld [vmem:[#allocation5 + $0x798] sm:$0xff]  ;;  %v738_v21 = vld [vmem:[#allocation5 + $0x590] sm:$0xff] }
 0x107   : > { %1213 = vmatprep.subr.mxu1 %v757_v22  ;;  %1137 = vmatpush1.msra.mxu0 %v692_v25  ;;  %v802_v22 = vld [vmem:[#allocation5 + $0x790] sm:$0xff]  ;;  %v801_v25 = vld [vmem:[#allocation5 + $0x788] sm:$0xff] }
 0x108   : > { %1214 = vmatpush1.msra.mxu1 %v756_v26  ;;  %1138 = vmatprep.subr.mxu0 %v691_v9  ;;  %v736_v26 = vld [vmem:[#allocation5 + $0x580] sm:$0xff] }
 0x109   : > { %1215 = vmatprep.subr.mxu1 %v755_v29  ;;  %1139 = vmatpush1.msra.mxu0 %v690_v34  ;;  %v800_v9 = vld [vmem:[#allocation5 + $0x780] sm:$0xff]  ;;  %v735_v29 = vld [vmem:[#allocation5 + $0x578] sm:$0xff]  ;;  %v734_v34 = vld [vmem:[#allocation5 + $0x570] sm:$0xff] }
 0x10a   : > { %1216 = vmatpush1.msra.mxu1 %v754_v35  ;;  %1140 = vmatprep.subr.mxu0 %v689_v37  ;;  %v798_v35 = vld [vmem:[#allocation5 + $0x770] sm:$0xff]  ;;  %v797_v37 = vld [vmem:[#allocation5 + $0x768] sm:$0xff] }
 0x10b   : > { %1217 = vmatprep.subr.mxu1 %v753_v38  ;;  %1141 = vmatpush1.msra.mxu0 %v688_v41  ;;  %v732_v38 = vld [vmem:[#allocation5 + $0x560] sm:$0xff] }
 0x10c   : > { %1218 = vmatpush1.msra.mxu1 %v752_v42  ;;  %1142 = vmatprep.subr.mxu0 %v751_v44  ;;  %v796_v41 = vld [vmem:[#allocation5 + $0x760] sm:$0xff]  ;;  %v731_v42 = vld [vmem:[#allocation5 + $0x558] sm:$0xff] }
 0x10d   : > { %1219 = vmatprep.subr.mxu1 %v815_v45  ;;  %1143 = vmatpush2.msra.mxu0 %v750_v46  ;;  %v795_v44 = vld [vmem:[#allocation5 + $0x758] sm:$0xff]  ;;  %v730_v45 = vld [vmem:[#allocation5 + $0x550] sm:$0xff] }
 0x10e   : > { %1220 = vmatpush2.msra.mxu1 %v814_v47  ;;  %1144 = vmatprep.subr.mxu0 %v749_v48  ;;  %v794_v46 = vld [vmem:[#allocation5 + $0x750] sm:$0xff]  ;;  %v729_v47 = vld [vmem:[#allocation5 + $0x548] sm:$0xff] }
 0x10f   : > { %1221 = vmatprep.subr.mxu1 %v813_v49  ;;  %1145 = vmatpush2.msra.mxu0 %v748_v50  ;;  %v793_v48 = vld [vmem:[#allocation5 + $0x748] sm:$0xff]  ;;  %v728_v49 = vld [vmem:[#allocation5 + $0x540] sm:$0xff] }
 0x110   : > { %1222 = vmatpush2.msra.mxu1 %v812_v51  ;;  %1146 = vmatprep.subr.mxu0 %v747_v52  ;;  %v792_v50 = vld [vmem:[#allocation5 + $0x740] sm:$0xff]  ;;  %v727_v51 = vld [vmem:[#allocation5 + $0x538] sm:$0xff] }
 0x111   : > { %1223 = vmatprep.subr.mxu1 %v811_v53  ;;  %1147 = vmatpush2.msra.mxu0 %v746_v54  ;;  %v791_v52 = vld [vmem:[#allocation5 + $0x738] sm:$0xff]  ;;  %v726_v53 = vld [vmem:[#allocation5 + $0x530] sm:$0xff] }
 0x112   : > { %1224 = vmatpush2.msra.mxu1 %v810_v56  ;;  %1148 = vmatprep.subr.mxu0 %v745_v57  ;;  %v790_v54 = vld [vmem:[#allocation5 + $0x730] sm:$0xff]  ;;  %v725_v56 = vld [vmem:[#allocation5 + $0x528] sm:$0xff] }
 0x113   : > { %1225 = vmatprep.subr.mxu1 %v809_v61  ;;  %1149 = vmatpush2.msra.mxu0 %v744_v62  ;;  %v789_v57 = vld [vmem:[#allocation5 + $0x728] sm:$0xff]  ;;  %v724_v61 = vld [vmem:[#allocation5 + $0x520] sm:$0xff] }
 0x114   : > { %1226 = vmatpush2.msra.mxu1 %v808_v3  ;;  %1150 = vmatprep.subr.mxu0 %v743_v6  ;;  %v788_v62 = vld [vmem:[#allocation5 + $0x720] sm:$0xff]  ;;  %v507_v3 = vrot.slane %v15559_v10, 1  ;;  %v723_v6 = vld [vmem:[#allocation5 + $0x518] sm:$0xff] }
 0x115   : > { %1227 = vmatprep.subr.mxu1 %v807_v8  ;;  %1151 = vmatpush2.msra.mxu0 %v742_v13  ;;  %v506_v8 = vrot.slane %v15545_v60, 1  ;;  %v504_v13 = vrot.slane %v15563_v11, 1  ;;  %v510_v60 = vrot.slane %v15580_v7, 1 }
 0x116   : > { %1228 = vmatpush2.msra.mxu1 %v806_v14  ;;  %1152 = vmatprep.subr.mxu0 %v741_v15  ;;  %v787_v14 = vld [vmem:[#allocation5 + $0x718] sm:$0xff]  ;;  %v503_v15 = vrot.slane %v15550_v0, 1  ;;  %v720_v0 = vld [vmem:[#allocation5 + $0x500] sm:$0xff] }
 0x117   : > { %1229 = vmatprep.subr.mxu1 %v805_v16  ;;  %1153 = vmatpush2.msra.mxu0 %v740_v1  ;;  %v513_v16 = vrot.slane %v15569_v12, 1  ;;  %v722_v1 = vld [vmem:[#allocation5 + $0x510] sm:$0xff] }
 0x118   : > { %1230 = vmatpush2.msra.mxu1 %v804_v5  ;;  %1154 = vmatprep.subr.mxu0 %v739_v18  ;;  %v786_v5 = vld [vmem:[#allocation5 + $0x710] sm:$0xff]  ;;  %v721_v18 = vld [vmem:[#allocation5 + $0x508] sm:$0xff] }
 0x119   : > { %1231 = vmatprep.subr.mxu1 %v803_v19  ;;  %1155 = vmatpush2.msra.mxu0 %v738_v21  ;;  %v785_v19 = vld [vmem:[#allocation5 + $0x708] sm:$0xff]  ;;  %v508_v21 = vsel %vm502_vm3, %v506_v8, %v507_v3  ;;  %v899_v8 = vld [vmem:[#allocation5 + $0xa98] sm:$0xff] }
 0x11a   : > { %1232 = vmatpush2.msra.mxu1 %v802_v22  ;;  %1156 = vmatprep.subr.mxu0 %v737_v24  ;;  %v784_v22 = vld [vmem:[#allocation5 + $0x700] sm:$0xff] }
 0x11b   : > { %1233 = vmatprep.subr.mxu1 %v801_v25  ;;  %1157 = vmatpush2.msra.mxu0 %v736_v26  ;;  %v847_v25 = vld [vmem:[#allocation5 + $0x8f8] sm:$0xff]  ;;  %v517_v26 = vrot.slane %v15589_v27, 1  ;;  %v15644_v27 = vsel %vm461_vm0, %v470_v63, 0.0 }
 0x11c   : > { %1234 = vmatpush2.msra.mxu1 %v800_v9  ;;  %1158 = vmatprep.subr.mxu0 %v735_v29  ;;  %v911_v9 = vld [vmem:[#allocation5 + $0xaf8] sm:$0xff]  ;;  %v519_v59 = vrot.slane %v15644_v27, 1 }
 0x11d   : > { %1235 = vmatprep.subr.mxu1 %v799_v33  ;;  %1159 = vmatpush2.msra.mxu0 %v734_v34  ;;  %v515_v33 = vrot.slane %v15592_v28, 1  ;;  %v846_v34 = vld [vmem:[#allocation5 + $0x8f0] sm:$0xff]  ;;  %v844_v28 = vld [vmem:[#allocation5 + $0x8e0] sm:$0xff]  ;;  %v843_v63 = vld [vmem:[#allocation5 + $0x8d8] sm:$0xff] }
 0x11e   : > { %1236 = vmatpush2.msra.mxu1 %v798_v35  ;;  %1160 = vmatprep.subr.mxu0 %v733_v36  ;;  %v910_v35 = vld [vmem:[#allocation5 + $0xaf0] sm:$0xff] }
 0x11f   : > { %1237 = vmatprep.subr.mxu1 %v797_v37  ;;  %1161 = vmatpush2.msra.mxu0 %v732_v38  ;;  %v518_v37 = vsel %vm502_vm3, %v507_v3, %v517_v26  ;;  %v908_v38 = vld [vmem:[#allocation5 + $0xae0] sm:$0xff]  ;;  %v890_v26 = vld [vmem:[#allocation5 + $0xa50] sm:$0xff] }
 0x120   : > { %1238 = vmatpush2.msra.mxu1 %v796_v41  ;;  %1162 = vmatprep.subr.mxu0 %v731_v42  ;;  %v516_v41 = vsel %vm502_vm3, %v504_v13, %v515_v33  ;;  %v907_v42 = vld [vmem:[#allocation5 + $0xad8] sm:$0xff]  ;;  %v900_v3 = vld [vmem:[#allocation5 + $0xaa0] sm:$0xff] }
 0x121   : > { %1239 = vmatprep.subr.mxu1 %v795_v44  ;;  %1163 = vmatpush2.msra.mxu0 %v730_v45  ;;  %v842_v45 = vld [vmem:[#allocation5 + $0x8d0] sm:$0xff]  ;;  %v824_v33 = vld [vmem:[#allocation5 + $0x840] sm:$0xff] }
 0x122   : > { %1240 = vmatpush2.msra.mxu1 %v794_v46  ;;  %1164 = vmatprep.subr.mxu0 %v729_v47  ;;  %v906_v46 = vld [vmem:[#allocation5 + $0xad0] sm:$0xff]  ;;  %v841_v47 = vld [vmem:[#allocation5 + $0x8c8] sm:$0xff] }
 0x123   : > { %1241 = vmatprep.subr.mxu1 %v793_v48  ;;  %1165 = vmatpush2.msra.mxu0 %v728_v49  ;;  %v520_v48 = vsel %vm502_vm3, %v510_v60, %v519_v59  ;;  %v905_v49 = vld [vmem:[#allocation5 + $0xac8] sm:$0xff]  ;;  %v819_v59 = vld [vmem:[#allocation5 + $0x818] sm:$0xff] }
 0x124   : > { %1242 = vmatpush2.msra.mxu1 %v792_v50  ;;  %1166 = vmatprep.subr.mxu0 %v727_v51  ;;  %v840_v50 = vld [vmem:[#allocation5 + $0x8c0] sm:$0xff] }
 0x125   : > { %1243 = vmatprep.subr.mxu1 %v791_v52  ;;  %1167 = vmatpush2.msra.mxu0 %v726_v53  ;;  %v904_v51 = vld [vmem:[#allocation5 + $0xac0] sm:$0xff]  ;;  %v839_v52 = vld [vmem:[#allocation5 + $0x8b8] sm:$0xff] }
 0x126   : > { %1244 = vmatpush2.msra.mxu1 %v790_v54  ;;  %1026 = vmatprep.mubr.f32.mxu0 %v15559_v10  ;;  %v512_v10 = vrot.slane %v15554_v2, 1  ;;  %v505_v2 = vsel %vm502_vm3, %v503_v15, %v504_v13  ;;  %v903_v53 = vld [vmem:[#allocation5 + $0xab8] sm:$0xff]  ;;  %v838_v54 = vld [vmem:[#allocation5 + $0x8b0] sm:$0xff]  ;;  %v833_v15 = vld [vmem:[#allocation5 + $0x888] sm:$0xff] }
 0x127   : > { %1168 = vmatprep.subr.mxu0 %v725_v56  ;;  %1245 = vmatprep.subr.mxu1 %v789_v57  ;;  %v902_v56 = vld [vmem:[#allocation5 + $0xab0] sm:$0xff]  ;;  %v837_v57 = vld [vmem:[#allocation5 + $0x8a8] sm:$0xff] }
 0x128   : > { %1027 = vmatmul.mubr.f32.gmra.mxu0 %v15563_v11  ;;  %1246 = vmatpush2.msra.mxu1 %v788_v62  ;;  %v509_v11 = vrot.slane %v15584_v20, 1  ;;  %v514_v24 = vsel %vm502_vm3, %v512_v10, %v513_v16  ;;  %v15637_v20 = vsel %vm461_vm0, %v472_v58, 0.0  ;;  %v909_v58 = vld [vmem:[#allocation5 + $0xae8] sm:$0xff]  ;;  %v836_v62 = vld [vmem:[#allocation5 + $0x8a0] sm:$0xff]  ;;  %v834_v13 = vld [vmem:[#allocation5 + $0x890] sm:$0xff] }
 0x129   : > { %1169 = vmatpush2.msra.mxu0 %v724_v61  ;;  %1103 = vmatprep.mubr.f32.mxu1 %v15569_v12  ;;  %v521_v36 = vrot.slane %v15637_v20, 1  ;;  %v901_v61 = vld [vmem:[#allocation5 + $0xaa8] sm:$0xff]  ;;  %v831_v10 = vld [vmem:[#allocation5 + $0x878] sm:$0xff] }
 0x12a   : > { %1170 = vmatprep.subr.mxu0 %v723_v6  ;;  %1247 = vmatprep.subr.mxu1 %v787_v14  ;;  %v511_v29 = vsel %vm502_vm3, %v509_v11, %v510_v60  ;;  %v835_v6 = vld [vmem:[#allocation5 + $0x898] sm:$0xff]  ;;  %v898_v14 = vld [vmem:[#allocation5 + $0xa90] sm:$0xff]  ;;  %v829_v11 = vld [vmem:[#allocation5 + $0x868] sm:$0xff] }
 0x12b   : > { %1104 = vmatmul.mubr.f32.gmra.mxu1 %v15580_v7  ;;  %1171 = vmatpush2.msra.mxu0 %v722_v1  ;;  %v522_v44 = vsel %vm502_vm3, %v513_v16, %v521_v36  ;;  %v897_v16 = vld [vmem:[#allocation5 + $0xa88] sm:$0xff]  ;;  %v832_v1 = vld [vmem:[#allocation5 + $0x880] sm:$0xff]  ;;  %v895_v60 = vld [vmem:[#allocation5 + $0xa78] sm:$0xff] }
 0x12c   : > { %1248 = vmatpush2.msra.mxu1 %v786_v5  ;;  %1172 = vmatprep.subr.mxu0 %v721_v18  ;;  %v896_v5 = vld [vmem:[#allocation5 + $0xa80] sm:$0xff]  ;;  %v830_v18 = vld [vmem:[#allocation5 + $0x870] sm:$0xff] }
 0x12d   : > { %1249 = vmatprep.subr.mxu1 %v785_v19  ;;  %1173 = vmatpush2.msra.mxu0 %v720_v0  ;;  %v894_v19 = vld [vmem:[#allocation5 + $0xa70] sm:$0xff]  ;;  %v893_v0 = vld [vmem:[#allocation5 + $0xa68] sm:$0xff]  ;;  %v1505_v12 = vld [vmem:[#allocation8 + $0xf8] sm:$0xff] }
 0x12e   : > { %1174 = vmatprep.mubr.f32.mxu0 %v508_v21  ;;  %1250 = vmatpush2.msra.mxu1 %v784_v22  ;;  %v828_v21 = vld [vmem:[#allocation5 + $0x860] sm:$0xff]  ;;  %v886_v36 = vld [vmem:[#allocation5 + $0xa30] sm:$0xff] }
 0x12f   : > { %1175 = vmatmul.mubr.f32.vlgmr.msra.gmra.mxu0 %v505_v2  ;;  %1251 = vmatprep.mubr.f32.mxu1 %v514_v24  ;;  %v892_v22 = vld [vmem:[#allocation5 + $0xa60] sm:$0xff]  ;;  %v827_v2 = vld [vmem:[#allocation5 + $0x858] sm:$0xff] }
 0x130   : > { %1264 = vmatprep.subr.mxu0 %v847_v25  ;;  %1341 = vmatprep.subr.mxu1 %v911_v9  ;;  %v891_v24 = vld [vmem:[#allocation5 + $0xa58] sm:$0xff]  ;;  %v826_v25 = vld [vmem:[#allocation5 + $0x850] sm:$0xff]  ;;  %v825_v9 = vld [vmem:[#allocation5 + $0x848] sm:$0xff] }
 0x131   : > { %1252 = vmatmul.mubr.f32.vlgmr.msra.gmra.mxu1 %v511_v29  ;;  %1265 = vmatpush1.msra.mxu0 %v846_v34  ;;  %v889_v29 = vld [vmem:[#allocation5 + $0xa48] sm:$0xff]  ;;  %v888_v34 = vld [vmem:[#allocation5 + $0xa40] sm:$0xff]  ;;  %v1536_v7 = vld [vmem:[#allocation8 + $0x1f0] sm:$0xff] }
 0x132   : > { %1342 = vmatpush1.msra.mxu1 %v910_v35  ;;  %1266 = vmatprep.subr.mxu0 %v845_v55  ;;  %v823_v35 = vld [vmem:[#allocation5 + $0x838] sm:$0xff] }
 0x133   : > { %1343 = vmatprep.subr.mxu1 %v909_v58  ;;  %1180 = vmatprep.mubr.f32.mxu0 %v518_v37  ;;  %v887_v55 = vld [vmem:[#allocation5 + $0xa38] sm:$0xff]  ;;  %v822_v58 = vld [vmem:[#allocation5 + $0x830] sm:$0xff]  ;;  %v821_v37 = vld [vmem:[#allocation5 + $0x828] sm:$0xff] }
 0x134   : > { %1267 = vmatpush1.msra.mxu0 %v844_v28  ;;  %1344 = vmatpush1.msra.mxu1 %v908_v38  ;;  %v885_v28 = vld [vmem:[#allocation5 + $0xa28] sm:$0xff]  ;;  %v820_v38 = vld [vmem:[#allocation5 + $0x820] sm:$0xff] }
 0x135   : > { %1181 = vmatmul.mubr.f32.gmra.mxu0 %v516_v41  ;;  %1268 = vmatprep.subr.mxu0 %v843_v63  ;;  %v884_v41 = vld [vmem:[#allocation5 + $0xa20] sm:$0xff]  ;;  %v883_v63 = vld [vmem:[#allocation5 + $0xa18] sm:$0xff] }
 0x136   : > { %1345 = vmatprep.subr.mxu1 %v907_v42  ;;  %1257 = vmatprep.mubr.f32.mxu1 %v522_v44  ;;  %v818_v42 = vld [vmem:[#allocation5 + $0x810] sm:$0xff] }
 0x137   : > { %1269 = vmatpush1.msra.mxu0 %v842_v45  ;;  %1346 = vmatpush1.msra.mxu1 %v906_v46  ;;  %v882_v44 = vld [vmem:[#allocation5 + $0xa10] sm:$0xff]  ;;  %v817_v45 = vld [vmem:[#allocation5 + $0x808] sm:$0xff] }
 0x138   : > { %1270 = vmatprep.subr.mxu0 %v841_v47  ;;  %1258 = vmatmul.mubr.f32.gmra.mxu1 %v520_v48  ;;  %v881_v46 = vld [vmem:[#allocation5 + $0xa08] sm:$0xff]  ;;  %v816_v47 = vld [vmem:[#allocation5 + $0x800] sm:$0xff] }
 0x139   : > { %1347 = vmatprep.subr.mxu1 %v905_v49  ;;  %1271 = vmatpush1.msra.mxu0 %v840_v50  ;;  %v880_v48 = vld [vmem:[#allocation5 + $0xa00] sm:$0xff]  ;;  %v879_v49 = vld [vmem:[#allocation5 + $0x9f8] sm:$0xff] }
 0x13a   : > { %1348 = vmatpush1.msra.mxu1 %v904_v51  ;;  %1272 = vmatprep.subr.mxu0 %v839_v52  ;;  %v943_v50 = vld [vmem:[#allocation5 + $0xbf8] sm:$0xff]  ;;  %v878_v51 = vld [vmem:[#allocation5 + $0x9f0] sm:$0xff] }
 0x13b   : > { %1349 = vmatprep.subr.mxu1 %v903_v53  ;;  %1273 = vmatpush1.msra.mxu0 %v838_v54  ;;  %v942_v52 = vld [vmem:[#allocation5 + $0xbf0] sm:$0xff]  ;;  %v877_v53 = vld [vmem:[#allocation5 + $0x9e8] sm:$0xff] }
 0x13c   : > { %1350 = vmatpush1.msra.mxu1 %v902_v56  ;;  %1274 = vmatprep.subr.mxu0 %v837_v57  ;;  %v941_v54 = vld [vmem:[#allocation5 + $0xbe8] sm:$0xff]  ;;  %v876_v56 = vld [vmem:[#allocation5 + $0x9e0] sm:$0xff] }
 0x13d   : > { %1351 = vmatprep.subr.mxu1 %v901_v61  ;;  %1275 = vmatpush1.msra.mxu0 %v836_v62  ;;  %v940_v57 = vld [vmem:[#allocation5 + $0xbe0] sm:$0xff]  ;;  %v875_v61 = vld [vmem:[#allocation5 + $0x9d8] sm:$0xff] }
 0x13e   : > { %1352 = vmatpush1.msra.mxu1 %v900_v3  ;;  %1276 = vmatprep.subr.mxu0 %v835_v6  ;;  %v939_v62 = vld [vmem:[#allocation5 + $0xbd8] sm:$0xff]  ;;  %v874_v3 = vld [vmem:[#allocation5 + $0x9d0] sm:$0xff] }
 0x13f   : > { %1353 = vmatprep.subr.mxu1 %v899_v8  ;;  %1277 = vmatpush1.msra.mxu0 %v834_v13  ;;  %v938_v6 = vld [vmem:[#allocation5 + $0xbd0] sm:$0xff]  ;;  %v873_v8 = vld [vmem:[#allocation5 + $0x9c8] sm:$0xff] }
 0x140   : > { %1354 = vmatpush1.msra.mxu1 %v898_v14  ;;  %1278 = vmatprep.subr.mxu0 %v833_v15  ;;  %v937_v13 = vld [vmem:[#allocation5 + $0xbc8] sm:$0xff]  ;;  %v872_v14 = vld [vmem:[#allocation5 + $0x9c0] sm:$0xff] }
 0x141   : > { %1355 = vmatprep.subr.mxu1 %v897_v16  ;;  %1279 = vmatpush1.msra.mxu0 %v832_v1  ;;  %v936_v15 = vld [vmem:[#allocation5 + $0xbc0] sm:$0xff]  ;;  %v871_v16 = vld [vmem:[#allocation5 + $0x9b8] sm:$0xff] }
 0x142   : > { %1356 = vmatpush1.msra.mxu1 %v896_v5  ;;  %1280 = vmatprep.subr.mxu0 %v831_v10  ;;  %v935_v1 = vld [vmem:[#allocation5 + $0xbb8] sm:$0xff]  ;;  %v870_v5 = vld [vmem:[#allocation5 + $0x9b0] sm:$0xff] }
 0x143   : > { %1357 = vmatprep.subr.mxu1 %v895_v60  ;;  %1281 = vmatpush1.msra.mxu0 %v830_v18  ;;  %v934_v10 = vld [vmem:[#allocation5 + $0xbb0] sm:$0xff]  ;;  %v869_v60 = vld [vmem:[#allocation5 + $0x9a8] sm:$0xff] }
 0x144   : > { %1358 = vmatpush1.msra.mxu1 %v894_v19  ;;  %1282 = vmatprep.subr.mxu0 %v829_v11  ;;  %v933_v18 = vld [vmem:[#allocation5 + $0xba8] sm:$0xff]  ;;  %v868_v19 = vld [vmem:[#allocation5 + $0x9a0] sm:$0xff] }
 0x145   : > { %1359 = vmatprep.subr.mxu1 %v893_v0  ;;  %1283 = vmatpush1.msra.mxu0 %v828_v21  ;;  %v932_v11 = vld [vmem:[#allocation5 + $0xba0] sm:$0xff]  ;;  %v867_v0 = vld [vmem:[#allocation5 + $0x998] sm:$0xff] }
 0x146   : > { %1360 = vmatpush1.msra.mxu1 %v892_v22  ;;  %1284 = vmatprep.subr.mxu0 %v827_v2  ;;  %v931_v21 = vld [vmem:[#allocation5 + $0xb98] sm:$0xff]  ;;  %v866_v22 = vld [vmem:[#allocation5 + $0x990] sm:$0xff] }
 0x147   : > { %1361 = vmatprep.subr.mxu1 %v891_v24  ;;  %1285 = vmatpush1.msra.mxu0 %v826_v25  ;;  %v930_v2 = vld [vmem:[#allocation5 + $0xb90] sm:$0xff]  ;;  %v865_v24 = vld [vmem:[#allocation5 + $0x988] sm:$0xff] }
 0x148   : > { %1362 = vmatpush1.msra.mxu1 %v890_v26  ;;  %1286 = vmatprep.subr.mxu0 %v825_v9  ;;  %v929_v25 = vld [vmem:[#allocation5 + $0xb88] sm:$0xff]  ;;  %v864_v26 = vld [vmem:[#allocation5 + $0x980] sm:$0xff] }
 0x149   : > { %1363 = vmatprep.subr.mxu1 %v889_v29  ;;  %1287 = vmatpush1.msra.mxu0 %v824_v33  ;;  %v928_v9 = vld [vmem:[#allocation5 + $0xb80] sm:$0xff]  ;;  %v863_v29 = vld [vmem:[#allocation5 + $0x978] sm:$0xff] }
 0x14a   : > { %1364 = vmatpush1.msra.mxu1 %v888_v34  ;;  %1288 = vmatprep.subr.mxu0 %v823_v35  ;;  %v927_v33 = vld [vmem:[#allocation5 + $0xb78] sm:$0xff]  ;;  %v862_v34 = vld [vmem:[#allocation5 + $0x970] sm:$0xff] }
 0x14b   : > { %1365 = vmatprep.subr.mxu1 %v887_v55  ;;  %1289 = vmatpush1.msra.mxu0 %v822_v58  ;;  %v926_v35 = vld [vmem:[#allocation5 + $0xb70] sm:$0xff]  ;;  %v861_v55 = vld [vmem:[#allocation5 + $0x968] sm:$0xff] }
 0x14c   : > { %1366 = vmatpush1.msra.mxu1 %v886_v36  ;;  %1290 = vmatprep.subr.mxu0 %v821_v37  ;;  %v925_v58 = vld [vmem:[#allocation5 + $0xb68] sm:$0xff]  ;;  %v860_v36 = vld [vmem:[#allocation5 + $0x960] sm:$0xff] }
 0x14d   : > { %1367 = vmatprep.subr.mxu1 %v885_v28  ;;  %1291 = vmatpush1.msra.mxu0 %v820_v38  ;;  %v924_v37 = vld [vmem:[#allocation5 + $0xb60] sm:$0xff]  ;;  %v859_v28 = vld [vmem:[#allocation5 + $0x958] sm:$0xff] }
 0x14e   : > { %1368 = vmatpush1.msra.mxu1 %v884_v41  ;;  %1292 = vmatprep.subr.mxu0 %v819_v59  ;;  %v923_v38 = vld [vmem:[#allocation5 + $0xb58] sm:$0xff]  ;;  %v858_v41 = vld [vmem:[#allocation5 + $0x950] sm:$0xff] }
 0x14f   : > { %1369 = vmatprep.subr.mxu1 %v883_v63  ;;  %1293 = vmatpush1.msra.mxu0 %v818_v42  ;;  %v922_v59 = vld [vmem:[#allocation5 + $0xb50] sm:$0xff]  ;;  %v857_v63 = vld [vmem:[#allocation5 + $0x948] sm:$0xff] }
 0x150   : > { %1370 = vmatpush1.msra.mxu1 %v882_v44  ;;  %1294 = vmatprep.subr.mxu0 %v817_v45  ;;  %v921_v42 = vld [vmem:[#allocation5 + $0xb48] sm:$0xff]  ;;  %v856_v44 = vld [vmem:[#allocation5 + $0x940] sm:$0xff] }
 0x151   : > { %1371 = vmatprep.subr.mxu1 %v881_v46  ;;  %1295 = vmatpush1.msra.mxu0 %v816_v47  ;;  %v920_v45 = vld [vmem:[#allocation5 + $0xb40] sm:$0xff]  ;;  %v855_v46 = vld [vmem:[#allocation5 + $0x938] sm:$0xff] }
 0x152   : > { %1372 = vmatpush1.msra.mxu1 %v880_v48  ;;  %1296 = vmatprep.subr.mxu0 %v879_v49  ;;  %v919_v47 = vld [vmem:[#allocation5 + $0xb38] sm:$0xff]  ;;  %v854_v48 = vld [vmem:[#allocation5 + $0x930] sm:$0xff] }
 0x153   : > { %1373 = vmatprep.subr.mxu1 %v943_v50  ;;  %1297 = vmatpush2.msra.mxu0 %v878_v51  ;;  %v918_v49 = vld [vmem:[#allocation5 + $0xb30] sm:$0xff]  ;;  %v853_v50 = vld [vmem:[#allocation5 + $0x928] sm:$0xff] }
 0x154   : > { %1374 = vmatpush2.msra.mxu1 %v942_v52  ;;  %1298 = vmatprep.subr.mxu0 %v877_v53  ;;  %v917_v51 = vld [vmem:[#allocation5 + $0xb28] sm:$0xff]  ;;  %v852_v52 = vld [vmem:[#allocation5 + $0x920] sm:$0xff] }
 0x155   : > { %1375 = vmatprep.subr.mxu1 %v941_v54  ;;  %1299 = vmatpush2.msra.mxu0 %v876_v56  ;;  %v916_v53 = vld [vmem:[#allocation5 + $0xb20] sm:$0xff]  ;;  %v851_v54 = vld [vmem:[#allocation5 + $0x918] sm:$0xff] }
 0x156   : > { %1376 = vmatpush2.msra.mxu1 %v940_v57  ;;  %1300 = vmatprep.subr.mxu0 %v875_v61  ;;  %v915_v56 = vld [vmem:[#allocation5 + $0xb18] sm:$0xff]  ;;  %v850_v57 = vld [vmem:[#allocation5 + $0x910] sm:$0xff] }
 0x157   : > { %1377 = vmatprep.subr.mxu1 %v939_v62  ;;  %1301 = vmatpush2.msra.mxu0 %v874_v3  ;;  %v914_v61 = vld [vmem:[#allocation5 + $0xb10] sm:$0xff]  ;;  %v849_v62 = vld [vmem:[#allocation5 + $0x908] sm:$0xff] }
 0x158   : > { %1378 = vmatpush2.msra.mxu1 %v938_v6  ;;  %1302 = vmatprep.subr.mxu0 %v873_v8  ;;  %v913_v3 = vld [vmem:[#allocation5 + $0xb08] sm:$0xff]  ;;  %v550_v6 = vrot.slane %v15637_v20, 2  ;;  %v848_v8 = vld [vmem:[#allocation5 + $0x900] sm:$0xff] }
 0x159   : > { %1379 = vmatprep.subr.mxu1 %v937_v13  ;;  %1303 = vmatpush2.msra.mxu0 %v872_v14  ;;  %v912_v13 = vld [vmem:[#allocation5 + $0xb00] sm:$0xff]  ;;  %v548_v14 = vrot.slane %v15644_v27, 2  ;;  %v1488_v27 = vld [vmem:[#allocation8 + $0x70] sm:$0xff] }
 0x15a   : > { %1380 = vmatpush2.msra.mxu1 %v936_v15  ;;  %1304 = vmatprep.subr.mxu0 %v871_v16  ;;  %v551_v15 = vsel %vm531_vm2, %v542_v17, %v550_v6  ;;  %v1504_v17 = vld [vmem:[#allocation8 + $0xf0] sm:$0xff]  ;;  %v1521_v16 = vld [vmem:[#allocation8 + $0x178] sm:$0xff] }
 0x15b   : > { %1381 = vmatprep.subr.mxu1 %v935_v1  ;;  %1305 = vmatpush2.msra.mxu0 %v870_v5  ;;  %v549_v20 = vsel %vm531_vm2, %v539_v23, %v548_v14  ;;  %v1486_v23 = vld [vmem:[#allocation8 + $0x60] sm:$0xff]  ;;  %v1501_v1 = vld [vmem:[#allocation8 + $0xd8] sm:$0xff]  ;;  %v1535_v5 = vld [vmem:[#allocation8 + $0x1e8] sm:$0xff] }
 0x15c   : > { %1382 = vmatpush2.msra.mxu1 %v934_v10  ;;  %1306 = vmatprep.subr.mxu0 %v869_v60  ;;  %v1519_v10 = vld [vmem:[#allocation8 + $0x168] sm:$0xff]  ;;  %v1485_v60 = vld [vmem:[#allocation8 + $0x58] sm:$0xff]  ;;  %v1508_v14 = vld [vmem:[#allocation8 + $0x110] sm:$0xff] }
 0x15d   : > { %1383 = vmatprep.subr.mxu1 %v933_v18  ;;  %1307 = vmatpush2.msra.mxu0 %v868_v19  ;;  %v1534_v18 = vld [vmem:[#allocation8 + $0x1e0] sm:$0xff]  ;;  %v1500_v19 = vld [vmem:[#allocation8 + $0xd0] sm:$0xff]  ;;  %v1525_v6 = vld [vmem:[#allocation8 + $0x198] sm:$0xff] }
 0x15e   : > { %1384 = vmatpush2.msra.mxu1 %v932_v11  ;;  %1308 = vmatprep.subr.mxu0 %v867_v0  ;;  %v1518_v11 = vld [vmem:[#allocation8 + $0x160] sm:$0xff]  ;;  %v1484_v0 = vld [vmem:[#allocation8 + $0x50] sm:$0xff] }
 0x15f   : > { %1385 = vmatprep.subr.mxu1 %v931_v21  ;;  %1309 = vmatpush2.msra.mxu0 %v866_v22  ;;  %v1533_v21 = vld [vmem:[#allocation8 + $0x1d8] sm:$0xff]  ;;  %v1499_v22 = vld [vmem:[#allocation8 + $0xc8] sm:$0xff] }
 0x160   : > { %1386 = vmatpush2.msra.mxu1 %v930_v2  ;;  %1310 = vmatprep.subr.mxu0 %v865_v24  ;;  %v1517_v2 = vld [vmem:[#allocation8 + $0x158] sm:$0xff]  ;;  %v1483_v24 = vld [vmem:[#allocation8 + $0x48] sm:$0xff] }
 0x161   : > { %1387 = vmatprep.subr.mxu1 %v929_v25  ;;  %1311 = vmatpush2.msra.mxu0 %v864_v26  ;;  %v1532_v25 = vld [vmem:[#allocation8 + $0x1d0] sm:$0xff]  ;;  %v1498_v26 = vld [vmem:[#allocation8 + $0xc0] sm:$0xff] }
 0x162   : > { %1388 = vmatpush2.msra.mxu1 %v928_v9  ;;  %1312 = vmatprep.subr.mxu0 %v863_v29  ;;  %v1516_v9 = vld [vmem:[#allocation8 + $0x150] sm:$0xff]  ;;  %v1482_v29 = vld [vmem:[#allocation8 + $0x40] sm:$0xff] }
 0x163   : > { %1389 = vmatprep.subr.mxu1 %v927_v33  ;;  %1313 = vmatpush2.msra.mxu0 %v862_v34  ;;  %v1497_v33 = vld [vmem:[#allocation8 + $0xb8] sm:$0xff] }
 0x164   : > { %1390 = vmatpush2.msra.mxu1 %v926_v35  ;;  %1314 = vmatprep.subr.mxu0 %v861_v55  ;;  %v1481_v34 = vld [vmem:[#allocation8 + $0x38] sm:$0xff]  ;;  %v1496_v35 = vld [vmem:[#allocation8 + $0xb0] sm:$0xff] }
 0x165   : > { %1391 = vmatprep.subr.mxu1 %v925_v58  ;;  %1315 = vmatpush2.msra.mxu0 %v860_v36  ;;  %v1480_v55 = vld [vmem:[#allocation8 + $0x30] sm:$0xff]  ;;  %v1495_v58 = vld [vmem:[#allocation8 + $0xa8] sm:$0xff] }
 0x166   : > { %1392 = vmatpush2.msra.mxu1 %v924_v37  ;;  %1316 = vmatprep.subr.mxu0 %v859_v28  ;;  %v1479_v36 = vld [vmem:[#allocation8 + $0x28] sm:$0xff]  ;;  %v1494_v28 = vld [vmem:[#allocation8 + $0xa0] sm:$0xff] }
 0x167   : > { %1393 = vmatprep.subr.mxu1 %v923_v38  ;;  %1317 = vmatpush2.msra.mxu0 %v858_v41  ;;  %v1531_v37 = vld [vmem:[#allocation8 + $0x1c8] sm:$0xff]  ;;  %v1478_v41 = vld [vmem:[#allocation8 + $0x20] sm:$0xff] }
 0x168   : > { %1394 = vmatpush2.msra.mxu1 %v922_v59  ;;  %1318 = vmatprep.subr.mxu0 %v857_v63  ;;  %v1515_v38 = vld [vmem:[#allocation8 + $0x148] sm:$0xff]  ;;  %v1530_v59 = vld [vmem:[#allocation8 + $0x1c0] sm:$0xff]  ;;  %v1493_v63 = vld [vmem:[#allocation8 + $0x98] sm:$0xff] }
 0x169   : > { %1395 = vmatprep.subr.mxu1 %v921_v42  ;;  %1319 = vmatpush2.msra.mxu0 %v856_v44  ;;  %v1514_v42 = vld [vmem:[#allocation8 + $0x140] sm:$0xff]  ;;  %v1477_v44 = vld [vmem:[#allocation8 + $0x18] sm:$0xff] }
 0x16a   : > { %1396 = vmatpush2.msra.mxu1 %v920_v45  ;;  %1320 = vmatprep.subr.mxu0 %v855_v46  ;;  %v1529_v45 = vld [vmem:[#allocation8 + $0x1b8] sm:$0xff]  ;;  %v1492_v46 = vld [vmem:[#allocation8 + $0x90] sm:$0xff] }
 0x16b   : > { %1397 = vmatprep.subr.mxu1 %v919_v47  ;;  %1321 = vmatpush2.msra.mxu0 %v854_v48  ;;  %v1513_v47 = vld [vmem:[#allocation8 + $0x138] sm:$0xff]  ;;  %v1476_v48 = vld [vmem:[#allocation8 + $0x10] sm:$0xff] }
 0x16c   : > { %1398 = vmatpush2.msra.mxu1 %v918_v49  ;;  %1322 = vmatprep.subr.mxu0 %v853_v50  ;;  %v1528_v49 = vld [vmem:[#allocation8 + $0x1b0] sm:$0xff]  ;;  %v1491_v50 = vld [vmem:[#allocation8 + $0x88] sm:$0xff] }
 0x16d   : > { %1399 = vmatprep.subr.mxu1 %v917_v51  ;;  %1323 = vmatpush2.msra.mxu0 %v852_v52  ;;  %v1512_v51 = vld [vmem:[#allocation8 + $0x130] sm:$0xff]  ;;  %v1475_v52 = vld [vmem:[#allocation8 + $0x8] sm:$0xff] }
 0x16e   : > { %1400 = vmatpush2.msra.mxu1 %v916_v53  ;;  %1324 = vmatprep.subr.mxu0 %v851_v54  ;;  %v1527_v53 = vld [vmem:[#allocation8 + $0x1a8] sm:$0xff]  ;;  %v1490_v54 = vld [vmem:[#allocation8 + $0x80] sm:$0xff] }
 0x16f   : > { %1401 = vmatprep.subr.mxu1 %v915_v56  ;;  %1325 = vmatpush2.msra.mxu0 %v850_v57  ;;  %v1511_v56 = vld [vmem:[#allocation8 + $0x128] sm:$0xff]  ;;  %v1474_v57 = vld [vmem:[#allocation8] sm:$0xff] }
 0x170   : > { %1402 = vmatpush2.msra.mxu1 %v914_v61  ;;  %1326 = vmatprep.subr.mxu0 %v849_v62  ;;  %v1526_v61 = vld [vmem:[#allocation8 + $0x1a0] sm:$0xff] }
 0x171   : > { %1403 = vmatprep.subr.mxu1 %v913_v3  ;;  %1327 = vmatpush2.msra.mxu0 %v848_v8  ;;  %v1510_v62 = vld [vmem:[#allocation8 + $0x120] sm:$0xff]  ;;  %v1569_v3 = vld [vmem:[#allocation8 + $0x2f8] sm:$0xff] }
 0x172   : > { %1328 = vmatprep.mubr.f32.mxu0 %v15595_v30  ;;  %1404 = vmatpush2.msra.mxu1 %v912_v13  ;;  %v1489_v30 = vld [vmem:[#allocation8 + $0x78] sm:$0xff]  ;;  %v1524_v13 = vld [vmem:[#allocation8 + $0x190] sm:$0xff] }
 0x173   : > { %1405 = vmatprep.mubr.f32.mxu1 %v15600_v31  ;;  %1329 = vmatmul.mubr.f32.vlgmr.msra.gmra.mxu0 %v15603_v32  ;;  %v1503_v31 = vld [vmem:[#allocation8 + $0xe8] sm:$0xff]  ;;  %v1509_v8 = vld [vmem:[#allocation8 + $0x118] sm:$0xff] }
 0x174   : > { %1406 = vmatmul.mubr.f32.vlgmr.msra.gmra.mxu1 %v15610_v39  ;;  %1334 = vmatprep.mubr.f32.mxu0 %v15613_v40  ;;  %v1487_v32 = vld [vmem:[#allocation8 + $0x68] sm:$0xff]  ;;  %v1537_v39 = vld [vmem:[#allocation8 + $0x1f8] sm:$0xff]  ;;  %v1502_v40 = vld [vmem:[#allocation8 + $0xe0] sm:$0xff] }
 0x175   : > { %1411 = vmatprep.mubr.f32.mxu1 %v551_v15  ;;  %14598 = vmatprep.subr.mxu0 %v1505_v12  ;;  %v1523_v15 = vld [vmem:[#allocation8 + $0x188] sm:$0xff]  ;;  %v1522_v12 = vld [vmem:[#allocation8 + $0x180] sm:$0xff] }
 0x176   : > { %14599 = vmatpush3.msra.mxu0 %v1489_v30  ;;  %14636 = vmatprep.subr.mxu1 %v1537_v39  ;;  %v1506_v30 = vld [vmem:[#allocation8 + $0x100] sm:$0xff] }
 0x177   : > { %1335 = vmatmul.mubr.f32.gmra.mxu0 %v15616_v43  ;;  %14600 = vmatprep.subr.mxu0 %v1504_v17  ;;  %v1520_v43 = vld [vmem:[#allocation8 + $0x170] sm:$0xff] }
 0x178   : > { %1412 = vmatmul.mubr.f32.gmra.mxu1 %v549_v20  ;;  %14601 = vmatpush3.msra.mxu0 %v1488_v27  ;;  %v1507_v20 = vld [vmem:[#allocation8 + $0x108] sm:$0xff] }
 0x179   : > { %14602 = vmatprep.subr.mxu0 %v1503_v31  ;;  %14637 = vmatpush3.msra.mxu1 %v1521_v16  ;;  %v946_v31 = vlaneseq }
 0x17a   : > { %14603 = vmatpush3.msra.mxu0 %v1487_v32  ;;  %14638 = vmatprep.subr.mxu1 %v1536_v7 }
 0x17b   : > { %14604 = vmatprep.subr.mxu0 %v1502_v40  ;;  %14639 = vmatpush3.msra.mxu1 %v1520_v43  ;;  %v15666_v40 = vshrl.u32 %v946_v31, 7  ;;  %v944_v43 = vld [vmem:[#allocation7] sm:$0x3] }
 0x17c   : > { %14605 = vmatpush3.msra.mxu0 %v1486_v23  ;;  %14640 = vmatprep.subr.mxu1 %v1535_v5 }
 0x17d   : > { %14606 = vmatprep.subr.mxu0 %v1501_v1  ;;  %14641 = vmatpush3.msra.mxu1 %v1519_v10  ;;  %v948_v23 = vsub.s32 0, %v15666_v40  ;;  %v952_v10 = vsub.s32 1, %v15666_v40 }
 0x17e   : > { %14607 = vmatpush3.msra.mxu0 %v1485_v60  ;;  %14642 = vmatprep.subr.mxu1 %v1534_v18 }
 0x17f   : > { %14608 = vmatprep.subr.mxu0 %v1500_v19  ;;  %14643 = vmatpush3.msra.mxu1 %v1518_v11  ;;  %v949_v60 = vrot.slane %v944_v43, %v948_v23  ;;  %v953_v11 = vrot.slane %v944_v43, %v952_v10 }
 0x180   : > { %14609 = vmatpush3.msra.mxu0 %v1484_v0  ;;  %14644 = vmatprep.subr.mxu1 %v1533_v21 }
 0x181   : > { %14610 = vmatprep.subr.mxu0 %v1499_v22  ;;  %14645 = vmatpush3.msra.mxu1 %v1517_v2 }
 0x182   : > { %14611 = vmatpush3.msra.mxu0 %v1483_v24  ;;  %14646 = vmatprep.subr.mxu1 %v1532_v25 }
 0x183   : > { %14612 = vmatprep.subr.mxu0 %v1498_v26  ;;  %14647 = vmatpush3.msra.mxu1 %v1516_v9 }
 0x184   : > { %14613 = vmatpush3.msra.mxu0 %v1482_v29  ;;  %14648 = vmatprep.subr.mxu1 %v1531_v37 }
 0x185   : > { %14614 = vmatprep.subr.mxu0 %v1497_v33  ;;  %14649 = vmatpush3.msra.mxu1 %v1515_v38 }
 0x186   : > { %14615 = vmatpush3.msra.mxu0 %v1481_v34  ;;  %14650 = vmatprep.subr.mxu1 %v1530_v59 }
 0x187   : > { %14616 = vmatprep.subr.mxu0 %v1496_v35  ;;  %14651 = vmatpush3.msra.mxu1 %v1514_v42 }
 0x188   : > { %14617 = vmatpush3.msra.mxu0 %v1480_v55  ;;  %14652 = vmatprep.subr.mxu1 %v1529_v45 }
 0x189   : > { %14618 = vmatprep.subr.mxu0 %v1495_v58  ;;  %14653 = vmatpush3.msra.mxu1 %v1513_v47 }
 0x18a   : > { %14619 = vmatpush3.msra.mxu0 %v1479_v36  ;;  %14654 = vmatprep.subr.mxu1 %v1528_v49 }
 0x18b   : > { %14620 = vmatprep.subr.mxu0 %v1494_v28  ;;  %14655 = vmatpush3.msra.mxu1 %v1512_v51 }
 0x18c   : > { %14621 = vmatpush3.msra.mxu0 %v1478_v41  ;;  %14656 = vmatprep.subr.mxu1 %v1527_v53 }
 0x18d   : > { %14622 = vmatprep.subr.mxu0 %v1493_v63  ;;  %14657 = vmatpush3.msra.mxu1 %v1511_v56 }
 0x18e   : > { %14623 = vmatpush3.msra.mxu0 %v1477_v44  ;;  %14658 = vmatprep.subr.mxu1 %v1526_v61 }
 0x18f   : > { %14624 = vmatprep.subr.mxu0 %v1492_v46  ;;  %14659 = vmatpush3.msra.mxu1 %v1510_v62 }
 0x190   : > { %14625 = vmatpush3.msra.mxu0 %v1476_v48  ;;  %14660 = vmatprep.subr.mxu1 %v1525_v6 }
 0x191   : > { %14626 = vmatprep.subr.mxu0 %v1491_v50  ;;  %14661 = vmatpush3.msra.mxu1 %v1509_v8 }
 0x192   : > { %14627 = vmatpush3.msra.mxu0 %v1475_v52  ;;  %14662 = vmatprep.subr.mxu1 %v1524_v13 }
 0x193   : > { %14628 = vmatprep.subr.mxu0 %v1490_v54  ;;  %14663 = vmatpush3.msra.mxu1 %v1508_v14 }
 0x194   : > { %14629 = vmatpush3.msra.mxu0 %v1474_v57  ;;  %14664 = vmatprep.subr.mxu1 %v1523_v15 }
 0x195   : > { %14674 = vmatprep.subr.mxu0 %v1569_v3  ;;  %14665 = vmatpush3.msra.mxu1 %v1507_v20  ;;  %v1553_v20 = vld [vmem:[#allocation8 + $0x278] sm:$0xff] }
 0x196   : > { %14666 = vmatprep.subr.mxu1 %v1522_v12 }
 0x197   : > { %14667 = vmatpush3.msra.mxu1 %v1506_v30 }
 0x1ab   : > { %v1022_v17 = vpop.f32.mrf.mxu0 }
 0x1ac   : > { %v1023_v0 = vadd.f32 %v1022_v17, %v949_v60  ;;  %v1568_v17 = vld [vmem:[#allocation8 + $0x2f0] sm:$0xff] }
 0x1ad   : > { %v1099_v27 = vpop.f32.mrf.mxu1  ;;  %v1024_v32 = vpop.f32.mrf.mxu0 }
 0x1ae   : > { %v1025_v2 = vadd.f32 %v1024_v32, %v953_v11  ;;  %v1100_v24 = vadd.f32 %v1099_v27, %v1023_v0  ;;  %v1552_v27 = vld [vmem:[#allocation8 + $0x270] sm:$0xff] }
 0x1af   : > { %v1101_v39 = vpop.f32.mrf.mxu1 }
 0x1b0   : > { %v1102_v29 = vadd.f32 %v1101_v39, %v1025_v2  ;;  %v1567_v39 = vld [vmem:[#allocation8 + $0x2e8] sm:$0xff]  ;;  %v1565_v2 = vld [vmem:[#allocation8 + $0x2d8] sm:$0xff] }
 0x1e8   : > { %v1028_v16 = vpop.f32.mrf.mxu0 }
 0x1e9   : > { %v1029_v25 = vadd.f32 %v1028_v16, %v949_v60 }
 0x1ea   : > { %v1030_v1 = vpop.f32.mrf.mxu0 }
 0x1eb   : > { %v1105_v7 = vpop.f32.mrf.mxu1  ;;  %v1031_v33 = vadd.f32 %v1030_v1, %v953_v11  ;;  %v1550_v11 = vld [vmem:[#allocation8 + $0x260] sm:$0xff] }
 0x1ec   : > { %v1106_v35 = vadd.f32 %v1105_v7, %v1029_v25  ;;  %v1551_v7 = vld [vmem:[#allocation8 + $0x268] sm:$0xff] }
 0x1ed   : > { %v1107_v5 = vpop.f32.mrf.mxu1 }
 0x1ee   : > { %v1108_v37 = vadd.f32 %v1107_v5, %v1031_v33  ;;  %v1566_v5 = vld [vmem:[#allocation8 + $0x2e0] sm:$0xff] }
 0x1ef   : > { %v1176_v18 = vpop.f32.mrf.mxu0 }
 0x1f0   : > { %v1177_v34 = vadd.f32 %v1176_v18, %v1100_v24 }
 0x1f1   : > { %v1253_v19 = vpop.f32.mrf.mxu1  ;;  %v1178_v21 = vpop.f32.mrf.mxu0 }
 0x1f2   : > { %v1179_v55 = vadd.f32 %v1178_v21, %v1102_v29  ;;  %v1254_v28 = vadd.f32 %v1253_v19, %v1177_v34  ;;  %v1564_v29 = vld [vmem:[#allocation8 + $0x2d0] sm:$0xff] }
 0x1f3   : > { %v1255_v22 = vpop.f32.mrf.mxu1 }
 0x1f4   : > { %v1256_v63 = vadd.f32 %v1255_v22, %v1179_v55 }
 0x1f5   : > { %v1182_v26 = vpop.f32.mrf.mxu0 }
 0x1f6   : > { %v1183_v38 = vadd.f32 %v1182_v26, %v1106_v35  ;;  %v1548_v35 = vld [vmem:[#allocation8 + $0x250] sm:$0xff] }
 0x1f7   : > { %v1184_v58 = vpop.f32.mrf.mxu0 }
 0x1f8   : > { %v1259_v9 = vpop.f32.mrf.mxu1  ;;  %v1185_v42 = vadd.f32 %v1184_v58, %v1108_v37  ;;  %v1563_v58 = vld [vmem:[#allocation8 + $0x2c8] sm:$0xff]  ;;  %v1562_v37 = vld [vmem:[#allocation8 + $0x2c0] sm:$0xff] }
 0x1f9   : > { %v1260_v47 = vadd.f32 %v1259_v9, %v1183_v38  ;;  %v1549_v9 = vld [vmem:[#allocation8 + $0x258] sm:$0xff]  ;;  %v1546_v38 = vld [vmem:[#allocation8 + $0x240] sm:$0xff] }
 0x1fa   : > { %v1261_v36 = vpop.f32.mrf.mxu1 }
 0x1fb   : > { %v1262_v52 = vadd.f32 %v1261_v36, %v1185_v42  ;;  %v1547_v36 = vld [vmem:[#allocation8 + $0x248] sm:$0xff]  ;;  %v1544_v42 = vld [vmem:[#allocation8 + $0x230] sm:$0xff] }
 0x233   : > { %v1330_v41 = vpop.f32.mrf.mxu0 }
 0x234   : > { %v1407_v59 = vpop.f32.mrf.mxu1  ;;  %v1331_v44 = vadd.f32 %v1330_v41, %v1254_v28  ;;  %v1561_v41 = vld [vmem:[#allocation8 + $0x2b8] sm:$0xff] }
 0x235   : > { %v1332_v45 = vpop.f32.mrf.mxu0 }
 0x236   : > { %v1409_v46 = vpop.f32.mrf.mxu1  ;;  %v1408_v48 = vadd.f32 %v1407_v59, %v1331_v44  ;;  %v1333_v49 = vadd.f32 %v1332_v45, %v1256_v63  ;;  %v1545_v59 = vld [vmem:[#allocation8 + $0x238] sm:$0xff]  ;;  %v1560_v63 = vld [vmem:[#allocation8 + $0x2b0] sm:$0xff]  ;;  %v1559_v44 = vld [vmem:[#allocation8 + $0x2a8] sm:$0xff] }
 0x237   : > { %v1336_v50 = vpop.f32.mrf.mxu0  ;;  %v1543_v45 = vld [vmem:[#allocation8 + $0x228] sm:$0xff] }
 0x238   : > { %v1413_v51 = vpop.f32.mrf.mxu1  ;;  %v1410_v53 = vadd.f32 %v1409_v46, %v1333_v49  ;;  %v1337_v54 = vadd.f32 %v1336_v50, %v1260_v47  ;;  %v1418_v56 = vmax.f32 %v1408_v48, 0.0  ;;  %v1558_v46 = vld [vmem:[#allocation8 + $0x2a0] sm:$0xff]  ;;  %v1557_v48 = vld [vmem:[#allocation8 + $0x298] sm:$0xff]  ;;  %v1556_v50 = vld [vmem:[#allocation8 + $0x290] sm:$0xff] }
 0x239   : > { %v1338_v57 = vpop.f32.mrf.mxu0  ;;  %v1542_v47 = vld [vmem:[#allocation8 + $0x220] sm:$0xff]  ;;  %v1541_v49 = vld [vmem:[#allocation8 + $0x218] sm:$0xff] }
 0x23a   : > { %v1415_v61 = vpop.f32.mrf.mxu1  ;;  %v1419_v62 = vmax.f32 %v1410_v53, 0.0  ;;  %v1339_v3 = vadd.f32 %v1338_v57, %v1262_v52  ;;  %v1414_v6 = vadd.f32 %v1413_v51, %v1337_v54  ;;  %v1426_v15 = vrot.slane %v1418_v56, 7  ;;  %v1540_v51 = vld [vmem:[#allocation8 + $0x210] sm:$0xff]  ;;  %v1555_v52 = vld [vmem:[#allocation8 + $0x288] sm:$0xff]  ;;  %v1554_v56 = vld [vmem:[#allocation8 + $0x280] sm:$0xff] }
 0x23b   : > { %v1539_v53 = vld [vmem:[#allocation8 + $0x208] sm:$0xff] }
 0x23c   : > { %v1427_v8 = vrot.slane %v1419_v62, 7  ;;  %v1420_v13 = vmax.f32 %v1414_v6, 0.0  ;;  %v1416_v14 = vadd.f32 %v1415_v61, %v1339_v3  ;;  %v15679_v23 = vsel %vm461_vm0, 0.0, %v1426_v15  ;;  %v1538_v61 = vld [vmem:[#allocation8 + $0x200] sm:$0xff] }
 0x23d   : > { %v1446_v24 = vrot.slane %v15679_v23, 1  ;;  %v1460_v62 = vrot.slane %v15679_v23, 2  ;;  %v1857_v23 = vld [vmem:[%s17302_s5 + $0xd8] sm:$0xff] }
 0x23e   : > { %v1428_v12 = vrot.slane %v1420_v13, 7  ;;  %v1421_v30 = vmax.f32 %v1416_v14, 0.0  ;;  %14453 = vmatprep.mubr.msk.f32.mxu0 %vm15512_vm1, %v1427_v8  ;;  %v1439_v31 = vsel %vm461_vm0, 0.0, %v1427_v8  ;;  %v1861_v14 = vld [vmem:[%s17302_s5 + $0xf8] sm:$0xff] }
 0x23f   : > { %14455 = vmatmul.mubr.msk.f32.vlgmr.msra.gmra.mxu0 %vm15512_vm1, %v1426_v15  ;;  %v1449_v10 = vrot.slane %v1439_v31, 1  ;;  %v1463_v0 = vrot.slane %v1439_v31, 2  ;;  %14712 = vmatprep.subr.mxu1 %v1861_v14  ;;  %v1875_v31 = vld [vmem:[%s17302_s5 + $0x168] sm:$0xff] }
 0x240   : > { %v1430_v32 = vrot.slane %v1421_v30, 7  ;;  %14675 = vmatpush3.msra.mxu0 %v1553_v20  ;;  %v15676_v16 = vsel %vm461_vm0, %v1426_v15, %v1428_v12  ;;  %v15692_v21 = vsel %vm461_vm0, %v1428_v12, 0.0  ;;  %v1877_v15 = vld [vmem:[%s17302_s5 + $0x178] sm:$0xff]  ;;  %v1860_v12 = vld [vmem:[%s17302_s5 + $0xf0] sm:$0xff] }
 0x241   : > { %14676 = vmatprep.subr.mxu0 %v1568_v17  ;;  %v1447_v19 = vrot.slane %v15676_v16, 1  ;;  %v1452_v33 = vrot.slane %v15692_v21, 1  ;;  %v1461_v54 = vrot.slane %v15676_v16, 2  ;;  %v1466_v3 = vrot.slane %v15692_v21, 2  ;;  %v1845_v20 = vld [vmem:[%s17302_s5 + $0x78] sm:$0xff]  ;;  %v1876_v30 = vld [vmem:[%s17302_s5 + $0x170] sm:$0xff] }
 0x242   : > { %v15682_v43 = vsel %vm461_vm0, %v1430_v32, 0.0  ;;  %14677 = vmatpush3.msra.mxu0 %v1552_v27  ;;  %v15685_v1 = vsel %vm461_vm0, %v1427_v8, %v1430_v32  ;;  %v1844_v17 = vld [vmem:[%s17302_s5 + $0x70] sm:$0xff]  ;;  %v1859_v27 = vld [vmem:[%s17302_s5 + $0xe8] sm:$0xff]  ;;  %v1870_v21 = vld [vmem:[%s17302_s5 + $0x140] sm:$0xff] }
 0x243   : > { %14678 = vmatprep.subr.mxu0 %v1567_v39  ;;  %v1450_v60 = vrot.slane %v15685_v1, 1  ;;  %v1464_v18 = vrot.slane %v15685_v1, 2  ;;  %1646 = vmatprep.mubr.f32.mxu0 %v15685_v1  ;;  %v1454_v22 = vrot.slane %v15682_v43, 1  ;;  %v1448_v34 = vsel %vm502_vm3, %v1446_v24, %v1447_v19  ;;  %v1843_v32 = vld [vmem:[%s17302_s5 + $0x68] sm:$0xff]  ;;  %v1858_v39 = vld [vmem:[%s17302_s5 + $0xe0] sm:$0xff]  ;;  %v1841_v1 = vld [vmem:[%s17302_s5 + $0x58] sm:$0xff] }
 0x244   : > { %14679 = vmatpush3.msra.mxu0 %v1551_v7  ;;  %v1453_v28 = vsel %vm502_vm3, %v1447_v19, %v1452_v33  ;;  %v1468_v57 = vrot.slane %v15682_v43, 2  ;;  %v1462_v6 = vsel %vm531_vm2, %v1460_v62, %v1461_v54  ;;  %v1467_v13 = vsel %vm531_vm2, %v1461_v54, %v1466_v3  ;;  %v1842_v7 = vld [vmem:[%s17302_s5 + $0x60] sm:$0xff]  ;;  %v1873_v43 = vld [vmem:[%s17302_s5 + $0x158] sm:$0xff]  ;;  %v1871_v19 = vld [vmem:[%s17302_s5 + $0x148] sm:$0xff] }
 0x245   : > { %1647 = vmatmul.mubr.f32.gmra.mxu0 %v15676_v16  ;;  %14680 = vmatprep.subr.mxu0 %v1566_v5  ;;  %v1451_v25 = vsel %vm502_vm3, %v1449_v10, %v1450_v60  ;;  %v1465_v26 = vsel %vm531_vm2, %v1463_v0, %v1464_v18  ;;  %v1455_v55 = vsel %vm502_vm3, %v1450_v60, %v1454_v22  ;;  %v1874_v16 = vld [vmem:[%s17302_s5 + $0x160] sm:$0xff]  ;;  %v1856_v5 = vld [vmem:[%s17302_s5 + $0xd0] sm:$0xff]  ;;  %v1869_v24 = vld [vmem:[%s17302_s5 + $0x138] sm:$0xff] }
 0x246   : > { %14681 = vmatpush3.msra.mxu0 %v1550_v11  ;;  %1716 = vmatprep.mubr.f32.mxu1 %v1451_v25  ;;  %v1469_v8 = vsel %vm531_vm2, %v1464_v18, %v1468_v57  ;;  %v1872_v10 = vld [vmem:[%s17302_s5 + $0x150] sm:$0xff]  ;;  %v1855_v18 = vld [vmem:[%s17302_s5 + $0xc8] sm:$0xff]  ;;  %v1854_v0 = vld [vmem:[%s17302_s5 + $0xc0] sm:$0xff] }
 0x247   : > { %14682 = vmatprep.subr.mxu0 %v1565_v2  ;;  %1791 = vmatprep.mubr.f32.mxu0 %v1465_v26  ;;  %v1840_v60 = vld [vmem:[%s17302_s5 + $0x50] sm:$0xff]  ;;  %v1839_v11 = vld [vmem:[%s17302_s5 + $0x48] sm:$0xff]  ;;  %v1838_v22 = vld [vmem:[%s17302_s5 + $0x40] sm:$0xff] }
 0x248   : > { %1717 = vmatmul.mubr.f32.vlgmr.msra.gmra.mxu1 %v1448_v34  ;;  %14683 = vmatpush3.msra.mxu0 %v1549_v9  ;;  %v1853_v2 = vld [vmem:[%s17302_s5 + $0xb8] sm:$0xff]  ;;  %v1852_v26 = vld [vmem:[%s17302_s5 + $0xb0] sm:$0xff]  ;;  %v1851_v33 = vld [vmem:[%s17302_s5 + $0xa8] sm:$0xff] }
 0x249   : > { %1721 = vmatprep.mubr.f32.mxu1 %v1455_v55  ;;  %14684 = vmatprep.subr.mxu0 %v1564_v29  ;;  %v1837_v25 = vld [vmem:[%s17302_s5 + $0x38] sm:$0xff]  ;;  %v1868_v9 = vld [vmem:[%s17302_s5 + $0x130] sm:$0xff]  ;;  %v1867_v34 = vld [vmem:[%s17302_s5 + $0x128] sm:$0xff] }
 0x24a   : > { %14685 = vmatpush3.msra.mxu0 %v1548_v35  ;;  %14713 = vmatpush3.msra.mxu1 %v1845_v20  ;;  %v1836_v29 = vld [vmem:[%s17302_s5 + $0x30] sm:$0xff]  ;;  %v1835_v35 = vld [vmem:[%s17302_s5 + $0x28] sm:$0xff]  ;;  %v1850_v55 = vld [vmem:[%s17302_s5 + $0xa0] sm:$0xff] }
 0x24b   : > { %14686 = vmatprep.subr.mxu0 %v1563_v58  ;;  %14714 = vmatprep.subr.mxu1 %v1860_v12  ;;  %v1866_v58 = vld [vmem:[%s17302_s5 + $0x120] sm:$0xff] }
 0x24c   : > { %1722 = vmatmul.mubr.f32.gmra.mxu1 %v1453_v28  ;;  %14687 = vmatpush3.msra.mxu0 %v1547_v36  ;;  %v1834_v36 = vld [vmem:[%s17302_s5 + $0x20] sm:$0xff]  ;;  %v1865_v28 = vld [vmem:[%s17302_s5 + $0x118] sm:$0xff] }
 0x24d   : > { %14688 = vmatprep.subr.mxu0 %v1562_v37  ;;  %14715 = vmatpush3.msra.mxu1 %v1844_v17  ;;  %v1849_v37 = vld [vmem:[%s17302_s5 + $0x98] sm:$0xff]  ;;  %v14451_v57 = vld [vmem:[#allocation10] ss:$0 sm:$0xff] }
 0x24e   : > { %14689 = vmatpush3.msra.mxu0 %v1546_v38  ;;  %14716 = vmatprep.subr.mxu1 %v1859_v27  ;;  %v1833_v38 = vld [vmem:[%s17302_s5 + $0x18] sm:$0xff] }
 0x24f   : > { %14690 = vmatprep.subr.mxu0 %v1561_v41  ;;  %14717 = vmatpush3.msra.mxu1 %v1843_v32  ;;  %v1848_v41 = vld [vmem:[%s17302_s5 + $0x90] sm:$0xff] }
 0x250   : > { %14691 = vmatpush3.msra.mxu0 %v1545_v59  ;;  %14718 = vmatprep.subr.mxu1 %v1858_v39  ;;  %v1864_v59 = vld [vmem:[%s17302_s5 + $0x110] sm:$0xff] }
 0x251   : > { %14692 = vmatprep.subr.mxu0 %v1560_v63  ;;  %14719 = vmatpush3.msra.mxu1 %v1842_v7  ;;  %v1832_v63 = vld [vmem:[%s17302_s5 + $0x10] sm:$0xff] }
 0x252   : > { %14693 = vmatpush3.msra.mxu0 %v1544_v42  ;;  %14720 = vmatprep.subr.mxu1 %v1857_v23  ;;  %v1847_v42 = vld [vmem:[%s17302_s5 + $0x88] sm:$0xff] }
 0x253   : > { %14694 = vmatprep.subr.mxu0 %v1559_v44  ;;  %14721 = vmatpush3.msra.mxu1 %v1841_v1  ;;  %v1863_v44 = vld [vmem:[%s17302_s5 + $0x108] sm:$0xff] }
 0x254   : > { %14695 = vmatpush3.msra.mxu0 %v1543_v45  ;;  %14722 = vmatprep.subr.mxu1 %v1856_v5  ;;  %v1831_v45 = vld [vmem:[%s17302_s5 + $0x8] sm:$0xff] }
 0x255   : > { %14696 = vmatprep.subr.mxu0 %v1558_v46  ;;  %14723 = vmatpush3.msra.mxu1 %v1840_v60  ;;  %v1846_v46 = vld [vmem:[%s17302_s5 + $0x80] sm:$0xff] }
 0x256   : > { %14697 = vmatpush3.msra.mxu0 %v1542_v47  ;;  %14724 = vmatprep.subr.mxu1 %v1855_v18  ;;  %v1862_v47 = vld [vmem:[%s17302_s5 + $0x100] sm:$0xff] }
 0x257   : > { %14698 = vmatprep.subr.mxu0 %v1557_v48  ;;  %14725 = vmatpush3.msra.mxu1 %v1839_v11  ;;  %v1830_v48 = vld [vmem:[%s17302_s5] sm:$0xff] }
 0x258   : > { %14699 = vmatpush3.msra.mxu0 %v1541_v49  ;;  %14726 = vmatprep.subr.mxu1 %v1854_v0 }
 0x259   : > { %14700 = vmatprep.subr.mxu0 %v1556_v50  ;;  %14727 = vmatpush3.msra.mxu1 %v1838_v22 }
 0x25a   : > { %14701 = vmatpush3.msra.mxu0 %v1540_v51  ;;  %14728 = vmatprep.subr.mxu1 %v1853_v2 }
 0x25b   : > { %14702 = vmatprep.subr.mxu0 %v1555_v52  ;;  %14729 = vmatpush3.msra.mxu1 %v1837_v25 }
 0x25c   : > { %14703 = vmatpush3.msra.mxu0 %v1539_v53  ;;  %14730 = vmatprep.subr.mxu1 %v1852_v26 }
 0x25d   : > { %14704 = vmatprep.subr.mxu0 %v1554_v56  ;;  %14731 = vmatpush3.msra.mxu1 %v1836_v29 }
 0x25e   : > { %14705 = vmatpush3.msra.mxu0 %v1538_v61  ;;  %14732 = vmatprep.subr.mxu1 %v1851_v33 }
 0x25f   : > { %1792 = vmatmul.mubr.f32.vlgmr.msra.gmra.mxu0 %v1462_v6  ;;  %14774 = vmatprep.subr.mxu0 %v1877_v15 }
 0x260   : > { %1796 = vmatprep.mubr.f32.mxu0 %v1469_v8  ;;  %14775 = vmatpush3.msra.mxu0 %v1877_v15 }
 0x261   : > { %14776 = vmatprep.subr.mxu0 %v1876_v30  ;;  %14733 = vmatpush3.msra.mxu1 %v1835_v35 }
 0x262   : > { %14777 = vmatpush3.msra.mxu0 %v1876_v30  ;;  %14734 = vmatprep.subr.mxu1 %v1850_v55 }
 0x263   : > { %1797 = vmatmul.mubr.f32.gmra.mxu0 %v1467_v13  ;;  %14778 = vmatprep.subr.mxu0 %v1875_v31 }
 0x264   : > { %14779 = vmatpush3.msra.mxu0 %v1875_v31  ;;  %14735 = vmatpush3.msra.mxu1 %v1834_v36 }
 0x265   : > { %14780 = vmatprep.subr.mxu0 %v1874_v16  ;;  %14736 = vmatprep.subr.mxu1 %v1849_v37 }
 0x266   : > { %14781 = vmatpush3.msra.mxu0 %v1874_v16  ;;  %14737 = vmatpush3.msra.mxu1 %v1833_v38 }
 0x267   : > { %14782 = vmatprep.subr.mxu0 %v1873_v43  ;;  %14738 = vmatprep.subr.mxu1 %v1848_v41 }
 0x268   : > { %14783 = vmatpush3.msra.mxu0 %v1873_v43  ;;  %14739 = vmatpush3.msra.mxu1 %v1832_v63  ;;  %v2195_v63 = vld [vmem:[#allocation13 + $0xc8] sm:$0xff] }
 0x269   : > { %14784 = vmatprep.subr.mxu0 %v1872_v10  ;;  %14740 = vmatprep.subr.mxu1 %v1847_v42  ;;  %v2200_v42 = vld [vmem:[#allocation13 + $0xf0] sm:$0xff] }
 0x26a   : > { %14785 = vmatpush3.msra.mxu0 %v1872_v10  ;;  %14741 = vmatpush3.msra.mxu1 %v1831_v45  ;;  %v2192_v45 = vld [vmem:[#allocation13 + $0xb0] sm:$0xff] }
 0x26b   : > { %14786 = vmatprep.subr.mxu0 %v1871_v19  ;;  %14742 = vmatprep.subr.mxu1 %v1846_v46 }
 0x26c   : > { %14787 = vmatpush3.msra.mxu0 %v1871_v19  ;;  %14743 = vmatpush3.msra.mxu1 %v1830_v48 }
 0x26d   : > { %14788 = vmatprep.subr.mxu0 %v1870_v21 }
 0x26e   : > { %14789 = vmatpush3.msra.mxu0 %v1870_v21 }
 0x26f   : > { %14790 = vmatprep.subr.mxu0 %v1869_v24 }
 0x270   : > { %14791 = vmatpush3.msra.mxu0 %v1869_v24 }
 0x271   : > { %14792 = vmatprep.subr.mxu0 %v1868_v9 }
 0x272   : > { %14793 = vmatpush3.msra.mxu0 %v1868_v9 }
 0x273   : > { %14794 = vmatprep.subr.mxu0 %v1867_v34 }
 0x274   : > { %14795 = vmatpush3.msra.mxu0 %v1867_v34  ;;  %v14456_v34 = vld [vmem:[#allocation11] ss:$0 sm:$0xff] }
 0x275   : > { %14796 = vmatprep.subr.mxu0 %v1866_v58 }
 0x276   : > { %14797 = vmatpush3.msra.mxu0 %v1866_v58 }
 0x277   : > { %14798 = vmatprep.subr.mxu0 %v1865_v28 }
 0x278   : > { %14799 = vmatpush3.msra.mxu0 %v1865_v28 }
 0x279   : > { %14800 = vmatprep.subr.mxu0 %v1864_v59 }
 0x27a   : > { %14801 = vmatpush3.msra.mxu0 %v1864_v59  ;;  %v2201_v59 = vld [vmem:[#allocation13 + $0xf8] sm:$0xff] }
 0x27b   : > { %14802 = vmatprep.subr.mxu0 %v1863_v44 }
 0x27c   : > { %14803 = vmatpush3.msra.mxu0 %v1863_v44  ;;  %v2193_v44 = vld [vmem:[#allocation13 + $0xb8] sm:$0xff] }
 0x27d   : > { %14804 = vmatprep.subr.mxu0 %v1862_v47 }
 0x27e   : > { %14805 = vmatpush3.msra.mxu0 %v1862_v47  ;;  %v2194_v47 = vld [vmem:[#allocation13 + $0xc0] sm:$0xff] }
 0x27f   : > { %2443 = vmatprep.subr.mxu0 %v2201_v59  ;;  %v2565_v59 = vld [vmem:[#allocation13 + $0x180] sm:$0xff] }
 0x2ff   : > { %v14630_v49 = vpop.f32.mrf.mxu0 }
 0x301   : > { %v14631_v51 = vpop.f32.mrf.mxu0 }
 0x302   : > { %v14632_v56 = vadd.f32 %v14631_v51, %v14630_v49  ;;  %v2187_v49 = vld [vmem:[#allocation13 + $0x88] sm:$0xff] }
 0x304   : > { %v1644_v8 = vadd.f32 %v14632_v56, %v14451_v57  ;;  %v2178_v56 = vld [vmem:[#allocation13 + $0x40] sm:$0xff] }
 0x305   : > { %v14633_v53 = vpop.f32.mrf.mxu0 }
 0x307   : > { %v14634_v61 = vpop.f32.mrf.mxu0 }
 0x308   : > { %v14668_v50 = vpop.f32.mrf.mxu1  ;;  %v14635_v13 = vadd.f32 %v14634_v61, %v14633_v53  ;;  %v2179_v53 = vld [vmem:[#allocation13 + $0x48] sm:$0xff] }
 0x309   : > { %v2171_v61 = vld [vmem:[#allocation13 + $0x8] sm:$0xff] }
 0x30a   : > { %v14669_v52 = vpop.f32.mrf.mxu1  ;;  %v1649_v17 = vadd.f32 %v14635_v13, %v14451_v57  ;;  %v2184_v57 = vld [vmem:[#allocation13 + $0x70] sm:$0xff]  ;;  %v2576_v13 = vld [vmem:[#allocation13 + $0x1d8] sm:$0xff] }
 0x30b   : > { %v14670_v62 = vadd.f32 %v14669_v52, %v14668_v50  ;;  %v2186_v50 = vld [vmem:[#allocation13 + $0x80] sm:$0xff] }
 0x30c   : > { %v14671_v54 = vpop.f32.mrf.mxu1 }
 0x30d   : > { %v1719_v15 = vadd.f32 %v14670_v62, %v1644_v8  ;;  %v2177_v62 = vld [vmem:[#allocation13 + $0x38] sm:$0xff] }
 0x30e   : > { %v14672_v3 = vpop.f32.mrf.mxu1  ;;  %v2197_v8 = vld [vmem:[#allocation13 + $0xd8] sm:$0xff] }
 0x30f   : > { %v14673_v20 = vadd.f32 %v14672_v3, %v14671_v54  ;;  %v2185_v54 = vld [vmem:[#allocation13 + $0x78] sm:$0xff]  ;;  %v2170_v3 = vld [vmem:[#allocation13] sm:$0xff] }
 0x311   : > { %v1724_v32 = vadd.f32 %v14673_v20, %v1649_v17  ;;  %v2575_v17 = vld [vmem:[#allocation13 + $0x1d0] sm:$0xff] }
 0x31f   : > { %v14706_v6 = vpop.f32.mrf.mxu0 }
 0x321   : > { %v14707_v14 = vpop.f32.mrf.mxu0 }
 0x322   : > { %v14708_v12 = vadd.f32 %v14707_v14, %v14706_v6  ;;  %v2176_v6 = vld [vmem:[#allocation13 + $0x30] sm:$0xff]  ;;  %v15254_v14 = vmov 0.0  }
 0x323   : > { %v14709_v30 = vpop.f32.mrf.mxu0 }
 0x324   : > { %v1794_v27 = vadd.f32 %v14708_v12, %v1719_v15 }
 0x325   : > { %v14710_v31 = vpop.f32.mrf.mxu0 }
 0x326   : > { %v1802_v39 = vmax.f32 %v1794_v27, 0.0  ;;  %v14711_v16 = vadd.f32 %v14710_v31, %v14709_v30  ;;  %v2196_v30 = vld [vmem:[#allocation13 + $0xd0] sm:$0xff]  ;;  %v2189_v27 = vld [vmem:[#allocation13 + $0x98] sm:$0xff] }
 0x327   : > { %v2568_v31 = vld [vmem:[#allocation13 + $0x198] sm:$0xff] }
 0x328   : > { %v1806_v7 = vrot.slane %v1802_v39, 7  ;;  %v1799_v23 = vadd.f32 %v14711_v16, %v1724_v32  ;;  %v2188_v32 = vld [vmem:[#allocation13 + $0x90] sm:$0xff]  ;;  %v2181_v16 = vld [vmem:[#allocation13 + $0x58] sm:$0xff] }
 0x329   : > { %v2567_v39 = vld [vmem:[#allocation13 + $0x190] sm:$0xff] }
 0x32a   : > { %v1803_v43 = vmax.f32 %v1799_v23, 0.0  ;;  %v1812_v1 = vsel %vm461_vm0, 0.0, %v1806_v7  ;;  %v2180_v23 = vld [vmem:[#allocation13 + $0x50] sm:$0xff] }
 0x32b   : > { %v1816_v18 = vrot.slane %v1812_v1, 1  ;;  %v1823_v19 = vrot.slane %v1812_v1, 2  ;;  %v2173_v1 = vld [vmem:[#allocation13 + $0x18] sm:$0xff] }
 0x32c   : > { %v1807_v5 = vrot.slane %v1803_v43, 7  ;;  %v2559_v43 = vld [vmem:[#allocation13 + $0x150] sm:$0xff] }
 0x32e   : > { %v1813_v10 = vsel %vm461_vm0, %v1807_v5, 0.0  ;;  %v1808_v60 = vsel %vm461_vm0, %v1806_v7, %v1807_v5  ;;  %v2552_v5 = vld [vmem:[#allocation13 + $0x118] sm:$0xff] }
 0x32f   : > { %v1826_v11 = vrot.slane %v1813_v10, 2  ;;  %v1817_v0 = vrot.slane %v1808_v60, 1  ;;  %v1824_v21 = vrot.slane %v1808_v60, 2  ;;  %v1819_v22 = vrot.slane %v1813_v10, 1  ;;  %v2172_v10 = vld [vmem:[#allocation13 + $0x10] sm:$0xff] }
 0x331   : > { %v1818_v2 = vsel %vm502_vm3, %v1816_v18, %v1817_v0  ;;  %v1825_v24 = vsel %vm531_vm2, %v1823_v19, %v1824_v21  ;;  %v1827_v25 = vsel %vm531_vm2, %v1824_v21, %v1826_v11  ;;  %v1820_v26 = vsel %vm502_vm3, %v1817_v0, %v1819_v22  ;;  %v2199_v18 = vld [vmem:[#allocation13 + $0xe8] sm:$0xff]  ;;  %v2580_v19 = vld [vmem:[#allocation13 + $0x1f8] sm:$0xff]  ;;  %v2198_v0 = vld [vmem:[#allocation13 + $0xe0] sm:$0xff] }
 0x332   : > { %1949 = vmatprep.mubr.f32.mxu1 %v1818_v2  ;;  %14806 = vmatprep.mubr.f32.mxu0 %v1825_v24  ;;  %v2579_v21 = vld [vmem:[#allocation13 + $0x1f0] sm:$0xff]  ;;  %v2191_v22 = vld [vmem:[#allocation13 + $0xa8] sm:$0xff]  ;;  %v2572_v2 = vld [vmem:[#allocation13 + $0x1b8] sm:$0xff] }
 0x333   : > { %14458 = vmatmul.mubr.msk.f32.vlgmr.msra.gmra.mxu1 %vm15512_vm1, %v1806_v7  ;;  %14807 = vmatmul.mubr.f32.vlgmr.msra.gmra.mxu0 %v1827_v25  ;;  %v2560_v7 = vld [vmem:[#allocation13 + $0x158] sm:$0xff]  ;;  %v2190_v24 = vld [vmem:[#allocation13 + $0xa0] sm:$0xff]  ;;  %v2571_v25 = vld [vmem:[#allocation13 + $0x1b0] sm:$0xff] }
 0x334   : > { %1954 = vmatprep.mubr.f32.mxu1 %v1820_v26  ;;  %2444 = vmatpush1.msra.mxu0 %v2200_v42  ;;  %v2183_v26 = vld [vmem:[#allocation13 + $0x68] sm:$0xff] }
 0x335   : > { %2445 = vmatprep.subr.mxu0 %v2193_v44  ;;  %2483 = vmatprep.mubr.f32.mxu0 %v15254_v14  ;;  %v2558_v42 = vld [vmem:[#allocation13 + $0x148] sm:$0xff]  ;;  %v2938_v44 = vld [vmem:[#allocation13 + $0x258] sm:$0xff] }
 0x336   : > { %2446 = vmatpush1.msra.mxu0 %v2192_v45  ;;  %v2557_v45 = vld [vmem:[#allocation13 + $0x140] sm:$0xff] }
 0x337   : > { %1955 = vmatmul.mubr.f32.gmra.mxu1 %v1808_v60  ;;  %2447 = vmatprep.subr.mxu0 %v2185_v54  ;;  %v2551_v60 = vld [vmem:[#allocation13 + $0x110] sm:$0xff]  ;;  %v2577_v54 = vld [vmem:[#allocation13 + $0x1e0] sm:$0xff] }
 0x338   : > { %2448 = vmatpush1.msra.mxu0 %v2184_v57  ;;  %v2570_v57 = vld [vmem:[#allocation13 + $0x1a8] sm:$0xff] }
 0x339   : > { %2449 = vmatprep.subr.mxu0 %v2177_v62  ;;  %v2569_v62 = vld [vmem:[#allocation13 + $0x1a0] sm:$0xff] }
 0x33a   : > { %2450 = vmatpush1.msra.mxu0 %v2176_v6  ;;  %v2562_v6 = vld [vmem:[#allocation13 + $0x168] sm:$0xff] }
 0x33b   : > { %2679 = vmatprep.subr.mxu0 %v2576_v13  ;;  %v2561_v13 = vld [vmem:[#allocation13 + $0x160] sm:$0xff] }
 0x3f3   : > { %v14744_v9 = vpop.f32.mrf.mxu1  ;;  %v14808_v29 = vpop.f32.mrf.mxu0 }
 0x3f5   : > { %v14745_v33 = vpop.f32.mrf.mxu1  ;;  %v2026_v36 = vpop.f32.mrf.mxu0 }
 0x3f6   : > { %v14746_v35 = vadd.f32 %v14745_v33, %v14744_v9  ;;  %v2564_v9 = vld [vmem:[#allocation13 + $0x178] sm:$0xff]  ;;  %v2563_v33 = vld [vmem:[#allocation13 + $0x170] sm:$0xff] }
 0x3f7   : > { %v14747_v55 = vpop.f32.mrf.mxu1 }
 0x3f8   : > { %v1952_v58 = vadd.f32 %v14746_v35, %v14456_v34  ;;  %v2556_v35 = vld [vmem:[#allocation13 + $0x138] sm:$0xff] }
 0x3f9   : > { %v14748_v37 = vpop.f32.mrf.mxu1 }
 0x3fa   : > { %v2027_v28 = vadd.f32 %v2026_v36, %v1952_v58  ;;  %v14749_v38 = vadd.f32 %v14748_v37, %v14747_v55  ;;  %v2174_v55 = vld [vmem:[#allocation13 + $0x20] sm:$0xff]  ;;  %v2555_v58 = vld [vmem:[#allocation13 + $0x130] sm:$0xff]  ;;  %v2574_v36 = vld [vmem:[#allocation13 + $0x1c8] sm:$0xff] }
 0x3fb   : > { %v2954_v37 = vld [vmem:[#allocation13 + $0x2d8] sm:$0xff] }
 0x3fc   : > { %v1957_v41 = vadd.f32 %v14749_v38, %v14456_v34  ;;  %2035 = vxpose.xlu0.b32.start [1/2] (short) (narrow) %v2027_v28, 32  ;;  %v2175_v34 = vld [vmem:[#allocation13 + $0x28] sm:$0xff]  ;;  %v2953_v38 = vld [vmem:[#allocation13 + $0x2d0] sm:$0xff] }
 0x3fe   : > { %v2032_v4 = vadd.f32 %v14808_v29, %v1957_v41  ;;  %v2182_v29 = vld [vmem:[#allocation13 + $0x60] sm:$0xff]  ;;  %v2566_v41 = vld [vmem:[#allocation13 + $0x188] sm:$0xff] }
 0x400   : > { %14809 = vmatprep.subr.mxu1 %v2032_v4  ;;  %2036 = vxpose.xlu0.b32.end [2/2] (short) (narrow) %v2032_v4, 32 }
 0x401   : > { %14810 = vmatpush3.msra.mxu1 %v2032_v4  ;;  %v2946_v4 = vld [vmem:[#allocation13 + $0x298] sm:$0xff] }
 0x402   : > { %14811 = vmatprep.subr.mxu1 %v2027_v28 }
 0x403   : > { %14812 = vmatpush3.msra.mxu1 %v2027_v28  ;;  %v2573_v28 = vld [vmem:[#allocation13 + $0x1c0] sm:$0xff] }
 0x404   : > { %2230 = vmatprep.subr.mxu1 %v2195_v63  ;;  %v2945_v63 = vld [vmem:[#allocation13 + $0x290] sm:$0xff] }
 0x478   : > { %v2051_v46 = vpop.trf.xlu0 }
 0x479   : > { %14813 = vmatprep.mubr.msk.f32.mxu1 %vm2067_vm4, %v2051_v46  ;;  %v2937_v46 = vld [vmem:[#allocation13 + $0x250] sm:$0xff] }
 0x47c   : > { %v2052_v48 = vpop.trf.xlu0 }
 0x47d   : > { %14814 = vmatmul.mubr.msk.f32.vlgmr.msra.gmra.mxu1 %vm2067_vm4, %v2052_v48  ;;  %v2930_v48 = vld [vmem:[#allocation13 + $0x218] sm:$0xff] }
 0x47e   : > { %2231 = vmatpush1.msra.mxu1 %v2194_v47  ;;  %v2550_v47 = vld [vmem:[#allocation13 + $0x108] sm:$0xff] }
 0x47f   : > { %2232 = vmatprep.subr.mxu1 %v2187_v49  ;;  %v2549_v49 = vld [vmem:[#allocation13 + $0x100] sm:$0xff] }
 0x480   : > { %v2053_v51 = vpop.trf.xlu0  ;;  %2233 = vmatpush1.msra.mxu1 %v2186_v50  ;;  %v2929_v50 = vld [vmem:[#allocation13 + $0x210] sm:$0xff] }
 0x481   : > { %14816 = vmatprep.mubr.msk.f32.mxu1 %vm2067_vm4, %v2053_v51  ;;  %2234 = vmatprep.subr.mxu1 %v2179_v53  ;;  %v2578_v51 = vld [vmem:[#allocation13 + $0x1e8] sm:$0xff] }
 0x482   : > { %2235 = vmatpush1.msra.mxu1 %v2178_v56  ;;  %v2957_v56 = vld [vmem:[#allocation13 + $0x2f0] sm:$0xff] }
 0x483   : > { %2236 = vmatprep.subr.mxu1 %v2171_v61  ;;  %v2950_v61 = vld [vmem:[#allocation13 + $0x2b8] sm:$0xff] }
 0x484   : > { %v2054_v52 = vpop.trf.xlu0  ;;  %2237 = vmatpush1.msra.mxu1 %v2170_v3  ;;  %v2949_v3 = vld [vmem:[#allocation13 + $0x2b0] sm:$0xff] }
 0x485   : > { %14817 = vmatmul.mubr.msk.f32.gmra.mxu1 %vm2067_vm4, %v2054_v52  ;;  %2301 = vmatprep.subr.mxu1 %v2197_v8  ;;  %v2958_v52 = vld [vmem:[#allocation13 + $0x2f8] sm:$0xff] }
 0x486   : > { %2270 = vmatprep.mubr.f32.mxu1 %v15254_v14  ;;  %v2942_v8 = vld [vmem:[#allocation13 + $0x278] sm:$0xff] }
 0x53d   : > { %v15869_v15 = vpop.f32.mrf.mxu1 }
 0x53f   : > { %v2146_v20 = vpop.f32.mrf.mxu1 }
 0x540   : > { %v15871_v12 = vmul.f32 0.0625, %v2146_v20  ;;  %v2941_v20 = vld [vmem:[#allocation13 + $0x270] sm:$0xff] }
 0x542   : > { %14463 = vmatmul.mubr.msk.f32.vlgmr.msra.gmra.mxu1 %vm2202_vm5, %v15871_v12  ;;  %14466 = vmatmul.mubr.msk.f32.vlgmr.msra.gmra.mxu0 %vm2202_vm5, %v15871_v12  ;;  %v15880_v11 = vrot.slane %v15871_v12, 1  ;;  %v15895_v53 = vrot.slane %v15871_v12, 2 }
 0x543   : > { %2302 = vmatpush1.msra.mxu1 %v2196_v30  ;;  %2680 = vmatpush1.msra.mxu0 %v2575_v17  ;;  %v2554_v30 = vld [vmem:[#allocation13 + $0x128] sm:$0xff]  ;;  %v2934_v17 = vld [vmem:[#allocation13 + $0x238] sm:$0xff] }
 0x544   : > { %2303 = vmatprep.subr.mxu1 %v2189_v27  ;;  %2681 = vmatprep.subr.mxu0 %v2568_v31  ;;  %v2553_v27 = vld [vmem:[#allocation13 + $0x120] sm:$0xff]  ;;  %v2933_v31 = vld [vmem:[#allocation13 + $0x230] sm:$0xff] }
 0x545   : > { %2304 = vmatpush1.msra.mxu1 %v2188_v32  ;;  %2682 = vmatpush1.msra.mxu0 %v2567_v39  ;;  %v2952_v32 = vld [vmem:[#allocation13 + $0x2c8] sm:$0xff]  ;;  %v3332_v39 = vld [vmem:[#allocation13 + $0x3d8] sm:$0xff] }
 0x546   : > { %2305 = vmatprep.subr.mxu1 %v2181_v16  ;;  %2683 = vmatprep.subr.mxu0 %v2560_v7  ;;  %v2951_v16 = vld [vmem:[#allocation13 + $0x2c0] sm:$0xff]  ;;  %v3331_v7 = vld [vmem:[#allocation13 + $0x3d0] sm:$0xff] }
 0x547   : > { %2306 = vmatpush1.msra.mxu1 %v2180_v23  ;;  %2684 = vmatpush1.msra.mxu0 %v2559_v43  ;;  %v2944_v23 = vld [vmem:[#allocation13 + $0x288] sm:$0xff]  ;;  %v3324_v43 = vld [vmem:[#allocation13 + $0x398] sm:$0xff] }
 0x548   : > { %2307 = vmatprep.subr.mxu1 %v2173_v1  ;;  %2685 = vmatprep.subr.mxu0 %v2552_v5  ;;  %v2943_v1 = vld [vmem:[#allocation13 + $0x280] sm:$0xff]  ;;  %v3323_v5 = vld [vmem:[#allocation13 + $0x390] sm:$0xff] }
 0x549   : > { %2308 = vmatpush1.msra.mxu1 %v2172_v10  ;;  %2341 = vmatprep.mubr.f32.mxu1 %v15254_v14  ;;  %v2936_v10 = vld [vmem:[#allocation13 + $0x248] sm:$0xff] }
 0x54a   : > { %2686 = vmatpush1.msra.mxu0 %v2551_v60  ;;  %2719 = vmatprep.mubr.f32.mxu0 %v15254_v14  ;;  %v3316_v60 = vld [vmem:[#allocation13 + $0x358] sm:$0xff] }
 0x54b   : > { %14464 = vmatmul.mubr.msk.f32.vlgmr.msra.gmra.mxu1 %vm2202_vm5, %v15871_v12  ;;  %2372 = vmatprep.subr.mxu1 %v2199_v18  ;;  %v2935_v18 = vld [vmem:[#allocation13 + $0x240] sm:$0xff] }
 0x54c   : > { %14468 = vmatmul.mubr.msk.f32.vlgmr.msra.gmra.mxu0 %vm2202_vm5, %v15880_v11  ;;  %2821 = vmatprep.subr.mxu0 %v2580_v19  ;;  %v3315_v19 = vld [vmem:[#allocation13 + $0x350] sm:$0xff] }
 0x54d   : > { %2373 = vmatpush1.msra.mxu1 %v2198_v0  ;;  %2822 = vmatpush1.msra.mxu0 %v2579_v21  ;;  %v3308_v0 = vld [vmem:[#allocation13 + $0x318] sm:$0xff]  ;;  %v2927_v21 = vld [vmem:[#allocation13 + $0x200] sm:$0xff] }
 0x54e   : > { %2374 = vmatprep.subr.mxu1 %v2191_v22  ;;  %2823 = vmatprep.subr.mxu0 %v2572_v2  ;;  %v3307_v22 = vld [vmem:[#allocation13 + $0x310] sm:$0xff]  ;;  %v2956_v2 = vld [vmem:[#allocation13 + $0x2e8] sm:$0xff] }
 0x54f   : > { %2375 = vmatpush1.msra.mxu1 %v2190_v24  ;;  %2824 = vmatpush1.msra.mxu0 %v2571_v25  ;;  %v3336_v24 = vld [vmem:[#allocation13 + $0x3f8] sm:$0xff]  ;;  %v15910_v25 = vrot.slane %v15871_v12, 3 }
 0x550   : > { %2376 = vmatprep.subr.mxu1 %v2183_v26  ;;  %2825 = vmatprep.subr.mxu0 %v2564_v9  ;;  %v2955_v26 = vld [vmem:[#allocation13 + $0x2e0] sm:$0xff]  ;;  %v3335_v9 = vld [vmem:[#allocation13 + $0x3f0] sm:$0xff] }
 0x551   : > { %2377 = vmatpush1.msra.mxu1 %v2182_v29  ;;  %2826 = vmatpush1.msra.mxu0 %v2563_v33  ;;  %v2948_v29 = vld [vmem:[#allocation13 + $0x2a8] sm:$0xff]  ;;  %v3328_v33 = vld [vmem:[#allocation13 + $0x3b8] sm:$0xff] }
 0x552   : > { %2378 = vmatprep.subr.mxu1 %v2175_v34  ;;  %2827 = vmatprep.subr.mxu0 %v2556_v35  ;;  %v2947_v34 = vld [vmem:[#allocation13 + $0x2a0] sm:$0xff]  ;;  %v3327_v35 = vld [vmem:[#allocation13 + $0x3b0] sm:$0xff] }
 0x553   : > { %2379 = vmatpush1.msra.mxu1 %v2174_v55  ;;  %2412 = vmatprep.mubr.f32.mxu1 %v15254_v14  ;;  %v2940_v55 = vld [vmem:[#allocation13 + $0x268] sm:$0xff] }
 0x554   : > { %2828 = vmatpush1.msra.mxu0 %v2555_v58  ;;  %2861 = vmatprep.mubr.f32.mxu0 %v15254_v14  ;;  %v3320_v58 = vld [vmem:[#allocation13 + $0x378] sm:$0xff] }
 0x555   : > { %14465 = vmatmul.mubr.msk.f32.vlgmr.msra.gmra.mxu1 %vm2202_vm5, %v15871_v12  ;;  %2608 = vmatprep.subr.mxu1 %v2574_v36  ;;  %v2939_v36 = vld [vmem:[#allocation13 + $0x260] sm:$0xff] }
 0x556   : > { %14470 = vmatmul.mubr.msk.f32.vlgmr.msra.gmra.mxu0 %vm2202_vm5, %v15880_v11  ;;  %3057 = vmatprep.subr.mxu0 %v2954_v37  ;;  %v3319_v37 = vld [vmem:[#allocation13 + $0x370] sm:$0xff] }
 0x557   : > { %2609 = vmatpush1.msra.mxu1 %v2573_v28  ;;  %3058 = vmatpush1.msra.mxu0 %v2953_v38  ;;  %v2932_v28 = vld [vmem:[#allocation13 + $0x228] sm:$0xff]  ;;  %v3312_v38 = vld [vmem:[#allocation13 + $0x338] sm:$0xff] }
 0x558   : > { %2610 = vmatprep.subr.mxu1 %v2566_v41  ;;  %3059 = vmatprep.subr.mxu0 %v2946_v4  ;;  %v2931_v41 = vld [vmem:[#allocation13 + $0x220] sm:$0xff]  ;;  %v3311_v4 = vld [vmem:[#allocation13 + $0x330] sm:$0xff] }
 0x559   : > { %2611 = vmatpush1.msra.mxu1 %v2565_v59  ;;  %3060 = vmatpush1.msra.mxu0 %v2945_v63  ;;  %v3330_v59 = vld [vmem:[#allocation13 + $0x3c8] sm:$0xff]  ;;  %v3710_v63 = vld [vmem:[#allocation13 + $0x4d8] sm:$0xff] }
 0x55a   : > { %2612 = vmatprep.subr.mxu1 %v2558_v42  ;;  %3061 = vmatprep.subr.mxu0 %v2938_v44  ;;  %v3329_v42 = vld [vmem:[#allocation13 + $0x3c0] sm:$0xff]  ;;  %v3709_v44 = vld [vmem:[#allocation13 + $0x4d0] sm:$0xff] }
 0x55b   : > { %2613 = vmatpush1.msra.mxu1 %v2557_v45  ;;  %3062 = vmatpush1.msra.mxu0 %v2937_v46  ;;  %v3322_v45 = vld [vmem:[#allocation13 + $0x388] sm:$0xff]  ;;  %v3702_v46 = vld [vmem:[#allocation13 + $0x498] sm:$0xff] }
 0x55c   : > { %2614 = vmatprep.subr.mxu1 %v2550_v47  ;;  %3063 = vmatprep.subr.mxu0 %v2930_v48  ;;  %v3321_v47 = vld [vmem:[#allocation13 + $0x380] sm:$0xff]  ;;  %v3701_v48 = vld [vmem:[#allocation13 + $0x490] sm:$0xff] }
 0x55d   : > { %2615 = vmatpush1.msra.mxu1 %v2549_v49  ;;  %2648 = vmatprep.mubr.f32.mxu1 %v15254_v14  ;;  %v3314_v49 = vld [vmem:[#allocation13 + $0x348] sm:$0xff] }
 0x55e   : > { %3064 = vmatpush1.msra.mxu0 %v2929_v50  ;;  %3097 = vmatprep.mubr.f32.mxu0 %v15254_v14  ;;  %v3694_v50 = vld [vmem:[#allocation13 + $0x458] sm:$0xff] }
 0x55f   : > { %14467 = vmatmul.mubr.msk.f32.vlgmr.msra.gmra.mxu1 %vm2202_vm5, %v15880_v11  ;;  %2750 = vmatprep.subr.mxu1 %v2578_v51  ;;  %v3313_v51 = vld [vmem:[#allocation13 + $0x340] sm:$0xff] }
 0x560   : > { %14472 = vmatmul.mubr.msk.f32.vlgmr.msra.gmra.mxu0 %vm2202_vm5, %v15895_v53  ;;  %3199 = vmatprep.subr.mxu0 %v2958_v52  ;;  %v3693_v52 = vld [vmem:[#allocation13 + $0x450] sm:$0xff] }
 0x561   : > { %2751 = vmatpush1.msra.mxu1 %v2577_v54  ;;  %3200 = vmatpush1.msra.mxu0 %v2957_v56  ;;  %v3686_v54 = vld [vmem:[#allocation13 + $0x418] sm:$0xff]  ;;  %v3305_v56 = vld [vmem:[#allocation13 + $0x300] sm:$0xff] }
 0x562   : > { %2752 = vmatprep.subr.mxu1 %v2570_v57  ;;  %3201 = vmatprep.subr.mxu0 %v2950_v61  ;;  %v3685_v57 = vld [vmem:[#allocation13 + $0x410] sm:$0xff]  ;;  %v3334_v61 = vld [vmem:[#allocation13 + $0x3e8] sm:$0xff] }
 0x563   : > { %2753 = vmatpush1.msra.mxu1 %v2569_v62  ;;  %3202 = vmatpush1.msra.mxu0 %v2949_v3  ;;  %v3714_v62 = vld [vmem:[#allocation13 + $0x4f8] sm:$0xff]  ;;  %v15925_v3 = vrot.slane %v15871_v12, 4 }
 0x564   : > { %2754 = vmatprep.subr.mxu1 %v2562_v6  ;;  %3203 = vmatprep.subr.mxu0 %v2942_v8  ;;  %v3333_v6 = vld [vmem:[#allocation13 + $0x3e0] sm:$0xff]  ;;  %v3713_v8 = vld [vmem:[#allocation13 + $0x4f0] sm:$0xff] }
 0x565   : > { %2755 = vmatpush1.msra.mxu1 %v2561_v13  ;;  %3204 = vmatpush1.msra.mxu0 %v2941_v20  ;;  %v3326_v13 = vld [vmem:[#allocation13 + $0x3a8] sm:$0xff]  ;;  %v3706_v20 = vld [vmem:[#allocation13 + $0x4b8] sm:$0xff] }
 0x566   : > { %2756 = vmatprep.subr.mxu1 %v2554_v30  ;;  %3205 = vmatprep.subr.mxu0 %v2934_v17  ;;  %v3325_v30 = vld [vmem:[#allocation13 + $0x3a0] sm:$0xff]  ;;  %v3705_v17 = vld [vmem:[#allocation13 + $0x4b0] sm:$0xff] }
 0x567   : > { %2757 = vmatpush1.msra.mxu1 %v2553_v27  ;;  %2790 = vmatprep.mubr.f32.mxu1 %v15254_v14  ;;  %v3318_v27 = vld [vmem:[#allocation13 + $0x368] sm:$0xff] }
 0x568   : > { %3206 = vmatpush1.msra.mxu0 %v2933_v31  ;;  %3239 = vmatprep.mubr.f32.mxu0 %v15254_v14  ;;  %v3698_v31 = vld [vmem:[#allocation13 + $0x478] sm:$0xff] }
 0x569   : > { %14469 = vmatmul.mubr.msk.f32.vlgmr.msra.gmra.mxu1 %vm2202_vm5, %v15880_v11  ;;  %2986 = vmatprep.subr.mxu1 %v2952_v32  ;;  %v2928_v11 = vld [vmem:[#allocation13 + $0x208] sm:$0xff]  ;;  %v3317_v32 = vld [vmem:[#allocation13 + $0x360] sm:$0xff] }
 0x56a   : > { %14474 = vmatmul.mubr.msk.f32.vlgmr.msra.gmra.mxu0 %vm2202_vm5, %v15895_v53  ;;  %3435 = vmatprep.subr.mxu0 %v3332_v39  ;;  %v3697_v39 = vld [vmem:[#allocation13 + $0x470] sm:$0xff] }
 0x56b   : > { %2987 = vmatpush1.msra.mxu1 %v2951_v16  ;;  %3436 = vmatpush1.msra.mxu0 %v3331_v7  ;;  %v3310_v16 = vld [vmem:[#allocation13 + $0x328] sm:$0xff]  ;;  %v3690_v7 = vld [vmem:[#allocation13 + $0x438] sm:$0xff] }
 0x56c   : > { %2988 = vmatprep.subr.mxu1 %v2944_v23  ;;  %3437 = vmatprep.subr.mxu0 %v3324_v43  ;;  %v3309_v23 = vld [vmem:[#allocation13 + $0x320] sm:$0xff]  ;;  %v3689_v43 = vld [vmem:[#allocation13 + $0x430] sm:$0xff] }
 0x56d   : > { %2989 = vmatpush1.msra.mxu1 %v2943_v1  ;;  %3438 = vmatpush1.msra.mxu0 %v3323_v5  ;;  %v3708_v1 = vld [vmem:[#allocation13 + $0x4c8] sm:$0xff]  ;;  %v4088_v5 = vld [vmem:[#allocation13 + $0x5d8] sm:$0xff] }
 0x56e   : > { %2990 = vmatprep.subr.mxu1 %v2936_v10  ;;  %3439 = vmatprep.subr.mxu0 %v3316_v60  ;;  %v3707_v10 = vld [vmem:[#allocation13 + $0x4c0] sm:$0xff]  ;;  %v4087_v60 = vld [vmem:[#allocation13 + $0x5d0] sm:$0xff] }
 0x56f   : > { %2991 = vmatpush1.msra.mxu1 %v2935_v18  ;;  %3440 = vmatpush1.msra.mxu0 %v3315_v19  ;;  %v3700_v18 = vld [vmem:[#allocation13 + $0x488] sm:$0xff]  ;;  %v4080_v19 = vld [vmem:[#allocation13 + $0x598] sm:$0xff] }
 0x570   : > { %2992 = vmatprep.subr.mxu1 %v2928_v11  ;;  %3441 = vmatprep.subr.mxu0 %v3308_v0  ;;  %v3699_v11 = vld [vmem:[#allocation13 + $0x480] sm:$0xff]  ;;  %v4079_v0 = vld [vmem:[#allocation13 + $0x590] sm:$0xff] }
 0x571   : > { %2993 = vmatpush1.msra.mxu1 %v2927_v21  ;;  %3026 = vmatprep.mubr.f32.mxu1 %v15254_v14  ;;  %v3692_v21 = vld [vmem:[#allocation13 + $0x448] sm:$0xff] }
 0x572   : > { %3442 = vmatpush1.msra.mxu0 %v3307_v22  ;;  %3475 = vmatprep.mubr.f32.mxu0 %v15254_v14  ;;  %v4072_v22 = vld [vmem:[#allocation13 + $0x558] sm:$0xff] }
 0x573   : > { %14471 = vmatmul.mubr.msk.f32.vlgmr.msra.gmra.mxu1 %vm2202_vm5, %v15895_v53  ;;  %3128 = vmatprep.subr.mxu1 %v2956_v2  ;;  %v3691_v2 = vld [vmem:[#allocation13 + $0x440] sm:$0xff] }
 0x574   : > { %14476 = vmatmul.mubr.msk.f32.vlgmr.msra.gmra.mxu0 %vm2202_vm5, %v15910_v25  ;;  %3577 = vmatprep.subr.mxu0 %v3336_v24  ;;  %v4071_v24 = vld [vmem:[#allocation13 + $0x550] sm:$0xff] }
 0x575   : > { %3129 = vmatpush1.msra.mxu1 %v2955_v26  ;;  %3578 = vmatpush1.msra.mxu0 %v3335_v9  ;;  %v4064_v26 = vld [vmem:[#allocation13 + $0x518] sm:$0xff]  ;;  %v3683_v9 = vld [vmem:[#allocation13 + $0x400] sm:$0xff] }
 0x576   : > { %3130 = vmatprep.subr.mxu1 %v2948_v29  ;;  %3579 = vmatprep.subr.mxu0 %v3328_v33  ;;  %v4063_v29 = vld [vmem:[#allocation13 + $0x510] sm:$0xff]  ;;  %v3712_v33 = vld [vmem:[#allocation13 + $0x4e8] sm:$0xff] }
 0x577   : > { %3131 = vmatpush1.msra.mxu1 %v2947_v34  ;;  %3580 = vmatpush1.msra.mxu0 %v3327_v35  ;;  %v4092_v34 = vld [vmem:[#allocation13 + $0x5f8] sm:$0xff]  ;;  %v15940_v35 = vrot.slane %v15871_v12, 5 }
 0x578   : > { %3132 = vmatprep.subr.mxu1 %v2940_v55  ;;  %3581 = vmatprep.subr.mxu0 %v3320_v58  ;;  %v3711_v55 = vld [vmem:[#allocation13 + $0x4e0] sm:$0xff]  ;;  %v4091_v58 = vld [vmem:[#allocation13 + $0x5f0] sm:$0xff] }
 0x579   : > { %3133 = vmatpush1.msra.mxu1 %v2939_v36  ;;  %3582 = vmatpush1.msra.mxu0 %v3319_v37  ;;  %v3704_v36 = vld [vmem:[#allocation13 + $0x4a8] sm:$0xff]  ;;  %v4084_v37 = vld [vmem:[#allocation13 + $0x5b8] sm:$0xff] }
 0x57a   : > { %3134 = vmatprep.subr.mxu1 %v2932_v28  ;;  %3583 = vmatprep.subr.mxu0 %v3312_v38  ;;  %v3703_v28 = vld [vmem:[#allocation13 + $0x4a0] sm:$0xff]  ;;  %v4083_v38 = vld [vmem:[#allocation13 + $0x5b0] sm:$0xff] }
 0x57b   : > { %3135 = vmatpush1.msra.mxu1 %v2931_v41  ;;  %3168 = vmatprep.mubr.f32.mxu1 %v15254_v14  ;;  %v3696_v41 = vld [vmem:[#allocation13 + $0x468] sm:$0xff] }
 0x57c   : > { %3584 = vmatpush1.msra.mxu0 %v3311_v4  ;;  %3617 = vmatprep.mubr.f32.mxu0 %v15254_v14  ;;  %v4076_v4 = vld [vmem:[#allocation13 + $0x578] sm:$0xff] }
 0x57d   : > { %14473 = vmatmul.mubr.msk.f32.vlgmr.msra.gmra.mxu1 %vm2202_vm5, %v15895_v53  ;;  %3364 = vmatprep.subr.mxu1 %v3330_v59  ;;  %v3306_v53 = vld [vmem:[#allocation13 + $0x308] sm:$0xff]  ;;  %v3695_v59 = vld [vmem:[#allocation13 + $0x460] sm:$0xff] }
 0x57e   : > { %14478 = vmatmul.mubr.msk.f32.vlgmr.msra.gmra.mxu0 %vm2202_vm5, %v15910_v25  ;;  %3813 = vmatprep.subr.mxu0 %v3710_v63  ;;  %v4075_v63 = vld [vmem:[#allocation13 + $0x570] sm:$0xff] }
 0x57f   : > { %3365 = vmatpush1.msra.mxu1 %v3329_v42  ;;  %3814 = vmatpush1.msra.mxu0 %v3709_v44  ;;  %v3688_v42 = vld [vmem:[#allocation13 + $0x428] sm:$0xff]  ;;  %v4068_v44 = vld [vmem:[#allocation13 + $0x538] sm:$0xff] }
 0x580   : > { %3366 = vmatprep.subr.mxu1 %v3322_v45  ;;  %3815 = vmatprep.subr.mxu0 %v3702_v46  ;;  %v3687_v45 = vld [vmem:[#allocation13 + $0x420] sm:$0xff]  ;;  %v4067_v46 = vld [vmem:[#allocation13 + $0x530] sm:$0xff] }
 0x581   : > { %3367 = vmatpush1.msra.mxu1 %v3321_v47  ;;  %3816 = vmatpush1.msra.mxu0 %v3701_v48  ;;  %v4086_v47 = vld [vmem:[#allocation13 + $0x5c8] sm:$0xff]  ;;  %v4466_v48 = vld [vmem:[#allocation13 + $0x6d8] sm:$0xff] }
 0x582   : > { %3368 = vmatprep.subr.mxu1 %v3314_v49  ;;  %3817 = vmatprep.subr.mxu0 %v3694_v50  ;;  %v4085_v49 = vld [vmem:[#allocation13 + $0x5c0] sm:$0xff]  ;;  %v4465_v50 = vld [vmem:[#allocation13 + $0x6d0] sm:$0xff] }
 0x583   : > { %3369 = vmatpush1.msra.mxu1 %v3313_v51  ;;  %3818 = vmatpush1.msra.mxu0 %v3693_v52  ;;  %v4078_v51 = vld [vmem:[#allocation13 + $0x588] sm:$0xff]  ;;  %v4458_v52 = vld [vmem:[#allocation13 + $0x698] sm:$0xff] }
 0x584   : > { %3370 = vmatprep.subr.mxu1 %v3306_v53  ;;  %3819 = vmatprep.subr.mxu0 %v3686_v54  ;;  %v4077_v53 = vld [vmem:[#allocation13 + $0x580] sm:$0xff]  ;;  %v4457_v54 = vld [vmem:[#allocation13 + $0x690] sm:$0xff] }
 0x585   : > { %3371 = vmatpush1.msra.mxu1 %v3305_v56  ;;  %3404 = vmatprep.mubr.f32.mxu1 %v15254_v14  ;;  %v4070_v56 = vld [vmem:[#allocation13 + $0x548] sm:$0xff] }
 0x586   : > { %3820 = vmatpush1.msra.mxu0 %v3685_v57  ;;  %3853 = vmatprep.mubr.f32.mxu0 %v15254_v14  ;;  %v4450_v57 = vld [vmem:[#allocation13 + $0x658] sm:$0xff] }
 0x587   : > { %14475 = vmatmul.mubr.msk.f32.vlgmr.msra.gmra.mxu1 %vm2202_vm5, %v15910_v25  ;;  %3506 = vmatprep.subr.mxu1 %v3334_v61  ;;  %v4069_v61 = vld [vmem:[#allocation13 + $0x540] sm:$0xff] }
 0x588   : > { %14480 = vmatmul.mubr.msk.f32.vlgmr.msra.gmra.mxu0 %vm2202_vm5, %v15925_v3  ;;  %3955 = vmatprep.subr.mxu0 %v3714_v62  ;;  %v4449_v62 = vld [vmem:[#allocation13 + $0x650] sm:$0xff] }
 0x589   : > { %3507 = vmatpush1.msra.mxu1 %v3333_v6  ;;  %3956 = vmatpush1.msra.mxu0 %v3713_v8  ;;  %v4442_v6 = vld [vmem:[#allocation13 + $0x618] sm:$0xff]  ;;  %v4061_v8 = vld [vmem:[#allocation13 + $0x500] sm:$0xff] }
 0x58a   : > { %3508 = vmatprep.subr.mxu1 %v3326_v13  ;;  %3957 = vmatprep.subr.mxu0 %v3706_v20  ;;  %v4441_v13 = vld [vmem:[#allocation13 + $0x610] sm:$0xff]  ;;  %v4090_v20 = vld [vmem:[#allocation13 + $0x5e8] sm:$0xff] }
 0x58b   : > { %3509 = vmatpush1.msra.mxu1 %v3325_v30  ;;  %3958 = vmatpush1.msra.mxu0 %v3705_v17  ;;  %v4470_v30 = vld [vmem:[#allocation13 + $0x6f8] sm:$0xff]  ;;  %v15955_v17 = vrot.slane %v15871_v12, 6 }
 0x58c   : > { %3510 = vmatprep.subr.mxu1 %v3318_v27  ;;  %3959 = vmatprep.subr.mxu0 %v3698_v31  ;;  %v4089_v27 = vld [vmem:[#allocation13 + $0x5e0] sm:$0xff]  ;;  %v4469_v31 = vld [vmem:[#allocation13 + $0x6f0] sm:$0xff] }
 0x58d   : > { %3511 = vmatpush1.msra.mxu1 %v3317_v32  ;;  %3960 = vmatpush1.msra.mxu0 %v3697_v39  ;;  %v4082_v32 = vld [vmem:[#allocation13 + $0x5a8] sm:$0xff]  ;;  %v4462_v39 = vld [vmem:[#allocation13 + $0x6b8] sm:$0xff] }
 0x58e   : > { %3512 = vmatprep.subr.mxu1 %v3310_v16  ;;  %3961 = vmatprep.subr.mxu0 %v3690_v7  ;;  %v4081_v16 = vld [vmem:[#allocation13 + $0x5a0] sm:$0xff]  ;;  %v4461_v7 = vld [vmem:[#allocation13 + $0x6b0] sm:$0xff] }
 0x58f   : > { %3513 = vmatpush1.msra.mxu1 %v3309_v23  ;;  %3546 = vmatprep.mubr.f32.mxu1 %v15254_v14  ;;  %v4074_v23 = vld [vmem:[#allocation13 + $0x568] sm:$0xff] }
 0x590   : > { %3962 = vmatpush1.msra.mxu0 %v3689_v43  ;;  %3995 = vmatprep.mubr.f32.mxu0 %v15254_v14  ;;  %v4454_v43 = vld [vmem:[#allocation13 + $0x678] sm:$0xff] }
 0x591   : > { %14477 = vmatmul.mubr.msk.f32.vlgmr.msra.gmra.mxu1 %vm2202_vm5, %v15910_v25  ;;  %3742 = vmatprep.subr.mxu1 %v3708_v1  ;;  %v3684_v25 = vld [vmem:[#allocation13 + $0x408] sm:$0xff]  ;;  %v4073_v1 = vld [vmem:[#allocation13 + $0x560] sm:$0xff] }
 0x592   : > { %14482 = vmatmul.mubr.msk.f32.vlgmr.msra.gmra.mxu0 %vm2202_vm5, %v15925_v3  ;;  %4191 = vmatprep.subr.mxu0 %v4088_v5  ;;  %v4453_v5 = vld [vmem:[#allocation13 + $0x670] sm:$0xff] }
 0x593   : > { %3743 = vmatpush1.msra.mxu1 %v3707_v10  ;;  %4192 = vmatpush1.msra.mxu0 %v4087_v60  ;;  %v4066_v10 = vld [vmem:[#allocation13 + $0x528] sm:$0xff]  ;;  %v4446_v60 = vld [vmem:[#allocation13 + $0x638] sm:$0xff] }
 0x594   : > { %3744 = vmatprep.subr.mxu1 %v3700_v18  ;;  %4193 = vmatprep.subr.mxu0 %v4080_v19  ;;  %v4065_v18 = vld [vmem:[#allocation13 + $0x520] sm:$0xff]  ;;  %v4445_v19 = vld [vmem:[#allocation13 + $0x630] sm:$0xff] }
 0x595   : > { %3745 = vmatpush1.msra.mxu1 %v3699_v11  ;;  %4194 = vmatpush1.msra.mxu0 %v4079_v0  ;;  %v4464_v11 = vld [vmem:[#allocation13 + $0x6c8] sm:$0xff]  ;;  %v4844_v0 = vld [vmem:[#allocation13 + $0x7d8] sm:$0xff] }
 0x596   : > { %3746 = vmatprep.subr.mxu1 %v3692_v21  ;;  %4195 = vmatprep.subr.mxu0 %v4072_v22  ;;  %v4463_v21 = vld [vmem:[#allocation13 + $0x6c0] sm:$0xff]  ;;  %v4843_v22 = vld [vmem:[#allocation13 + $0x7d0] sm:$0xff] }
 0x597   : > { %3747 = vmatpush1.msra.mxu1 %v3691_v2  ;;  %4196 = vmatpush1.msra.mxu0 %v4071_v24  ;;  %v4456_v2 = vld [vmem:[#allocation13 + $0x688] sm:$0xff]  ;;  %v4836_v24 = vld [vmem:[#allocation13 + $0x798] sm:$0xff] }
 0x598   : > { %3748 = vmatprep.subr.mxu1 %v3684_v25  ;;  %4197 = vmatprep.subr.mxu0 %v4064_v26  ;;  %v4455_v25 = vld [vmem:[#allocation13 + $0x680] sm:$0xff]  ;;  %v4835_v26 = vld [vmem:[#allocation13 + $0x790] sm:$0xff] }
 0x599   : > { %3749 = vmatpush1.msra.mxu1 %v3683_v9  ;;  %3782 = vmatprep.mubr.f32.mxu1 %v15254_v14  ;;  %v4448_v9 = vld [vmem:[#allocation13 + $0x648] sm:$0xff] }
 0x59a   : > { %4198 = vmatpush1.msra.mxu0 %v4063_v29  ;;  %4231 = vmatprep.mubr.f32.mxu0 %v15254_v14  ;;  %v4828_v29 = vld [vmem:[#allocation13 + $0x758] sm:$0xff] }
 0x59b   : > { %14479 = vmatmul.mubr.msk.f32.vlgmr.msra.gmra.mxu1 %vm2202_vm5, %v15925_v3  ;;  %3884 = vmatprep.subr.mxu1 %v3712_v33  ;;  %v4447_v33 = vld [vmem:[#allocation13 + $0x640] sm:$0xff] }
 0x59c   : > { %14484 = vmatmul.mubr.msk.f32.vlgmr.msra.gmra.mxu0 %vm2202_vm5, %v15940_v35  ;;  %4333 = vmatprep.subr.mxu0 %v4092_v34  ;;  %v4827_v34 = vld [vmem:[#allocation13 + $0x750] sm:$0xff] }
 0x59d   : > { %3885 = vmatpush1.msra.mxu1 %v3711_v55  ;;  %4334 = vmatpush1.msra.mxu0 %v4091_v58  ;;  %v4820_v55 = vld [vmem:[#allocation13 + $0x718] sm:$0xff]  ;;  %v4439_v58 = vld [vmem:[#allocation13 + $0x600] sm:$0xff] }
 0x59e   : > { %3886 = vmatprep.subr.mxu1 %v3704_v36  ;;  %4335 = vmatprep.subr.mxu0 %v4084_v37  ;;  %v4819_v36 = vld [vmem:[#allocation13 + $0x710] sm:$0xff]  ;;  %v4468_v37 = vld [vmem:[#allocation13 + $0x6e8] sm:$0xff] }
 0x59f   : > { %3887 = vmatpush1.msra.mxu1 %v3703_v28  ;;  %4336 = vmatpush1.msra.mxu0 %v4083_v38  ;;  %v4848_v28 = vld [vmem:[#allocation13 + $0x7f8] sm:$0xff]  ;;  %v15970_v38 = vrot.slane %v15871_v12, 7  ;;  %v4451_v12 = vld [vmem:[#allocation13 + $0x660] sm:$0xff] }
 0x5a0   : > { %3888 = vmatprep.subr.mxu1 %v3696_v41  ;;  %4337 = vmatprep.subr.mxu0 %v4076_v4  ;;  %v4467_v41 = vld [vmem:[#allocation13 + $0x6e0] sm:$0xff]  ;;  %v4847_v4 = vld [vmem:[#allocation13 + $0x7f0] sm:$0xff] }
 0x5a1   : > { %3889 = vmatpush1.msra.mxu1 %v3695_v59  ;;  %4338 = vmatpush1.msra.mxu0 %v4075_v63  ;;  %v4460_v59 = vld [vmem:[#allocation13 + $0x6a8] sm:$0xff]  ;;  %v4840_v63 = vld [vmem:[#allocation13 + $0x7b8] sm:$0xff] }
 0x5a2   : > { %3890 = vmatprep.subr.mxu1 %v3688_v42  ;;  %4339 = vmatprep.subr.mxu0 %v4068_v44  ;;  %v4459_v42 = vld [vmem:[#allocation13 + $0x6a0] sm:$0xff]  ;;  %v4839_v44 = vld [vmem:[#allocation13 + $0x7b0] sm:$0xff] }
 0x5a3   : > { %3891 = vmatpush1.msra.mxu1 %v3687_v45  ;;  %3924 = vmatprep.mubr.f32.mxu1 %v15254_v14  ;;  %v4452_v45 = vld [vmem:[#allocation13 + $0x668] sm:$0xff] }
 0x5a4   : > { %4340 = vmatpush1.msra.mxu0 %v4067_v46  ;;  %4373 = vmatprep.mubr.f32.mxu0 %v15254_v14  ;;  %v4832_v46 = vld [vmem:[#allocation13 + $0x778] sm:$0xff] }
 0x5a5   : > { %14481 = vmatmul.mubr.msk.f32.vlgmr.msra.gmra.mxu1 %vm2202_vm5, %v15925_v3  ;;  %4120 = vmatprep.subr.mxu1 %v4086_v47  ;;  %v4062_v3 = vld [vmem:[#allocation13 + $0x508] sm:$0xff]  ;;  %v4831_v47 = vld [vmem:[#allocation13 + $0x770] sm:$0xff] }
 0x5a6   : > { %14486 = vmatmul.mubr.msk.f32.vlgmr.msra.gmra.mxu0 %vm2202_vm5, %v15940_v35  ;;  %4569 = vmatprep.subr.mxu0 %v4466_v48  ;;  %v4444_v48 = vld [vmem:[#allocation13 + $0x628] sm:$0xff] }
 0x5a7   : > { %4121 = vmatpush1.msra.mxu1 %v4085_v49  ;;  %4570 = vmatpush1.msra.mxu0 %v4465_v50  ;;  %v4824_v49 = vld [vmem:[#allocation13 + $0x738] sm:$0xff]  ;;  %v4443_v50 = vld [vmem:[#allocation13 + $0x620] sm:$0xff] }
 0x5a8   : > { %4122 = vmatprep.subr.mxu1 %v4078_v51  ;;  %4571 = vmatprep.subr.mxu0 %v4458_v52  ;;  %v4823_v51 = vld [vmem:[#allocation13 + $0x730] sm:$0xff]  ;;  %v4842_v52 = vld [vmem:[#allocation13 + $0x7c8] sm:$0xff] }
 0x5a9   : > { %4123 = vmatpush1.msra.mxu1 %v4077_v53  ;;  %4572 = vmatpush1.msra.mxu0 %v4457_v54  ;;  %v5222_v53 = vld [vmem:[#allocation13 + $0x8d8] sm:$0xff]  ;;  %v4841_v54 = vld [vmem:[#allocation13 + $0x7c0] sm:$0xff] }
 0x5aa   : > { %4124 = vmatprep.subr.mxu1 %v4070_v56  ;;  %4573 = vmatprep.subr.mxu0 %v4450_v57  ;;  %v5221_v56 = vld [vmem:[#allocation13 + $0x8d0] sm:$0xff]  ;;  %v4834_v57 = vld [vmem:[#allocation13 + $0x788] sm:$0xff] }
 0x5ab   : > { %4125 = vmatpush1.msra.mxu1 %v4069_v61  ;;  %4574 = vmatpush1.msra.mxu0 %v4449_v62  ;;  %v5214_v61 = vld [vmem:[#allocation13 + $0x898] sm:$0xff]  ;;  %v4833_v62 = vld [vmem:[#allocation13 + $0x780] sm:$0xff] }
 0x5ac   : > { %4126 = vmatprep.subr.mxu1 %v4062_v3  ;;  %4575 = vmatprep.subr.mxu0 %v4442_v6  ;;  %v5213_v3 = vld [vmem:[#allocation13 + $0x890] sm:$0xff]  ;;  %v4826_v6 = vld [vmem:[#allocation13 + $0x748] sm:$0xff] }
 0x5ad   : > { %4127 = vmatpush1.msra.mxu1 %v4061_v8  ;;  %4160 = vmatprep.mubr.f32.mxu1 %v15254_v14  ;;  %v5206_v8 = vld [vmem:[#allocation13 + $0x858] sm:$0xff] }
 0x5ae   : > { %4576 = vmatpush1.msra.mxu0 %v4441_v13  ;;  %4609 = vmatprep.mubr.f32.mxu0 %v15254_v14  ;;  %v4825_v13 = vld [vmem:[#allocation13 + $0x740] sm:$0xff] }
 0x5af   : > { %14483 = vmatmul.mubr.msk.f32.vlgmr.msra.gmra.mxu1 %vm2202_vm5, %v15940_v35  ;;  %4262 = vmatprep.subr.mxu1 %v4090_v20  ;;  %v5205_v20 = vld [vmem:[#allocation13 + $0x850] sm:$0xff] }
 0x5b0   : > { %14488 = vmatmul.mubr.msk.f32.vlgmr.msra.gmra.mxu0 %vm2202_vm5, %v15955_v17  ;;  %4711 = vmatprep.subr.mxu0 %v4470_v30  ;;  %v4818_v30 = vld [vmem:[#allocation13 + $0x708] sm:$0xff] }
 0x5b1   : > { %4263 = vmatpush1.msra.mxu1 %v4089_v27  ;;  %4712 = vmatpush1.msra.mxu0 %v4469_v31  ;;  %v4817_v27 = vld [vmem:[#allocation13 + $0x700] sm:$0xff]  ;;  %v5197_v31 = vld [vmem:[#allocation13 + $0x810] sm:$0xff] }
 0x5b2   : > { %4264 = vmatprep.subr.mxu1 %v4082_v32  ;;  %4713 = vmatprep.subr.mxu0 %v4462_v39  ;;  %v4846_v32 = vld [vmem:[#allocation13 + $0x7e8] sm:$0xff]  ;;  %v5226_v39 = vld [vmem:[#allocation13 + $0x8f8] sm:$0xff] }
 0x5b3   : > { %4265 = vmatpush1.msra.mxu1 %v4081_v16  ;;  %4714 = vmatpush1.msra.mxu0 %v4461_v7  ;;  %v15984_v16 = vmul.f32 0.0625, %v15869_v15  ;;  %v4845_v7 = vld [vmem:[#allocation13 + $0x7e0] sm:$0xff]  ;;  %v4830_v15 = vld [vmem:[#allocation13 + $0x768] sm:$0xff] }
 0x5b4   : > { %4266 = vmatprep.subr.mxu1 %v4074_v23  ;;  %4715 = vmatprep.subr.mxu0 %v4454_v43  ;;  %v5225_v23 = vld [vmem:[#allocation13 + $0x8f0] sm:$0xff]  ;;  %v4838_v43 = vld [vmem:[#allocation13 + $0x7a8] sm:$0xff] }
 0x5b5   : > { %4267 = vmatpush1.msra.mxu1 %v4073_v1  ;;  %4716 = vmatpush1.msra.mxu0 %v4453_v5  ;;  %v5218_v1 = vld [vmem:[#allocation13 + $0x8b8] sm:$0xff]  ;;  %v4837_v5 = vld [vmem:[#allocation13 + $0x7a0] sm:$0xff] }
 0x5b6   : > { %4268 = vmatprep.subr.mxu1 %v4066_v10  ;;  %4717 = vmatprep.subr.mxu0 %v4446_v60  ;;  %v5217_v10 = vld [vmem:[#allocation13 + $0x8b0] sm:$0xff]  ;;  %v5210_v60 = vld [vmem:[#allocation13 + $0x878] sm:$0xff] }
 0x5b7   : > { %4269 = vmatpush1.msra.mxu1 %v4065_v18  ;;  %4302 = vmatprep.mubr.f32.mxu1 %v15254_v14  ;;  %v4829_v18 = vld [vmem:[#allocation13 + $0x760] sm:$0xff] }
 0x5b8   : > { %4718 = vmatpush1.msra.mxu0 %v4445_v19  ;;  %4751 = vmatprep.mubr.f32.mxu0 %v15254_v14  ;;  %v5209_v19 = vld [vmem:[#allocation13 + $0x870] sm:$0xff] }
 0x5b9   : > { %14485 = vmatmul.mubr.msk.f32.vlgmr.msra.gmra.mxu1 %vm2202_vm5, %v15940_v35  ;;  %4498 = vmatprep.subr.mxu1 %v4464_v11  ;;  %v4440_v35 = vld [vmem:[#allocation13 + $0x608] sm:$0xff] }
 0x5ba   : > { %14490 = vmatmul.mubr.msk.f32.vlgmr.msra.gmra.mxu0 %vm2202_vm5, %v15955_v17  ;;  %4947 = vmatprep.subr.mxu0 %v4844_v0  ;;  %v4822_v11 = vld [vmem:[#allocation13 + $0x728] sm:$0xff]  ;;  %v5202_v0 = vld [vmem:[#allocation13 + $0x838] sm:$0xff] }
 0x5bb   : > { %4499 = vmatpush1.msra.mxu1 %v4463_v21  ;;  %4948 = vmatpush1.msra.mxu0 %v4843_v22  ;;  %v4821_v21 = vld [vmem:[#allocation13 + $0x720] sm:$0xff]  ;;  %v5201_v22 = vld [vmem:[#allocation13 + $0x830] sm:$0xff] }
 0x5bc   : > { %4500 = vmatprep.subr.mxu1 %v4456_v2  ;;  %4949 = vmatprep.subr.mxu0 %v4836_v24  ;;  %v5220_v2 = vld [vmem:[#allocation13 + $0x8c8] sm:$0xff]  ;;  %v5600_v24 = vld [vmem:[#allocation13 + $0x9d8] sm:$0xff] }
 0x5bd   : > { %4501 = vmatpush1.msra.mxu1 %v4455_v25  ;;  %4950 = vmatpush1.msra.mxu0 %v4835_v26  ;;  %v5219_v25 = vld [vmem:[#allocation13 + $0x8c0] sm:$0xff]  ;;  %v5599_v26 = vld [vmem:[#allocation13 + $0x9d0] sm:$0xff] }
 0x5be   : > { %4502 = vmatprep.subr.mxu1 %v4448_v9  ;;  %4951 = vmatprep.subr.mxu0 %v4828_v29  ;;  %v5212_v9 = vld [vmem:[#allocation13 + $0x888] sm:$0xff]  ;;  %v5592_v29 = vld [vmem:[#allocation13 + $0x998] sm:$0xff] }
 0x5bf   : > { %4503 = vmatpush1.msra.mxu1 %v4447_v33  ;;  %4952 = vmatpush1.msra.mxu0 %v4827_v34  ;;  %v5211_v33 = vld [vmem:[#allocation13 + $0x880] sm:$0xff]  ;;  %v5591_v34 = vld [vmem:[#allocation13 + $0x990] sm:$0xff] }
 0x5c0   : > { %4504 = vmatprep.subr.mxu1 %v4440_v35  ;;  %4953 = vmatprep.subr.mxu0 %v4820_v55  ;;  %v5204_v35 = vld [vmem:[#allocation13 + $0x848] sm:$0xff]  ;;  %v5584_v55 = vld [vmem:[#allocation13 + $0x958] sm:$0xff] }
 0x5c1   : > { %4505 = vmatpush1.msra.mxu1 %v4439_v58  ;;  %4538 = vmatprep.mubr.f32.mxu1 %v15254_v14  ;;  %v5203_v58 = vld [vmem:[#allocation13 + $0x840] sm:$0xff] }
 0x5c2   : > { %4954 = vmatpush1.msra.mxu0 %v4819_v36  ;;  %4987 = vmatprep.mubr.f32.mxu0 %v15254_v14  ;;  %v5583_v36 = vld [vmem:[#allocation13 + $0x950] sm:$0xff] }
 0x5c3   : > { %14487 = vmatmul.mubr.msk.f32.vlgmr.msra.gmra.mxu1 %vm2202_vm5, %v15955_v17  ;;  %4640 = vmatprep.subr.mxu1 %v4468_v37  ;;  %v5196_v37 = vld [vmem:[#allocation13 + $0x808] sm:$0xff] }
 0x5c4   : > { %14492 = vmatmul.mubr.msk.f32.vlgmr.msra.gmra.mxu0 %vm2202_vm5, %v15970_v38  ;;  %5089 = vmatprep.subr.mxu0 %v4848_v28  ;;  %v5576_v28 = vld [vmem:[#allocation13 + $0x918] sm:$0xff] }
 0x5c5   : > { %4641 = vmatpush1.msra.mxu1 %v4467_v41  ;;  %5090 = vmatpush1.msra.mxu0 %v4847_v4  ;;  %v5575_v41 = vld [vmem:[#allocation13 + $0x910] sm:$0xff]  ;;  %v5224_v4 = vld [vmem:[#allocation13 + $0x8e8] sm:$0xff] }
 0x5c6   : > { %4642 = vmatprep.subr.mxu1 %v4460_v59  ;;  %5091 = vmatprep.subr.mxu0 %v4840_v63  ;;  %v5604_v59 = vld [vmem:[#allocation13 + $0x9f8] sm:$0xff]  ;;  %v16000_v63 = vrot.slane %v15984_v16, 1 }
 0x5c7   : > { %4643 = vmatpush1.msra.mxu1 %v4459_v42  ;;  %5092 = vmatpush1.msra.mxu0 %v4839_v44  ;;  %v5223_v42 = vld [vmem:[#allocation13 + $0x8e0] sm:$0xff]  ;;  %v5603_v44 = vld [vmem:[#allocation13 + $0x9f0] sm:$0xff] }
 0x5c8   : > { %4644 = vmatprep.subr.mxu1 %v4452_v45  ;;  %5093 = vmatprep.subr.mxu0 %v4832_v46  ;;  %v5216_v45 = vld [vmem:[#allocation13 + $0x8a8] sm:$0xff]  ;;  %v5596_v46 = vld [vmem:[#allocation13 + $0x9b8] sm:$0xff] }
 0x5c9   : > { %4645 = vmatpush1.msra.mxu1 %v4451_v12  ;;  %5094 = vmatpush1.msra.mxu0 %v4831_v47  ;;  %v5215_v12 = vld [vmem:[#allocation13 + $0x8a0] sm:$0xff]  ;;  %v5595_v47 = vld [vmem:[#allocation13 + $0x9b0] sm:$0xff] }
 0x5ca   : > { %4646 = vmatprep.subr.mxu1 %v4444_v48  ;;  %5095 = vmatprep.subr.mxu0 %v4824_v49  ;;  %v5208_v48 = vld [vmem:[#allocation13 + $0x868] sm:$0xff]  ;;  %v5588_v49 = vld [vmem:[#allocation13 + $0x978] sm:$0xff] }
 0x5cb   : > { %4647 = vmatpush1.msra.mxu1 %v4443_v50  ;;  %4680 = vmatprep.mubr.f32.mxu1 %v15254_v14  ;;  %v5207_v50 = vld [vmem:[#allocation13 + $0x860] sm:$0xff] }
 0x5cc   : > { %5096 = vmatpush1.msra.mxu0 %v4823_v51  ;;  %5129 = vmatprep.mubr.f32.mxu0 %v15254_v14  ;;  %v5587_v51 = vld [vmem:[#allocation13 + $0x970] sm:$0xff] }
 0x5cd   : > { %14489 = vmatmul.mubr.msk.f32.vlgmr.msra.gmra.mxu1 %vm2202_vm5, %v15955_v17  ;;  %4876 = vmatprep.subr.mxu1 %v4842_v52  ;;  %v5198_v17 = vld [vmem:[#allocation13 + $0x818] sm:$0xff]  ;;  %v5200_v52 = vld [vmem:[#allocation13 + $0x828] sm:$0xff] }
 0x5ce   : > { %14494 = vmatmul.mubr.msk.f32.vlgmr.msra.gmra.mxu0 %vm2202_vm5, %v15970_v38  ;;  %5325 = vmatprep.subr.mxu0 %v5222_v53  ;;  %v5580_v53 = vld [vmem:[#allocation13 + $0x938] sm:$0xff] }
 0x5cf   : > { %4877 = vmatpush1.msra.mxu1 %v4841_v54  ;;  %5326 = vmatpush1.msra.mxu0 %v5221_v56  ;;  %v5199_v54 = vld [vmem:[#allocation13 + $0x820] sm:$0xff]  ;;  %v5579_v56 = vld [vmem:[#allocation13 + $0x930] sm:$0xff] }
 0x5d0   : > { %4878 = vmatprep.subr.mxu1 %v4834_v57  ;;  %5327 = vmatprep.subr.mxu0 %v5214_v61  ;;  %v5598_v57 = vld [vmem:[#allocation13 + $0x9c8] sm:$0xff]  ;;  %v5978_v61 = vld [vmem:[#allocation13 + $0xad8] sm:$0xff] }
 0x5d1   : > { %4879 = vmatpush1.msra.mxu1 %v4833_v62  ;;  %5328 = vmatpush1.msra.mxu0 %v5213_v3  ;;  %v5597_v62 = vld [vmem:[#allocation13 + $0x9c0] sm:$0xff]  ;;  %v5977_v3 = vld [vmem:[#allocation13 + $0xad0] sm:$0xff] }
 0x5d2   : > { %4880 = vmatprep.subr.mxu1 %v4826_v6  ;;  %5329 = vmatprep.subr.mxu0 %v5206_v8  ;;  %v5590_v6 = vld [vmem:[#allocation13 + $0x988] sm:$0xff]  ;;  %v5970_v8 = vld [vmem:[#allocation13 + $0xa98] sm:$0xff] }
 0x5d3   : > { %4881 = vmatpush1.msra.mxu1 %v4825_v13  ;;  %5330 = vmatpush1.msra.mxu0 %v5205_v20  ;;  %v5589_v13 = vld [vmem:[#allocation13 + $0x980] sm:$0xff]  ;;  %v5969_v20 = vld [vmem:[#allocation13 + $0xa90] sm:$0xff] }
 0x5d4   : > { %4882 = vmatprep.subr.mxu1 %v4818_v30  ;;  %5331 = vmatprep.subr.mxu0 %v5198_v17  ;;  %v5582_v30 = vld [vmem:[#allocation13 + $0x948] sm:$0xff]  ;;  %v5962_v17 = vld [vmem:[#allocation13 + $0xa58] sm:$0xff] }
 0x5d5   : > { %4883 = vmatpush1.msra.mxu1 %v4817_v27  ;;  %4916 = vmatprep.mubr.f32.mxu1 %v15254_v14  ;;  %v5581_v27 = vld [vmem:[#allocation13 + $0x940] sm:$0xff] }
 0x5d6   : > { %5332 = vmatpush1.msra.mxu0 %v5197_v31  ;;  %5365 = vmatprep.mubr.f32.mxu0 %v15254_v14  ;;  %v5961_v31 = vld [vmem:[#allocation13 + $0xa50] sm:$0xff] }
 0x5d7   : > { %14491 = vmatmul.mubr.msk.f32.vlgmr.msra.gmra.mxu1 %vm2202_vm5, %v15970_v38  ;;  %5018 = vmatprep.subr.mxu1 %v4846_v32  ;;  %v5574_v32 = vld [vmem:[#allocation13 + $0x908] sm:$0xff] }
 0x5d8   : > { %14496 = vmatmul.mubr.msk.f32.vlgmr.msra.gmra.mxu0 %vm2202_vm5, %v15984_v16  ;;  %5467 = vmatprep.subr.mxu0 %v5226_v39  ;;  %v5954_v39 = vld [vmem:[#allocation13 + $0xa18] sm:$0xff] }
 0x5d9   : > { %5019 = vmatpush1.msra.mxu1 %v4845_v7  ;;  %5468 = vmatpush1.msra.mxu0 %v5225_v23  ;;  %v5573_v7 = vld [vmem:[#allocation13 + $0x900] sm:$0xff]  ;;  %v5953_v23 = vld [vmem:[#allocation13 + $0xa10] sm:$0xff] }
 0x5da   : > { %5020 = vmatprep.subr.mxu1 %v4838_v43  ;;  %5469 = vmatprep.subr.mxu0 %v5218_v1  ;;  %v5602_v43 = vld [vmem:[#allocation13 + $0x9e8] sm:$0xff]  ;;  %v5982_v1 = vld [vmem:[#allocation13 + $0xaf8] sm:$0xff] }
 0x5db   : > { %5021 = vmatpush1.msra.mxu1 %v4837_v5  ;;  %5470 = vmatpush1.msra.mxu0 %v5217_v10  ;;  %v16015_v5 = vrot.slane %v15984_v16, 2  ;;  %v5601_v10 = vld [vmem:[#allocation13 + $0x9e0] sm:$0xff] }
 0x5dc   : > { %5022 = vmatprep.subr.mxu1 %v4830_v15  ;;  %5471 = vmatprep.subr.mxu0 %v5210_v60  ;;  %v5981_v15 = vld [vmem:[#allocation13 + $0xaf0] sm:$0xff]  ;;  %v5594_v60 = vld [vmem:[#allocation13 + $0x9a8] sm:$0xff] }
 0x5dd   : > { %5023 = vmatpush1.msra.mxu1 %v4829_v18  ;;  %5472 = vmatpush1.msra.mxu0 %v5209_v19  ;;  %v5974_v18 = vld [vmem:[#allocation13 + $0xab8] sm:$0xff]  ;;  %v16019_v19 = vpop.f32.mrf.mxu1 }
 0x5de   : > { %5024 = vmatprep.subr.mxu1 %v4822_v11  ;;  %5473 = vmatprep.subr.mxu0 %v5202_v0  ;;  %v5593_v11 = vld [vmem:[#allocation13 + $0x9a0] sm:$0xff]  ;;  %v5973_v0 = vld [vmem:[#allocation13 + $0xab0] sm:$0xff] }
 0x5df   : > { %5025 = vmatpush1.msra.mxu1 %v4821_v21  ;;  %5058 = vmatprep.mubr.f32.mxu1 %v15254_v14  ;;  %v5586_v21 = vld [vmem:[#allocation13 + $0x968] sm:$0xff] }
 0x5e0   : > { %5474 = vmatpush1.msra.mxu0 %v5201_v22  ;;  %5507 = vmatprep.mubr.f32.mxu0 %v15254_v14  ;;  %v5966_v22 = vld [vmem:[#allocation13 + $0xa78] sm:$0xff] }
 0x5e1   : > { %14493 = vmatmul.mubr.msk.f32.vlgmr.msra.gmra.mxu1 %vm2202_vm5, %v15970_v38  ;;  %5254 = vmatprep.subr.mxu1 %v5220_v2  ;;  %v5195_v38 = vld [vmem:[#allocation13 + $0x800] sm:$0xff] }
 0x5e2   : > { %14498 = vmatmul.mubr.msk.f32.vlgmr.msra.gmra.mxu0 %vm2202_vm5, %v15984_v16  ;;  %5703 = vmatprep.subr.mxu0 %v5600_v24  ;;  %v5585_v2 = vld [vmem:[#allocation13 + $0x960] sm:$0xff]  ;;  %v5965_v24 = vld [vmem:[#allocation13 + $0xa70] sm:$0xff] }
 0x5e3   : > { %5255 = vmatpush1.msra.mxu1 %v5219_v25  ;;  %5704 = vmatpush1.msra.mxu0 %v5599_v26  ;;  %v5578_v25 = vld [vmem:[#allocation13 + $0x928] sm:$0xff]  ;;  %v5958_v26 = vld [vmem:[#allocation13 + $0xa38] sm:$0xff] }
 0x5e4   : > { %5256 = vmatprep.subr.mxu1 %v5212_v9  ;;  %5705 = vmatprep.subr.mxu0 %v5592_v29  ;;  %v16023_v9 = vpop.f32.mrf.mxu1  ;;  %v15255_v29 = vmov 1966171168  }
 0x5e5   : > { %5257 = vmatpush1.msra.mxu1 %v5211_v33  ;;  %5706 = vmatpush1.msra.mxu0 %v5591_v34  ;;  %v2503_v33 = vunpack.c.l.s4 %v15255_v29  ;;  %v5577_v34 = vld [vmem:[#allocation13 + $0x920] sm:$0xff] }
 0x5e6   : > { %5258 = vmatprep.subr.mxu1 %v5204_v35  ;;  %5707 = vmatprep.subr.mxu0 %v5584_v55  ;;  %v5957_v35 = vld [vmem:[#allocation13 + $0xa30] sm:$0xff]  ;;  %v6353_v29 = vld [vmem:[#allocation13 + $0xbc0] sm:$0xff] }
 0x5e7   : > { %5259 = vmatpush1.msra.mxu1 %v5203_v58  ;;  %5708 = vmatpush1.msra.mxu0 %v5583_v36  ;;  %v5976_v58 = vld [vmem:[#allocation13 + $0xac8] sm:$0xff]  ;;  %v6356_v36 = vld [vmem:[#allocation13 + $0xbd8] sm:$0xff] }
 0x5e8   : > { %5260 = vmatprep.subr.mxu1 %v5196_v37  ;;  %5709 = vmatprep.subr.mxu0 %v5576_v28  ;;  %v2504_v37 = vunpack.c.0.s8 %v2503_v33  ;;  %v5975_v28 = vld [vmem:[#allocation13 + $0xac0] sm:$0xff]  ;;  %v6733_v33 = vld [vmem:[#allocation13 + $0xcd0] sm:$0xff] }
 0x5e9   : > { %5261 = vmatpush1.msra.mxu1 %v5195_v38  ;;  %5294 = vmatprep.mubr.f32.mxu1 %v15254_v14  ;;  %v6355_v38 = vld [vmem:[#allocation13 + $0xbd0] sm:$0xff] }
 0x5ea   : > { %5710 = vmatpush1.msra.mxu0 %v5575_v41  ;;  %5743 = vmatprep.mubr.f32.mxu0 %v15254_v14  ;;  %v5968_v41 = vld [vmem:[#allocation13 + $0xa88] sm:$0xff] }
 0x5eb   : > { %14495 = vmatmul.mubr.msk.f32.vlgmr.msra.gmra.mxu1 %vm2202_vm5, %v15984_v16  ;;  %5396 = vmatprep.subr.mxu1 %v5224_v4  ;;  %v6348_v4 = vld [vmem:[#allocation13 + $0xb98] sm:$0xff] }
 0x5ec   : > { %14500 = vmatmul.mubr.msk.f32.vlgmr.msra.gmra.mxu0 %vm2202_vm5, %v16000_v63  ;;  %5845 = vmatprep.subr.mxu0 %v5604_v59 }
 0x5ed   : > { %5397 = vmatpush1.msra.mxu1 %v5223_v42  ;;  %5846 = vmatpush1.msra.mxu0 %v5603_v44  ;;  %v5967_v42 = vld [vmem:[#allocation13 + $0xa80] sm:$0xff]  ;;  %v6347_v44 = vld [vmem:[#allocation13 + $0xb90] sm:$0xff] }
 0x5ee   : > { %5398 = vmatprep.subr.mxu1 %v5216_v45  ;;  %5847 = vmatprep.subr.mxu0 %v5596_v46  ;;  %v5960_v45 = vld [vmem:[#allocation13 + $0xa48] sm:$0xff]  ;;  %v6340_v46 = vld [vmem:[#allocation13 + $0xb58] sm:$0xff] }
 0x5ef   : > { %5399 = vmatpush1.msra.mxu1 %v5215_v12  ;;  %5848 = vmatpush1.msra.mxu0 %v5595_v47  ;;  %v16032_v47 = vsub.s32 %v2504_v37, %v15666_v40  ;;  %v5980_v40 = vld [vmem:[#allocation13 + $0xae8] sm:$0xff]  ;;  %v6725_v37 = vld [vmem:[#allocation13 + $0xc90] sm:$0xff] }
 0x5f0   : > { %5400 = vmatprep.subr.mxu1 %v5208_v48  ;;  %5849 = vmatprep.subr.mxu0 %v5588_v49  ;;  %v6339_v48 = vld [vmem:[#allocation13 + $0xb50] sm:$0xff] }
 0x5f1   : > { %5401 = vmatpush1.msra.mxu1 %v5207_v50  ;;  %5850 = vmatpush1.msra.mxu0 %v5587_v51  ;;  %v5952_v50 = vld [vmem:[#allocation13 + $0xa08] sm:$0xff]  ;;  %v6332_v51 = vld [vmem:[#allocation13 + $0xb18] sm:$0xff] }
 0x5f2   : > { %5402 = vmatprep.subr.mxu1 %v5200_v52  ;;  %5851 = vmatprep.subr.mxu0 %v5580_v53  ;;  %v5951_v53 = vld [vmem:[#allocation13 + $0xa00] sm:$0xff] }
 0x5f3   : > { %5403 = vmatpush1.msra.mxu1 %v5199_v54  ;;  %5436 = vmatprep.mubr.f32.mxu1 %v15254_v14 }
 0x5f4   : > { %5852 = vmatpush1.msra.mxu0 %v5579_v56  ;;  %5885 = vmatprep.mubr.f32.mxu0 %v15254_v14  ;;  %v6331_v56 = vld [vmem:[#allocation13 + $0xb10] sm:$0xff] }
 0x5f5   : > { %14497 = vmatmul.mubr.msk.f32.vlgmr.msra.gmra.mxu1 %vm2202_vm5, %v15984_v16  ;;  %5632 = vmatprep.subr.mxu1 %v5598_v57 }
 0x5f6   : > { %14502 = vmatmul.mubr.msk.f32.vlgmr.msra.gmra.mxu0 %vm2202_vm5, %v16000_v63  ;;  %6081 = vmatprep.subr.mxu0 %v5978_v61 }
 0x5f7   : > { %5633 = vmatpush1.msra.mxu1 %v5597_v62  ;;  %6082 = vmatpush1.msra.mxu0 %v5977_v3  ;;  %v6360_v3 = vld [vmem:[#allocation13 + $0xbf8] sm:$0xff] }
 0x5f8   : > { %5634 = vmatprep.subr.mxu1 %v5590_v6  ;;  %6083 = vmatprep.subr.mxu0 %v5970_v8  ;;  %v16043_v6 = vrot.slane %v15984_v16, 3  ;;  %v5979_v8 = vld [vmem:[#allocation13 + $0xae0] sm:$0xff] }
 0x5f9   : > { %5635 = vmatpush1.msra.mxu1 %v5589_v13  ;;  %6084 = vmatpush1.msra.mxu0 %v5969_v20  ;;  %v6359_v13 = vld [vmem:[#allocation13 + $0xbf0] sm:$0xff] }
 0x5fa   : > { %5636 = vmatprep.subr.mxu1 %v5582_v30  ;;  %6085 = vmatprep.subr.mxu0 %v5962_v17  ;;  %v5972_v30 = vld [vmem:[#allocation13 + $0xaa8] sm:$0xff]  ;;  %v6352_v17 = vld [vmem:[#allocation13 + $0xbb8] sm:$0xff] }
 0x5fb   : > { %5637 = vmatpush1.msra.mxu1 %v5581_v27  ;;  %6086 = vmatpush1.msra.mxu0 %v5961_v31  ;;  %v5971_v31 = vld [vmem:[#allocation13 + $0xaa0] sm:$0xff] }
 0x5fc   : > { %5638 = vmatprep.subr.mxu1 %v5574_v32  ;;  %6087 = vmatprep.subr.mxu0 %v5954_v39  ;;  %v6351_v32 = vld [vmem:[#allocation13 + $0xbb0] sm:$0xff]  ;;  %v5964_v39 = vld [vmem:[#allocation13 + $0xa68] sm:$0xff] }
 0x5fd   : > { %5639 = vmatpush1.msra.mxu1 %v5573_v7  ;;  %5672 = vmatprep.mubr.f32.mxu1 %v15254_v14  ;;  %v6344_v7 = vld [vmem:[#allocation13 + $0xb78] sm:$0xff] }
 0x5fe   : > { %6088 = vmatpush1.msra.mxu0 %v5953_v23  ;;  %6121 = vmatprep.mubr.f32.mxu0 %v15254_v14 }
 0x5ff   : > { %14499 = vmatmul.mubr.msk.f32.vlgmr.msra.gmra.mxu1 %vm2202_vm5, %v16000_v63  ;;  %5774 = vmatprep.subr.mxu1 %v5602_v43  ;;  %v5963_v43 = vld [vmem:[#allocation13 + $0xa60] sm:$0xff] }
 0x600   : > { %14504 = vmatmul.mubr.msk.f32.vlgmr.msra.gmra.mxu0 %vm2202_vm5, %v16015_v5  ;;  %6223 = vmatprep.subr.mxu0 %v5982_v1  ;;  %v6343_v1 = vld [vmem:[#allocation13 + $0xb70] sm:$0xff] }
 0x601   : > { %5775 = vmatpush1.msra.mxu1 %v5601_v10  ;;  %6224 = vmatpush1.msra.mxu0 %v5981_v15  ;;  %v5956_v15 = vld [vmem:[#allocation13 + $0xa28] sm:$0xff] }
 0x602   : > { %5776 = vmatprep.subr.mxu1 %v5594_v60  ;;  %6225 = vmatprep.subr.mxu0 %v5974_v18  ;;  %v2272_v55 = vpop.f32.mrf.mxu1  ;;  %v2485_v57 = vpop.f32.mrf.mxu0  ;;  %v6336_v60 = vld [vmem:[#allocation13 + $0xb38] sm:$0xff] }
 0x603   : > { %5777 = vmatpush1.msra.mxu1 %v5593_v11  ;;  %6226 = vmatpush1.msra.mxu0 %v5973_v0  ;;  %v5955_v11 = vld [vmem:[#allocation13 + $0xa20] sm:$0xff] }
 0x604   : > { %5778 = vmatprep.subr.mxu1 %v5586_v21  ;;  %6227 = vmatprep.subr.mxu0 %v5966_v22  ;;  %v2274_v59 = vpop.f32.mrf.mxu1  ;;  %v2487_v27 = vpop.f32.mrf.mxu0  ;;  %v6335_v21 = vld [vmem:[#allocation13 + $0xb30] sm:$0xff] }
 0x605   : > { %5779 = vmatpush1.msra.mxu1 %v5585_v2  ;;  %6228 = vmatpush1.msra.mxu0 %v5965_v24  ;;  %v2498_v49 = vcombine.low %v2272_v55, %v2274_v59  ;;  %v2501_v10 = vcombine.low %v2485_v57, %v2487_v27  ;;  %v6354_v2 = vld [vmem:[#allocation13 + $0xbc8] sm:$0xff]  ;;  %v6726_v55 = vld [vmem:[#allocation13 + $0xc98] sm:$0xff]  ;;  %v6337_v59 = vld [vmem:[#allocation13 + $0xb40] sm:$0xff]  ;;  %v16076_v57 = vrot.slane %v15984_v16, 4 }
 0x606   : > { %5780 = vmatprep.subr.mxu1 %v5578_v25  ;;  %6229 = vmatprep.subr.mxu0 %v5958_v26  ;;  %v6734_v26 = vld [vmem:[#allocation13 + $0xcd8] sm:$0xff] }
 0x607   : > { %5781 = vmatpush1.msra.mxu1 %v5577_v34  ;;  %5814 = vmatprep.mubr.f32.mxu1 %v15254_v14  ;;  %v16035_v61 = vrot.slane %v2498_v49, %v16032_v47  ;;  %v2529_v24 = vrot.slane %v2501_v10, %v16032_v47  ;;  %v6722_v27 = vld [vmem:[#allocation13 + $0xc78] sm:$0xff]  ;;  %v6333_v10 = vld [vmem:[#allocation13 + $0xb20] sm:$0xff] }
 0x608   : > { %6230 = vmatpush1.msra.mxu0 %v5957_v35  ;;  %6263 = vmatprep.mubr.f32.mxu0 %v15254_v14  ;;  %v6346_v35 = vld [vmem:[#allocation13 + $0xb88] sm:$0xff] }
 0x609   : > { %14501 = vmatmul.mubr.msk.f32.vlgmr.msra.gmra.mxu1 %vm2202_vm5, %v16000_v63  ;;  %6010 = vmatprep.subr.mxu1 %v5976_v58  ;;  %v5959_v63 = vld [vmem:[#allocation13 + $0xa40] sm:$0xff] }
 0x60a   : > { %14506 = vmatmul.mubr.msk.f32.vlgmr.msra.gmra.mxu0 %vm2202_vm5, %v16015_v5  ;;  %6459 = vmatprep.subr.mxu0 %v6356_v36  ;;  %v6345_v36 = vld [vmem:[#allocation13 + $0xb80] sm:$0xff] }
 0x60b   : > { %6011 = vmatpush1.msra.mxu1 %v5975_v28  ;;  %6460 = vmatpush1.msra.mxu0 %v6355_v38  ;;  %v2343_v12 = vpop.f32.mrf.mxu1 }
 0x60c   : > { %6012 = vmatprep.subr.mxu1 %v5968_v41  ;;  %6461 = vmatprep.subr.mxu0 %v6348_v4  ;;  %v2721_v22 = vpop.f32.mrf.mxu0  ;;  %v6338_v41 = vld [vmem:[#allocation13 + $0xb48] sm:$0xff] }
 0x60d   : > { %6013 = vmatpush1.msra.mxu1 %v5967_v42  ;;  %6462 = vmatpush1.msra.mxu0 %v6347_v44  ;;  %v2345_v52 = vpop.f32.mrf.mxu1  ;;  %v6717_v42 = vld [vmem:[#allocation13 + $0xc50] sm:$0xff] }
 0x60e   : > { %6014 = vmatprep.subr.mxu1 %v5960_v45  ;;  %6463 = vmatprep.subr.mxu0 %v6340_v46  ;;  %v2499_v54 = vcombine.low %v2343_v12, %v2345_v52  ;;  %v2723_v58 = vpop.f32.mrf.mxu0  ;;  %v6330_v46 = vld [vmem:[#allocation13 + $0xb08] sm:$0xff]  ;;  %v6710_v12 = vld [vmem:[#allocation13 + $0xc18] sm:$0xff] }
 0x60f   : > { %6015 = vmatpush1.msra.mxu1 %v5959_v63  ;;  %6464 = vmatpush1.msra.mxu0 %v6339_v48  ;;  %v2877_v44 = vcombine.low %v2721_v22, %v2723_v58  ;;  %v6329_v48 = vld [vmem:[#allocation13 + $0xb00] sm:$0xff]  ;;  %v6358_v52 = vld [vmem:[#allocation13 + $0xbe8] sm:$0xff]  ;;  %v7112_v22 = vld [vmem:[#allocation13 + $0xdd8] sm:$0xff] }
 0x610   : > { %6016 = vmatprep.subr.mxu1 %v5952_v50  ;;  %6465 = vmatprep.subr.mxu0 %v6332_v51  ;;  %v16038_v62 = vrot.slane %v2499_v54, %v16032_v47  ;;  %v6709_v50 = vld [vmem:[#allocation13 + $0xc10] sm:$0xff] }
 0x611   : > { %6017 = vmatpush1.msra.mxu1 %v5951_v53  ;;  %6050 = vmatprep.mubr.f32.mxu1 %v15254_v14  ;;  %v16068_v53 = vrot.slane %v2877_v44, %v16032_v47 }
 0x612   : > { %6466 = vmatpush1.msra.mxu0 %v6331_v56  ;;  %6499 = vmatprep.mubr.f32.mxu0 %v15254_v14  ;;  %v2530_v20 = vcombine.low %v16035_v61, %v16038_v62  ;;  %v6738_v56 = vld [vmem:[#allocation13 + $0xcf8] sm:$0xff]  ;;  %v6737_v61 = vld [vmem:[#allocation13 + $0xcf0] sm:$0xff] }
 0x613   : > { %14503 = vmatmul.mubr.msk.f32.vlgmr.msra.gmra.mxu1 %vm2202_vm5, %v16015_v5  ;;  %6152 = vmatprep.subr.mxu1 %v5980_v40  ;;  %v6357_v40 = vld [vmem:[#allocation13 + $0xbe0] sm:$0xff] }
 0x614   : > { %14508 = vmatmul.mubr.msk.f32.vlgmr.msra.gmra.mxu0 %vm2202_vm5, %v16043_v6  ;;  %6601 = vmatprep.subr.mxu0 %v6360_v3  ;;  %v16060_v28 = vrot.slane %v2530_v20, %v16032_v47  ;;  %v6350_v3 = vld [vmem:[#allocation13 + $0xba8] sm:$0xff]  ;;  %v6349_v20 = vld [vmem:[#allocation13 + $0xba0] sm:$0xff] }
 0x615   : > { %6153 = vmatpush1.msra.mxu1 %v5979_v8  ;;  %6602 = vmatpush1.msra.mxu0 %v6359_v13  ;;  %v2414_v23 = vpop.f32.mrf.mxu1  ;;  %v6730_v8 = vld [vmem:[#allocation13 + $0xcb8] sm:$0xff] }
 0x616   : > { %6154 = vmatprep.subr.mxu1 %v5972_v30  ;;  %6603 = vmatprep.subr.mxu0 %v6352_v17  ;;  %v2863_v51 = vpop.f32.mrf.mxu0  ;;  %v6729_v30 = vld [vmem:[#allocation13 + $0xcb0] sm:$0xff]  ;;  %v6342_v17 = vld [vmem:[#allocation13 + $0xb68] sm:$0xff] }
 0x617   : > { %6155 = vmatpush1.msra.mxu1 %v5971_v31  ;;  %6604 = vmatpush1.msra.mxu0 %v6351_v32  ;;  %v2416_v18 = vpop.f32.mrf.mxu1  ;;  %v6341_v32 = vld [vmem:[#allocation13 + $0xb60] sm:$0xff] }
 0x618   : > { %6156 = vmatprep.subr.mxu1 %v5964_v39  ;;  %6605 = vmatprep.subr.mxu0 %v6344_v7  ;;  %v2500_v0 = vcombine.low %v2414_v23, %v2416_v18  ;;  %v2865_v13 = vpop.f32.mrf.mxu0  ;;  %v6721_v39 = vld [vmem:[#allocation13 + $0xc70] sm:$0xff]  ;;  %v6334_v23 = vld [vmem:[#allocation13 + $0xb28] sm:$0xff] }
 0x619   : > { %6157 = vmatpush1.msra.mxu1 %v5963_v43  ;;  %6606 = vmatpush1.msra.mxu0 %v6343_v1  ;;  %v2879_v7 = vcombine.low %v2863_v51, %v2865_v13  ;;  %v6714_v43 = vld [vmem:[#allocation13 + $0xc38] sm:$0xff]  ;;  %v6727_v13 = vld [vmem:[#allocation13 + $0xca0] sm:$0xff] }
 0x61a   : > { %6158 = vmatprep.subr.mxu1 %v5956_v15  ;;  %6607 = vmatprep.subr.mxu0 %v6336_v60  ;;  %v2522_v25 = vrot.slane %v2500_v0, %v16032_v47  ;;  %v6713_v60 = vld [vmem:[#allocation13 + $0xc30] sm:$0xff] }
 0x61b   : > { %6159 = vmatpush1.msra.mxu1 %v5955_v11  ;;  %6192 = vmatprep.mubr.f32.mxu1 %v15254_v14  ;;  %v6732_v11 = vld [vmem:[#allocation13 + $0xcc8] sm:$0xff]  ;;  %v2907_v0 = vrot.slane %v2879_v7, %v16032_v47 }
 0x61c   : > { %6608 = vmatpush1.msra.mxu0 %v6335_v21  ;;  %6641 = vmatprep.mubr.f32.mxu0 %v15254_v14  ;;  %v2531_v34 = vcombine.low %v2522_v25, %v2529_v24  ;;  %v7111_v24 = vld [vmem:[#allocation13 + $0xdd0] sm:$0xff] }
 0x61d   : > { %14505 = vmatmul.mubr.msk.f32.vlgmr.msra.gmra.mxu1 %vm2202_vm5, %v16015_v5  ;;  %6388 = vmatprep.subr.mxu1 %v6354_v2  ;;  %v6718_v5 = vld [vmem:[#allocation13 + $0xc58] sm:$0xff]  ;;  %v6731_v2 = vld [vmem:[#allocation13 + $0xcc0] sm:$0xff] }
 0x61e   : > { %14510 = vmatmul.mubr.msk.f32.vlgmr.msra.gmra.mxu0 %vm2202_vm5, %v16043_v6  ;;  %6837 = vmatprep.subr.mxu0 %v6734_v26  ;;  %v16063_v38 = vrot.slane %v2531_v34, %v16032_v47  ;;  %v6724_v26 = vld [vmem:[#allocation13 + $0xc88] sm:$0xff] }
 0x61f   : > { %6389 = vmatpush1.msra.mxu1 %v6353_v29  ;;  %6838 = vmatpush1.msra.mxu0 %v6733_v33  ;;  %v2650_v4 = vpop.f32.mrf.mxu1  ;;  %v7104_v29 = vld [vmem:[#allocation13 + $0xd98] sm:$0xff]  ;;  %v2169_v33 = vld [vmem:[#allocation14] sm:$0xff] }
 0x620   : > { %6390 = vmatprep.subr.mxu1 %v6346_v35  ;;  %6839 = vmatprep.subr.mxu0 %v6726_v55  ;;  %v2546_v45 = vcombine.low %v16060_v28, %v16063_v38  ;;  %v3099_v18 = vpop.f32.mrf.mxu0  ;;  %v6723_v35 = vld [vmem:[#allocation13 + $0xc80] sm:$0xff]  ;;  %v7103_v55 = vld [vmem:[#allocation13 + $0xd90] sm:$0xff]  ;;  %v6736_v28 = vld [vmem:[#allocation13 + $0xce8] sm:$0xff] }
 0x621   : > { %6391 = vmatpush1.msra.mxu1 %v6345_v36  ;;  %6840 = vmatpush1.msra.mxu0 %v6725_v37  ;;  %v2652_v63 = vpop.f32.mrf.mxu1  ;;  %v6716_v37 = vld [vmem:[#allocation13 + $0xc48] sm:$0xff] }
 0x622   : > { %6392 = vmatprep.subr.mxu1 %v6338_v41  ;;  %6841 = vmatprep.subr.mxu0 %v6718_v5  ;;  %v2876_v49 = vcombine.low %v2650_v4, %v2652_v63  ;;  %v3101_v34 = vpop.f32.mrf.mxu0  ;;  %v7096_v41 = vld [vmem:[#allocation13 + $0xd58] sm:$0xff]  ;;  %v6715_v5 = vld [vmem:[#allocation13 + $0xc40] sm:$0xff]  ;;  %v7095_v4 = vld [vmem:[#allocation13 + $0xd50] sm:$0xff] }
 0x623   : > { %6393 = vmatpush1.msra.mxu1 %v6337_v59  ;;  %6842 = vmatpush1.msra.mxu0 %v6717_v42  ;;  %v2548_v59 = vadd.f32 %v2546_v45, %v2169_v33  ;;  %v3255_v42 = vcombine.low %v3099_v18, %v3101_v34  ;;  %v7091_v18 = vld [vmem:[#allocation13 + $0xd30] sm:$0xff]  ;;  %v7482_v33 = vld [vmem:[#allocation13 + $0xe98] sm:$0xff]  ;;  %v7101_v34 = vld [vmem:[#allocation13 + $0xd80] sm:$0xff] }
 0x624   : > { %6394 = vmatprep.subr.mxu1 %v6330_v46  ;;  %6843 = vmatprep.subr.mxu0 %v6710_v12  ;;  %v16071_v54 = vrot.slane %v2876_v49, %v16032_v47  ;;  %v6708_v46 = vld [vmem:[#allocation13 + $0xc08] sm:$0xff]  ;;  %v7088_v12 = vld [vmem:[#allocation13 + $0xd18] sm:$0xff] }
 0x625   : > { %6395 = vmatpush1.msra.mxu1 %v6329_v48  ;;  %6428 = vmatprep.mubr.f32.mxu1 %v15254_v14  ;;  %v6707_v48 = vld [vmem:[#allocation13 + $0xc00] sm:$0xff]  ;;  %v16100_v38 = vrot.slane %v3255_v42, %v16032_v47 }
 0x626   : > { %6844 = vmatpush1.msra.mxu0 %v6709_v50  ;;  %6877 = vmatprep.mubr.f32.mxu0 %v15254_v14  ;;  %v2908_v62 = vcombine.low %v16071_v54, %v16068_v53  ;;  %v7116_v53 = vld [vmem:[#allocation13 + $0xdf8] sm:$0xff]  ;;  %v16108_v54 = vrot.slane %v15984_v16, 5 }
 0x627   : > { %14507 = vmatmul.mubr.msk.f32.vlgmr.msra.gmra.mxu1 %vm2202_vm5, %v16043_v6  ;;  %6530 = vmatprep.subr.mxu1 %v6358_v52  ;;  %v7087_v52 = vld [vmem:[#allocation13 + $0xd10] sm:$0xff] }
 0x628   : > { %14512 = vmatmul.mubr.msk.f32.vlgmr.msra.gmra.mxu0 %vm2202_vm5, %v16076_v57  ;;  %6979 = vmatprep.subr.mxu0 %v6738_v56  ;;  %v2916_v58 = vrot.slane %v2908_v62, %v16032_v47  ;;  %v6735_v56 = vld [vmem:[#allocation13 + $0xce0] sm:$0xff] }
 0x629   : > { %6531 = vmatpush1.msra.mxu1 %v6357_v40  ;;  %6980 = vmatpush1.msra.mxu0 %v6737_v61  ;;  %v2792_v31 = vpop.f32.mrf.mxu1  ;;  %v7115_v40 = vld [vmem:[#allocation13 + $0xdf0] sm:$0xff] }
 0x62a   : > { %6532 = vmatprep.subr.mxu1 %v6350_v3  ;;  %6981 = vmatprep.subr.mxu0 %v6730_v8  ;;  %v3241_v49 = vpop.f32.mrf.mxu0  ;;  %v6728_v3 = vld [vmem:[#allocation13 + $0xca8] sm:$0xff]  ;;  %v7108_v8 = vld [vmem:[#allocation13 + $0xdb8] sm:$0xff] }
 0x62b   : > { %6533 = vmatpush1.msra.mxu1 %v6349_v20  ;;  %6982 = vmatpush1.msra.mxu0 %v6729_v30  ;;  %v2794_v1 = vpop.f32.mrf.mxu1  ;;  %v7107_v20 = vld [vmem:[#allocation13 + $0xdb0] sm:$0xff] }
 0x62c   : > { %6534 = vmatprep.subr.mxu1 %v6342_v17  ;;  %6983 = vmatprep.subr.mxu0 %v6722_v27  ;;  %v2878_v15 = vcombine.low %v2792_v31, %v2794_v1  ;;  %v3243_v61 = vpop.f32.mrf.mxu0  ;;  %v6720_v17 = vld [vmem:[#allocation13 + $0xc68] sm:$0xff]  ;;  %v7100_v27 = vld [vmem:[#allocation13 + $0xd78] sm:$0xff] }
 0x62d   : > { %6535 = vmatpush1.msra.mxu1 %v6341_v32  ;;  %6984 = vmatpush1.msra.mxu0 %v6721_v39  ;;  %v6719_v32 = vld [vmem:[#allocation13 + $0xc60] sm:$0xff]  ;;  %v7099_v39 = vld [vmem:[#allocation13 + $0xd70] sm:$0xff]  ;;  %v3257_v7 = vcombine.low %v3241_v49, %v3243_v61 }
 0x62e   : > { %6536 = vmatprep.subr.mxu1 %v6334_v23  ;;  %6985 = vmatprep.subr.mxu0 %v6714_v43  ;;  %v2900_v21 = vrot.slane %v2878_v15, %v16032_v47  ;;  %v6712_v23 = vld [vmem:[#allocation13 + $0xc28] sm:$0xff]  ;;  %v7092_v43 = vld [vmem:[#allocation13 + $0xd38] sm:$0xff]  ;;  %v7493_v61 = vld [vmem:[#allocation13 + $0xef0] sm:$0xff] }
 0x62f   : > { %6537 = vmatpush1.msra.mxu1 %v6333_v10  ;;  %6570 = vmatprep.mubr.f32.mxu1 %v15254_v14  ;;  %v6711_v10 = vld [vmem:[#allocation13 + $0xc20] sm:$0xff] }
 0x630   : > { %6986 = vmatpush1.msra.mxu0 %v6713_v60  ;;  %7019 = vmatprep.mubr.f32.mxu0 %v15254_v14  ;;  %v2909_v25 = vcombine.low %v2900_v21, %v2907_v0  ;;  %v3285_v0 = vrot.slane %v3257_v7, %v16032_v47 }
 0x631   : > { %14509 = vmatmul.mubr.msk.f32.vlgmr.msra.gmra.mxu1 %vm2202_vm5, %v16043_v6  ;;  %6766 = vmatprep.subr.mxu1 %v6732_v11  ;;  %v7110_v11 = vld [vmem:[#allocation13 + $0xdc8] sm:$0xff] }
 0x632   : > { %14514 = vmatmul.mubr.msk.f32.vlgmr.msra.gmra.mxu0 %vm2202_vm5, %v16076_v57  ;;  %7215 = vmatprep.subr.mxu0 %v7112_v22  ;;  %v2923_v36 = vrot.slane %v2909_v25, %v16032_v47  ;;  %v7489_v25 = vld [vmem:[#allocation13 + $0xed0] sm:$0xff] }
 0x633   : > { %6767 = vmatpush1.msra.mxu1 %v6731_v2  ;;  %7216 = vmatpush1.msra.mxu0 %v7111_v24  ;;  %v3028_v6 = vpop.f32.mrf.mxu1  ;;  %v7490_v2 = vld [vmem:[#allocation13 + $0xed8] sm:$0xff]  ;;  %v7109_v24 = vld [vmem:[#allocation13 + $0xdc0] sm:$0xff] }
 0x634   : > { %6768 = vmatprep.subr.mxu1 %v6724_v26  ;;  %7217 = vmatprep.subr.mxu0 %v7104_v29  ;;  %v2924_v44 = vcombine.low %v2916_v58, %v2923_v36  ;;  %v16116_v30 = vpop.f32.mrf.mxu0  ;;  %v7102_v29 = vld [vmem:[#allocation13 + $0xd88] sm:$0xff] }
 0x635   : > { %6769 = vmatpush1.msra.mxu1 %v6723_v35  ;;  %7218 = vmatpush1.msra.mxu0 %v7103_v55  ;;  %v3030_v63 = vpop.f32.mrf.mxu1  ;;  %v7481_v35 = vld [vmem:[#allocation13 + $0xe90] sm:$0xff] }
 0x636   : > { %6770 = vmatprep.subr.mxu1 %v6716_v37  ;;  %7219 = vmatprep.subr.mxu0 %v7096_v41  ;;  %v16097_v50 = vadd.f32 %v2924_v44, %v2548_v59  ;;  %v3254_v51 = vcombine.low %v3028_v6, %v3030_v63  ;;  %v3479_v15 = vpop.f32.mrf.mxu0  ;;  %v7094_v37 = vld [vmem:[#allocation13 + $0xd48] sm:$0xff]  ;;  %v7474_v41 = vld [vmem:[#allocation13 + $0xe58] sm:$0xff]  ;;  %v7093_v6 = vld [vmem:[#allocation13 + $0xd40] sm:$0xff] }
 0x637   : > { %6771 = vmatpush1.msra.mxu1 %v6715_v5  ;;  %7220 = vmatpush1.msra.mxu0 %v7095_v4  ;;  %v7473_v5 = vld [vmem:[#allocation13 + $0xe50] sm:$0xff]  ;;  %v3633_v4 = vcombine.low %v16116_v30, %v3479_v15  ;;  %v7086_v44 = vld [vmem:[#allocation13 + $0xd08] sm:$0xff]  ;;  %v7085_v63 = vld [vmem:[#allocation13 + $0xd00] sm:$0xff] }
 0x638   : > { %6772 = vmatprep.subr.mxu1 %v6708_v46  ;;  %7221 = vmatprep.subr.mxu0 %v7088_v12  ;;  %v16103_v45 = vrot.slane %v3254_v51, %v16032_v47  ;;  %v7466_v46 = vld [vmem:[#allocation13 + $0xe18] sm:$0xff]  ;;  %v7098_v30 = vld [vmem:[#allocation13 + $0xd68] sm:$0xff] }
 0x639   : > { %6773 = vmatpush1.msra.mxu1 %v6707_v48  ;;  %6806 = vmatprep.mubr.f32.mxu1 %v15254_v14 }
 0x63a   : > { %7222 = vmatpush1.msra.mxu0 %v7087_v52  ;;  %7255 = vmatprep.mubr.f32.mxu0 %v15254_v14  ;;  %v3286_v62 = vcombine.low %v16103_v45, %v16100_v38  ;;  %v7465_v52 = vld [vmem:[#allocation13 + $0xe10] sm:$0xff]  ;;  %v7114_v38 = vld [vmem:[#allocation13 + $0xde8] sm:$0xff]  ;;  %v16143_v45 = vrot.slane %v3633_v4, %v16032_v47 }
 0x63b   : > { %14511 = vmatmul.mubr.msk.f32.vlgmr.msra.gmra.mxu1 %vm2202_vm5, %v16076_v57  ;;  %6908 = vmatprep.subr.mxu1 %v6736_v28  ;;  %v7464_v4 = vld [vmem:[#allocation13 + $0xe08] sm:$0xff] }
 0x63c   : > { %14516 = vmatmul.mubr.msk.f32.vlgmr.msra.gmra.mxu0 %vm2202_vm5, %v16108_v54  ;;  %7357 = vmatprep.subr.mxu0 %v7116_v53  ;;  %v3294_v55 = vrot.slane %v3286_v62, %v16032_v47 }
 0x63d   : > { %6909 = vmatpush1.msra.mxu1 %v6735_v56  ;;  %7358 = vmatpush1.msra.mxu0 %v7115_v40  ;;  %v3170_v31 = vpop.f32.mrf.mxu1  ;;  %v16151_v56 = vrot.slane %v15984_v16, 6  ;;  %v7113_v40 = vld [vmem:[#allocation13 + $0xde0] sm:$0xff] }
 0x63e   : > { %6910 = vmatprep.subr.mxu1 %v6728_v3  ;;  %7359 = vmatprep.subr.mxu0 %v7108_v8  ;;  %v16119_v21 = vpop.f32.mrf.mxu0  ;;  %v7106_v3 = vld [vmem:[#allocation13 + $0xda8] sm:$0xff]  ;;  %v7486_v8 = vld [vmem:[#allocation13 + $0xeb8] sm:$0xff] }
 0x63f   : > { %6911 = vmatpush1.msra.mxu1 %v6727_v13  ;;  %7360 = vmatpush1.msra.mxu0 %v7107_v20  ;;  %v3172_v1 = vpop.f32.mrf.mxu1  ;;  %v7105_v13 = vld [vmem:[#allocation13 + $0xda0] sm:$0xff]  ;;  %v7485_v20 = vld [vmem:[#allocation13 + $0xeb0] sm:$0xff] }
 0x640   : > { %6912 = vmatprep.subr.mxu1 %v6720_v17  ;;  %7361 = vmatprep.subr.mxu0 %v7100_v27  ;;  %v3256_v60 = vcombine.low %v3170_v31, %v3172_v1  ;;  %v16130_v36 = vpop.f32.mrf.mxu0  ;;  %v7478_v17 = vld [vmem:[#allocation13 + $0xe78] sm:$0xff]  ;;  %v7097_v31 = vld [vmem:[#allocation13 + $0xd60] sm:$0xff] }
 0x641   : > { %6913 = vmatpush1.msra.mxu1 %v6719_v32  ;;  %7362 = vmatpush1.msra.mxu0 %v7099_v39  ;;  %v7477_v32 = vld [vmem:[#allocation13 + $0xe70] sm:$0xff]  ;;  %v3635_v39 = vcombine.low %v16119_v21, %v16130_v36  ;;  %v7472_v36 = vld [vmem:[#allocation13 + $0xe48] sm:$0xff] }
 0x642   : > { %6914 = vmatprep.subr.mxu1 %v6712_v23  ;;  %7363 = vmatprep.subr.mxu0 %v7092_v43  ;;  %v3278_v22 = vrot.slane %v3256_v60, %v16032_v47  ;;  %v7090_v23 = vld [vmem:[#allocation13 + $0xd28] sm:$0xff]  ;;  %v7470_v43 = vld [vmem:[#allocation13 + $0xe38] sm:$0xff] }
 0x643   : > { %6915 = vmatpush1.msra.mxu1 %v6711_v10  ;;  %6948 = vmatprep.mubr.f32.mxu1 %v15254_v14  ;;  %v7089_v10 = vld [vmem:[#allocation13 + $0xd20] sm:$0xff]  ;;  %v3663_v21 = vrot.slane %v3635_v39, %v16032_v47 }
 0x644   : > { %7364 = vmatpush1.msra.mxu0 %v7091_v18  ;;  %7397 = vmatprep.mubr.f32.mxu0 %v15254_v14  ;;  %v3287_v26 = vcombine.low %v3278_v22, %v3285_v0  ;;  %v7469_v18 = vld [vmem:[#allocation13 + $0xe30] sm:$0xff]  ;;  %v7488_v0 = vld [vmem:[#allocation13 + $0xec8] sm:$0xff] }
 0x645   : > { %14513 = vmatmul.mubr.msk.f32.vlgmr.msra.gmra.mxu1 %vm2202_vm5, %v16076_v57  ;;  %7144 = vmatprep.subr.mxu1 %v7110_v11 }
 0x646   : > { %14518 = vmatmul.mubr.msk.f32.vlgmr.msra.gmra.mxu0 %vm2202_vm5, %v16108_v54  ;;  %7593 = vmatprep.subr.mxu0 %v7490_v2  ;;  %v3301_v58 = vrot.slane %v3287_v26, %v16032_v47  ;;  %v7868_v2 = vld [vmem:[#allocation13 + $0xfd8] sm:$0xff] }
 0x647   : > { %7145 = vmatpush1.msra.mxu1 %v7109_v24  ;;  %7594 = vmatpush1.msra.mxu0 %v7489_v25  ;;  %v3406_v57 = vpop.f32.mrf.mxu1  ;;  %v7487_v24 = vld [vmem:[#allocation13 + $0xec0] sm:$0xff]  ;;  %v7867_v25 = vld [vmem:[#allocation13 + $0xfd0] sm:$0xff] }
 0x648   : > { %7146 = vmatprep.subr.mxu1 %v7102_v29  ;;  %7595 = vmatprep.subr.mxu0 %v7482_v33  ;;  %v3302_v59 = vcombine.low %v3294_v55, %v3301_v58  ;;  %v16133_v42 = vpop.f32.mrf.mxu0  ;;  %v7480_v29 = vld [vmem:[#allocation13 + $0xe88] sm:$0xff]  ;;  %v7860_v33 = vld [vmem:[#allocation13 + $0xf98] sm:$0xff] }
 0x649   : > { %7147 = vmatpush1.msra.mxu1 %v7101_v34  ;;  %7596 = vmatpush1.msra.mxu0 %v7481_v35  ;;  %v3408_v12 = vpop.f32.mrf.mxu1  ;;  %v7479_v34 = vld [vmem:[#allocation13 + $0xe80] sm:$0xff]  ;;  %v7859_v35 = vld [vmem:[#allocation13 + $0xf90] sm:$0xff] }
 0x64a   : > { %7148 = vmatprep.subr.mxu1 %v7094_v37  ;;  %7597 = vmatprep.subr.mxu0 %v7474_v41  ;;  %v16136_v48 = vadd.f32 %v3302_v59, %v16097_v50  ;;  %v3632_v49 = vcombine.low %v3406_v57, %v3408_v12  ;;  %v16138_v51 = vpop.f32.mrf.mxu0  ;;  %v7494_v50 = vld [vmem:[#allocation13 + $0xef8] sm:$0xff]  ;;  %v7851_v57 = vld [vmem:[#allocation13 + $0xf50] sm:$0xff] }
 0x64b   : > { %7149 = vmatpush1.msra.mxu1 %v7093_v6  ;;  %7598 = vmatpush1.msra.mxu0 %v7473_v5  ;;  %v4011_v28 = vcombine.low %v16133_v42, %v16138_v51  ;;  %v7852_v37 = vld [vmem:[#allocation13 + $0xf58] sm:$0xff]  ;;  %v7484_v51 = vld [vmem:[#allocation13 + $0xea8] sm:$0xff] }
 0x64c   : > { %7150 = vmatprep.subr.mxu1 %v7086_v44  ;;  %7599 = vmatprep.subr.mxu0 %v7466_v46  ;;  %v16146_v53 = vrot.slane %v3632_v49, %v16032_v47  ;;  %v7844_v59 = vld [vmem:[#allocation13 + $0xf18] sm:$0xff]  ;;  %v7463_v46 = vld [vmem:[#allocation13 + $0xe00] sm:$0xff] }
 0x64d   : > { %7151 = vmatpush1.msra.mxu1 %v7085_v63  ;;  %7184 = vmatprep.mubr.f32.mxu1 %v15254_v14 }
 0x64e   : > { %7600 = vmatpush1.msra.mxu0 %v7465_v52  ;;  %7633 = vmatprep.mubr.f32.mxu0 %v15254_v14  ;;  %v3664_v62 = vcombine.low %v16146_v53, %v16143_v45  ;;  %v7843_v52 = vld [vmem:[#allocation13 + $0xf10] sm:$0xff]  ;;  %v7492_v45 = vld [vmem:[#allocation13 + $0xee8] sm:$0xff]  ;;  %v16190_v53 = vrot.slane %v4011_v28, %v16032_v47  ;;  %v7864_v28 = vld [vmem:[#allocation13 + $0xfb8] sm:$0xff] }
 0x64f   : > { %14515 = vmatmul.mubr.msk.f32.vlgmr.msra.gmra.mxu1 %vm2202_vm5, %v16108_v54  ;;  %7286 = vmatprep.subr.mxu1 %v7114_v38 }
 0x650   : > { %14520 = vmatmul.mubr.msk.f32.vlgmr.msra.gmra.mxu0 %vm2202_vm5, %v16151_v56  ;;  %7735 = vmatprep.subr.mxu0 %v7494_v50  ;;  %v3672_v55 = vrot.slane %v3664_v62, %v16032_v47  ;;  %v7872_v50 = vld [vmem:[#allocation13 + $0xff8] sm:$0xff]  ;;  %v7871_v62 = vld [vmem:[#allocation13 + $0xff0] sm:$0xff] }
 0x651   : > { %7287 = vmatpush1.msra.mxu1 %v7113_v40  ;;  %7736 = vmatpush1.msra.mxu0 %v7493_v61  ;;  %v3548_v27 = vpop.f32.mrf.mxu1  ;;  %v16198_v40 = vrot.slane %v15984_v16, 7  ;;  %v7491_v61 = vld [vmem:[#allocation13 + $0xee0] sm:$0xff]  ;;  %v7476_v16 = vld [vmem:[#allocation13 + $0xe68] sm:$0xff] }
 0x652   : > { %7288 = vmatprep.subr.mxu1 %v7106_v3  ;;  %7737 = vmatprep.subr.mxu0 %v7486_v8  ;;  %v16161_v7 = vpop.f32.mrf.mxu0  ;;  %v7483_v3 = vld [vmem:[#allocation13 + $0xea0] sm:$0xff]  ;;  %v7863_v8 = vld [vmem:[#allocation13 + $0xfb0] sm:$0xff] }
 0x653   : > { %7289 = vmatpush1.msra.mxu1 %v7105_v13  ;;  %7738 = vmatpush1.msra.mxu0 %v7485_v20  ;;  %v3550_v1 = vpop.f32.mrf.mxu1  ;;  %v7856_v13 = vld [vmem:[#allocation13 + $0xf78] sm:$0xff] }
 0x654   : > { %7290 = vmatprep.subr.mxu1 %v7098_v30  ;;  %7739 = vmatprep.subr.mxu0 %v7478_v17  ;;  %v3634_v15 = vcombine.low %v3548_v27, %v3550_v1  ;;  %v16163_v60 = vpop.f32.mrf.mxu0  ;;  %v7475_v30 = vld [vmem:[#allocation13 + $0xe60] sm:$0xff]  ;;  %v7855_v17 = vld [vmem:[#allocation13 + $0xf70] sm:$0xff] }
 0x655   : > { %7291 = vmatpush1.msra.mxu1 %v7097_v31  ;;  %7740 = vmatpush1.msra.mxu0 %v7477_v32  ;;  %v4013_v11 = vcombine.low %v16161_v7, %v16163_v60  ;;  %v7468_v31 = vld [vmem:[#allocation13 + $0xe28] sm:$0xff]  ;;  %v7848_v32 = vld [vmem:[#allocation13 + $0xf38] sm:$0xff]  ;;  %v7857_v7 = vld [vmem:[#allocation13 + $0xf80] sm:$0xff] }
 0x656   : > { %7292 = vmatprep.subr.mxu1 %v7090_v23  ;;  %7741 = vmatprep.subr.mxu0 %v7470_v43  ;;  %v3656_v22 = vrot.slane %v3634_v15, %v16032_v47  ;;  %v7467_v23 = vld [vmem:[#allocation13 + $0xe20] sm:$0xff]  ;;  %v8237_v60 = vld [vmem:[#allocation13 + $0x1090] sm:$0xff] }
 0x657   : > { %7293 = vmatpush1.msra.mxu1 %v7089_v10  ;;  %7326 = vmatprep.mubr.f32.mxu1 %v15254_v14  ;;  %v7847_v10 = vld [vmem:[#allocation13 + $0xf30] sm:$0xff] }
 0x658   : > { %7742 = vmatpush1.msra.mxu0 %v7469_v18  ;;  %7775 = vmatprep.mubr.f32.mxu0 %v15254_v14  ;;  %v3665_v26 = vcombine.low %v3656_v22, %v3663_v21  ;;  %v7866_v18 = vld [vmem:[#allocation13 + $0xfc8] sm:$0xff]  ;;  %v8246_v22 = vld [vmem:[#allocation13 + $0x10d8] sm:$0xff] }
 0x659   : > { %14517 = vmatmul.mubr.msk.f32.vlgmr.msra.gmra.mxu1 %vm2202_vm5, %v16108_v54  ;;  %7522 = vmatprep.subr.mxu1 %v7488_v0  ;;  %v7471_v54 = vld [vmem:[#allocation13 + $0xe40] sm:$0xff]  ;;  %v4041_v0 = vrot.slane %v4013_v11, %v16032_v47 }
 0x65a   : > { %14522 = vmatmul.mubr.msk.f32.vlgmr.msra.gmra.mxu0 %vm2202_vm5, %v16151_v56  ;;  %7971 = vmatprep.subr.mxu0 %v7868_v2  ;;  %v3679_v58 = vrot.slane %v3665_v26, %v16032_v47  ;;  %v7865_v2 = vld [vmem:[#allocation13 + $0xfc0] sm:$0xff]  ;;  %v7858_v26 = vld [vmem:[#allocation13 + $0xf88] sm:$0xff] }
 0x65b   : > { %7523 = vmatpush1.msra.mxu1 %v7487_v24  ;;  %7972 = vmatpush1.msra.mxu0 %v7867_v25  ;;  %v3784_v41 = vpop.f32.mrf.mxu1  ;;  %v8245_v24 = vld [vmem:[#allocation13 + $0x10d0] sm:$0xff] }
 0x65c   : > { %7524 = vmatprep.subr.mxu1 %v7480_v29  ;;  %7973 = vmatprep.subr.mxu0 %v7860_v33  ;;  %v3680_v6 = vcombine.low %v3672_v55, %v3679_v58  ;;  %v16177_v5 = vpop.f32.mrf.mxu0  ;;  %v8238_v29 = vld [vmem:[#allocation13 + $0x1098] sm:$0xff]  ;;  %v8229_v58 = vld [vmem:[#allocation13 + $0x1050] sm:$0xff] }
 0x65d   : > { %7525 = vmatpush1.msra.mxu1 %v7479_v34  ;;  %7974 = vmatpush1.msra.mxu0 %v7859_v35  ;;  %v3786_v44 = vpop.f32.mrf.mxu1  ;;  %v7850_v34 = vld [vmem:[#allocation13 + $0xf48] sm:$0xff]  ;;  %v8230_v35 = vld [vmem:[#allocation13 + $0x1058] sm:$0xff] }
 0x65e   : > { %7526 = vmatprep.subr.mxu1 %v7472_v36  ;;  %7975 = vmatprep.subr.mxu0 %v7852_v37  ;;  %v16180_v12 = vadd.f32 %v3680_v6, %v16136_v48  ;;  %v4010_v63 = vcombine.low %v3784_v41, %v3786_v44  ;;  %v16182_v49 = vpop.f32.mrf.mxu0  ;;  %v7842_v41 = vld [vmem:[#allocation13 + $0xf08] sm:$0xff]  ;;  %v7841_v6 = vld [vmem:[#allocation13 + $0xf00] sm:$0xff] }
 0x65f   : > { %7527 = vmatpush1.msra.mxu1 %v7471_v54  ;;  %7976 = vmatpush1.msra.mxu0 %v7851_v57  ;;  %v4389_v38 = vcombine.low %v16177_v5, %v16182_v49  ;;  %v8222_v54 = vld [vmem:[#allocation13 + $0x1018] sm:$0xff]  ;;  %v7862_v49 = vld [vmem:[#allocation13 + $0xfa8] sm:$0xff] }
 0x660   : > { %7528 = vmatprep.subr.mxu1 %v7464_v4  ;;  %7977 = vmatprep.subr.mxu0 %v7844_v59  ;;  %v16193_v48 = vrot.slane %v4010_v63, %v16032_v47 }
 0x661   : > { %7529 = vmatpush1.msra.mxu1 %v7463_v46  ;;  %7562 = vmatprep.mubr.f32.mxu1 %v15254_v14  ;;  %v8221_v46 = vld [vmem:[#allocation13 + $0x1010] sm:$0xff] }
 0x662   : > { %7978 = vmatpush1.msra.mxu0 %v7843_v52  ;;  %8011 = vmatprep.mubr.f32.mxu0 %v15254_v14  ;;  %v4042_v42 = vcombine.low %v16193_v48, %v16190_v53  ;;  %v7870_v52 = vld [vmem:[#allocation13 + $0xfe8] sm:$0xff]  ;;  %v8250_v53 = vld [vmem:[#allocation13 + $0x10f8] sm:$0xff]  ;;  %v16245_v48 = vmul.f32 0.0625, %v16023_v9  ;;  %v7861_v9 = vld [vmem:[#allocation13 + $0xfa0] sm:$0xff] }
 0x663   : > { %14519 = vmatmul.mubr.msk.f32.vlgmr.msra.gmra.mxu1 %vm2202_vm5, %v16151_v56  ;;  %7664 = vmatprep.subr.mxu1 %v7492_v45  ;;  %v16238_v45 = vrot.slane %v4389_v38, %v16032_v47  ;;  %v8242_v38 = vld [vmem:[#allocation13 + $0x10b8] sm:$0xff] }
 0x664   : > { %14524 = vmatmul.mubr.msk.f32.vlgmr.msra.gmra.mxu0 %vm2202_vm5, %v16198_v40  ;;  %8113 = vmatprep.subr.mxu0 %v7872_v50  ;;  %v4050_v11 = vrot.slane %v4042_v42, %v16032_v47  ;;  %v7869_v50 = vld [vmem:[#allocation13 + $0xfe0] sm:$0xff]  ;;  %v7854_v42 = vld [vmem:[#allocation13 + $0xf68] sm:$0xff] }
 0x665   : > { %7665 = vmatpush1.msra.mxu1 %v7491_v61  ;;  %8114 = vmatpush1.msra.mxu0 %v7871_v62  ;;  %v3926_v20 = vpop.f32.mrf.mxu1  ;;  %v8249_v61 = vld [vmem:[#allocation13 + $0x10f0] sm:$0xff] }
 0x666   : > { %7666 = vmatprep.subr.mxu1 %v7484_v51  ;;  %8115 = vmatprep.subr.mxu0 %v7864_v28  ;;  %v16206_v27 = vpop.f32.mrf.mxu0  ;;  %v8241_v62 = vld [vmem:[#allocation13 + $0x10b0] sm:$0xff]  ;;  %v8234_v51 = vld [vmem:[#allocation13 + $0x1078] sm:$0xff] }
 0x667   : > { %7667 = vmatpush1.msra.mxu1 %v7483_v3  ;;  %8116 = vmatpush1.msra.mxu0 %v7863_v8  ;;  %v3928_v39 = vpop.f32.mrf.mxu1  ;;  %v7853_v3 = vld [vmem:[#allocation13 + $0xf60] sm:$0xff]  ;;  %v8233_v8 = vld [vmem:[#allocation13 + $0x1070] sm:$0xff] }
 0x668   : > { %7668 = vmatprep.subr.mxu1 %v7476_v16  ;;  %8117 = vmatprep.subr.mxu0 %v7856_v13  ;;  %v4012_v43 = vcombine.low %v3926_v20, %v3928_v39  ;;  %v16208_v1 = vpop.f32.mrf.mxu0  ;;  %v7846_v13 = vld [vmem:[#allocation13 + $0xf28] sm:$0xff]  ;;  %v8226_v20 = vld [vmem:[#allocation13 + $0x1038] sm:$0xff]  ;;  %v8225_v39 = vld [vmem:[#allocation13 + $0x1030] sm:$0xff] }
 0x669   : > { %7669 = vmatpush1.msra.mxu1 %v7475_v30  ;;  %8118 = vmatpush1.msra.mxu0 %v7855_v17  ;;  %v4391_v15 = vcombine.low %v16206_v27, %v16208_v1  ;;  %v7845_v17 = vld [vmem:[#allocation13 + $0xf20] sm:$0xff]  ;;  %v8615_v1 = vld [vmem:[#allocation13 + $0x1190] sm:$0xff] }
 0x66a   : > { %7670 = vmatprep.subr.mxu1 %v7468_v31  ;;  %8119 = vmatprep.subr.mxu0 %v7848_v32  ;;  %v4034_v21 = vrot.slane %v4012_v43, %v16032_v47  ;;  %v8244_v43 = vld [vmem:[#allocation13 + $0x10c8] sm:$0xff]  ;;  %v8235_v27 = vld [vmem:[#allocation13 + $0x1080] sm:$0xff] }
 0x66b   : > { %7671 = vmatpush1.msra.mxu1 %v7467_v23  ;;  %7704 = vmatprep.mubr.f32.mxu1 %v15254_v14 }
 0x66c   : > { %8120 = vmatpush1.msra.mxu0 %v7847_v10  ;;  %8153 = vmatprep.mubr.f32.mxu0 %v15254_v14  ;;  %v4043_v25 = vcombine.low %v4034_v21, %v4041_v0  ;;  %v4419_v10 = vrot.slane %v4391_v15, %v16032_v47  ;;  %v8624_v0 = vld [vmem:[#allocation13 + $0x11d8] sm:$0xff]  ;;  %v8243_v21 = vld [vmem:[#allocation13 + $0x10c0] sm:$0xff] }
 0x66d   : > { %14521 = vmatmul.mubr.msk.f32.vlgmr.msra.gmra.mxu1 %vm2202_vm5, %v16151_v56  ;;  %7900 = vmatprep.subr.mxu1 %v7866_v18  ;;  %v7849_v56 = vld [vmem:[#allocation13 + $0xf40] sm:$0xff] }
 0x66e   : > { %14526 = vmatmul.mubr.msk.f32.vlgmr.msra.gmra.mxu0 %vm2202_vm5, %v16198_v40  ;;  %8349 = vmatprep.subr.mxu0 %v8246_v22  ;;  %v4057_v33 = vrot.slane %v4043_v25, %v16032_v47  ;;  %v8623_v22 = vld [vmem:[#allocation13 + $0x11d0] sm:$0xff]  ;;  %v8616_v25 = vld [vmem:[#allocation13 + $0x1198] sm:$0xff] }
 0x66f   : > { %7901 = vmatpush1.msra.mxu1 %v7865_v2  ;;  %8350 = vmatpush1.msra.mxu0 %v8245_v24  ;;  %v4162_v55 = vpop.f32.mrf.mxu1  ;;  %v8236_v24 = vld [vmem:[#allocation13 + $0x1088] sm:$0xff] }
 0x670   : > { %7902 = vmatprep.subr.mxu1 %v7858_v26  ;;  %8351 = vmatprep.subr.mxu0 %v8238_v29  ;;  %v4058_v36 = vcombine.low %v4050_v11, %v4057_v33  ;;  %v16225_v37 = vpop.f32.mrf.mxu0  ;;  %v8228_v29 = vld [vmem:[#allocation13 + $0x1048] sm:$0xff]  ;;  %v8607_v11 = vld [vmem:[#allocation13 + $0x1150] sm:$0xff] }
 0x671   : > { %7903 = vmatpush1.msra.mxu1 %v7857_v7  ;;  %8352 = vmatpush1.msra.mxu0 %v8237_v60  ;;  %v4164_v57 = vpop.f32.mrf.mxu1  ;;  %v8608_v7 = vld [vmem:[#allocation13 + $0x1158] sm:$0xff] }
 0x672   : > { %7904 = vmatprep.subr.mxu1 %v7850_v34  ;;  %8353 = vmatprep.subr.mxu0 %v8230_v35  ;;  %v16228_v4 = vadd.f32 %v4058_v36, %v16180_v12  ;;  %v4388_v59 = vcombine.low %v4162_v55, %v4164_v57  ;;  %v16230_v44 = vpop.f32.mrf.mxu0  ;;  %v8220_v35 = vld [vmem:[#allocation13 + $0x1008] sm:$0xff]  ;;  %v8600_v55 = vld [vmem:[#allocation13 + $0x1118] sm:$0xff]  ;;  %v8599_v57 = vld [vmem:[#allocation13 + $0x1110] sm:$0xff] }
 0x673   : > { %7905 = vmatpush1.msra.mxu1 %v7849_v56  ;;  %8354 = vmatpush1.msra.mxu0 %v8229_v58  ;;  %v4767_v63 = vcombine.low %v16225_v37, %v16230_v44  ;;  %v8219_v58 = vld [vmem:[#allocation13 + $0x1000] sm:$0xff]  ;;  %v8240_v44 = vld [vmem:[#allocation13 + $0x10a8] sm:$0xff] }
 0x674   : > { %7906 = vmatprep.subr.mxu1 %v7842_v41  ;;  %8355 = vmatprep.subr.mxu0 %v8222_v54  ;;  %v16241_v12 = vrot.slane %v4388_v59, %v16032_v47  ;;  %v8248_v59 = vld [vmem:[#allocation13 + $0x10e8] sm:$0xff] }
 0x675   : > { %7907 = vmatpush1.msra.mxu1 %v7841_v6  ;;  %7940 = vmatprep.mubr.f32.mxu1 %v15254_v14 }
 0x676   : > { %8356 = vmatpush1.msra.mxu0 %v8221_v46  ;;  %8389 = vmatprep.mubr.f32.mxu0 %v15254_v14  ;;  %v4420_v5 = vcombine.low %v16241_v12, %v16238_v45  ;;  %v16286_v46 = vrot.slane %v4767_v63, %v16032_v47  ;;  %v16294_v45 = vrot.slane %v16245_v48, 1  ;;  %v8247_v12 = vld [vmem:[#allocation13 + $0x10e0] sm:$0xff]  ;;  %v8620_v63 = vld [vmem:[#allocation13 + $0x11b8] sm:$0xff] }
 0x677   : > { %14523 = vmatmul.mubr.msk.f32.vlgmr.msra.gmra.mxu1 %vm2202_vm5, %v16198_v40  ;;  %8042 = vmatprep.subr.mxu1 %v7870_v52  ;;  %v8628_v52 = vld [vmem:[#allocation13 + $0x11f8] sm:$0xff] }
 0x678   : > { %14528 = vmatmul.mubr.msk.f32.vlgmr.msra.gmra.mxu0 %vm2202_vm5, %v16245_v48  ;;  %8491 = vmatprep.subr.mxu0 %v8250_v53  ;;  %v4428_v15 = vrot.slane %v4420_v5, %v16032_v47  ;;  %v8627_v53 = vld [vmem:[#allocation13 + $0x11f0] sm:$0xff]  ;;  %v8232_v5 = vld [vmem:[#allocation13 + $0x1068] sm:$0xff] }
 0x679   : > { %8043 = vmatpush1.msra.mxu1 %v7869_v50  ;;  %8492 = vmatpush1.msra.mxu0 %v8249_v61  ;;  %v4304_v28 = vpop.f32.mrf.mxu1  ;;  %v8239_v50 = vld [vmem:[#allocation13 + $0x10a0] sm:$0xff]  ;;  %v8619_v61 = vld [vmem:[#allocation13 + $0x11b0] sm:$0xff] }
 0x67a   : > { %8044 = vmatprep.subr.mxu1 %v7862_v49  ;;  %8493 = vmatprep.subr.mxu0 %v8242_v38  ;;  %v16254_v16 = vpop.f32.mrf.mxu0  ;;  %v8612_v49 = vld [vmem:[#allocation13 + $0x1178] sm:$0xff] }
 0x67b   : > { %8045 = vmatpush1.msra.mxu1 %v7861_v9  ;;  %8494 = vmatpush1.msra.mxu0 %v8241_v62  ;;  %v4306_v30 = vpop.f32.mrf.mxu1  ;;  %v8231_v9 = vld [vmem:[#allocation13 + $0x1060] sm:$0xff]  ;;  %v8611_v62 = vld [vmem:[#allocation13 + $0x1170] sm:$0xff] }
 0x67c   : > { %8046 = vmatprep.subr.mxu1 %v7854_v42  ;;  %8495 = vmatprep.subr.mxu0 %v8234_v51  ;;  %v4390_v31 = vcombine.low %v4304_v28, %v4306_v30  ;;  %v16256_v32 = vpop.f32.mrf.mxu0  ;;  %v8224_v51 = vld [vmem:[#allocation13 + $0x1028] sm:$0xff]  ;;  %v8604_v28 = vld [vmem:[#allocation13 + $0x1138] sm:$0xff]  ;;  %v8603_v30 = vld [vmem:[#allocation13 + $0x1130] sm:$0xff] }
 0x67d   : > { %8047 = vmatpush1.msra.mxu1 %v7853_v3  ;;  %8496 = vmatpush1.msra.mxu0 %v8233_v8  ;;  %v4769_v23 = vcombine.low %v16254_v16, %v16256_v32  ;;  %v8223_v8 = vld [vmem:[#allocation13 + $0x1020] sm:$0xff]  ;;  %v8993_v32 = vld [vmem:[#allocation13 + $0x1290] sm:$0xff] }
 0x67e   : > { %8048 = vmatprep.subr.mxu1 %v7846_v13  ;;  %8497 = vmatprep.subr.mxu0 %v8226_v20  ;;  %v4412_v18 = vrot.slane %v4390_v31, %v16032_v47  ;;  %v8622_v31 = vld [vmem:[#allocation13 + $0x11c8] sm:$0xff]  ;;  %v8613_v16 = vld [vmem:[#allocation13 + $0x1180] sm:$0xff] }
 0x67f   : > { %8049 = vmatpush1.msra.mxu1 %v7845_v17  ;;  %8082 = vmatprep.mubr.f32.mxu1 %v15254_v14 }
 0x680   : > { %8498 = vmatpush1.msra.mxu0 %v8225_v39  ;;  %8531 = vmatprep.mubr.f32.mxu0 %v15254_v14  ;;  %v4421_v2 = vcombine.low %v4412_v18, %v4419_v10  ;;  %v4797_v39 = vrot.slane %v4769_v23, %v16032_v47  ;;  %v9002_v10 = vld [vmem:[#allocation13 + $0x12d8] sm:$0xff]  ;;  %v8621_v18 = vld [vmem:[#allocation13 + $0x11c0] sm:$0xff] }
 0x681   : > { %14525 = vmatmul.mubr.msk.f32.vlgmr.msra.gmra.mxu1 %vm2202_vm5, %v16198_v40  ;;  %8278 = vmatprep.subr.mxu1 %v8244_v43  ;;  %v8227_v40 = vld [vmem:[#allocation13 + $0x1040] sm:$0xff] }
 0x682   : > { %14530 = vmatmul.mubr.msk.f32.vlgmr.msra.gmra.mxu0 %vm2202_vm5, %v16245_v48  ;;  %8727 = vmatprep.subr.mxu0 %v8624_v0  ;;  %v4435_v26 = vrot.slane %v4421_v2, %v16032_v47  ;;  %v9001_v0 = vld [vmem:[#allocation13 + $0x12d0] sm:$0xff]  ;;  %v8994_v2 = vld [vmem:[#allocation13 + $0x1298] sm:$0xff] }
 0x683   : > { %8279 = vmatpush1.msra.mxu1 %v8243_v21  ;;  %8728 = vmatpush1.msra.mxu0 %v8623_v22  ;;  %v4540_v60 = vpop.f32.mrf.mxu1  ;;  %v8614_v22 = vld [vmem:[#allocation13 + $0x1188] sm:$0xff] }
 0x684   : > { %8280 = vmatprep.subr.mxu1 %v8236_v24  ;;  %8729 = vmatprep.subr.mxu0 %v8616_v25  ;;  %v4436_v33 = vcombine.low %v4428_v15, %v4435_v26  ;;  %v16273_v34 = vpop.f32.mrf.mxu0  ;;  %v8606_v25 = vld [vmem:[#allocation13 + $0x1148] sm:$0xff]  ;;  %v8605_v15 = vld [vmem:[#allocation13 + $0x1140] sm:$0xff]  ;;  %v8985_v26 = vld [vmem:[#allocation13 + $0x1250] sm:$0xff] }
 0x685   : > { %8281 = vmatpush1.msra.mxu1 %v8235_v27  ;;  %8730 = vmatpush1.msra.mxu0 %v8615_v1  ;;  %v4542_v56 = vpop.f32.mrf.mxu1  ;;  %v8986_v27 = vld [vmem:[#allocation13 + $0x1258] sm:$0xff] }
 0x686   : > { %8282 = vmatprep.subr.mxu1 %v8228_v29  ;;  %8731 = vmatprep.subr.mxu0 %v8608_v7  ;;  %v16276_v36 = vadd.f32 %v4436_v33, %v16228_v4  ;;  %v4766_v41 = vcombine.low %v4540_v60, %v4542_v56  ;;  %v16278_v54 = vpop.f32.mrf.mxu0  ;;  %v8598_v60 = vld [vmem:[#allocation13 + $0x1108] sm:$0xff]  ;;  %v8597_v33 = vld [vmem:[#allocation13 + $0x1100] sm:$0xff] }
 0x687   : > { %8283 = vmatpush1.msra.mxu1 %v8227_v40  ;;  %8732 = vmatpush1.msra.mxu0 %v8607_v11  ;;  %v5145_v6 = vcombine.low %v16273_v34, %v16278_v54  ;;  %v8978_v40 = vld [vmem:[#allocation13 + $0x1218] sm:$0xff]  ;;  %v8618_v54 = vld [vmem:[#allocation13 + $0x11a8] sm:$0xff] }
 0x688   : > { %8284 = vmatprep.subr.mxu1 %v8220_v35  ;;  %8733 = vmatprep.subr.mxu0 %v8600_v55  ;;  %v16289_v4 = vrot.slane %v4766_v41, %v16032_v47 }
 0x689   : > { %8285 = vmatpush1.msra.mxu1 %v8219_v58  ;;  %8318 = vmatprep.mubr.f32.mxu1 %v15254_v14  ;;  %v8977_v58 = vld [vmem:[#allocation13 + $0x1210] sm:$0xff] }
 0x68a   : > { %8734 = vmatpush1.msra.mxu0 %v8599_v57  ;;  %8767 = vmatprep.mubr.f32.mxu0 %v15254_v14  ;;  %v4798_v37 = vcombine.low %v16289_v4, %v16286_v46  ;;  %v8626_v57 = vld [vmem:[#allocation13 + $0x11e8] sm:$0xff]  ;;  %v9006_v46 = vld [vmem:[#allocation13 + $0x12f8] sm:$0xff]  ;;  %v16342_v4 = vrot.slane %v16245_v48, 2 }
 0x68b   : > { %14527 = vmatmul.mubr.msk.f32.vlgmr.msra.gmra.mxu1 %vm2202_vm5, %v16245_v48  ;;  %8420 = vmatprep.subr.mxu1 %v8248_v59  ;;  %v16334_v59 = vrot.slane %v5145_v6, %v16032_v47  ;;  %v8998_v6 = vld [vmem:[#allocation13 + $0x12b8] sm:$0xff] }
 0x68c   : > { %14532 = vmatmul.mubr.msk.f32.vlgmr.msra.gmra.mxu0 %vm2202_vm5, %v16294_v45  ;;  %8869 = vmatprep.subr.mxu0 %v8628_v52  ;;  %v4806_v23 = vrot.slane %v4798_v37, %v16032_v47  ;;  %v8625_v52 = vld [vmem:[#allocation13 + $0x11e0] sm:$0xff]  ;;  %v8997_v37 = vld [vmem:[#allocation13 + $0x12b0] sm:$0xff] }
 0x68d   : > { %8421 = vmatpush1.msra.mxu1 %v8247_v12  ;;  %8870 = vmatpush1.msra.mxu0 %v8627_v53  ;;  %v4682_v38 = vpop.f32.mrf.mxu1  ;;  %v9005_v12 = vld [vmem:[#allocation13 + $0x12f0] sm:$0xff]  ;;  %v8617_v53 = vld [vmem:[#allocation13 + $0x11a0] sm:$0xff] }
 0x68e   : > { %8422 = vmatprep.subr.mxu1 %v8240_v44  ;;  %8871 = vmatprep.subr.mxu0 %v8620_v63  ;;  %v16302_v42 = vpop.f32.mrf.mxu0  ;;  %v8610_v44 = vld [vmem:[#allocation13 + $0x1168] sm:$0xff]  ;;  %v8990_v63 = vld [vmem:[#allocation13 + $0x1278] sm:$0xff] }
 0x68f   : > { %8423 = vmatpush1.msra.mxu1 %v8239_v50  ;;  %8872 = vmatpush1.msra.mxu0 %v8619_v61  ;;  %v4684_v3 = vpop.f32.mrf.mxu1  ;;  %v8609_v61 = vld [vmem:[#allocation13 + $0x1160] sm:$0xff] }
 0x690   : > { %8424 = vmatprep.subr.mxu1 %v8232_v5  ;;  %8873 = vmatprep.subr.mxu0 %v8612_v49  ;;  %v4768_v13 = vcombine.low %v4682_v38, %v4684_v3  ;;  %v16304_v20 = vpop.f32.mrf.mxu0  ;;  %v8989_v5 = vld [vmem:[#allocation13 + $0x1270] sm:$0xff]  ;;  %v8602_v38 = vld [vmem:[#allocation13 + $0x1128] sm:$0xff] }
 0x691   : > { %8425 = vmatpush1.msra.mxu1 %v8231_v9  ;;  %8874 = vmatpush1.msra.mxu0 %v8611_v62  ;;  %v5147_v17 = vcombine.low %v16302_v42, %v16304_v20  ;;  %v8982_v9 = vld [vmem:[#allocation13 + $0x1238] sm:$0xff]  ;;  %v8991_v42 = vld [vmem:[#allocation13 + $0x1280] sm:$0xff]  ;;  %v9371_v20 = vld [vmem:[#allocation13 + $0x1390] sm:$0xff] }
 0x692   : > { %8426 = vmatprep.subr.mxu1 %v8224_v51  ;;  %8875 = vmatprep.subr.mxu0 %v8604_v28  ;;  %v4790_v43 = vrot.slane %v4768_v13, %v16032_v47  ;;  %v8601_v51 = vld [vmem:[#allocation13 + $0x1120] sm:$0xff] }
 0x693   : > { %8427 = vmatpush1.msra.mxu1 %v8223_v8  ;;  %8460 = vmatprep.mubr.f32.mxu1 %v15254_v14  ;;  %v8981_v8 = vld [vmem:[#allocation13 + $0x1230] sm:$0xff] }
 0x694   : > { %8876 = vmatpush1.msra.mxu0 %v8603_v30  ;;  %8909 = vmatprep.mubr.f32.mxu0 %v15254_v14  ;;  %v4799_v21 = vcombine.low %v4790_v43, %v4797_v39  ;;  %v9000_v30 = vld [vmem:[#allocation13 + $0x12c8] sm:$0xff]  ;;  %v9380_v43 = vld [vmem:[#allocation13 + $0x13d8] sm:$0xff] }
 0x695   : > { %14529 = vmatmul.mubr.msk.f32.vlgmr.msra.gmra.mxu1 %vm2202_vm5, %v16245_v48  ;;  %8656 = vmatprep.subr.mxu1 %v8622_v31  ;;  %v5175_v31 = vrot.slane %v5147_v17, %v16032_v47 }
 0x696   : > { %14534 = vmatmul.mubr.msk.f32.vlgmr.msra.gmra.mxu0 %vm2202_vm5, %v16294_v45  ;;  %9105 = vmatprep.subr.mxu0 %v9002_v10  ;;  %v4813_v24 = vrot.slane %v4799_v21, %v16032_v47  ;;  %v8999_v10 = vld [vmem:[#allocation13 + $0x12c0] sm:$0xff]  ;;  %v8992_v21 = vld [vmem:[#allocation13 + $0x1288] sm:$0xff] }
 0x697   : > { %8657 = vmatpush1.msra.mxu1 %v8621_v18  ;;  %9106 = vmatpush1.msra.mxu0 %v9001_v0  ;;  %v4918_v1 = vpop.f32.mrf.mxu1  ;;  %v9379_v18 = vld [vmem:[#allocation13 + $0x13d0] sm:$0xff] }
 0x698   : > { %8658 = vmatprep.subr.mxu1 %v8614_v22  ;;  %9107 = vmatprep.subr.mxu0 %v8994_v2  ;;  %v4814_v29 = vcombine.low %v4806_v23, %v4813_v24  ;;  %v16321_v7 = vpop.f32.mrf.mxu0  ;;  %v9372_v22 = vld [vmem:[#allocation13 + $0x1398] sm:$0xff]  ;;  %v9363_v24 = vld [vmem:[#allocation13 + $0x1350] sm:$0xff] }
 0x699   : > { %8659 = vmatpush1.msra.mxu1 %v8613_v16  ;;  %9108 = vmatpush1.msra.mxu0 %v8993_v32  ;;  %v4920_v11 = vpop.f32.mrf.mxu1  ;;  %v8984_v16 = vld [vmem:[#allocation13 + $0x1248] sm:$0xff]  ;;  %v9364_v32 = vld [vmem:[#allocation13 + $0x1358] sm:$0xff] }
 0x69a   : > { %8660 = vmatprep.subr.mxu1 %v8606_v25  ;;  %9109 = vmatprep.subr.mxu0 %v8986_v27  ;;  %v16324_v35 = vadd.f32 %v4814_v29, %v16276_v36  ;;  %v5144_v55 = vcombine.low %v4918_v1, %v4920_v11  ;;  %v16326_v56 = vpop.f32.mrf.mxu0  ;;  %v8976_v1 = vld [vmem:[#allocation13 + $0x1208] sm:$0xff]  ;;  %v8975_v29 = vld [vmem:[#allocation13 + $0x1200] sm:$0xff] }
 0x69b   : > { %8661 = vmatpush1.msra.mxu1 %v8605_v15  ;;  %9110 = vmatpush1.msra.mxu0 %v8985_v26  ;;  %v5523_v41 = vcombine.low %v16321_v7, %v16326_v56  ;;  %v9356_v15 = vld [vmem:[#allocation13 + $0x1318] sm:$0xff]  ;;  %v8996_v56 = vld [vmem:[#allocation13 + $0x12a8] sm:$0xff] }
 0x69c   : > { %8662 = vmatprep.subr.mxu1 %v8598_v60  ;;  %9111 = vmatprep.subr.mxu0 %v8978_v40  ;;  %v16337_v36 = vrot.slane %v5144_v55, %v16032_v47 }
 0x69d   : > { %8663 = vmatpush1.msra.mxu1 %v8597_v33  ;;  %8696 = vmatprep.mubr.f32.mxu1 %v15254_v14  ;;  %v9355_v33 = vld [vmem:[#allocation13 + $0x1310] sm:$0xff] }
 0x69e   : > { %9112 = vmatpush1.msra.mxu0 %v8977_v58  ;;  %9145 = vmatprep.mubr.f32.mxu0 %v15254_v14  ;;  %v5176_v34 = vcombine.low %v16337_v36, %v16334_v59  ;;  %v9004_v58 = vld [vmem:[#allocation13 + $0x12e8] sm:$0xff]  ;;  %v9384_v59 = vld [vmem:[#allocation13 + $0x13f8] sm:$0xff]  ;;  %v16390_v36 = vrot.slane %v16245_v48, 3 }
 0x69f   : > { %14531 = vmatmul.mubr.msk.f32.vlgmr.msra.gmra.mxu1 %vm2202_vm5, %v16294_v45  ;;  %8798 = vmatprep.subr.mxu1 %v8626_v57  ;;  %v16382_v57 = vrot.slane %v5523_v41, %v16032_v47  ;;  %v9376_v41 = vld [vmem:[#allocation13 + $0x13b8] sm:$0xff] }
 0x6a0   : > { %14536 = vmatmul.mubr.msk.f32.vlgmr.msra.gmra.mxu0 %vm2202_vm5, %v16342_v4  ;;  %9247 = vmatprep.subr.mxu0 %v9006_v46  ;;  %v5184_v17 = vrot.slane %v5176_v34, %v16032_v47  ;;  %v9003_v46 = vld [vmem:[#allocation13 + $0x12e0] sm:$0xff]  ;;  %v9375_v34 = vld [vmem:[#allocation13 + $0x13b0] sm:$0xff] }
 0x6a1   : > { %8799 = vmatpush1.msra.mxu1 %v8625_v52  ;;  %9248 = vmatpush1.msra.mxu0 %v9005_v12  ;;  %v5060_v50 = vpop.f32.mrf.mxu1  ;;  %v9383_v52 = vld [vmem:[#allocation13 + $0x13f0] sm:$0xff]  ;;  %v8995_v12 = vld [vmem:[#allocation13 + $0x12a0] sm:$0xff] }
 0x6a2   : > { %8800 = vmatprep.subr.mxu1 %v8618_v54  ;;  %9249 = vmatprep.subr.mxu0 %v8998_v6  ;;  %v16350_v49 = vpop.f32.mrf.mxu0  ;;  %v8988_v54 = vld [vmem:[#allocation13 + $0x1268] sm:$0xff]  ;;  %v9368_v6 = vld [vmem:[#allocation13 + $0x1378] sm:$0xff] }
 0x6a3   : > { %8801 = vmatpush1.msra.mxu1 %v8617_v53  ;;  %9250 = vmatpush1.msra.mxu0 %v8997_v37  ;;  %v5062_v62 = vpop.f32.mrf.mxu1  ;;  %v8987_v37 = vld [vmem:[#allocation13 + $0x1260] sm:$0xff] }
 0x6a4   : > { %8802 = vmatprep.subr.mxu1 %v8610_v44  ;;  %9251 = vmatprep.subr.mxu0 %v8990_v63  ;;  %v5146_v28 = vcombine.low %v5060_v50, %v5062_v62  ;;  %v16352_v3 = vpop.f32.mrf.mxu0  ;;  %v9367_v44 = vld [vmem:[#allocation13 + $0x1370] sm:$0xff]  ;;  %v8980_v50 = vld [vmem:[#allocation13 + $0x1228] sm:$0xff] }
 0x6a5   : > { %8803 = vmatpush1.msra.mxu1 %v8609_v61  ;;  %9252 = vmatpush1.msra.mxu0 %v8989_v5  ;;  %v5525_v13 = vcombine.low %v16350_v49, %v16352_v3  ;;  %v9360_v61 = vld [vmem:[#allocation13 + $0x1338] sm:$0xff]  ;;  %v9369_v49 = vld [vmem:[#allocation13 + $0x1380] sm:$0xff]  ;;  %v9749_v3 = vld [vmem:[#allocation13 + $0x1490] sm:$0xff] }
 0x6a6   : > { %8804 = vmatprep.subr.mxu1 %v8602_v38  ;;  %9253 = vmatprep.subr.mxu0 %v8982_v9  ;;  %v5168_v39 = vrot.slane %v5146_v28, %v16032_v47  ;;  %v8979_v38 = vld [vmem:[#allocation13 + $0x1220] sm:$0xff] }
 0x6a7   : > { %8805 = vmatpush1.msra.mxu1 %v8601_v51  ;;  %8838 = vmatprep.mubr.f32.mxu1 %v15254_v14  ;;  %v9359_v51 = vld [vmem:[#allocation13 + $0x1330] sm:$0xff] }
 0x6a8   : > { %9254 = vmatpush1.msra.mxu0 %v8981_v8  ;;  %9287 = vmatprep.mubr.f32.mxu0 %v15254_v14  ;;  %v5177_v0 = vcombine.low %v5168_v39, %v5175_v31  ;;  %v9378_v8 = vld [vmem:[#allocation13 + $0x13c8] sm:$0xff]  ;;  %v9758_v39 = vld [vmem:[#allocation13 + $0x14d8] sm:$0xff] }
 0x6a9   : > { %14533 = vmatmul.mubr.msk.f32.vlgmr.msra.gmra.mxu1 %vm2202_vm5, %v16294_v45  ;;  %9034 = vmatprep.subr.mxu1 %v9000_v30  ;;  %v8983_v45 = vld [vmem:[#allocation13 + $0x1240] sm:$0xff]  ;;  %v5553_v30 = vrot.slane %v5525_v13, %v16032_v47 }
 0x6aa   : > { %14538 = vmatmul.mubr.msk.f32.vlgmr.msra.gmra.mxu0 %vm2202_vm5, %v16342_v4  ;;  %9483 = vmatprep.subr.mxu0 %v9380_v43  ;;  %v5191_v2 = vrot.slane %v5177_v0, %v16032_v47  ;;  %v9377_v43 = vld [vmem:[#allocation13 + $0x13c0] sm:$0xff]  ;;  %v9370_v0 = vld [vmem:[#allocation13 + $0x1388] sm:$0xff] }
 0x6ab   : > { %9035 = vmatpush1.msra.mxu1 %v8999_v10  ;;  %9484 = vmatpush1.msra.mxu0 %v9379_v18  ;;  %v5296_v23 = vpop.f32.mrf.mxu1  ;;  %v9757_v10 = vld [vmem:[#allocation13 + $0x14d0] sm:$0xff] }
 0x6ac   : > { %9036 = vmatprep.subr.mxu1 %v8992_v21  ;;  %9485 = vmatprep.subr.mxu0 %v9372_v22  ;;  %v5192_v25 = vcombine.low %v5184_v17, %v5191_v2  ;;  %v16369_v27 = vpop.f32.mrf.mxu0  ;;  %v9750_v21 = vld [vmem:[#allocation13 + $0x1498] sm:$0xff]  ;;  %v9741_v2 = vld [vmem:[#allocation13 + $0x1450] sm:$0xff] }
 0x6ad   : > { %9037 = vmatpush1.msra.mxu1 %v8991_v42  ;;  %9486 = vmatpush1.msra.mxu0 %v9371_v20  ;;  %v5298_v26 = vpop.f32.mrf.mxu1  ;;  %v9362_v42 = vld [vmem:[#allocation13 + $0x1348] sm:$0xff]  ;;  %v9742_v20 = vld [vmem:[#allocation13 + $0x1458] sm:$0xff] }
 0x6ae   : > { %9038 = vmatprep.subr.mxu1 %v8984_v16  ;;  %9487 = vmatprep.subr.mxu0 %v9364_v32  ;;  %v16372_v60 = vadd.f32 %v5192_v25, %v16324_v35  ;;  %v5522_v40 = vcombine.low %v5296_v23, %v5298_v26  ;;  %v16374_v11 = vpop.f32.mrf.mxu0  ;;  %v9354_v23 = vld [vmem:[#allocation13 + $0x1308] sm:$0xff]  ;;  %v9353_v25 = vld [vmem:[#allocation13 + $0x1300] sm:$0xff] }
 0x6af   : > { %9039 = vmatpush1.msra.mxu1 %v8983_v45  ;;  %9488 = vmatpush1.msra.mxu0 %v9363_v24  ;;  %v5901_v55 = vcombine.low %v16369_v27, %v16374_v11  ;;  %v9734_v45 = vld [vmem:[#allocation13 + $0x1418] sm:$0xff]  ;;  %v9374_v11 = vld [vmem:[#allocation13 + $0x13a8] sm:$0xff] }
 0x6b0   : > { %9040 = vmatprep.subr.mxu1 %v8976_v1  ;;  %9489 = vmatprep.subr.mxu0 %v9356_v15  ;;  %v16385_v35 = vrot.slane %v5522_v40, %v16032_v47 }
 0x6b1   : > { %9041 = vmatpush1.msra.mxu1 %v8975_v29  ;;  %9074 = vmatprep.mubr.f32.mxu1 %v15254_v14  ;;  %v9733_v29 = vld [vmem:[#allocation13 + $0x1410] sm:$0xff] }
 0x6b2   : > { %9490 = vmatpush1.msra.mxu0 %v9355_v33  ;;  %9523 = vmatprep.mubr.f32.mxu0 %v15254_v14  ;;  %v5554_v7 = vcombine.low %v16385_v35, %v16382_v57  ;;  %v9382_v33 = vld [vmem:[#allocation13 + $0x13e8] sm:$0xff]  ;;  %v9762_v57 = vld [vmem:[#allocation13 + $0x14f8] sm:$0xff]  ;;  %v16438_v35 = vrot.slane %v16245_v48, 4 }
 0x6b3   : > { %14535 = vmatmul.mubr.msk.f32.vlgmr.msra.gmra.mxu1 %vm2202_vm5, %v16342_v4  ;;  %9176 = vmatprep.subr.mxu1 %v9004_v58  ;;  %v16430_v58 = vrot.slane %v5901_v55, %v16032_v47  ;;  %v9754_v55 = vld [vmem:[#allocation13 + $0x14b8] sm:$0xff] }
 0x6b4   : > { %14540 = vmatmul.mubr.msk.f32.vlgmr.msra.gmra.mxu0 %vm2202_vm5, %v16390_v36  ;;  %9625 = vmatprep.subr.mxu0 %v9384_v59  ;;  %v5562_v13 = vrot.slane %v5554_v7, %v16032_v47  ;;  %v9381_v59 = vld [vmem:[#allocation13 + $0x13e0] sm:$0xff]  ;;  %v9753_v7 = vld [vmem:[#allocation13 + $0x14b0] sm:$0xff] }
 0x6b5   : > { %9177 = vmatpush1.msra.mxu1 %v9003_v46  ;;  %9626 = vmatpush1.msra.mxu0 %v9383_v52  ;;  %v5438_v53 = vpop.f32.mrf.mxu1  ;;  %v9761_v46 = vld [vmem:[#allocation13 + $0x14f0] sm:$0xff]  ;;  %v9373_v52 = vld [vmem:[#allocation13 + $0x13a0] sm:$0xff] }
 0x6b6   : > { %9178 = vmatprep.subr.mxu1 %v8996_v56  ;;  %9627 = vmatprep.subr.mxu0 %v9376_v41  ;;  %v16398_v63 = vpop.f32.mrf.mxu0  ;;  %v9366_v56 = vld [vmem:[#allocation13 + $0x1368] sm:$0xff]  ;;  %v9746_v41 = vld [vmem:[#allocation13 + $0x1478] sm:$0xff] }
 0x6b7   : > { %9179 = vmatpush1.msra.mxu1 %v8995_v12  ;;  %9628 = vmatpush1.msra.mxu0 %v9375_v34  ;;  %v5440_v5 = vpop.f32.mrf.mxu1  ;;  %v9365_v34 = vld [vmem:[#allocation13 + $0x1360] sm:$0xff] }
 0x6b8   : > { %9180 = vmatprep.subr.mxu1 %v8988_v54  ;;  %9629 = vmatprep.subr.mxu0 %v9368_v6  ;;  %v5524_v9 = vcombine.low %v5438_v53, %v5440_v5  ;;  %v16400_v62 = vpop.f32.mrf.mxu0  ;;  %v9745_v54 = vld [vmem:[#allocation13 + $0x1470] sm:$0xff]  ;;  %v9358_v53 = vld [vmem:[#allocation13 + $0x1328] sm:$0xff] }
 0x6b9   : > { %9181 = vmatpush1.msra.mxu1 %v8987_v37  ;;  %9630 = vmatpush1.msra.mxu0 %v9367_v44  ;;  %v5903_v28 = vcombine.low %v16398_v63, %v16400_v62  ;;  %v9738_v37 = vld [vmem:[#allocation13 + $0x1438] sm:$0xff]  ;;  %v9747_v63 = vld [vmem:[#allocation13 + $0x1480] sm:$0xff]  ;;  %v10127_v62 = vld [vmem:[#allocation13 + $0x1590] sm:$0xff] }
 0x6ba   : > { %9182 = vmatprep.subr.mxu1 %v8980_v50  ;;  %9631 = vmatprep.subr.mxu0 %v9360_v61  ;;  %v5546_v31 = vrot.slane %v5524_v9, %v16032_v47  ;;  %v9357_v50 = vld [vmem:[#allocation13 + $0x1320] sm:$0xff] }
 0x6bb   : > { %9183 = vmatpush1.msra.mxu1 %v8979_v38  ;;  %9216 = vmatprep.mubr.f32.mxu1 %v15254_v14  ;;  %v9737_v38 = vld [vmem:[#allocation13 + $0x1430] sm:$0xff] }
 0x6bc   : > { %9632 = vmatpush1.msra.mxu0 %v9359_v51  ;;  %9665 = vmatprep.mubr.f32.mxu0 %v15254_v14  ;;  %v5555_v18 = vcombine.low %v5546_v31, %v5553_v30  ;;  %v9756_v51 = vld [vmem:[#allocation13 + $0x14c8] sm:$0xff]  ;;  %v10136_v31 = vld [vmem:[#allocation13 + $0x15d8] sm:$0xff] }
 0x6bd   : > { %14537 = vmatmul.mubr.msk.f32.vlgmr.msra.gmra.mxu1 %vm2202_vm5, %v16342_v4  ;;  %9412 = vmatprep.subr.mxu1 %v9378_v8  ;;  %v9361_v4 = vld [vmem:[#allocation13 + $0x1340] sm:$0xff]  ;;  %v5931_v8 = vrot.slane %v5903_v28, %v16032_v47 }
 0x6be   : > { %14542 = vmatmul.mubr.msk.f32.vlgmr.msra.gmra.mxu0 %vm2202_vm5, %v16390_v36  ;;  %9861 = vmatprep.subr.mxu0 %v9758_v39  ;;  %v5569_v22 = vrot.slane %v5555_v18, %v16032_v47  ;;  %v9755_v39 = vld [vmem:[#allocation13 + $0x14c0] sm:$0xff]  ;;  %v9748_v18 = vld [vmem:[#allocation13 + $0x1488] sm:$0xff] }
 0x6bf   : > { %9413 = vmatpush1.msra.mxu1 %v9377_v43  ;;  %9862 = vmatpush1.msra.mxu0 %v9757_v10  ;;  %v5674_v17 = vpop.f32.mrf.mxu1  ;;  %v10135_v43 = vld [vmem:[#allocation13 + $0x15d0] sm:$0xff] }
 0x6c0   : > { %9414 = vmatprep.subr.mxu1 %v9370_v0  ;;  %9863 = vmatprep.subr.mxu0 %v9750_v21  ;;  %v5570_v16 = vcombine.low %v5562_v13, %v5569_v22  ;;  %v16417_v32 = vpop.f32.mrf.mxu0  ;;  %v10128_v0 = vld [vmem:[#allocation13 + $0x1598] sm:$0xff]  ;;  %v10119_v22 = vld [vmem:[#allocation13 + $0x1550] sm:$0xff] }
 0x6c1   : > { %9415 = vmatpush1.msra.mxu1 %v9369_v49  ;;  %9864 = vmatpush1.msra.mxu0 %v9749_v3  ;;  %v5676_v24 = vpop.f32.mrf.mxu1  ;;  %v9740_v49 = vld [vmem:[#allocation13 + $0x1448] sm:$0xff]  ;;  %v10120_v3 = vld [vmem:[#allocation13 + $0x1558] sm:$0xff] }
 0x6c2   : > { %9416 = vmatprep.subr.mxu1 %v9362_v42  ;;  %9865 = vmatprep.subr.mxu0 %v9742_v20  ;;  %v16420_v1 = vadd.f32 %v5570_v16, %v16372_v60  ;;  %v5900_v15 = vcombine.low %v5674_v17, %v5676_v24  ;;  %v16422_v26 = vpop.f32.mrf.mxu0  ;;  %v9732_v17 = vld [vmem:[#allocation13 + $0x1408] sm:$0xff]  ;;  %v9731_v16 = vld [vmem:[#allocation13 + $0x1400] sm:$0xff] }
 0x6c3   : > { %9417 = vmatpush1.msra.mxu1 %v9361_v4  ;;  %9866 = vmatpush1.msra.mxu0 %v9741_v2  ;;  %v6279_v40 = vcombine.low %v16417_v32, %v16422_v26  ;;  %v10112_v4 = vld [vmem:[#allocation13 + $0x1518] sm:$0xff]  ;;  %v9752_v26 = vld [vmem:[#allocation13 + $0x14a8] sm:$0xff] }
 0x6c4   : > { %9418 = vmatprep.subr.mxu1 %v9354_v23  ;;  %9867 = vmatprep.subr.mxu0 %v9734_v45  ;;  %v16433_v60 = vrot.slane %v5900_v15, %v16032_v47 }
 0x6c5   : > { %9419 = vmatpush1.msra.mxu1 %v9353_v25  ;;  %9452 = vmatprep.mubr.f32.mxu1 %v15254_v14  ;;  %v10111_v25 = vld [vmem:[#allocation13 + $0x1510] sm:$0xff] }
 0x6c6   : > { %9868 = vmatpush1.msra.mxu0 %v9733_v29  ;;  %9901 = vmatprep.mubr.f32.mxu0 %v15254_v14  ;;  %v5932_v27 = vcombine.low %v16433_v60, %v16430_v58  ;;  %v9760_v29 = vld [vmem:[#allocation13 + $0x14e8] sm:$0xff]  ;;  %v10140_v58 = vld [vmem:[#allocation13 + $0x15f8] sm:$0xff]  ;;  %v16486_v60 = vrot.slane %v16245_v48, 5 }
 0x6c7   : > { %14539 = vmatmul.mubr.msk.f32.vlgmr.msra.gmra.mxu1 %vm2202_vm5, %v16390_v36  ;;  %9554 = vmatprep.subr.mxu1 %v9382_v33  ;;  %v16478_v33 = vrot.slane %v6279_v40, %v16032_v47  ;;  %v10132_v40 = vld [vmem:[#allocation13 + $0x15b8] sm:$0xff] }
 0x6c8   : > { %14544 = vmatmul.mubr.msk.f32.vlgmr.msra.gmra.mxu0 %vm2202_vm5, %v16438_v35  ;;  %10003 = vmatprep.subr.mxu0 %v9762_v57  ;;  %v5940_v28 = vrot.slane %v5932_v27, %v16032_v47  ;;  %v9759_v57 = vld [vmem:[#allocation13 + $0x14e0] sm:$0xff]  ;;  %v10131_v27 = vld [vmem:[#allocation13 + $0x15b0] sm:$0xff] }
 0x6c9   : > { %9555 = vmatpush1.msra.mxu1 %v9381_v59  ;;  %10004 = vmatpush1.msra.mxu0 %v9761_v46  ;;  %v5816_v12 = vpop.f32.mrf.mxu1  ;;  %v10139_v59 = vld [vmem:[#allocation13 + $0x15f0] sm:$0xff]  ;;  %v9751_v46 = vld [vmem:[#allocation13 + $0x14a0] sm:$0xff] }
 0x6ca   : > { %9556 = vmatprep.subr.mxu1 %v9374_v11  ;;  %10005 = vmatprep.subr.mxu0 %v9754_v55  ;;  %v16446_v6 = vpop.f32.mrf.mxu0  ;;  %v9744_v11 = vld [vmem:[#allocation13 + $0x1468] sm:$0xff]  ;;  %v10124_v55 = vld [vmem:[#allocation13 + $0x1578] sm:$0xff] }
 0x6cb   : > { %9557 = vmatpush1.msra.mxu1 %v9373_v52  ;;  %10006 = vmatpush1.msra.mxu0 %v9753_v7  ;;  %v5818_v44 = vpop.f32.mrf.mxu1  ;;  %v9743_v7 = vld [vmem:[#allocation13 + $0x1460] sm:$0xff] }
 0x6cc   : > { %9558 = vmatprep.subr.mxu1 %v9366_v56  ;;  %10007 = vmatprep.subr.mxu0 %v9746_v41  ;;  %v5902_v61 = vcombine.low %v5816_v12, %v5818_v44  ;;  %v16448_v5 = vpop.f32.mrf.mxu0  ;;  %v10123_v56 = vld [vmem:[#allocation13 + $0x1570] sm:$0xff]  ;;  %v9736_v12 = vld [vmem:[#allocation13 + $0x1428] sm:$0xff] }
 0x6cd   : > { %9559 = vmatpush1.msra.mxu1 %v9365_v34  ;;  %10008 = vmatpush1.msra.mxu0 %v9745_v54  ;;  %v6281_v9 = vcombine.low %v16446_v6, %v16448_v5  ;;  %v10116_v34 = vld [vmem:[#allocation13 + $0x1538] sm:$0xff]  ;;  %v10125_v6 = vld [vmem:[#allocation13 + $0x1580] sm:$0xff]  ;;  %v10505_v5 = vld [vmem:[#allocation13 + $0x1690] sm:$0xff] }
 0x6ce   : > { %9560 = vmatprep.subr.mxu1 %v9358_v53  ;;  %10009 = vmatprep.subr.mxu0 %v9738_v37  ;;  %v5924_v30 = vrot.slane %v5902_v61, %v16032_v47  ;;  %v9735_v53 = vld [vmem:[#allocation13 + $0x1420] sm:$0xff] }
 0x6cf   : > { %9561 = vmatpush1.msra.mxu1 %v9357_v50  ;;  %9594 = vmatprep.mubr.f32.mxu1 %v15254_v14  ;;  %v10115_v50 = vld [vmem:[#allocation13 + $0x1530] sm:$0xff] }
 0x6d0   : > { %10010 = vmatpush1.msra.mxu0 %v9737_v38  ;;  %10043 = vmatprep.mubr.f32.mxu0 %v15254_v14  ;;  %v5933_v10 = vcombine.low %v5924_v30, %v5931_v8  ;;  %v10134_v38 = vld [vmem:[#allocation13 + $0x15c8] sm:$0xff]  ;;  %v10514_v30 = vld [vmem:[#allocation13 + $0x16d8] sm:$0xff] }
 0x6d1   : > { %14541 = vmatmul.mubr.msk.f32.vlgmr.msra.gmra.mxu1 %vm2202_vm5, %v16390_v36  ;;  %9790 = vmatprep.subr.mxu1 %v9756_v51  ;;  %v9739_v36 = vld [vmem:[#allocation13 + $0x1440] sm:$0xff]  ;;  %v6309_v51 = vrot.slane %v6281_v9, %v16032_v47 }
 0x6d2   : > { %14546 = vmatmul.mubr.msk.f32.vlgmr.msra.gmra.mxu0 %vm2202_vm5, %v16438_v35  ;;  %10239 = vmatprep.subr.mxu0 %v10136_v31  ;;  %v5947_v21 = vrot.slane %v5933_v10, %v16032_v47  ;;  %v10133_v31 = vld [vmem:[#allocation13 + $0x15c0] sm:$0xff]  ;;  %v10126_v10 = vld [vmem:[#allocation13 + $0x1588] sm:$0xff] }
 0x6d3   : > { %9791 = vmatpush1.msra.mxu1 %v9755_v39  ;;  %10240 = vmatpush1.msra.mxu0 %v10135_v43  ;;  %v6052_v13 = vpop.f32.mrf.mxu1  ;;  %v10513_v39 = vld [vmem:[#allocation13 + $0x16d0] sm:$0xff] }
 0x6d4   : > { %9792 = vmatprep.subr.mxu1 %v9748_v18  ;;  %10241 = vmatprep.subr.mxu0 %v10128_v0  ;;  %v5948_v42 = vcombine.low %v5940_v28, %v5947_v21  ;;  %v16465_v20 = vpop.f32.mrf.mxu0  ;;  %v10506_v18 = vld [vmem:[#allocation13 + $0x1698] sm:$0xff]  ;;  %v10497_v21 = vld [vmem:[#allocation13 + $0x1650] sm:$0xff] }
 0x6d5   : > { %9793 = vmatpush1.msra.mxu1 %v9747_v63  ;;  %10242 = vmatpush1.msra.mxu0 %v10127_v62  ;;  %v6054_v2 = vpop.f32.mrf.mxu1  ;;  %v10118_v63 = vld [vmem:[#allocation13 + $0x1548] sm:$0xff]  ;;  %v10498_v62 = vld [vmem:[#allocation13 + $0x1658] sm:$0xff] }
 0x6d6   : > { %9794 = vmatprep.subr.mxu1 %v9740_v49  ;;  %10243 = vmatprep.subr.mxu0 %v10120_v3  ;;  %v16468_v23 = vadd.f32 %v5948_v42, %v16420_v1  ;;  %v6278_v45 = vcombine.low %v6052_v13, %v6054_v2  ;;  %v16470_v24 = vpop.f32.mrf.mxu0  ;;  %v10110_v13 = vld [vmem:[#allocation13 + $0x1508] sm:$0xff]  ;;  %v10109_v42 = vld [vmem:[#allocation13 + $0x1500] sm:$0xff] }
 0x6d7   : > { %9795 = vmatpush1.msra.mxu1 %v9739_v36  ;;  %10244 = vmatpush1.msra.mxu0 %v10119_v22  ;;  %v6657_v15 = vcombine.low %v16465_v20, %v16470_v24  ;;  %v10490_v36 = vld [vmem:[#allocation13 + $0x1618] sm:$0xff]  ;;  %v10130_v24 = vld [vmem:[#allocation13 + $0x15a8] sm:$0xff] }
 0x6d8   : > { %9796 = vmatprep.subr.mxu1 %v9732_v17  ;;  %10245 = vmatprep.subr.mxu0 %v10112_v4  ;;  %v16481_v1 = vrot.slane %v6278_v45, %v16032_v47 }
 0x6d9   : > { %9797 = vmatpush1.msra.mxu1 %v9731_v16  ;;  %9830 = vmatprep.mubr.f32.mxu1 %v15254_v14  ;;  %v10489_v16 = vld [vmem:[#allocation13 + $0x1610] sm:$0xff] }
 0x6da   : > { %10246 = vmatpush1.msra.mxu0 %v10111_v25  ;;  %10279 = vmatprep.mubr.f32.mxu0 %v15254_v14  ;;  %v6310_v32 = vcombine.low %v16481_v1, %v16478_v33  ;;  %v10138_v25 = vld [vmem:[#allocation13 + $0x15e8] sm:$0xff]  ;;  %v10518_v33 = vld [vmem:[#allocation13 + $0x16f8] sm:$0xff]  ;;  %v16534_v1 = vrot.slane %v16245_v48, 6 }
 0x6db   : > { %14543 = vmatmul.mubr.msk.f32.vlgmr.msra.gmra.mxu1 %vm2202_vm5, %v16438_v35  ;;  %9932 = vmatprep.subr.mxu1 %v9760_v29  ;;  %v16526_v29 = vrot.slane %v6657_v15, %v16032_v47  ;;  %v10510_v15 = vld [vmem:[#allocation13 + $0x16b8] sm:$0xff] }
 0x6dc   : > { %14548 = vmatmul.mubr.msk.f32.vlgmr.msra.gmra.mxu0 %vm2202_vm5, %v16486_v60  ;;  %10381 = vmatprep.subr.mxu0 %v10140_v58  ;;  %v6318_v9 = vrot.slane %v6310_v32, %v16032_v47  ;;  %v10137_v58 = vld [vmem:[#allocation13 + $0x15e0] sm:$0xff]  ;;  %v10509_v32 = vld [vmem:[#allocation13 + $0x16b0] sm:$0xff] }
 0x6dd   : > { %9933 = vmatpush1.msra.mxu1 %v9759_v57  ;;  %10382 = vmatpush1.msra.mxu0 %v10139_v59  ;;  %v6194_v52 = vpop.f32.mrf.mxu1  ;;  %v10517_v57 = vld [vmem:[#allocation13 + $0x16f0] sm:$0xff]  ;;  %v10129_v59 = vld [vmem:[#allocation13 + $0x15a0] sm:$0xff] }
 0x6de   : > { %9934 = vmatprep.subr.mxu1 %v9752_v26  ;;  %10383 = vmatprep.subr.mxu0 %v10132_v40  ;;  %v16494_v41 = vpop.f32.mrf.mxu0  ;;  %v10122_v26 = vld [vmem:[#allocation13 + $0x1568] sm:$0xff]  ;;  %v10502_v40 = vld [vmem:[#allocation13 + $0x1678] sm:$0xff] }
 0x6df   : > { %9935 = vmatpush1.msra.mxu1 %v9751_v46  ;;  %10384 = vmatpush1.msra.mxu0 %v10131_v27  ;;  %v6196_v54 = vpop.f32.mrf.mxu1  ;;  %v10121_v27 = vld [vmem:[#allocation13 + $0x1560] sm:$0xff] }
 0x6e0   : > { %9936 = vmatprep.subr.mxu1 %v9744_v11  ;;  %10385 = vmatprep.subr.mxu0 %v10124_v55  ;;  %v6280_v37 = vcombine.low %v6194_v52, %v6196_v54  ;;  %v16496_v44 = vpop.f32.mrf.mxu0  ;;  %v10501_v11 = vld [vmem:[#allocation13 + $0x1670] sm:$0xff]  ;;  %v10114_v52 = vld [vmem:[#allocation13 + $0x1528] sm:$0xff] }
 0x6e1   : > { %9937 = vmatpush1.msra.mxu1 %v9743_v7  ;;  %10386 = vmatpush1.msra.mxu0 %v10123_v56  ;;  %v6659_v61 = vcombine.low %v16494_v41, %v16496_v44  ;;  %v10494_v7 = vld [vmem:[#allocation13 + $0x1638] sm:$0xff]  ;;  %v10503_v41 = vld [vmem:[#allocation13 + $0x1680] sm:$0xff]  ;;  %v10883_v44 = vld [vmem:[#allocation13 + $0x1790] sm:$0xff] }
 0x6e2   : > { %9938 = vmatprep.subr.mxu1 %v9736_v12  ;;  %10387 = vmatprep.subr.mxu0 %v10116_v34  ;;  %v6302_v8 = vrot.slane %v6280_v37, %v16032_v47  ;;  %v10113_v12 = vld [vmem:[#allocation13 + $0x1520] sm:$0xff] }
 0x6e3   : > { %9939 = vmatpush1.msra.mxu1 %v9735_v53  ;;  %9972 = vmatprep.mubr.f32.mxu1 %v15254_v14  ;;  %v10493_v53 = vld [vmem:[#allocation13 + $0x1630] sm:$0xff] }
 0x6e4   : > { %10388 = vmatpush1.msra.mxu0 %v10115_v50  ;;  %10421 = vmatprep.mubr.f32.mxu0 %v15254_v14  ;;  %v6311_v43 = vcombine.low %v6302_v8, %v6309_v51  ;;  %v10512_v50 = vld [vmem:[#allocation13 + $0x16c8] sm:$0xff]  ;;  %v10892_v8 = vld [vmem:[#allocation13 + $0x17d8] sm:$0xff] }
 0x6e5   : > { %14545 = vmatmul.mubr.msk.f32.vlgmr.msra.gmra.mxu1 %vm2202_vm5, %v16438_v35  ;;  %10168 = vmatprep.subr.mxu1 %v10134_v38  ;;  %v10117_v35 = vld [vmem:[#allocation13 + $0x1540] sm:$0xff]  ;;  %v6687_v38 = vrot.slane %v6659_v61, %v16032_v47 }
 0x6e6   : > { %14550 = vmatmul.mubr.msk.f32.vlgmr.msra.gmra.mxu0 %vm2202_vm5, %v16486_v60  ;;  %10617 = vmatprep.subr.mxu0 %v10514_v30  ;;  %v6325_v0 = vrot.slane %v6311_v43, %v16032_v47  ;;  %v10511_v30 = vld [vmem:[#allocation13 + $0x16c0] sm:$0xff]  ;;  %v10504_v43 = vld [vmem:[#allocation13 + $0x1688] sm:$0xff] }
 0x6e7   : > { %10169 = vmatpush1.msra.mxu1 %v10133_v31  ;;  %10618 = vmatpush1.msra.mxu0 %v10513_v39  ;;  %v6430_v28 = vpop.f32.mrf.mxu1  ;;  %v10891_v31 = vld [vmem:[#allocation13 + $0x17d0] sm:$0xff] }
 0x6e8   : > { %10170 = vmatprep.subr.mxu1 %v10126_v10  ;;  %10619 = vmatprep.subr.mxu0 %v10506_v18  ;;  %v6326_v49 = vcombine.low %v6318_v9, %v6325_v0  ;;  %v16513_v3 = vpop.f32.mrf.mxu0  ;;  %v10884_v10 = vld [vmem:[#allocation13 + $0x1798] sm:$0xff]  ;;  %v10875_v0 = vld [vmem:[#allocation13 + $0x1750] sm:$0xff] }
 0x6e9   : > { %10171 = vmatpush1.msra.mxu1 %v10125_v6  ;;  %10620 = vmatpush1.msra.mxu0 %v10505_v5  ;;  %v6432_v22 = vpop.f32.mrf.mxu1  ;;  %v10496_v6 = vld [vmem:[#allocation13 + $0x1648] sm:$0xff]  ;;  %v10876_v5 = vld [vmem:[#allocation13 + $0x1758] sm:$0xff] }
 0x6ea   : > { %10172 = vmatprep.subr.mxu1 %v10118_v63  ;;  %10621 = vmatprep.subr.mxu0 %v10498_v62  ;;  %v16516_v17 = vadd.f32 %v6326_v49, %v16468_v23  ;;  %v6656_v4 = vcombine.low %v6430_v28, %v6432_v22  ;;  %v16518_v2 = vpop.f32.mrf.mxu0  ;;  %v10488_v28 = vld [vmem:[#allocation13 + $0x1608] sm:$0xff]  ;;  %v10487_v49 = vld [vmem:[#allocation13 + $0x1600] sm:$0xff] }
 0x6eb   : > { %10173 = vmatpush1.msra.mxu1 %v10117_v35  ;;  %10622 = vmatpush1.msra.mxu0 %v10497_v21  ;;  %v7035_v45 = vcombine.low %v16513_v3, %v16518_v2  ;;  %v10868_v35 = vld [vmem:[#allocation13 + $0x1718] sm:$0xff]  ;;  %v10508_v2 = vld [vmem:[#allocation13 + $0x16a8] sm:$0xff] }
 0x6ec   : > { %10174 = vmatprep.subr.mxu1 %v10110_v13  ;;  %10623 = vmatprep.subr.mxu0 %v10490_v36  ;;  %v16529_v23 = vrot.slane %v6656_v4, %v16032_v47 }
 0x6ed   : > { %10175 = vmatpush1.msra.mxu1 %v10109_v42  ;;  %10208 = vmatprep.mubr.f32.mxu1 %v15254_v14  ;;  %v10867_v42 = vld [vmem:[#allocation13 + $0x1710] sm:$0xff] }
 0x6ee   : > { %10624 = vmatpush1.msra.mxu0 %v10489_v16  ;;  %10657 = vmatprep.mubr.f32.mxu0 %v15254_v14  ;;  %v6688_v20 = vcombine.low %v16529_v23, %v16526_v29  ;;  %v10516_v16 = vld [vmem:[#allocation13 + $0x16e8] sm:$0xff]  ;;  %v10896_v29 = vld [vmem:[#allocation13 + $0x17f8] sm:$0xff]  ;;  %v16582_v23 = vrot.slane %v16245_v48, 7 }
 0x6ef   : > { %14547 = vmatmul.mubr.msk.f32.vlgmr.msra.gmra.mxu1 %vm2202_vm5, %v16486_v60  ;;  %10310 = vmatprep.subr.mxu1 %v10138_v25  ;;  %v16574_v25 = vrot.slane %v7035_v45, %v16032_v47  ;;  %v10888_v45 = vld [vmem:[#allocation13 + $0x17b8] sm:$0xff]  ;;  %v10500_v48 = vld [vmem:[#allocation13 + $0x1668] sm:$0xff] }
 0x6f0   : > { %14552 = vmatmul.mubr.msk.f32.vlgmr.msra.gmra.mxu0 %vm2202_vm5, %v16534_v1  ;;  %10759 = vmatprep.subr.mxu0 %v10518_v33  ;;  %v6696_v61 = vrot.slane %v6688_v20, %v16032_v47  ;;  %v10515_v33 = vld [vmem:[#allocation13 + $0x16e0] sm:$0xff]  ;;  %v10887_v20 = vld [vmem:[#allocation13 + $0x17b0] sm:$0xff] }
 0x6f1   : > { %10311 = vmatpush1.msra.mxu1 %v10137_v58  ;;  %10760 = vmatpush1.msra.mxu0 %v10517_v57  ;;  %v6572_v46 = vpop.f32.mrf.mxu1  ;;  %v10895_v58 = vld [vmem:[#allocation13 + $0x17f0] sm:$0xff]  ;;  %v10507_v57 = vld [vmem:[#allocation13 + $0x16a0] sm:$0xff] }
 0x6f2   : > { %10312 = vmatprep.subr.mxu1 %v10130_v24  ;;  %10761 = vmatprep.subr.mxu0 %v10510_v15  ;;  %v16542_v55 = vpop.f32.mrf.mxu0  ;;  %v10880_v24 = vld [vmem:[#allocation13 + $0x1778] sm:$0xff] }
 0x6f3   : > { %10313 = vmatpush1.msra.mxu1 %v10129_v59  ;;  %10762 = vmatpush1.msra.mxu0 %v10509_v32  ;;  %v6574_v56 = vpop.f32.mrf.mxu1  ;;  %v10499_v59 = vld [vmem:[#allocation13 + $0x1660] sm:$0xff]  ;;  %v10879_v32 = vld [vmem:[#allocation13 + $0x1770] sm:$0xff] }
 0x6f4   : > { %10314 = vmatprep.subr.mxu1 %v10122_v26  ;;  %10763 = vmatprep.subr.mxu0 %v10502_v40  ;;  %v6658_v34 = vcombine.low %v6572_v46, %v6574_v56  ;;  %v16544_v54 = vpop.f32.mrf.mxu0  ;;  %v10492_v40 = vld [vmem:[#allocation13 + $0x1628] sm:$0xff]  ;;  %v10872_v46 = vld [vmem:[#allocation13 + $0x1738] sm:$0xff]  ;;  %v10871_v56 = vld [vmem:[#allocation13 + $0x1730] sm:$0xff] }
 0x6f5   : > { %10315 = vmatpush1.msra.mxu1 %v10121_v27  ;;  %10764 = vmatpush1.msra.mxu0 %v10501_v11  ;;  %v7037_v37 = vcombine.low %v16542_v55, %v16544_v54  ;;  %v10491_v11 = vld [vmem:[#allocation13 + $0x1620] sm:$0xff]  ;;  %v11261_v54 = vld [vmem:[#allocation13 + $0x1890] sm:$0xff] }
 0x6f6   : > { %10316 = vmatprep.subr.mxu1 %v10114_v52  ;;  %10765 = vmatprep.subr.mxu0 %v10494_v7  ;;  %v6680_v51 = vrot.slane %v6658_v34, %v16032_v47  ;;  %v10890_v34 = vld [vmem:[#allocation13 + $0x17c8] sm:$0xff]  ;;  %v10881_v55 = vld [vmem:[#allocation13 + $0x1780] sm:$0xff] }
 0x6f7   : > { %10317 = vmatpush1.msra.mxu1 %v10113_v12  ;;  %10350 = vmatprep.mubr.f32.mxu1 %v15254_v14 }
 0x6f8   : > { %10766 = vmatpush1.msra.mxu0 %v10493_v53  ;;  %10799 = vmatprep.mubr.f32.mxu0 %v15254_v14  ;;  %v6689_v39 = vcombine.low %v6680_v51, %v6687_v38  ;;  %v7065_v53 = vrot.slane %v7037_v37, %v16032_v47  ;;  %v11270_v38 = vld [vmem:[#allocation13 + $0x18d8] sm:$0xff]  ;;  %v10889_v51 = vld [vmem:[#allocation13 + $0x17c0] sm:$0xff] }
 0x6f9   : > { %14549 = vmatmul.mubr.msk.f32.vlgmr.msra.gmra.mxu1 %vm2202_vm5, %v16486_v60  ;;  %10546 = vmatprep.subr.mxu1 %v10512_v50  ;;  %v10495_v60 = vld [vmem:[#allocation13 + $0x1640] sm:$0xff] }
 0x6fa   : > { %14554 = vmatmul.mubr.msk.f32.vlgmr.msra.gmra.mxu0 %vm2202_vm5, %v16534_v1  ;;  %10995 = vmatprep.subr.mxu0 %v10892_v8  ;;  %v6703_v18 = vrot.slane %v6689_v39, %v16032_v47  ;;  %v11269_v8 = vld [vmem:[#allocation13 + $0x18d0] sm:$0xff]  ;;  %v11262_v39 = vld [vmem:[#allocation13 + $0x1898] sm:$0xff] }
 0x6fb   : > { %10547 = vmatpush1.msra.mxu1 %v10511_v30  ;;  %10996 = vmatpush1.msra.mxu0 %v10891_v31  ;;  %v6808_v9 = vpop.f32.mrf.mxu1  ;;  %v10882_v31 = vld [vmem:[#allocation13 + $0x1788] sm:$0xff] }
 0x6fc   : > { %10548 = vmatprep.subr.mxu1 %v10504_v43  ;;  %10997 = vmatprep.subr.mxu0 %v10884_v10  ;;  %v6704_v63 = vcombine.low %v6696_v61, %v6703_v18  ;;  %v16561_v62 = vpop.f32.mrf.mxu0  ;;  %v10874_v10 = vld [vmem:[#allocation13 + $0x1748] sm:$0xff]  ;;  %v11253_v61 = vld [vmem:[#allocation13 + $0x1850] sm:$0xff] }
 0x6fd   : > { %10549 = vmatpush1.msra.mxu1 %v10503_v41  ;;  %10998 = vmatpush1.msra.mxu0 %v10883_v44  ;;  %v6810_v21 = vpop.f32.mrf.mxu1  ;;  %v11254_v41 = vld [vmem:[#allocation13 + $0x1858] sm:$0xff] }
 0x6fe   : > { %10550 = vmatprep.subr.mxu1 %v10496_v6  ;;  %10999 = vmatprep.subr.mxu0 %v10876_v5  ;;  %v16564_v13 = vadd.f32 %v6704_v63, %v16516_v17  ;;  %v7034_v36 = vcombine.low %v6808_v9, %v6810_v21  ;;  %v16566_v22 = vpop.f32.mrf.mxu0  ;;  %v10866_v5 = vld [vmem:[#allocation13 + $0x1708] sm:$0xff]  ;;  %v11246_v9 = vld [vmem:[#allocation13 + $0x1818] sm:$0xff]  ;;  %v11245_v21 = vld [vmem:[#allocation13 + $0x1810] sm:$0xff] }
 0x6ff   : > { %10551 = vmatpush1.msra.mxu1 %v10495_v60  ;;  %11000 = vmatpush1.msra.mxu0 %v10875_v0  ;;  %v7413_v4 = vcombine.low %v16561_v62, %v16566_v22  ;;  %v10865_v0 = vld [vmem:[#allocation13 + $0x1700] sm:$0xff]  ;;  %v10886_v22 = vld [vmem:[#allocation13 + $0x17a8] sm:$0xff] }
 0x700   : > { %10552 = vmatprep.subr.mxu1 %v10488_v28  ;;  %11001 = vmatprep.subr.mxu0 %v10868_v35  ;;  %v16577_v17 = vrot.slane %v7034_v36, %v16032_v47  ;;  %v10894_v36 = vld [vmem:[#allocation13 + $0x17e8] sm:$0xff] }
 0x701   : > { %10553 = vmatpush1.msra.mxu1 %v10487_v49  ;;  %10586 = vmatprep.mubr.f32.mxu1 %v15254_v14 }
 0x702   : > { %11002 = vmatpush1.msra.mxu0 %v10867_v42  ;;  %11035 = vmatprep.mubr.f32.mxu0 %v15254_v14  ;;  %v7066_v3 = vcombine.low %v16577_v17, %v16574_v25  ;;  %v16622_v42 = vrot.slane %v7413_v4, %v16032_v47  ;;  %v16629_v25 = vmul.f32 0.0625, %v16019_v19  ;;  %v10893_v17 = vld [vmem:[#allocation13 + $0x17e0] sm:$0xff]  ;;  %v11266_v4 = vld [vmem:[#allocation13 + $0x18b8] sm:$0xff] }
 0x703   : > { %14551 = vmatmul.mubr.msk.f32.vlgmr.msra.gmra.mxu1 %vm2202_vm5, %v16534_v1  ;;  %10688 = vmatprep.subr.mxu1 %v10516_v16  ;;  %v11274_v16 = vld [vmem:[#allocation13 + $0x18f8] sm:$0xff]  ;;  %v10885_v19 = vld [vmem:[#allocation13 + $0x17a0] sm:$0xff] }
 0x704   : > { %14556 = vmatmul.mubr.msk.f32.vlgmr.msra.gmra.mxu0 %vm2202_vm5, %v16582_v23  ;;  %11137 = vmatprep.subr.mxu0 %v10896_v29  ;;  %v7074_v37 = vrot.slane %v7066_v3, %v16032_v47  ;;  %v11273_v29 = vld [vmem:[#allocation13 + $0x18f0] sm:$0xff]  ;;  %v11258_v3 = vld [vmem:[#allocation13 + $0x1878] sm:$0xff] }
 0x705   : > { %10689 = vmatpush1.msra.mxu1 %v10515_v33  ;;  %11138 = vmatpush1.msra.mxu0 %v10895_v58  ;;  %v6950_v15 = vpop.f32.mrf.mxu1  ;;  %v11265_v33 = vld [vmem:[#allocation13 + $0x18b0] sm:$0xff]  ;;  %v10878_v58 = vld [vmem:[#allocation13 + $0x1768] sm:$0xff] }
 0x706   : > { %10690 = vmatprep.subr.mxu1 %v10508_v2  ;;  %11139 = vmatprep.subr.mxu0 %v10888_v45  ;;  %v16590_v26 = vpop.f32.mrf.mxu0  ;;  %v10877_v45 = vld [vmem:[#allocation13 + $0x1760] sm:$0xff] }
 0x707   : > { %10691 = vmatpush1.msra.mxu1 %v10507_v57  ;;  %11140 = vmatpush1.msra.mxu0 %v10887_v20  ;;  %v6952_v27 = vpop.f32.mrf.mxu1  ;;  %v11257_v57 = vld [vmem:[#allocation13 + $0x1870] sm:$0xff] }
 0x708   : > { %10692 = vmatprep.subr.mxu1 %v10500_v48  ;;  %11141 = vmatprep.subr.mxu0 %v10880_v24  ;;  %v7036_v52 = vcombine.low %v6950_v15, %v6952_v27  ;;  %v16592_v7 = vpop.f32.mrf.mxu0  ;;  %v10870_v48 = vld [vmem:[#allocation13 + $0x1728] sm:$0xff]  ;;  %v11250_v24 = vld [vmem:[#allocation13 + $0x1838] sm:$0xff] }
 0x709   : > { %10693 = vmatpush1.msra.mxu1 %v10499_v59  ;;  %11142 = vmatpush1.msra.mxu0 %v10879_v32  ;;  %v7415_v12 = vcombine.low %v16590_v26, %v16592_v7  ;;  %v10869_v59 = vld [vmem:[#allocation13 + $0x1720] sm:$0xff]  ;;  %v11639_v7 = vld [vmem:[#allocation13 + $0x1990] sm:$0xff] }
 0x70a   : > { %10694 = vmatprep.subr.mxu1 %v10492_v40  ;;  %11143 = vmatprep.subr.mxu0 %v10872_v46  ;;  %v7058_v50 = vrot.slane %v7036_v52, %v16032_v47  ;;  %v11249_v46 = vld [vmem:[#allocation13 + $0x1830] sm:$0xff]  ;;  %v11259_v26 = vld [vmem:[#allocation13 + $0x1880] sm:$0xff] }
 0x70b   : > { %10695 = vmatpush1.msra.mxu1 %v10491_v11  ;;  %10728 = vmatprep.mubr.f32.mxu1 %v15254_v14  ;;  %v11268_v11 = vld [vmem:[#allocation13 + $0x18c8] sm:$0xff]  ;;  %v7443_v52 = vrot.slane %v7415_v12, %v16032_v47 }
 0x70c   : > { %11144 = vmatpush1.msra.mxu0 %v10871_v56  ;;  %11177 = vmatprep.mubr.f32.mxu0 %v15254_v14  ;;  %v7067_v30 = vcombine.low %v7058_v50, %v7065_v53  ;;  %v11267_v53 = vld [vmem:[#allocation13 + $0x18c0] sm:$0xff]  ;;  %v11647_v50 = vld [vmem:[#allocation13 + $0x19d0] sm:$0xff] }
 0x70d   : > { %14553 = vmatmul.mubr.msk.f32.vlgmr.msra.gmra.mxu1 %vm2202_vm5, %v16534_v1  ;;  %10924 = vmatprep.subr.mxu1 %v10890_v34  ;;  %v10873_v1 = vld [vmem:[#allocation13 + $0x1740] sm:$0xff]  ;;  %v11648_v34 = vld [vmem:[#allocation13 + $0x19d8] sm:$0xff] }
 0x70e   : > { %14558 = vmatmul.mubr.msk.f32.vlgmr.msra.gmra.mxu0 %vm2202_vm5, %v16582_v23  ;;  %11373 = vmatprep.subr.mxu0 %v11270_v38  ;;  %v7081_v43 = vrot.slane %v7067_v30, %v16032_v47 }
 0x70f   : > { %10925 = vmatpush1.msra.mxu1 %v10889_v51  ;;  %11374 = vmatpush1.msra.mxu0 %v11269_v8  ;;  %v7186_v44 = vpop.f32.mrf.mxu1  ;;  %v11260_v51 = vld [vmem:[#allocation13 + $0x1888] sm:$0xff]  ;;  %v11640_v8 = vld [vmem:[#allocation13 + $0x1998] sm:$0xff] }
 0x710   : > { %10926 = vmatprep.subr.mxu1 %v10882_v31  ;;  %11375 = vmatprep.subr.mxu0 %v11262_v39  ;;  %v7082_v18 = vcombine.low %v7074_v37, %v7081_v43  ;;  %v16609_v6 = vpop.f32.mrf.mxu0  ;;  %v11252_v31 = vld [vmem:[#allocation13 + $0x1848] sm:$0xff]  ;;  %v11632_v39 = vld [vmem:[#allocation13 + $0x1958] sm:$0xff] }
 0x711   : > { %10927 = vmatpush1.msra.mxu1 %v10881_v55  ;;  %11376 = vmatpush1.msra.mxu0 %v11261_v54  ;;  %v7188_v60 = vpop.f32.mrf.mxu1  ;;  %v11631_v54 = vld [vmem:[#allocation13 + $0x1950] sm:$0xff] }
 0x712   : > { %10928 = vmatprep.subr.mxu1 %v10874_v10  ;;  %11377 = vmatprep.subr.mxu0 %v11254_v41  ;;  %v16612_v63 = vadd.f32 %v7082_v18, %v16564_v13  ;;  %v7412_v28 = vcombine.low %v7186_v44, %v7188_v60  ;;  %v16614_v35 = vpop.f32.mrf.mxu0  ;;  %v11244_v10 = vld [vmem:[#allocation13 + $0x1808] sm:$0xff]  ;;  %v11624_v41 = vld [vmem:[#allocation13 + $0x1918] sm:$0xff] }
 0x713   : > { %10929 = vmatpush1.msra.mxu1 %v10873_v1  ;;  %11378 = vmatpush1.msra.mxu0 %v11253_v61  ;;  %v7791_v49 = vcombine.low %v16609_v6, %v16614_v35  ;;  %v11243_v1 = vld [vmem:[#allocation13 + $0x1800] sm:$0xff]  ;;  %v11264_v35 = vld [vmem:[#allocation13 + $0x18a8] sm:$0xff] }
 0x714   : > { %10930 = vmatprep.subr.mxu1 %v10866_v5  ;;  %11379 = vmatprep.subr.mxu0 %v11246_v9  ;;  %v16625_v13 = vrot.slane %v7412_v28, %v16032_v47  ;;  %v11623_v9 = vld [vmem:[#allocation13 + $0x1910] sm:$0xff] }
 0x715   : > { %10931 = vmatpush1.msra.mxu1 %v10865_v0  ;;  %10964 = vmatprep.mubr.f32.mxu1 %v15254_v14  ;;  %v11272_v0 = vld [vmem:[#allocation13 + $0x18e8] sm:$0xff]  ;;  %v16670_v28 = vrot.slane %v7791_v49, %v16032_v47  ;;  %v11644_v49 = vld [vmem:[#allocation13 + $0x19b8] sm:$0xff] }
 0x716   : > { %11380 = vmatpush1.msra.mxu0 %v11245_v21  ;;  %11413 = vmatprep.mubr.f32.mxu0 %v15254_v14  ;;  %v7444_v62 = vcombine.low %v16625_v13, %v16622_v42  ;;  %v11652_v21 = vld [vmem:[#allocation13 + $0x19f8] sm:$0xff]  ;;  %v11271_v42 = vld [vmem:[#allocation13 + $0x18e0] sm:$0xff]  ;;  %v11651_v13 = vld [vmem:[#allocation13 + $0x19f0] sm:$0xff] }
 0x717   : > { %14555 = vmatmul.mubr.msk.f32.vlgmr.msra.gmra.mxu1 %vm2202_vm5, %v16582_v23  ;;  %11066 = vmatprep.subr.mxu1 %v10894_v36  ;;  %v16678_v36 = vrot.slane %v16629_v25, 1 }
 0x718   : > { %14560 = vmatmul.mubr.msk.f32.vlgmr.msra.gmra.mxu0 %vm2202_vm5, %v16629_v25  ;;  %11515 = vmatprep.subr.mxu0 %v11274_v16  ;;  %v7452_v12 = vrot.slane %v7444_v62, %v16032_v47  ;;  %v11263_v16 = vld [vmem:[#allocation13 + $0x18a0] sm:$0xff]  ;;  %v11636_v62 = vld [vmem:[#allocation13 + $0x1978] sm:$0xff] }
 0x719   : > { %11067 = vmatpush1.msra.mxu1 %v10893_v17  ;;  %11516 = vmatpush1.msra.mxu0 %v11273_v29  ;;  %v7328_v2 = vpop.f32.mrf.mxu1  ;;  %v11643_v17 = vld [vmem:[#allocation13 + $0x19b0] sm:$0xff]  ;;  %v11256_v29 = vld [vmem:[#allocation13 + $0x1868] sm:$0xff] }
 0x71a   : > { %11068 = vmatprep.subr.mxu1 %v10886_v22  ;;  %11517 = vmatprep.subr.mxu0 %v11266_v4  ;;  %v16638_v20 = vpop.f32.mrf.mxu0  ;;  %v11255_v4 = vld [vmem:[#allocation13 + $0x1860] sm:$0xff] }
 0x71b   : > { %11069 = vmatpush1.msra.mxu1 %v10885_v19  ;;  %11518 = vmatpush1.msra.mxu0 %v11265_v33  ;;  %v7330_v15 = vpop.f32.mrf.mxu1  ;;  %v11635_v19 = vld [vmem:[#allocation13 + $0x1970] sm:$0xff] }
 0x71c   : > { %11070 = vmatprep.subr.mxu1 %v10878_v58  ;;  %11519 = vmatprep.subr.mxu0 %v11258_v3  ;;  %v7414_v32 = vcombine.low %v7328_v2, %v7330_v15  ;;  %v16640_v40 = vpop.f32.mrf.mxu0  ;;  %v11248_v58 = vld [vmem:[#allocation13 + $0x1828] sm:$0xff]  ;;  %v11628_v3 = vld [vmem:[#allocation13 + $0x1938] sm:$0xff] }
 0x71d   : > { %11071 = vmatpush1.msra.mxu1 %v10877_v45  ;;  %11520 = vmatpush1.msra.mxu0 %v11257_v57  ;;  %v7793_v27 = vcombine.low %v16638_v20, %v16640_v40  ;;  %v11247_v45 = vld [vmem:[#allocation13 + $0x1820] sm:$0xff]  ;;  %v12017_v40 = vld [vmem:[#allocation13 + $0x1a90] sm:$0xff] }
 0x71e   : > { %11072 = vmatprep.subr.mxu1 %v10870_v48  ;;  %11521 = vmatprep.subr.mxu0 %v11250_v24  ;;  %v7436_v56 = vrot.slane %v7414_v32, %v16032_v47  ;;  %v11627_v24 = vld [vmem:[#allocation13 + $0x1930] sm:$0xff]  ;;  %v11637_v20 = vld [vmem:[#allocation13 + $0x1980] sm:$0xff] }
 0x71f   : > { %11073 = vmatpush1.msra.mxu1 %v10869_v59  ;;  %11106 = vmatprep.mubr.f32.mxu1 %v15254_v14  ;;  %v11646_v59 = vld [vmem:[#allocation13 + $0x19c8] sm:$0xff]  ;;  %v7821_v32 = vrot.slane %v7793_v27, %v16032_v47 }
 0x720   : > { %11522 = vmatpush1.msra.mxu0 %v11249_v46  ;;  %11555 = vmatprep.mubr.f32.mxu0 %v15254_v14  ;;  %v7445_v38 = vcombine.low %v7436_v56, %v7443_v52  ;;  %v11645_v52 = vld [vmem:[#allocation13 + $0x19c0] sm:$0xff]  ;;  %v12025_v56 = vld [vmem:[#allocation13 + $0x1ad0] sm:$0xff] }
 0x721   : > { %14557 = vmatmul.mubr.msk.f32.vlgmr.msra.gmra.mxu1 %vm2202_vm5, %v16582_v23  ;;  %11302 = vmatprep.subr.mxu1 %v11268_v11  ;;  %v11251_v23 = vld [vmem:[#allocation13 + $0x1840] sm:$0xff]  ;;  %v12026_v11 = vld [vmem:[#allocation13 + $0x1ad8] sm:$0xff] }
 0x722   : > { %14562 = vmatmul.mubr.msk.f32.vlgmr.msra.gmra.mxu0 %vm2202_vm5, %v16629_v25  ;;  %11751 = vmatprep.subr.mxu0 %v11648_v34  ;;  %v7459_v30 = vrot.slane %v7445_v38, %v16032_v47 }
 0x723   : > { %11303 = vmatpush1.msra.mxu1 %v11267_v53  ;;  %11752 = vmatpush1.msra.mxu0 %v11647_v50  ;;  %v7564_v55 = vpop.f32.mrf.mxu1  ;;  %v11638_v53 = vld [vmem:[#allocation13 + $0x1988] sm:$0xff]  ;;  %v12018_v50 = vld [vmem:[#allocation13 + $0x1a98] sm:$0xff] }
 0x724   : > { %11304 = vmatprep.subr.mxu1 %v11260_v51  ;;  %11753 = vmatprep.subr.mxu0 %v11640_v8  ;;  %v7460_v37 = vcombine.low %v7452_v12, %v7459_v30  ;;  %v16657_v43 = vpop.f32.mrf.mxu0  ;;  %v11630_v51 = vld [vmem:[#allocation13 + $0x1948] sm:$0xff]  ;;  %v12010_v8 = vld [vmem:[#allocation13 + $0x1a58] sm:$0xff]  ;;  %v12009_v12 = vld [vmem:[#allocation13 + $0x1a50] sm:$0xff] }
 0x725   : > { %11305 = vmatpush1.msra.mxu1 %v11259_v26  ;;  %11754 = vmatpush1.msra.mxu0 %v11639_v7  ;;  %v7566_v44 = vpop.f32.mrf.mxu1  ;;  %v11629_v7 = vld [vmem:[#allocation13 + $0x1940] sm:$0xff] }
 0x726   : > { %11306 = vmatprep.subr.mxu1 %v11252_v31  ;;  %11755 = vmatprep.subr.mxu0 %v11632_v39  ;;  %v16660_v61 = vadd.f32 %v7460_v37, %v16612_v63  ;;  %v7790_v18 = vcombine.low %v7564_v55, %v7566_v44  ;;  %v16662_v5 = vpop.f32.mrf.mxu0  ;;  %v11622_v39 = vld [vmem:[#allocation13 + $0x1908] sm:$0xff]  ;;  %v12002_v55 = vld [vmem:[#allocation13 + $0x1a18] sm:$0xff]  ;;  %v12001_v44 = vld [vmem:[#allocation13 + $0x1a10] sm:$0xff] }
 0x727   : > { %11307 = vmatpush1.msra.mxu1 %v11251_v23  ;;  %11756 = vmatpush1.msra.mxu0 %v11631_v54  ;;  %v8169_v60 = vcombine.low %v16657_v43, %v16662_v5  ;;  %v11621_v54 = vld [vmem:[#allocation13 + $0x1900] sm:$0xff]  ;;  %v11642_v5 = vld [vmem:[#allocation13 + $0x19a8] sm:$0xff] }
 0x728   : > { %11308 = vmatprep.subr.mxu1 %v11244_v10  ;;  %11757 = vmatprep.subr.mxu0 %v11624_v41  ;;  %v16673_v63 = vrot.slane %v7790_v18, %v16032_v47  ;;  %v11650_v18 = vld [vmem:[#allocation13 + $0x19e8] sm:$0xff] }
 0x729   : > { %11309 = vmatpush1.msra.mxu1 %v11243_v1  ;;  %11342 = vmatprep.mubr.f32.mxu1 %v15254_v14 }
 0x72a   : > { %11758 = vmatpush1.msra.mxu0 %v11623_v9  ;;  %11791 = vmatprep.mubr.f32.mxu0 %v15254_v14  ;;  %v7822_v6 = vcombine.low %v16673_v63, %v16670_v28  ;;  %v16718_v9 = vrot.slane %v8169_v60, %v16032_v47  ;;  %v16726_v28 = vrot.slane %v16629_v25, 2  ;;  %v11649_v63 = vld [vmem:[#allocation13 + $0x19e0] sm:$0xff]  ;;  %v12022_v60 = vld [vmem:[#allocation13 + $0x1ab8] sm:$0xff] }
 0x72b   : > { %14559 = vmatmul.mubr.msk.f32.vlgmr.msra.gmra.mxu1 %vm2202_vm5, %v16629_v25  ;;  %11444 = vmatprep.subr.mxu1 %v11272_v0  ;;  %v12030_v0 = vld [vmem:[#allocation13 + $0x1af8] sm:$0xff] }
 0x72c   : > { %14564 = vmatmul.mubr.msk.f32.vlgmr.msra.gmra.mxu0 %vm2202_vm5, %v16678_v36  ;;  %11893 = vmatprep.subr.mxu0 %v11652_v21  ;;  %v7830_v27 = vrot.slane %v7822_v6, %v16032_v47  ;;  %v12029_v21 = vld [vmem:[#allocation13 + $0x1af0] sm:$0xff]  ;;  %v11634_v6 = vld [vmem:[#allocation13 + $0x1968] sm:$0xff] }
 0x72d   : > { %11445 = vmatpush1.msra.mxu1 %v11271_v42  ;;  %11894 = vmatpush1.msra.mxu0 %v11651_v13  ;;  %v7706_v22 = vpop.f32.mrf.mxu1  ;;  %v11641_v42 = vld [vmem:[#allocation13 + $0x19a0] sm:$0xff]  ;;  %v12021_v13 = vld [vmem:[#allocation13 + $0x1ab0] sm:$0xff] }
 0x72e   : > { %11446 = vmatprep.subr.mxu1 %v11264_v35  ;;  %11895 = vmatprep.subr.mxu0 %v11644_v49  ;;  %v16686_v33 = vpop.f32.mrf.mxu0  ;;  %v12014_v35 = vld [vmem:[#allocation13 + $0x1a78] sm:$0xff] }
 0x72f   : > { %11447 = vmatpush1.msra.mxu1 %v11263_v16  ;;  %11896 = vmatpush1.msra.mxu0 %v11643_v17  ;;  %v7708_v2 = vpop.f32.mrf.mxu1  ;;  %v11633_v16 = vld [vmem:[#allocation13 + $0x1960] sm:$0xff]  ;;  %v12013_v17 = vld [vmem:[#allocation13 + $0x1a70] sm:$0xff] }
 0x730   : > { %11448 = vmatprep.subr.mxu1 %v11256_v29  ;;  %11897 = vmatprep.subr.mxu0 %v11636_v62  ;;  %v7792_v57 = vcombine.low %v7706_v22, %v7708_v2  ;;  %v16688_v48 = vpop.f32.mrf.mxu0  ;;  %v11626_v62 = vld [vmem:[#allocation13 + $0x1928] sm:$0xff]  ;;  %v12006_v22 = vld [vmem:[#allocation13 + $0x1a38] sm:$0xff]  ;;  %v12005_v2 = vld [vmem:[#allocation13 + $0x1a30] sm:$0xff] }
 0x731   : > { %11449 = vmatpush1.msra.mxu1 %v11255_v4  ;;  %11898 = vmatpush1.msra.mxu0 %v11635_v19  ;;  %v8171_v15 = vcombine.low %v16686_v33, %v16688_v48  ;;  %v11625_v19 = vld [vmem:[#allocation13 + $0x1920] sm:$0xff]  ;;  %v12395_v48 = vld [vmem:[#allocation13 + $0x1b90] sm:$0xff] }
 0x732   : > { %11450 = vmatprep.subr.mxu1 %v11248_v58  ;;  %11899 = vmatprep.subr.mxu0 %v11628_v3  ;;  %v7814_v46 = vrot.slane %v7792_v57, %v16032_v47  ;;  %v12024_v57 = vld [vmem:[#allocation13 + $0x1ac8] sm:$0xff]  ;;  %v12015_v33 = vld [vmem:[#allocation13 + $0x1a80] sm:$0xff] }
 0x733   : > { %11451 = vmatpush1.msra.mxu1 %v11247_v45  ;;  %11484 = vmatprep.mubr.f32.mxu1 %v15254_v14 }
 0x734   : > { %11900 = vmatpush1.msra.mxu0 %v11627_v24  ;;  %11933 = vmatprep.mubr.f32.mxu0 %v15254_v14  ;;  %v7823_v34 = vcombine.low %v7814_v46, %v7821_v32  ;;  %v8199_v24 = vrot.slane %v8171_v15, %v16032_v47  ;;  %v12404_v32 = vld [vmem:[#allocation13 + $0x1bd8] sm:$0xff]  ;;  %v12023_v46 = vld [vmem:[#allocation13 + $0x1ac0] sm:$0xff] }
 0x735   : > { %14561 = vmatmul.mubr.msk.f32.vlgmr.msra.gmra.mxu1 %vm2202_vm5, %v16629_v25  ;;  %11680 = vmatprep.subr.mxu1 %v11646_v59 }
 0x736   : > { %14566 = vmatmul.mubr.msk.f32.vlgmr.msra.gmra.mxu0 %vm2202_vm5, %v16678_v36  ;;  %12129 = vmatprep.subr.mxu0 %v12026_v11  ;;  %v7837_v38 = vrot.slane %v7823_v34, %v16032_v47  ;;  %v12403_v11 = vld [vmem:[#allocation13 + $0x1bd0] sm:$0xff]  ;;  %v12396_v34 = vld [vmem:[#allocation13 + $0x1b98] sm:$0xff] }
 0x737   : > { %11681 = vmatpush1.msra.mxu1 %v11645_v52  ;;  %12130 = vmatpush1.msra.mxu0 %v12025_v56  ;;  %v7942_v26 = vpop.f32.mrf.mxu1  ;;  %v12016_v56 = vld [vmem:[#allocation13 + $0x1a88] sm:$0xff] }
 0x738   : > { %11682 = vmatprep.subr.mxu1 %v11638_v53  ;;  %12131 = vmatprep.subr.mxu0 %v12018_v50  ;;  %v7838_v30 = vcombine.low %v7830_v27, %v7837_v38  ;;  %v16705_v31 = vpop.f32.mrf.mxu0  ;;  %v12008_v50 = vld [vmem:[#allocation13 + $0x1a48] sm:$0xff]  ;;  %v12387_v27 = vld [vmem:[#allocation13 + $0x1b50] sm:$0xff] }
 0x739   : > { %11683 = vmatpush1.msra.mxu1 %v11637_v20  ;;  %12132 = vmatpush1.msra.mxu0 %v12017_v40  ;;  %v7944_v23 = vpop.f32.mrf.mxu1  ;;  %v12388_v20 = vld [vmem:[#allocation13 + $0x1b58] sm:$0xff] }
 0x73a   : > { %11684 = vmatprep.subr.mxu1 %v11630_v51  ;;  %12133 = vmatprep.subr.mxu0 %v12010_v8  ;;  %v16708_v37 = vadd.f32 %v7838_v30, %v16660_v61  ;;  %v8168_v10 = vcombine.low %v7942_v26, %v7944_v23  ;;  %v16710_v41 = vpop.f32.mrf.mxu0  ;;  %v12000_v8 = vld [vmem:[#allocation13 + $0x1a08] sm:$0xff]  ;;  %v12380_v26 = vld [vmem:[#allocation13 + $0x1b18] sm:$0xff]  ;;  %v12379_v23 = vld [vmem:[#allocation13 + $0x1b10] sm:$0xff] }
 0x73b   : > { %11685 = vmatpush1.msra.mxu1 %v11629_v7  ;;  %12134 = vmatpush1.msra.mxu0 %v12009_v12  ;;  %v8547_v1 = vcombine.low %v16705_v31, %v16710_v41  ;;  %v11999_v12 = vld [vmem:[#allocation13 + $0x1a00] sm:$0xff]  ;;  %v12020_v41 = vld [vmem:[#allocation13 + $0x1aa8] sm:$0xff] }
 0x73c   : > { %11686 = vmatprep.subr.mxu1 %v11622_v39  ;;  %12135 = vmatprep.subr.mxu0 %v12002_v55  ;;  %v16721_v61 = vrot.slane %v8168_v10, %v16032_v47  ;;  %v12028_v10 = vld [vmem:[#allocation13 + $0x1ae8] sm:$0xff] }
 0x73d   : > { %11687 = vmatpush1.msra.mxu1 %v11621_v54  ;;  %11720 = vmatprep.mubr.f32.mxu1 %v15254_v14 }
 0x73e   : > { %12136 = vmatpush1.msra.mxu0 %v12001_v44  ;;  %12169 = vmatprep.mubr.f32.mxu0 %v15254_v14  ;;  %v8200_v43 = vcombine.low %v16721_v61, %v16718_v9  ;;  %v16766_v44 = vrot.slane %v8547_v1, %v16032_v47  ;;  %v16774_v9 = vrot.slane %v16629_v25, 3  ;;  %v12027_v61 = vld [vmem:[#allocation13 + $0x1ae0] sm:$0xff]  ;;  %v12400_v1 = vld [vmem:[#allocation13 + $0x1bb8] sm:$0xff] }
 0x73f   : > { %14563 = vmatmul.mubr.msk.f32.vlgmr.msra.gmra.mxu1 %vm2202_vm5, %v16678_v36  ;;  %11822 = vmatprep.subr.mxu1 %v11650_v18  ;;  %v12408_v18 = vld [vmem:[#allocation13 + $0x1bf8] sm:$0xff] }
 0x740   : > { %14568 = vmatmul.mubr.msk.f32.vlgmr.msra.gmra.mxu0 %vm2202_vm5, %v16726_v28  ;;  %12271 = vmatprep.subr.mxu0 %v12030_v0  ;;  %v8208_v15 = vrot.slane %v8200_v43, %v16032_v47  ;;  %v12407_v0 = vld [vmem:[#allocation13 + $0x1bf0] sm:$0xff]  ;;  %v12012_v43 = vld [vmem:[#allocation13 + $0x1a68] sm:$0xff] }
 0x741   : > { %11823 = vmatpush1.msra.mxu1 %v11649_v63  ;;  %12272 = vmatpush1.msra.mxu0 %v12029_v21  ;;  %v8084_v49 = vpop.f32.mrf.mxu1  ;;  %v12019_v63 = vld [vmem:[#allocation13 + $0x1aa0] sm:$0xff]  ;;  %v12399_v21 = vld [vmem:[#allocation13 + $0x1bb0] sm:$0xff] }
 0x742   : > { %11824 = vmatprep.subr.mxu1 %v11642_v5  ;;  %12273 = vmatprep.subr.mxu0 %v12022_v60  ;;  %v16734_v29 = vpop.f32.mrf.mxu0  ;;  %v12392_v5 = vld [vmem:[#allocation13 + $0x1b78] sm:$0xff] }
 0x743   : > { %11825 = vmatpush1.msra.mxu1 %v11641_v42  ;;  %12274 = vmatpush1.msra.mxu0 %v12021_v13  ;;  %v8086_v4 = vpop.f32.mrf.mxu1  ;;  %v12011_v42 = vld [vmem:[#allocation13 + $0x1a60] sm:$0xff]  ;;  %v12391_v13 = vld [vmem:[#allocation13 + $0x1b70] sm:$0xff] }
 0x744   : > { %11826 = vmatprep.subr.mxu1 %v11634_v6  ;;  %12275 = vmatprep.subr.mxu0 %v12014_v35  ;;  %v8170_v58 = vcombine.low %v8084_v49, %v8086_v4  ;;  %v16736_v3 = vpop.f32.mrf.mxu0  ;;  %v12004_v35 = vld [vmem:[#allocation13 + $0x1a28] sm:$0xff]  ;;  %v12384_v49 = vld [vmem:[#allocation13 + $0x1b38] sm:$0xff]  ;;  %v12383_v4 = vld [vmem:[#allocation13 + $0x1b30] sm:$0xff] }
 0x745   : > { %11827 = vmatpush1.msra.mxu1 %v11633_v16  ;;  %12276 = vmatpush1.msra.mxu0 %v12013_v17  ;;  %v8549_v45 = vcombine.low %v16734_v29, %v16736_v3  ;;  %v12003_v17 = vld [vmem:[#allocation13 + $0x1a20] sm:$0xff]  ;;  %v12773_v3 = vld [vmem:[#allocation13 + $0x1c90] sm:$0xff] }
 0x746   : > { %11828 = vmatprep.subr.mxu1 %v11626_v62  ;;  %12277 = vmatprep.subr.mxu0 %v12006_v22  ;;  %v8192_v59 = vrot.slane %v8170_v58, %v16032_v47  ;;  %v12402_v58 = vld [vmem:[#allocation13 + $0x1bc8] sm:$0xff]  ;;  %v12393_v29 = vld [vmem:[#allocation13 + $0x1b80] sm:$0xff] }
 0x747   : > { %11829 = vmatpush1.msra.mxu1 %v11625_v19  ;;  %11862 = vmatprep.mubr.f32.mxu1 %v15254_v14 }
 0x748   : > { %12278 = vmatpush1.msra.mxu0 %v12005_v2  ;;  %12311 = vmatprep.mubr.f32.mxu0 %v15254_v14  ;;  %v8201_v52 = vcombine.low %v8192_v59, %v8199_v24  ;;  %v8577_v2 = vrot.slane %v8549_v45, %v16032_v47  ;;  %v12782_v24 = vld [vmem:[#allocation13 + $0x1cd8] sm:$0xff]  ;;  %v12401_v59 = vld [vmem:[#allocation13 + $0x1bc0] sm:$0xff] }
 0x749   : > { %14565 = vmatmul.mubr.msk.f32.vlgmr.msra.gmra.mxu1 %vm2202_vm5, %v16678_v36  ;;  %12058 = vmatprep.subr.mxu1 %v12024_v57  ;;  %v12007_v36 = vld [vmem:[#allocation13 + $0x1a40] sm:$0xff] }
 0x74a   : > { %14570 = vmatmul.mubr.msk.f32.vlgmr.msra.gmra.mxu0 %vm2202_vm5, %v16726_v28  ;;  %12507 = vmatprep.subr.mxu0 %v12404_v32  ;;  %v8215_v53 = vrot.slane %v8201_v52, %v16032_v47  ;;  %v12781_v32 = vld [vmem:[#allocation13 + $0x1cd0] sm:$0xff]  ;;  %v12774_v52 = vld [vmem:[#allocation13 + $0x1c98] sm:$0xff] }
 0x74b   : > { %12059 = vmatpush1.msra.mxu1 %v12023_v46  ;;  %12508 = vmatpush1.msra.mxu0 %v12403_v11  ;;  %v8320_v40 = vpop.f32.mrf.mxu1  ;;  %v12394_v11 = vld [vmem:[#allocation13 + $0x1b88] sm:$0xff] }
 0x74c   : > { %12060 = vmatprep.subr.mxu1 %v12016_v56  ;;  %12509 = vmatprep.subr.mxu0 %v12396_v34  ;;  %v8216_v38 = vcombine.low %v8208_v15, %v8215_v53  ;;  %v16753_v51 = vpop.f32.mrf.mxu0  ;;  %v12386_v34 = vld [vmem:[#allocation13 + $0x1b48] sm:$0xff]  ;;  %v12765_v15 = vld [vmem:[#allocation13 + $0x1c50] sm:$0xff] }
 0x74d   : > { %12061 = vmatpush1.msra.mxu1 %v12015_v33  ;;  %12510 = vmatpush1.msra.mxu0 %v12395_v48  ;;  %v8322_v7 = vpop.f32.mrf.mxu1  ;;  %v12766_v33 = vld [vmem:[#allocation13 + $0x1c58] sm:$0xff] }
 0x74e   : > { %12062 = vmatprep.subr.mxu1 %v12008_v50  ;;  %12511 = vmatprep.subr.mxu0 %v12388_v20  ;;  %v16756_v30 = vadd.f32 %v8216_v38, %v16708_v37  ;;  %v8546_v39 = vcombine.low %v8320_v40, %v8322_v7  ;;  %v16758_v55 = vpop.f32.mrf.mxu0  ;;  %v12378_v20 = vld [vmem:[#allocation13 + $0x1b08] sm:$0xff]  ;;  %v12758_v40 = vld [vmem:[#allocation13 + $0x1c18] sm:$0xff]  ;;  %v12757_v7 = vld [vmem:[#allocation13 + $0x1c10] sm:$0xff] }
 0x74f   : > { %12063 = vmatpush1.msra.mxu1 %v12007_v36  ;;  %12512 = vmatpush1.msra.mxu0 %v12387_v27  ;;  %v8925_v54 = vcombine.low %v16753_v51, %v16758_v55  ;;  %v12377_v27 = vld [vmem:[#allocation13 + $0x1b00] sm:$0xff]  ;;  %v12398_v55 = vld [vmem:[#allocation13 + $0x1ba8] sm:$0xff] }
 0x750   : > { %12064 = vmatprep.subr.mxu1 %v12000_v8  ;;  %12513 = vmatprep.subr.mxu0 %v12380_v26  ;;  %v16769_v37 = vrot.slane %v8546_v39, %v16032_v47  ;;  %v12406_v39 = vld [vmem:[#allocation13 + $0x1be8] sm:$0xff] }
 0x751   : > { %12065 = vmatpush1.msra.mxu1 %v11999_v12  ;;  %12098 = vmatprep.mubr.f32.mxu1 %v15254_v14 }
 0x752   : > { %12514 = vmatpush1.msra.mxu0 %v12379_v23  ;;  %12547 = vmatprep.mubr.f32.mxu0 %v15254_v14  ;;  %v8578_v31 = vcombine.low %v16769_v37, %v16766_v44  ;;  %v16814_v23 = vrot.slane %v8925_v54, %v16032_v47  ;;  %v16822_v44 = vrot.slane %v16629_v25, 4  ;;  %v12405_v37 = vld [vmem:[#allocation13 + $0x1be0] sm:$0xff]  ;;  %v12778_v54 = vld [vmem:[#allocation13 + $0x1cb8] sm:$0xff] }
 0x753   : > { %14567 = vmatmul.mubr.msk.f32.vlgmr.msra.gmra.mxu1 %vm2202_vm5, %v16726_v28  ;;  %12200 = vmatprep.subr.mxu1 %v12028_v10  ;;  %v12786_v10 = vld [vmem:[#allocation13 + $0x1cf8] sm:$0xff] }
 0x754   : > { %14572 = vmatmul.mubr.msk.f32.vlgmr.msra.gmra.mxu0 %vm2202_vm5, %v16774_v9  ;;  %12649 = vmatprep.subr.mxu0 %v12408_v18  ;;  %v8586_v45 = vrot.slane %v8578_v31, %v16032_v47  ;;  %v12785_v18 = vld [vmem:[#allocation13 + $0x1cf0] sm:$0xff]  ;;  %v12390_v31 = vld [vmem:[#allocation13 + $0x1b68] sm:$0xff] }
 0x755   : > { %12201 = vmatpush1.msra.mxu1 %v12027_v61  ;;  %12650 = vmatpush1.msra.mxu0 %v12407_v0  ;;  %v8462_v60 = vpop.f32.mrf.mxu1  ;;  %v12397_v61 = vld [vmem:[#allocation13 + $0x1ba0] sm:$0xff]  ;;  %v12777_v0 = vld [vmem:[#allocation13 + $0x1cb0] sm:$0xff] }
 0x756   : > { %12202 = vmatprep.subr.mxu1 %v12020_v41  ;;  %12651 = vmatprep.subr.mxu0 %v12400_v1  ;;  %v16782_v6 = vpop.f32.mrf.mxu0  ;;  %v12770_v41 = vld [vmem:[#allocation13 + $0x1c78] sm:$0xff] }
 0x757   : > { %12203 = vmatpush1.msra.mxu1 %v12019_v63  ;;  %12652 = vmatpush1.msra.mxu0 %v12399_v21  ;;  %v8464_v16 = vpop.f32.mrf.mxu1  ;;  %v12389_v63 = vld [vmem:[#allocation13 + $0x1b60] sm:$0xff]  ;;  %v12769_v21 = vld [vmem:[#allocation13 + $0x1c70] sm:$0xff] }
 0x758   : > { %12204 = vmatprep.subr.mxu1 %v12012_v43  ;;  %12653 = vmatprep.subr.mxu0 %v12392_v5  ;;  %v8548_v62 = vcombine.low %v8462_v60, %v8464_v16  ;;  %v16784_v22 = vpop.f32.mrf.mxu0  ;;  %v12382_v5 = vld [vmem:[#allocation13 + $0x1b28] sm:$0xff]  ;;  %v12762_v60 = vld [vmem:[#allocation13 + $0x1c38] sm:$0xff]  ;;  %v12761_v16 = vld [vmem:[#allocation13 + $0x1c30] sm:$0xff] }
 0x759   : > { %12205 = vmatpush1.msra.mxu1 %v12011_v42  ;;  %12654 = vmatpush1.msra.mxu0 %v12391_v13  ;;  %v8927_v19 = vcombine.low %v16782_v6, %v16784_v22  ;;  %v12381_v13 = vld [vmem:[#allocation13 + $0x1b20] sm:$0xff]  ;;  %v13151_v22 = vld [vmem:[#allocation13 + $0x1d90] sm:$0xff] }
 0x75a   : > { %12206 = vmatprep.subr.mxu1 %v12004_v35  ;;  %12655 = vmatprep.subr.mxu0 %v12384_v49  ;;  %v8570_v57 = vrot.slane %v8548_v62, %v16032_v47  ;;  %v12780_v62 = vld [vmem:[#allocation13 + $0x1cc8] sm:$0xff]  ;;  %v12771_v6 = vld [vmem:[#allocation13 + $0x1c80] sm:$0xff] }
 0x75b   : > { %12207 = vmatpush1.msra.mxu1 %v12003_v17  ;;  %12240 = vmatprep.mubr.f32.mxu1 %v15254_v14 }
 0x75c   : > { %12656 = vmatpush1.msra.mxu0 %v12383_v4  ;;  %12689 = vmatprep.mubr.f32.mxu0 %v15254_v14  ;;  %v8579_v46 = vcombine.low %v8570_v57, %v8577_v2  ;;  %v8955_v4 = vrot.slane %v8927_v19, %v16032_v47  ;;  %v13160_v2 = vld [vmem:[#allocation13 + $0x1dd8] sm:$0xff]  ;;  %v12779_v57 = vld [vmem:[#allocation13 + $0x1cc0] sm:$0xff] }
 0x75d   : > { %14569 = vmatmul.mubr.msk.f32.vlgmr.msra.gmra.mxu1 %vm2202_vm5, %v16726_v28  ;;  %12436 = vmatprep.subr.mxu1 %v12402_v58  ;;  %v12385_v28 = vld [vmem:[#allocation13 + $0x1b40] sm:$0xff] }
 0x75e   : > { %14574 = vmatmul.mubr.msk.f32.vlgmr.msra.gmra.mxu0 %vm2202_vm5, %v16774_v9  ;;  %12885 = vmatprep.subr.mxu0 %v12782_v24  ;;  %v8593_v56 = vrot.slane %v8579_v46, %v16032_v47  ;;  %v13159_v24 = vld [vmem:[#allocation13 + $0x1dd0] sm:$0xff]  ;;  %v13152_v46 = vld [vmem:[#allocation13 + $0x1d98] sm:$0xff] }
 0x75f   : > { %12437 = vmatpush1.msra.mxu1 %v12401_v59  ;;  %12886 = vmatpush1.msra.mxu0 %v12781_v32  ;;  %v8698_v48 = vpop.f32.mrf.mxu1  ;;  %v12772_v32 = vld [vmem:[#allocation13 + $0x1c88] sm:$0xff] }
 0x760   : > { %12438 = vmatprep.subr.mxu1 %v12394_v11  ;;  %12887 = vmatprep.subr.mxu0 %v12774_v52  ;;  %v8594_v53 = vcombine.low %v8586_v45, %v8593_v56  ;;  %v16801_v50 = vpop.f32.mrf.mxu0  ;;  %v12764_v52 = vld [vmem:[#allocation13 + $0x1c48] sm:$0xff]  ;;  %v13143_v45 = vld [vmem:[#allocation13 + $0x1d50] sm:$0xff] }
 0x761   : > { %12439 = vmatpush1.msra.mxu1 %v12393_v29  ;;  %12888 = vmatpush1.msra.mxu0 %v12773_v3  ;;  %v8700_v36 = vpop.f32.mrf.mxu1  ;;  %v13144_v29 = vld [vmem:[#allocation13 + $0x1d58] sm:$0xff] }
 0x762   : > { %12440 = vmatprep.subr.mxu1 %v12386_v34  ;;  %12889 = vmatprep.subr.mxu0 %v12766_v33  ;;  %v16804_v38 = vadd.f32 %v8594_v53, %v16756_v30  ;;  %v8924_v8 = vcombine.low %v8698_v48, %v8700_v36  ;;  %v16806_v26 = vpop.f32.mrf.mxu0  ;;  %v12756_v33 = vld [vmem:[#allocation13 + $0x1c08] sm:$0xff]  ;;  %v13136_v48 = vld [vmem:[#allocation13 + $0x1d18] sm:$0xff]  ;;  %v13135_v36 = vld [vmem:[#allocation13 + $0x1d10] sm:$0xff] }
 0x763   : > { %12441 = vmatpush1.msra.mxu1 %v12385_v28  ;;  %12890 = vmatpush1.msra.mxu0 %v12765_v15  ;;  %v9303_v12 = vcombine.low %v16801_v50, %v16806_v26  ;;  %v12755_v15 = vld [vmem:[#allocation13 + $0x1c00] sm:$0xff]  ;;  %v12776_v26 = vld [vmem:[#allocation13 + $0x1ca8] sm:$0xff] }
 0x764   : > { %12442 = vmatprep.subr.mxu1 %v12378_v20  ;;  %12891 = vmatprep.subr.mxu0 %v12758_v40  ;;  %v16817_v30 = vrot.slane %v8924_v8, %v16032_v47  ;;  %v12784_v8 = vld [vmem:[#allocation13 + $0x1ce8] sm:$0xff] }
 0x765   : > { %12443 = vmatpush1.msra.mxu1 %v12377_v27  ;;  %12476 = vmatprep.mubr.f32.mxu1 %v15254_v14 }
 0x766   : > { %12892 = vmatpush1.msra.mxu0 %v12757_v7  ;;  %12925 = vmatprep.mubr.f32.mxu0 %v15254_v14  ;;  %v8956_v51 = vcombine.low %v16817_v30, %v16814_v23  ;;  %v16862_v7 = vrot.slane %v9303_v12, %v16032_v47  ;;  %v16870_v23 = vrot.slane %v16629_v25, 5  ;;  %v12783_v30 = vld [vmem:[#allocation13 + $0x1ce0] sm:$0xff]  ;;  %v13156_v12 = vld [vmem:[#allocation13 + $0x1db8] sm:$0xff] }
 0x767   : > { %14571 = vmatmul.mubr.msk.f32.vlgmr.msra.gmra.mxu1 %vm2202_vm5, %v16774_v9  ;;  %12578 = vmatprep.subr.mxu1 %v12406_v39  ;;  %v13164_v39 = vld [vmem:[#allocation13 + $0x1df8] sm:$0xff] }
 0x768   : > { %14576 = vmatmul.mubr.msk.f32.vlgmr.msra.gmra.mxu0 %vm2202_vm5, %v16822_v44  ;;  %13027 = vmatprep.subr.mxu0 %v12786_v10  ;;  %v8964_v19 = vrot.slane %v8956_v51, %v16032_v47  ;;  %v13163_v10 = vld [vmem:[#allocation13 + $0x1df0] sm:$0xff]  ;;  %v12768_v51 = vld [vmem:[#allocation13 + $0x1c68] sm:$0xff] }
 0x769   : > { %12579 = vmatpush1.msra.mxu1 %v12405_v37  ;;  %13028 = vmatpush1.msra.mxu0 %v12785_v18  ;;  %v8840_v1 = vpop.f32.mrf.mxu1  ;;  %v12775_v37 = vld [vmem:[#allocation13 + $0x1ca0] sm:$0xff]  ;;  %v13155_v18 = vld [vmem:[#allocation13 + $0x1db0] sm:$0xff] }
 0x76a   : > { %12580 = vmatprep.subr.mxu1 %v12398_v55  ;;  %13029 = vmatprep.subr.mxu0 %v12778_v54  ;;  %v16830_v43 = vpop.f32.mrf.mxu0  ;;  %v13148_v55 = vld [vmem:[#allocation13 + $0x1d78] sm:$0xff] }
 0x76b   : > { %12581 = vmatpush1.msra.mxu1 %v12397_v61  ;;  %13030 = vmatpush1.msra.mxu0 %v12777_v0  ;;  %v8842_v42 = vpop.f32.mrf.mxu1  ;;  %v12767_v61 = vld [vmem:[#allocation13 + $0x1c60] sm:$0xff]  ;;  %v13147_v0 = vld [vmem:[#allocation13 + $0x1d70] sm:$0xff] }
 0x76c   : > { %12582 = vmatprep.subr.mxu1 %v12390_v31  ;;  %13031 = vmatprep.subr.mxu0 %v12770_v41  ;;  %v8926_v35 = vcombine.low %v8840_v1, %v8842_v42  ;;  %v16832_v49 = vpop.f32.mrf.mxu0  ;;  %v12760_v41 = vld [vmem:[#allocation13 + $0x1c28] sm:$0xff]  ;;  %v13140_v1 = vld [vmem:[#allocation13 + $0x1d38] sm:$0xff]  ;;  %v13139_v42 = vld [vmem:[#allocation13 + $0x1d30] sm:$0xff] }
 0x76d   : > { %12583 = vmatpush1.msra.mxu1 %v12389_v63  ;;  %13032 = vmatpush1.msra.mxu0 %v12769_v21  ;;  %v9305_v17 = vcombine.low %v16830_v43, %v16832_v49  ;;  %v12759_v21 = vld [vmem:[#allocation13 + $0x1c20] sm:$0xff]  ;;  %v13529_v49 = vld [vmem:[#allocation13 + $0x1e90] sm:$0xff] }
 0x76e   : > { %12584 = vmatprep.subr.mxu1 %v12382_v5  ;;  %13033 = vmatprep.subr.mxu0 %v12762_v60  ;;  %v8948_v58 = vrot.slane %v8926_v35, %v16032_v47  ;;  %v13158_v35 = vld [vmem:[#allocation13 + $0x1dc8] sm:$0xff]  ;;  %v13149_v43 = vld [vmem:[#allocation13 + $0x1d80] sm:$0xff] }
 0x76f   : > { %12585 = vmatpush1.msra.mxu1 %v12381_v13  ;;  %12618 = vmatprep.mubr.f32.mxu1 %v15254_v14 }
 0x770   : > { %13034 = vmatpush1.msra.mxu0 %v12761_v16  ;;  %13067 = vmatprep.mubr.f32.mxu0 %v15254_v14  ;;  %v8957_v59 = vcombine.low %v8948_v58, %v8955_v4  ;;  %v9333_v16 = vrot.slane %v9305_v17, %v16032_v47  ;;  %v13538_v4 = vld [vmem:[#allocation13 + $0x1ed8] sm:$0xff]  ;;  %v13157_v58 = vld [vmem:[#allocation13 + $0x1dc0] sm:$0xff] }
 0x771   : > { %14573 = vmatmul.mubr.msk.f32.vlgmr.msra.gmra.mxu1 %vm2202_vm5, %v16774_v9  ;;  %12814 = vmatprep.subr.mxu1 %v12780_v62  ;;  %v12763_v9 = vld [vmem:[#allocation13 + $0x1c40] sm:$0xff] }
 0x772   : > { %14578 = vmatmul.mubr.msk.f32.vlgmr.msra.gmra.mxu0 %vm2202_vm5, %v16822_v44  ;;  %13263 = vmatprep.subr.mxu0 %v13160_v2  ;;  %v8971_v11 = vrot.slane %v8957_v59, %v16032_v47  ;;  %v13537_v2 = vld [vmem:[#allocation13 + $0x1ed0] sm:$0xff]  ;;  %v13530_v59 = vld [vmem:[#allocation13 + $0x1e98] sm:$0xff] }
 0x773   : > { %12815 = vmatpush1.msra.mxu1 %v12779_v57  ;;  %13264 = vmatpush1.msra.mxu0 %v13159_v24  ;;  %v9076_v3 = vpop.f32.mrf.mxu1  ;;  %v13150_v24 = vld [vmem:[#allocation13 + $0x1d88] sm:$0xff] }
 0x774   : > { %12816 = vmatprep.subr.mxu1 %v12772_v32  ;;  %13265 = vmatprep.subr.mxu0 %v13152_v46  ;;  %v8972_v56 = vcombine.low %v8964_v19, %v8971_v11  ;;  %v16849_v34 = vpop.f32.mrf.mxu0  ;;  %v13142_v46 = vld [vmem:[#allocation13 + $0x1d48] sm:$0xff]  ;;  %v13521_v19 = vld [vmem:[#allocation13 + $0x1e50] sm:$0xff] }
 0x775   : > { %12817 = vmatpush1.msra.mxu1 %v12771_v6  ;;  %13266 = vmatpush1.msra.mxu0 %v13151_v22  ;;  %v9078_v28 = vpop.f32.mrf.mxu1  ;;  %v13522_v6 = vld [vmem:[#allocation13 + $0x1e58] sm:$0xff] }
 0x776   : > { %12818 = vmatprep.subr.mxu1 %v12764_v52  ;;  %13267 = vmatprep.subr.mxu0 %v13144_v29  ;;  %v16852_v53 = vadd.f32 %v8972_v56, %v16804_v38  ;;  %v9302_v20 = vcombine.low %v9076_v3, %v9078_v28  ;;  %v16854_v40 = vpop.f32.mrf.mxu0  ;;  %v13134_v29 = vld [vmem:[#allocation13 + $0x1d08] sm:$0xff]  ;;  %v13514_v3 = vld [vmem:[#allocation13 + $0x1e18] sm:$0xff]  ;;  %v13513_v28 = vld [vmem:[#allocation13 + $0x1e10] sm:$0xff] }
 0x777   : > { %12819 = vmatpush1.msra.mxu1 %v12763_v9  ;;  %13268 = vmatpush1.msra.mxu0 %v13143_v45  ;;  %v9681_v27 = vcombine.low %v16849_v34, %v16854_v40  ;;  %v13133_v45 = vld [vmem:[#allocation13 + $0x1d00] sm:$0xff]  ;;  %v13154_v40 = vld [vmem:[#allocation13 + $0x1da8] sm:$0xff] }
 0x778   : > { %12820 = vmatprep.subr.mxu1 %v12756_v33  ;;  %13269 = vmatprep.subr.mxu0 %v13136_v48  ;;  %v16865_v38 = vrot.slane %v9302_v20, %v16032_v47  ;;  %v13162_v20 = vld [vmem:[#allocation13 + $0x1de8] sm:$0xff] }
 0x779   : > { %12821 = vmatpush1.msra.mxu1 %v12755_v15  ;;  %12854 = vmatprep.mubr.f32.mxu1 %v15254_v14 }
 0x77a   : > { %13270 = vmatpush1.msra.mxu0 %v13135_v36  ;;  %13303 = vmatprep.mubr.f32.mxu0 %v15254_v14  ;;  %v9334_v50 = vcombine.low %v16865_v38, %v16862_v7  ;;  %v16910_v36 = vrot.slane %v9681_v27, %v16032_v47  ;;  %v16918_v7 = vrot.slane %v16629_v25, 6  ;;  %v13161_v38 = vld [vmem:[#allocation13 + $0x1de0] sm:$0xff]  ;;  %v13534_v27 = vld [vmem:[#allocation13 + $0x1eb8] sm:$0xff] }
 0x77b   : > { %14575 = vmatmul.mubr.msk.f32.vlgmr.msra.gmra.mxu1 %vm2202_vm5, %v16822_v44  ;;  %12956 = vmatprep.subr.mxu1 %v12784_v8  ;;  %v13542_v8 = vld [vmem:[#allocation13 + $0x1ef8] sm:$0xff] }
 0x77c   : > { %14580 = vmatmul.mubr.msk.f32.vlgmr.msra.gmra.mxu0 %vm2202_vm5, %v16870_v23  ;;  %13405 = vmatprep.subr.mxu0 %v13164_v39  ;;  %v9342_v17 = vrot.slane %v9334_v50, %v16032_v47  ;;  %v13541_v39 = vld [vmem:[#allocation13 + $0x1ef0] sm:$0xff]  ;;  %v13146_v50 = vld [vmem:[#allocation13 + $0x1d68] sm:$0xff] }
 0x77d   : > { %12957 = vmatpush1.msra.mxu1 %v12783_v30  ;;  %13406 = vmatpush1.msra.mxu0 %v13163_v10  ;;  %v9218_v54 = vpop.f32.mrf.mxu1  ;;  %v13153_v30 = vld [vmem:[#allocation13 + $0x1da0] sm:$0xff]  ;;  %v13533_v10 = vld [vmem:[#allocation13 + $0x1eb0] sm:$0xff] }
 0x77e   : > { %12958 = vmatprep.subr.mxu1 %v12776_v26  ;;  %13407 = vmatprep.subr.mxu0 %v13156_v12  ;;  %v16878_v31 = vpop.f32.mrf.mxu0  ;;  %v13526_v26 = vld [vmem:[#allocation13 + $0x1e78] sm:$0xff] }
 0x77f   : > { %12959 = vmatpush1.msra.mxu1 %v12775_v37  ;;  %13408 = vmatpush1.msra.mxu0 %v13155_v18  ;;  %v9220_v63 = vpop.f32.mrf.mxu1  ;;  %v13145_v37 = vld [vmem:[#allocation13 + $0x1d60] sm:$0xff]  ;;  %v13525_v18 = vld [vmem:[#allocation13 + $0x1e70] sm:$0xff] }
 0x780   : > { %12960 = vmatprep.subr.mxu1 %v12768_v51  ;;  %13409 = vmatprep.subr.mxu0 %v13148_v55  ;;  %v9304_v5 = vcombine.low %v9218_v54, %v9220_v63  ;;  %v16880_v60 = vpop.f32.mrf.mxu0  ;;  %v13138_v55 = vld [vmem:[#allocation13 + $0x1d28] sm:$0xff]  ;;  %v13518_v54 = vld [vmem:[#allocation13 + $0x1e38] sm:$0xff]  ;;  %v13517_v63 = vld [vmem:[#allocation13 + $0x1e30] sm:$0xff] }
 0x781   : > { %12961 = vmatpush1.msra.mxu1 %v12767_v61  ;;  %13410 = vmatpush1.msra.mxu0 %v13147_v0  ;;  %v9683_v13 = vcombine.low %v16878_v31, %v16880_v60  ;;  %v13137_v0 = vld [vmem:[#allocation13 + $0x1d20] sm:$0xff]  ;;  %v13907_v60 = vld [vmem:[#allocation13 + $0x1f90] sm:$0xff] }
 0x782   : > { %12962 = vmatprep.subr.mxu1 %v12760_v41  ;;  %13411 = vmatprep.subr.mxu0 %v13140_v1  ;;  %v9326_v62 = vrot.slane %v9304_v5, %v16032_v47  ;;  %v13536_v5 = vld [vmem:[#allocation13 + $0x1ec8] sm:$0xff]  ;;  %v13527_v31 = vld [vmem:[#allocation13 + $0x1e80] sm:$0xff] }
 0x783   : > { %12963 = vmatpush1.msra.mxu1 %v12759_v21  ;;  %12996 = vmatprep.mubr.f32.mxu1 %v15254_v14 }
 0x784   : > { %13412 = vmatpush1.msra.mxu0 %v13139_v42  ;;  %13445 = vmatprep.mubr.f32.mxu0 %v15254_v14  ;;  %v9335_v57 = vcombine.low %v9326_v62, %v9333_v16  ;;  %v9711_v42 = vrot.slane %v9683_v13, %v16032_v47  ;;  %v13916_v16 = vld [vmem:[#allocation13 + $0x1fd8] sm:$0xff]  ;;  %v13535_v62 = vld [vmem:[#allocation13 + $0x1ec0] sm:$0xff] }
 0x785   : > { %14577 = vmatmul.mubr.msk.f32.vlgmr.msra.gmra.mxu1 %vm2202_vm5, %v16822_v44  ;;  %13192 = vmatprep.subr.mxu1 %v13158_v35  ;;  %v13141_v44 = vld [vmem:[#allocation13 + $0x1d40] sm:$0xff] }
 0x786   : > { %14582 = vmatmul.mubr.msk.f32.vlgmr.msra.gmra.mxu0 %vm2202_vm5, %v16870_v23  ;;  %13641 = vmatprep.subr.mxu0 %v13538_v4  ;;  %v9349_v32 = vrot.slane %v9335_v57, %v16032_v47  ;;  %v13915_v4 = vld [vmem:[#allocation13 + $0x1fd0] sm:$0xff]  ;;  %v13908_v57 = vld [vmem:[#allocation13 + $0x1f98] sm:$0xff] }
 0x787   : > { %13193 = vmatpush1.msra.mxu1 %v13157_v58  ;;  %13642 = vmatpush1.msra.mxu0 %v13537_v2  ;;  %v9454_v22 = vpop.f32.mrf.mxu1  ;;  %v13528_v2 = vld [vmem:[#allocation13 + $0x1e88] sm:$0xff] }
 0x788   : > { %13194 = vmatprep.subr.mxu1 %v13150_v24  ;;  %13643 = vmatprep.subr.mxu0 %v13530_v59  ;;  %v9350_v11 = vcombine.low %v9342_v17, %v9349_v32  ;;  %v16897_v52 = vpop.f32.mrf.mxu0  ;;  %v13520_v59 = vld [vmem:[#allocation13 + $0x1e48] sm:$0xff]  ;;  %v13899_v17 = vld [vmem:[#allocation13 + $0x1f50] sm:$0xff] }
 0x789   : > { %13195 = vmatpush1.msra.mxu1 %v13149_v43  ;;  %13644 = vmatpush1.msra.mxu0 %v13529_v49  ;;  %v9456_v9 = vpop.f32.mrf.mxu1  ;;  %v13900_v43 = vld [vmem:[#allocation13 + $0x1f58] sm:$0xff] }
 0x78a   : > { %13196 = vmatprep.subr.mxu1 %v13142_v46  ;;  %13645 = vmatprep.subr.mxu0 %v13522_v6  ;;  %v16900_v56 = vadd.f32 %v9350_v11, %v16852_v53  ;;  %v9680_v33 = vcombine.low %v9454_v22, %v9456_v9  ;;  %v16902_v48 = vpop.f32.mrf.mxu0  ;;  %v13512_v6 = vld [vmem:[#allocation13 + $0x1e08] sm:$0xff]  ;;  %v13892_v22 = vld [vmem:[#allocation13 + $0x1f18] sm:$0xff]  ;;  %v13891_v9 = vld [vmem:[#allocation13 + $0x1f10] sm:$0xff] }
 0x78b   : > { %13197 = vmatpush1.msra.mxu1 %v13141_v44  ;;  %13646 = vmatpush1.msra.mxu0 %v13521_v19  ;;  %v10059_v15 = vcombine.low %v16897_v52, %v16902_v48  ;;  %v13511_v19 = vld [vmem:[#allocation13 + $0x1e00] sm:$0xff]  ;;  %v13532_v52 = vld [vmem:[#allocation13 + $0x1ea8] sm:$0xff]  ;;  %v13912_v48 = vld [vmem:[#allocation13 + $0x1fb8] sm:$0xff] }
 0x78c   : > { %13198 = vmatprep.subr.mxu1 %v13134_v29  ;;  %13647 = vmatprep.subr.mxu0 %v13514_v3  ;;  %v16913_v53 = vrot.slane %v9680_v33, %v16032_v47  ;;  %v13540_v33 = vld [vmem:[#allocation13 + $0x1ee8] sm:$0xff] }
 0x78d   : > { %13199 = vmatpush1.msra.mxu1 %v13133_v45  ;;  %13232 = vmatprep.mubr.f32.mxu1 %v15254_v14 }
 0x78e   : > { %13648 = vmatpush1.msra.mxu0 %v13513_v28  ;;  %13681 = vmatprep.mubr.f32.mxu0 %v15254_v14  ;;  %v9712_v34 = vcombine.low %v16913_v53, %v16910_v36  ;;  %v10075_v28 = vrot.slane %v10059_v15, %v16032_v47  ;;  %v16962_v36 = vrot.slane %v16629_v25, 7  ;;  %v13539_v53 = vld [vmem:[#allocation13 + $0x1ee0] sm:$0xff]  ;;  %v13904_v25 = vld [vmem:[#allocation13 + $0x1f78] sm:$0xff] }
 0x78f   : > { %14579 = vmatmul.mubr.msk.f32.vlgmr.msra.gmra.mxu1 %vm2202_vm5, %v16870_v23  ;;  %13334 = vmatprep.subr.mxu1 %v13162_v20  ;;  %v13920_v20 = vld [vmem:[#allocation13 + $0x1ff8] sm:$0xff]  ;;  %v13531_v15 = vld [vmem:[#allocation13 + $0x1ea0] sm:$0xff] }
 0x790   : > { %14584 = vmatmul.mubr.msk.f32.vlgmr.msra.gmra.mxu0 %vm2202_vm5, %v16918_v7  ;;  %13783 = vmatprep.subr.mxu0 %v13542_v8  ;;  %v9720_v13 = vrot.slane %v9712_v34, %v16032_v47  ;;  %v13919_v8 = vld [vmem:[#allocation13 + $0x1ff0] sm:$0xff]  ;;  %v13524_v34 = vld [vmem:[#allocation13 + $0x1e68] sm:$0xff] }
 0x791   : > { %13335 = vmatpush1.msra.mxu1 %v13161_v38  ;;  %13784 = vmatpush1.msra.mxu0 %v13541_v39  ;;  %v9596_v12 = vpop.f32.mrf.mxu1  ;;  %v13911_v39 = vld [vmem:[#allocation13 + $0x1fb0] sm:$0xff] }
 0x792   : > { %13336 = vmatprep.subr.mxu1 %v13154_v40  ;;  %13785 = vmatprep.subr.mxu0 %v13534_v27  ;;  %v16926_v51 = vpop.f32.mrf.mxu0  ;;  %v13523_v27 = vld [vmem:[#allocation13 + $0x1e60] sm:$0xff] }
 0x793   : > { %13337 = vmatpush1.msra.mxu1 %v13153_v30  ;;  %13786 = vmatpush1.msra.mxu0 %v13533_v10  ;;  %v9598_v61 = vpop.f32.mrf.mxu1  ;;  %v13903_v30 = vld [vmem:[#allocation13 + $0x1f70] sm:$0xff]  ;;  %v13516_v10 = vld [vmem:[#allocation13 + $0x1e28] sm:$0xff] }
 0x794   : > { %13338 = vmatprep.subr.mxu1 %v13146_v50  ;;  %13787 = vmatprep.subr.mxu0 %v13526_v26  ;;  %v9682_v41 = vcombine.low %v9596_v12, %v9598_v61  ;;  %v16928_v1 = vpop.f32.mrf.mxu0  ;;  %v13896_v50 = vld [vmem:[#allocation13 + $0x1f38] sm:$0xff]  ;;  %v13515_v12 = vld [vmem:[#allocation13 + $0x1e20] sm:$0xff] }
 0x795   : > { %13339 = vmatpush1.msra.mxu1 %v13145_v37  ;;  %13788 = vmatpush1.msra.mxu0 %v13525_v18  ;;  %v10061_v21 = vcombine.low %v16926_v51, %v16928_v1  ;;  %v13895_v18 = vld [vmem:[#allocation13 + $0x1f30] sm:$0xff]  ;;  %v13898_v51 = vld [vmem:[#allocation13 + $0x1f48] sm:$0xff] }
 0x796   : > { %13340 = vmatprep.subr.mxu1 %v13138_v55  ;;  %13789 = vmatprep.subr.mxu0 %v13518_v54  ;;  %v9704_v35 = vrot.slane %v9682_v41, %v16032_v47  ;;  %v13914_v55 = vld [vmem:[#allocation13 + $0x1fc8] sm:$0xff] }
 0x797   : > { %13341 = vmatpush1.msra.mxu1 %v13137_v0  ;;  %13374 = vmatprep.mubr.f32.mxu1 %v15254_v14  ;;  %v10089_v54 = vrot.slane %v10061_v21, %v16032_v47  ;;  %v13913_v0 = vld [vmem:[#allocation13 + $0x1fc0] sm:$0xff]  ;;  %v13906_v41 = vld [vmem:[#allocation13 + $0x1f88] sm:$0xff] }
 0x798   : > { %13790 = vmatpush1.msra.mxu0 %v13517_v63  ;;  %13823 = vmatprep.mubr.f32.mxu0 %v15254_v14  ;;  %v9713_v58 = vcombine.low %v9704_v35, %v9711_v42  ;;  %v13897_v42 = vld [vmem:[#allocation13 + $0x1f40] sm:$0xff] }
 0x799   : > { %14581 = vmatmul.mubr.msk.f32.vlgmr.msra.gmra.mxu1 %vm2202_vm5, %v16870_v23  ;;  %13570 = vmatprep.subr.mxu1 %v13536_v5  ;;  %v13519_v23 = vld [vmem:[#allocation13 + $0x1e40] sm:$0xff] }
 0x79a   : > { %14586 = vmatmul.mubr.msk.f32.vlgmr.msra.gmra.mxu0 %vm2202_vm5, %v16918_v7  ;;  %14019 = vmatprep.subr.mxu0 %v13916_v16  ;;  %v9727_v24 = vrot.slane %v9713_v58, %v16032_v47  ;;  %v13905_v5 = vld [vmem:[#allocation13 + $0x1f80] sm:$0xff]  ;;  %v13890_v16 = vld [vmem:[#allocation13 + $0x1f08] sm:$0xff] }
 0x79b   : > { %13571 = vmatpush1.msra.mxu1 %v13535_v62  ;;  %14020 = vmatpush1.msra.mxu0 %v13915_v4  ;;  %v9832_v49 = vpop.f32.mrf.mxu1  ;;  %v13918_v58 = vld [vmem:[#allocation13 + $0x1fe8] sm:$0xff] }
 0x79c   : > { %13572 = vmatprep.subr.mxu1 %v13528_v2  ;;  %14021 = vmatprep.subr.mxu0 %v13908_v57  ;;  %v9728_v32 = vcombine.low %v9720_v13, %v9727_v24  ;;  %v16945_v46 = vpop.f32.mrf.mxu0  ;;  %v13910_v13 = vld [vmem:[#allocation13 + $0x1fa8] sm:$0xff] }
 0x79d   : > { %13573 = vmatpush1.msra.mxu1 %v13527_v31  ;;  %14022 = vmatpush1.msra.mxu0 %v13907_v60  ;;  %v9834_v44 = vpop.f32.mrf.mxu1  ;;  %v13917_v31 = vld [vmem:[#allocation13 + $0x1fe0] sm:$0xff] }
 0x79e   : > { %13574 = vmatprep.subr.mxu1 %v13520_v59  ;;  %14023 = vmatprep.subr.mxu0 %v13900_v43  ;;  %v16948_v11 = vadd.f32 %v9728_v32, %v16900_v56  ;;  %v10058_v29 = vcombine.low %v9832_v49, %v9834_v44  ;;  %v16950_v3 = vpop.f32.mrf.mxu0  ;;  %v13909_v43 = vld [vmem:[#allocation13 + $0x1fa0] sm:$0xff]  ;;  %v13902_v49 = vld [vmem:[#allocation13 + $0x1f68] sm:$0xff] }
 0x79f   : > { %13575 = vmatpush1.msra.mxu1 %v13519_v23  ;;  %14024 = vmatpush1.msra.mxu0 %v13899_v17  ;;  %v10437_v45 = vcombine.low %v16945_v46, %v16950_v3  ;;  %v13901_v17 = vld [vmem:[#allocation13 + $0x1f60] sm:$0xff] }
 0x7a0   : > { %13576 = vmatprep.subr.mxu1 %v13512_v6  ;;  %14025 = vmatprep.subr.mxu0 %v13892_v22  ;;  %v10068_v56 = vrot.slane %v10058_v29, %v16032_v47  ;;  %v13894_v6 = vld [vmem:[#allocation13 + $0x1f28] sm:$0xff]  ;;  %v13893_v46 = vld [vmem:[#allocation13 + $0x1f20] sm:$0xff] }
 0x7a1   : > { %13577 = vmatpush1.msra.mxu1 %v13511_v19  ;;  %13610 = vmatprep.mubr.f32.mxu1 %v15254_v14  ;;  %v10453_v24 = vrot.slane %v10437_v45, %v16032_v47 }
 0x7a2   : > { %14026 = vmatpush1.msra.mxu0 %v13891_v9  ;;  %14059 = vmatprep.mubr.f32.mxu0 %v15254_v14  ;;  %v10090_v38 = vcombine.low %v10068_v56, %v10075_v28 }
 0x7a3   : > { %14583 = vmatmul.mubr.msk.f32.vlgmr.msra.gmra.mxu1 %vm2202_vm5, %v16918_v7  ;;  %13712 = vmatprep.subr.mxu1 %v13540_v33 }
 0x7a4   : > { %14588 = vmatmul.mubr.msk.f32.vlgmr.msra.gmra.mxu0 %vm2202_vm5, %v16962_v36  ;;  %14161 = vmatprep.subr.mxu0 %v13920_v20  ;;  %v10098_v1 = vrot.slane %v10090_v38, %v16032_v47 }
 0x7a5   : > { %13713 = vmatpush1.msra.mxu1 %v13539_v53  ;;  %14162 = vmatpush1.msra.mxu0 %v13919_v8  ;;  %v9974_v40 = vpop.f32.mrf.mxu1 }
 0x7a6   : > { %13714 = vmatprep.subr.mxu1 %v13532_v52  ;;  %14163 = vmatprep.subr.mxu0 %v13912_v48  ;;  %v10423_v60 = vpop.f32.mrf.mxu0 }
 0x7a7   : > { %13715 = vmatpush1.msra.mxu1 %v13531_v15  ;;  %14164 = vmatpush1.msra.mxu0 %v13911_v39  ;;  %v9976_v26 = vpop.f32.mrf.mxu1 }
 0x7a8   : > { %13716 = vmatprep.subr.mxu1 %v13524_v34  ;;  %14165 = vmatprep.subr.mxu0 %v13904_v25  ;;  %v10060_v37 = vcombine.low %v9974_v40, %v9976_v26  ;;  %v10425_v32 = vpop.f32.mrf.mxu0 }
 0x7a9   : > { %13717 = vmatpush1.msra.mxu1 %v13523_v27  ;;  %14166 = vmatpush1.msra.mxu0 %v13903_v30  ;;  %v10439_v44 = vcombine.low %v10423_v60, %v10425_v32 }
 0x7aa   : > { %13718 = vmatprep.subr.mxu1 %v13516_v10  ;;  %14167 = vmatprep.subr.mxu0 %v13896_v50  ;;  %v10082_v61 = vrot.slane %v10060_v37, %v16032_v47 }
 0x7ab   : > { %13719 = vmatpush1.msra.mxu1 %v13515_v12  ;;  %13752 = vmatprep.mubr.f32.mxu1 %v15254_v14 }
 0x7ac   : > { %14168 = vmatpush1.msra.mxu0 %v13895_v18  ;;  %14201 = vmatprep.mubr.f32.mxu0 %v15254_v14  ;;  %v10091_v63 = vcombine.low %v10082_v61, %v10089_v54 }
 0x7ad   : > { %14585 = vmatmul.mubr.msk.f32.vlgmr.msra.gmra.mxu1 %vm2202_vm5, %v16918_v7  ;;  %13948 = vmatprep.subr.mxu1 %v13914_v55  ;;  %v13889_v7 = vld [vmem:[#allocation13 + $0x1f00] sm:$0xff] }
 0x7ae   : > { %14590 = vmatmul.mubr.msk.f32.vlgmr.msra.gmra.mxu0 %vm2202_vm5, %v16962_v36  ;;  %13949 = vmatpush1.msra.mxu1 %v13913_v0  ;;  %v10105_v21 = vrot.slane %v10091_v63, %v16032_v47 }
 0x7af   : > { %13950 = vmatprep.subr.mxu1 %v13906_v41  ;;  %13988 = vmatprep.mubr.f32.mxu1 %v15254_v14  ;;  %v10210_v35 = vpop.f32.mrf.mxu1 }
 0x7b0   : > { %13951 = vmatpush1.msra.mxu1 %v13905_v5  ;;  %v10106_v62 = vcombine.low %v10098_v1, %v10105_v21  ;;  %v16999_v56 = vpop.f32.mrf.mxu0 }
 0x7b1   : > { %13952 = vmatprep.subr.mxu1 %v13898_v51  ;;  %v10212_v4 = vpop.f32.mrf.mxu1 }
 0x7b2   : > { %13953 = vmatpush1.msra.mxu1 %v13897_v42  ;;  %v10108_v2 = vadd.f32 %v10106_v62, %v16948_v11  ;;  %v10436_v57 = vcombine.low %v10210_v35, %v10212_v4  ;;  %v17003_v53 = vpop.f32.mrf.mxu0 }
 0x7b3   : > { %13954 = vmatprep.subr.mxu1 %v13890_v16 }
 0x7b4   : > { %13955 = vmatpush1.msra.mxu1 %v13889_v7  ;;  %v10446_v59 = vrot.slane %v10436_v57, %v16032_v47 }
 0x7b5   : > { %14587 = vmatmul.mubr.msk.f32.vlgmr.msra.gmra.mxu1 %vm2202_vm5, %v16962_v36  ;;  %14090 = vmatprep.subr.mxu1 %v13918_v58 }
 0x7b6   : > { %14091 = vmatpush1.msra.mxu1 %v13917_v31  ;;  %14130 = vmatprep.mubr.f32.mxu1 %v15254_v14  ;;  %v10468_v23 = vcombine.low %v10446_v59, %v10453_v24  ;;  %v10467_v14 = vrot.slane %v10439_v44, %v16032_v47 }
 0x7b7   : > { %14092 = vmatprep.subr.mxu1 %v13910_v13 }
 0x7b8   : > { %14093 = vmatpush1.msra.mxu1 %v13909_v43  ;;  %v10476_v9 = vrot.slane %v10468_v23, %v16032_v47 }
 0x7b9   : > { %14094 = vmatprep.subr.mxu1 %v13902_v49  ;;  %v10352_v22 = vpop.f32.mrf.mxu1 }
 0x7ba   : > { %14095 = vmatpush1.msra.mxu1 %v13901_v17  ;;  %v17005_v8 = vpop.f32.mrf.mxu0 }
 0x7bb   : > { %14096 = vmatprep.subr.mxu1 %v13894_v6  ;;  %v10354_v19 = vpop.f32.mrf.mxu1 }
 0x7bc   : > { %14097 = vmatpush1.msra.mxu1 %v13893_v46  ;;  %v10438_v11 = vcombine.low %v10352_v22, %v10354_v19  ;;  %v10803_v52 = vpop.f32.mrf.mxu0 }
 0x7bd   : > { %14589 = vmatmul.mubr.msk.f32.vlgmr.msra.gmra.mxu1 %vm2202_vm5, %v16962_v36 }
 0x7be   : > { %v10460_v29 = vrot.slane %v10438_v11, %v16032_v47 }
 0x7c0   : > { %v10469_v3 = vcombine.low %v10460_v29, %v10467_v14 }
 0x7c2   : > { %v10483_v45 = vrot.slane %v10469_v3, %v16032_v47  ;;  %v10817_v3 = vcombine.low %v17005_v8, %v10803_v52 }
 0x7c3   : > { %v17001_v20 = vpop.f32.mrf.mxu1 }
 0x7c4   : > { %v10484_v33 = vcombine.low %v10476_v9, %v10483_v45  ;;  %v17009_v48 = vpop.f32.mrf.mxu0  ;;  %v10845_v8 = vrot.slane %v10817_v3, %v16032_v47 }
 0x7c5   : > { %v17007_v36 = vpop.f32.mrf.mxu1 }
 0x7c6   : > { %v16997_v28 = vadd.f32 %v10484_v33, %v10108_v2  ;;  %v17013_v34 = vpop.f32.mrf.mxu0  ;;  %v10814_v9 = vcombine.low %v17001_v20, %v17007_v36 }
 0x7c7   : > { %v11193_v36 = vcombine.low %v17009_v48, %v17013_v34 }
 0x7c8   : > { %v10824_v20 = vrot.slane %v10814_v9, %v16032_v47 }
 0x7cd   : > { %v10730_v38 = vpop.f32.mrf.mxu1 }
 0x7ce   : > { %v17015_v25 = vpop.f32.mrf.mxu0 }
 0x7cf   : > { %v10732_v15 = vpop.f32.mrf.mxu1 }
 0x7d0   : > { %v17019_v30 = vpop.f32.mrf.mxu0  ;;  %v10816_v11 = vcombine.low %v10730_v38, %v10732_v15 }
 0x7d1   : > { %v11195_v38 = vcombine.low %v17015_v25, %v17019_v30 }
 0x7d7   : > { %v17011_v39 = vpop.f32.mrf.mxu1 }
 0x7d8   : > { %v17021_v10 = vpop.f32.mrf.mxu0 }
 0x7d9   : > { %v17017_v40 = vpop.f32.mrf.mxu1 }
 0x7da   : > { %v17025_v12 = vpop.f32.mrf.mxu0  ;;  %v11192_v15 = vcombine.low %v17011_v39, %v17017_v40 }
 0x7dc   : > { %v11202_v30 = vrot.slane %v11192_v15, %v16032_v47 }
 0x7e1   : > { %v11108_v27 = vpop.f32.mrf.mxu1 }
 0x7e2   : > { %v17027_v37 = vpop.f32.mrf.mxu0 }
 0x7e3   : > { %v11110_v50 = vpop.f32.mrf.mxu1 }
 0x7e4   : > { %v17033_v54 = vpop.f32.mrf.mxu0  ;;  %v11194_v45 = vcombine.low %v11108_v27, %v11110_v50  ;;  %v11223_v27 = vrot.slane %v11195_v38, %v16032_v47 }
 0x7e5   : > { %v11573_v50 = vcombine.low %v17027_v37, %v17033_v54 }
 0x7e6   : > { %v11216_v52 = vrot.slane %v11194_v45, %v16032_v47 }
 0x7eb   : > { %v17023_v26 = vpop.f32.mrf.mxu1 }
 0x7ec   : > { %v17035_v61 = vpop.f32.mrf.mxu0 }
 0x7ed   : > { %v17029_v18 = vpop.f32.mrf.mxu1 }
 0x7ee   : > { %v17041_v63 = vpop.f32.mrf.mxu0  ;;  %v11570_v48 = vcombine.low %v17023_v26, %v17029_v18 }
 0x7ef   : > { %v11949_v38 = vcombine.low %v17035_v61, %v17041_v63 }
 0x7f1   : > { %v11965_v61 = vrot.slane %v11949_v38, %v16032_v47 }
 0x7f5   : > { %v17031_v55 = vpop.f32.mrf.mxu1 }
 0x7f6   : > { %v17043_v5 = vpop.f32.mrf.mxu0 }
 0x7f7   : > { %v17037_v0 = vpop.f32.mrf.mxu1 }
 0x7f8   : > { %v17049_v21 = vpop.f32.mrf.mxu0 }
 0x7f9   : > { %v11951_v26 = vcombine.low %v17043_v5, %v17049_v21 }
 0x7ff   : > { %v17039_v41 = vpop.f32.mrf.mxu1 }
 0x800   : > { %v17051_v42 = vpop.f32.mrf.mxu0 }
 0x801   : > { %v17045_v51 = vpop.f32.mrf.mxu1 }
 0x802   : > { %v17057_v62 = vpop.f32.mrf.mxu0  ;;  %v11948_v18 = vcombine.low %v17039_v41, %v17045_v51 }
 0x809   : > { %v17047_v1 = vpop.f32.mrf.mxu1 }
 0x80a   : > { %v17059_v7 = vpop.f32.mrf.mxu0 }
 0x80b   : > { %v17053_v35 = vpop.f32.mrf.mxu1 }
 0x80c   : > { %v17065_v2 = vpop.f32.mrf.mxu0 }
 0x813   : > { %v17055_v16 = vpop.f32.mrf.mxu1 }
 0x814   : > { %v17067_v57 = vpop.f32.mrf.mxu0 }
 0x815   : > { %v17061_v4 = vpop.f32.mrf.mxu1 }
 0x816   : > { %v17073_v13 = vpop.f32.mrf.mxu0 }
 0x81d   : > { %v17063_v58 = vpop.f32.mrf.mxu1 }
 0x81e   : > { %v17075_v24 = vpop.f32.mrf.mxu0 }
 0x81f   : > { %v17069_v31 = vpop.f32.mrf.mxu1 }
 0x820   : > { %v17081_v49 = vpop.f32.mrf.mxu0 }
 0x827   : > { %v17071_v60 = vpop.f32.mrf.mxu1 }
 0x828   : > { %v17083_v23 = vpop.f32.mrf.mxu0 }
 0x829   : > { %v17077_v59 = vpop.f32.mrf.mxu1  ;;  %17337 = vst [vmem:[#allocation23_spill] sm:$0xff] %v17083_v23  ;;  %v10815_v23 = vcombine.low %v16999_v56, %v17003_v53  ;;  %v11572_v56 = vcombine.low %v17031_v55, %v17037_v0  ;;  %v11950_v0 = vcombine.low %v17047_v1, %v17053_v35  ;;  %v11601_v1 = vrot.slane %v11573_v50, %v16032_v47 }
 0x82a   : > { %v17089_v6 = vpop.f32.mrf.mxu0  ;;  %v11580_v35 = vrot.slane %v11570_v48, %v16032_v47 }
 0x82b   : > { %17338 = vst [vmem:[#allocation24_spill] sm:$0xff] %v17089_v6  ;;  %v10838_v6 = vrot.slane %v10816_v11, %v16032_v47  ;;  %v10831_v39 = vrot.slane %v10815_v23, %v16032_v47  ;;  %v11209_v11 = vrot.slane %v11193_v36, %v16032_v47  ;;  %v11571_v23 = vcombine.low %v17021_v10, %v17025_v12 }
 0x82c   : > { %v11594_v3 = vrot.slane %v11572_v56, %v16032_v47  ;;  %v11972_v15 = vrot.slane %v11950_v0, %v16032_v47  ;;  %v11958_v36 = vrot.slane %v11948_v18, %v16032_v47 }
 0x82d   : > { %v10847_v40 = vcombine.low %v10838_v6, %v10845_v8  ;;  %v10846_v55 = vcombine.low %v10824_v20, %v10831_v39  ;;  %v11225_v6 = vcombine.low %v11216_v52, %v11223_v27  ;;  %v11224_v54 = vcombine.low %v11202_v30, %v11209_v11 }
 0x82e   : > { %v11587_v5 = vrot.slane %v11571_v23, %v16032_v47  ;;  %v11603_v41 = vcombine.low %v11594_v3, %v11601_v1  ;;  %v11979_v20 = vrot.slane %v11951_v26, %v16032_v47  ;;  %v12328_v30 = vcombine.low %v17063_v58, %v17069_v31 }
 0x82f   : > { %v10861_v37 = vrot.slane %v10847_v40, %v16032_v47  ;;  %v10854_v12 = vrot.slane %v10846_v55, %v16032_v47  ;;  %v11239_v21 = vrot.slane %v11225_v6, %v16032_v47  ;;  %v11232_v52 = vrot.slane %v11224_v54, %v16032_v47 }
 0x830   : > { %v11602_v56 = vcombine.low %v11580_v35, %v11587_v5  ;;  %v11981_v63 = vcombine.low %v11972_v15, %v11979_v20  ;;  %v17169_v27 = vrot.slane %v11603_v41, %v16032_v47  ;;  %v11980_v0 = vcombine.low %v11958_v36, %v11965_v61  ;;  %v17341_v15 = vld [vmem:[#allocation23_spill] sm:$0xff] }
 0x831   : > { %v17079_v43 = vpop.f32.mrf.mxu1  ;;  %v10862_v8 = vcombine.low %v10854_v12, %v10861_v37  ;;  %v11240_v40 = vcombine.low %v11232_v52, %v11239_v21  ;;  %v12327_v11 = vcombine.low %v17051_v42, %v17057_v62  ;;  %v12329_v6 = vcombine.low %v17059_v7, %v17065_v2 }
 0x832   : > { %v17091_v46 = vpop.f32.mrf.mxu0  ;;  %v17181_v23 = vrot.slane %v11602_v56, %v16032_v47  ;;  %v12326_v3 = vcombine.low %v17055_v16, %v17061_v4  ;;  %v17190_v37 = vrot.slane %v11981_v63, %v16032_v47  ;;  %v12350_v26 = vrot.slane %v12328_v30, %v16032_v47  ;;  %v17340_v38 = vld [vmem:[#allocation24_spill] sm:$0xff] }
 0x833   : > { %v17085_v17 = vpop.f32.mrf.mxu1  ;;  %v10864_v55 = vadd.f32 %v10862_v8, %v16997_v28  ;;  %v12707_v28 = vcombine.low %v17075_v24, %v17081_v49  ;;  %v12704_v7 = vcombine.low %v17071_v60, %v17077_v59  ;;  %v11988_v4 = vrot.slane %v11980_v0, %v16032_v47 }
 0x834   : > { %v17097_v19 = vpop.f32.mrf.mxu0  ;;  %v12706_v58 = vcombine.low %v17079_v43, %v17085_v17  ;;  %v11618_v62 = vcombine.low %v17181_v23, %v17169_v27  ;;  %v12343_v2 = vrot.slane %v12327_v11, %v16032_v47  ;;  %v12705_v43 = vcombine.low %v17067_v57, %v17073_v13 }
 0x835   : > { %v11242_v42 = vadd.f32 %v11240_v40, %v10864_v55  ;;  %v12357_v49 = vrot.slane %v12329_v6, %v16032_v47  ;;  %v12336_v17 = vrot.slane %v12326_v3, %v16032_v47  ;;  %v11996_v1 = vcombine.low %v11988_v4, %v17190_v37 }
 0x836   : > { %v12728_v18 = vrot.slane %v12706_v58, %v16032_v47  ;;  %v12735_v35 = vrot.slane %v12707_v28, %v16032_v47  ;;  %v13085_v57 = vcombine.low %v17091_v46, %v17097_v19  ;;  %v13083_v5 = vcombine.low %v17341_v15, %v17340_v38 }
 0x837   : > { %v12358_v19 = vcombine.low %v12336_v17, %v12343_v2 }
 0x838   : > { %v12737_v41 = vcombine.low %v12728_v18, %v12735_v35  ;;  %v13099_v27 = vrot.slane %v13083_v5, %v16032_v47 }
 0x839   : > { %v12366_v0 = vrot.slane %v12358_v19, %v16032_v47 }
 0x83b   : > { %v17087_v32 = vpop.f32.mrf.mxu1 }
 0x83c   : > { %v17099_v14 = vpop.f32.mrf.mxu0 }
 0x83d   : > { %v17093_v22 = vpop.f32.mrf.mxu1  ;;  %17339 = vst [vmem:[#allocation25_spill] sm:$0xff] %v17099_v14 }
 0x83e   : > { %v17115_v14 = vpop.f32.mrf.mxu0  ;;  %v13082_v13 = vcombine.low %v17087_v32, %v17093_v22 }
 0x844   : > { %v17342_v32 = vld [vmem:[#allocation25_spill] sm:$0xff] }
 0x845   : > { %v17095_v44 = vpop.f32.mrf.mxu1  ;;  %v13461_v22 = vcombine.low %v17342_v32, %v17115_v14 }
 0x846   : > { %v17124_v53 = vpop.f32.mrf.mxu0 }
 0x847   : > { %v17101_v29 = vpop.f32.mrf.mxu1 }
 0x848   : > { %v17143_v9 = vpop.f32.mrf.mxu0  ;;  %v13084_v24 = vcombine.low %v17095_v44, %v17101_v29  ;;  %v12359_v44 = vcombine.low %v12350_v26, %v12357_v49  ;;  %v12714_v29 = vrot.slane %v12704_v7, %v16032_v47 }
 0x849   : > { %v13463_v12 = vcombine.low %v17124_v53, %v17143_v9  ;;  %v13113_v9 = vrot.slane %v13085_v57, %v16032_v47 }
 0x84a   : > { %v13106_v21 = vrot.slane %v13084_v24, %v16032_v47  ;;  %v12373_v52 = vrot.slane %v12359_v44, %v16032_v47 }
 0x84b   : > { %v13491_v61 = vrot.slane %v13463_v12, %v16032_v47 }
 0x84c   : > { %v13115_v30 = vcombine.low %v13106_v21, %v13113_v9  ;;  %v12374_v37 = vcombine.low %v12366_v0, %v12373_v52 }
 0x84e   : > { %v13129_v26 = vrot.slane %v13115_v30, %v16032_v47 }
 0x84f   : > { %v17106_v33 = vpop.f32.mrf.mxu1 }
 0x850   : > { %v17152_v45 = vpop.f32.mrf.mxu0 }
 0x851   : > { %v17126_v25 = vpop.f32.mrf.mxu1 }
 0x852   : > { %v17165_v39 = vpop.f32.mrf.mxu0 }
 0x853   : > { %v13839_v55 = vcombine.low %v17152_v45, %v17165_v39 }
 0x855   : > { %v13855_v7 = vrot.slane %v13839_v55, %v16032_v47 }
 0x859   : > { %v17135_v34 = vpop.f32.mrf.mxu1 }
 0x85a   : > { %v17173_v50 = vpop.f32.mrf.mxu0 }
 0x85b   : > { %v13378_v10 = vpop.f32.mrf.mxu1 }
 0x85c   : > { %v13827_v16 = vpop.f32.mrf.mxu0  ;;  %v13462_v54 = vcombine.low %v17135_v34, %v13378_v10  ;;  %v13460_v34 = vcombine.low %v17106_v33, %v17126_v25  ;;  %v12721_v10 = vrot.slane %v12705_v43, %v16032_v47  ;;  %v13092_v33 = vrot.slane %v13082_v13, %v16032_v47 }
 0x85d   : > { %v13841_v25 = vcombine.low %v17173_v50, %v13827_v16 }
 0x85e   : > { %v13484_v8 = vrot.slane %v13462_v54, %v16032_v47  ;;  %v12736_v56 = vcombine.low %v12714_v29, %v12721_v10  ;;  %v13470_v14 = vrot.slane %v13460_v34, %v16032_v47  ;;  %v13114_v23 = vcombine.low %v13092_v33, %v13099_v27 }
 0x85f   : > { %v13869_v6 = vrot.slane %v13841_v25, %v16032_v47 }
 0x860   : > { %v13493_v11 = vcombine.low %v13484_v8, %v13491_v61  ;;  %v12744_v28 = vrot.slane %v12736_v56, %v16032_v47 }
 0x862   : > { %v13507_v24 = vrot.slane %v13493_v11, %v16032_v47 }
 0x863   : > { %v17160_v51 = vpop.f32.mrf.mxu1 }
 0x864   : > { %v17209_v60 = vpop.f32.mrf.mxu0 }
 0x865   : > { %v17175_v48 = vpop.f32.mrf.mxu1 }
 0x866   : > { %v14063_v20 = vpop.f32.mrf.mxu0  ;;  %v13838_v36 = vcombine.low %v17160_v51, %v17175_v48  ;;  %v12751_v51 = vrot.slane %v12737_v41, %v16032_v47  ;;  %v13477_v48 = vrot.slane %v13461_v22, %v16032_v47 }
 0x867   : > { %v14217_v16 = vcombine.low %v17209_v60, %v14063_v20 }
 0x868   : > { %v13848_v3 = vrot.slane %v13838_v36, %v16032_v47  ;;  %v13492_v45 = vcombine.low %v13470_v14, %v13477_v48  ;;  %v12752_v43 = vcombine.low %v12744_v28, %v12751_v51 }
 0x869   : > { %v14233_v60 = vrot.slane %v14217_v16, %v16032_v47 }
 0x86d   : > { %v13754_v31 = vpop.f32.mrf.mxu1 }
 0x86e   : > { %v14203_v63 = vpop.f32.mrf.mxu0 }
 0x86f   : > { %v13756_v59 = vpop.f32.mrf.mxu1 }
 0x870   : > { %v13840_v46 = vcombine.low %v13754_v31, %v13756_v59  ;;  %v11620_v31 = vadd.f32 %v11618_v62, %v11242_v42  ;;  %v14205_v39 = vpop.f32.mrf.mxu0  ;;  %v13122_v42 = vrot.slane %v13114_v23, %v16032_v47  ;;  %v13870_v62 = vcombine.low %v13848_v3, %v13855_v7 }
 0x871   : > { %v14219_v17 = vcombine.low %v14203_v63, %v14205_v39  ;;  %v13500_v59 = vrot.slane %v13492_v45, %v16032_v47 }
 0x872   : > { %v13862_v50 = vrot.slane %v13840_v46, %v16032_v47  ;;  %v11998_v2 = vadd.f32 %v11996_v1, %v11620_v31  ;;  %v13130_v57 = vcombine.low %v13122_v42, %v13129_v26  ;;  %v13878_v12 = vrot.slane %v13870_v62, %v16032_v47 }
 0x873   : > { %v13508_v29 = vcombine.low %v13500_v59, %v13507_v24  ;;  %v14247_v34 = vrot.slane %v14219_v17, %v16032_v47 }
 0x874   : > { %v13871_v4 = vcombine.low %v13862_v50, %v13869_v6  ;;  %v12376_v54 = vadd.f32 %v12374_v37, %v11998_v2 }
 0x875   : > { %v13990_v53 = vpop.f32.mrf.mxu1 }
 0x876   : > { %v13885_v1 = vrot.slane %v13871_v4, %v16032_v47  ;;  %v12754_v44 = vadd.f32 %v12752_v43, %v12376_v54 }
 0x877   : > { %v13992_v40 = vpop.f32.mrf.mxu1 }
 0x878   : > { %v14216_v58 = vcombine.low %v13990_v53, %v13992_v40  ;;  %v13132_v15 = vadd.f32 %v13130_v57, %v12754_v44  ;;  %v13886_v5 = vcombine.low %v13878_v12, %v13885_v1 }
 0x87a   : > { %v14226_v18 = vrot.slane %v14216_v58, %v16032_v47  ;;  %v13510_v46 = vadd.f32 %v13508_v29, %v13132_v15 }
 0x87c   : > { %v14248_v10 = vcombine.low %v14226_v18, %v14233_v60  ;;  %v13888_v32 = vadd.f32 %v13886_v5, %v13510_v46 }
 0x87d   : > { %v14132_v49 = vpop.f32.mrf.mxu1 }
 0x87e   : > { %v14256_v19 = vrot.slane %v14248_v10, %v16032_v47 }
 0x87f   : > { %v14134_v35 = vpop.f32.mrf.mxu1 }
 0x880   : > { %v14218_v13 = vcombine.low %v14132_v49, %v14134_v35 }
 0x882   : > { %v14240_v38 = vrot.slane %v14218_v13, %v16032_v47 }
 0x884   : > { %v14249_v21 = vcombine.low %v14240_v38, %v14247_v34 }
 0x886   : > { %v14263_v41 = vrot.slane %v14249_v21, %v16032_v47 }
 0x888   : > { %v14264_v22 = vcombine.low %v14256_v19, %v14263_v41 }
 0x88a   : > { %v14266_v8 = vadd.f32 %v14264_v22, %v13888_v32 }
 0x88c   : > { %14267 = vst [vmem:[%s444_s16] sm:$0xff] %v14266_v8 }
 0x88d   : > { %15169 = shalt.err (!%p15166_p6)
}
 0x88e   : > { %s15170_s1 = scalar_lea.hbm %s14281_s22, 128  ;;  %s15174_s3 = scalar_lea.hbm %s17306_s9, 256 }
 0x88f   : > { %p15171_p2 = scmp.ne.s32.totalorder %s14281_s22, %s15170_s1  ;;  %p15175_p1 = scmp.lt.s32.totalorder %s14281_s22, %s17306_s9 }
 0x890   : > { %p15176_p4 = scmp.lt.s32.totalorder %s15174_s3, %s15170_s1 }
 0x891   : > { %p15172_p5 = pnand %p15171_p2, %p17343_p13 }
 0x892   : > { %p15177_p11 = por %p15176_p4, %p15175_p1 }
 0x893   : > { %p15173_p10 = pneg %p15172_p5 }
 0x895   : > { %p15178_p0 = pnand %p15177_p11, %p15173_p10 }
 0x897   : > { %15181 = shalt.err (!%p15178_p0)
}
 0x898   : > { %14849 = dma.vmem_to_hbm [thread:$0]  (%p17343_p13), %s14284_s18, 128, %s14281_s22, %s14269_s24  }
 0x899 PF: > { %s14295_s16 = sand.u32 1, %s15224_s30   ;;  %p17344_p7 = scmp.ne.s32.totalorder %s17323_s29, 0 }
 0x89a   : > { %p17345_p9 = scmp.ge.s32.totalorder %s15236_s12, 2  ;;  %s14296_s14 = scalar_lea.sflag [#allocation4], %s14295_s16 }
 0x89c   : > { %p14878_p8 = pnand %p17345_p9, %p17344_p7 }
 0x89e   : > { %p14879_p3 = pneg %p14878_p8 }
 0x8a0   : > { %15219 = dma.done.wait (%p14879_p3), %s14296_s14, 128  }
 0x8a1   : > { %15221 = vsyncadd (%p14879_p3), %s14296_s14, 4294967168  ;;  %p26_p12 = scmp.ge.s32.totalorder %s15413_s19, 4   ;;  %s17346_s30 = smov %s15228_s10 }
 0x8a2   : > { %s17347_s10 = smov %s15232_s11  ;;  %s17348_s11 = smov %s15425_s25 }
 0x8a3   : > { %s17349_s12 = smov %s15413_s19  ;;  %28 = sbr.rel (!%p26_p12) target bundleno = 13 (0xd), region = 129 }
 0x8a8   :  { %14301 = vsyncpa [#allocation3], 1 }
 0x8a9   :  { %14303 = vsyncpa [#allocation3 + $0x1], 1 }
 0x8aa   :  { %14304 = vsyncpa [#allocation6], 1 }
 0x8ab   :  { %14305 = vsyncpa [#allocation9], 1 }
 0x8ac   :  { %14306 = vsyncpa [#allocation12], 1 }
 0x8ad   :  { %14307 = vsyncpa [#allocation15], 1 }
 0x8ae   :  { %14308 = vsyncpa [#allocation4], 1 }
 0x8af   :  { %14310 = vsyncpa [#allocation4 + $0x1], 1 }

</bundles_post_ra>
